<compile_context>
chip_gen: v7x
topology: tpu7x:2x2x1
jax: 0.10.0
libtpu: 0.0.40
codegen_flags: <defaults>
</compile_context>

<pallas_src>
import jax
import jax.numpy as jnp
from jax import lax
from jax.experimental import pallas as pl
from jax.experimental.pallas import tpu as pltpu


# ----------------------------------------------------------------------------
# Shared single-layer LSTM kernel (grid over time blocks).
# ----------------------------------------------------------------------------
def _make_lstm_kernel(T_blk, B, H, T_total, with_logits):
    needs_mask = (T_total % T_blk) != 0

    def _sigmoid(z):
        # sigmoid(x) == 0.5 * tanh(0.5 * x) + 0.5  -> single EUP push
        return 0.5 * jnp.tanh(0.5 * z) + 0.5

    def kernel(*refs):
        if with_logits:
            (x_ref, wih_ref, whh_ref, b_ref, h0_ref, c0_ref, wout_ref, bout_ref,
             h_out, c_out, logits_out, gx_scr, h_scr, c_scr, hseq_scr) = refs
        else:
            (x_ref, wih_ref, whh_ref, b_ref, h0_ref, c0_ref,
             h_out, c_out, gx_scr, h_scr, c_scr) = refs

        tb = pl.program_id(0)

        @pl.when(tb == 0)
        def _():
            h_scr[...] = h0_ref[...]
            c_scr[...] = c0_ref[...]

        # Hoisted input projection + bias for the whole time block:
        # one well-shaped MXU matmul, off the serial dependence chain.
        gx_scr[...] = (
            jnp.dot(x_ref[...], wih_ref[...],
                    preferred_element_type=jnp.float32)
            + b_ref[...])

        h = h_scr[...]          # (B, H) f32, lives in vregs inside the loop
        c = c_scr[...]

        # Fully unrolled recurrence (T_blk is a compile-time constant).
        for t in range(T_blk):
            gx_t = gx_scr[pl.ds(t * B, B), :]                       # (B, 4H) f32
            gates = gx_t + jnp.dot(h.astype(jnp.bfloat16), whh_ref[...],
                                   preferred_element_type=jnp.float32)
            i_g = _sigmoid(gates[:, 0 * H:1 * H])
            f_g = _sigmoid(gates[:, 1 * H:2 * H])
            g_g = jnp.tanh(gates[:, 2 * H:3 * H])
            o_g = _sigmoid(gates[:, 3 * H:4 * H])
            c_new = f_g * c + i_g * g_g
            h_new = o_g * jnp.tanh(c_new)
            if needs_mask:
                valid = (tb * T_blk + t) < T_total
                h = jnp.where(valid, h_new, h)
                c = jnp.where(valid, c_new, c)
            else:
                h, c = h_new, c_new
            if with_logits:
                hseq_scr[pl.ds(t * B, B), :] = h

        h_scr[...] = h
        c_scr[...] = c

        @pl.when(tb == pl.num_programs(0) - 1)
        def _():
            h_out[...] = h
            c_out[...] = c

        if with_logits:
            # Fused output_fc: one (T_blk*B, H) x (H, V) matmul per block.
            logits_out[...] = (
                jnp.dot(hseq_scr[...].astype(jnp.bfloat16), wout_ref[...],
                        preferred_element_type=jnp.float32)
                + bout_ref[...])

    return kernel


def _lstm_pallas(x_btd, w_ih, w_hh, b_ih, b_hh, h0, c0,
                 w_out=None, b_out=None, *, t_blk=8):
    """Single-layer LSTM (batch_first semantics) with initial state (h0, c0).

    Returns (h_T, c_T) and, if w_out/b_out are given, also the per-step logits
    h_t @ w_out^T + b_out with shape (B, T, V).
    """
    B, T, D = x_btd.shape
    H = w_hh.shape[1]
    G = 4 * H
    with_logits = w_out is not None

    T_blk = max(1, min(int(t_blk), T))
    n_blk = -(-T // T_blk)              # cdiv
    T_pad = n_blk * T_blk

    # Time-major, flattened to (T*B, D) so each block's input projection is a
    # single flat matmul.  (For very long sequences, read batch-first tiles
    # directly from HBM via the BlockSpec index_map instead of this transpose.)
    x_tbd = jnp.transpose(x_btd, (1, 0, 2)).astype(jnp.float32)
    if T_pad != T:
        x_tbd = jnp.pad(x_tbd, ((0, T_pad - T), (0, 0), (0, 0)))
    x2d = x_tbd.reshape(T_pad * B, D).astype(jnp.bfloat16)

    wih_t = jnp.transpose(w_ih).astype(jnp.bfloat16)            # (D, 4H)
    whh_t = jnp.transpose(w_hh).astype(jnp.bfloat16)            # (H, 4H)
    bias = (b_ih + b_hh).reshape(1, G).astype(jnp.float32)
    h0 = h0.astype(jnp.float32)
    c0 = c0.astype(jnp.float32)

    in_specs = [
        pl.BlockSpec((T_blk * B, D), lambda t: (t, 0)),   # x streamed over time
        pl.BlockSpec((D, G), lambda t: (0, 0)),
        pl.BlockSpec((H, G), lambda t: (0, 0)),
        pl.BlockSpec((1, G), lambda t: (0, 0)),
        pl.BlockSpec((B, H), lambda t: (0, 0)),
        pl.BlockSpec((B, H), lambda t: (0, 0)),
    ]
    out_specs = [
        pl.BlockSpec((B, H), lambda t: (0, 0)),
        pl.BlockSpec((B, H), lambda t: (0, 0)),
    ]
    out_shape = [
        jax.ShapeDtypeStruct((B, H), jnp.float32),
        jax.ShapeDtypeStruct((B, H), jnp.float32),
    ]
    scratch = [
        pltpu.VMEM((T_blk * B, G), jnp.float32),   # hoisted x @ W_ih^T + b
        pltpu.VMEM((B, H), jnp.float32),           # h carried across blocks
        pltpu.VMEM((B, H), jnp.float32),           # c carried across blocks
    ]
    args = [x2d, wih_t, whh_t, bias, h0, c0]

    if with_logits:
        V = w_out.shape[0]
        wout_t = jnp.transpose(w_out).astype(jnp.bfloat16)      # (H, V)
        bout = b_out.reshape(1, V).astype(jnp.float32)
        in_specs += [pl.BlockSpec((H, V), lambda t: (0, 0)),
                     pl.BlockSpec((1, V), lambda t: (0, 0))]
        out_specs.append(pl.BlockSpec((T_blk * B, V), lambda t: (t, 0)))
        out_shape.append(jax.ShapeDtypeStruct((T_pad * B, V), jnp.float32))
        scratch.append(pltpu.VMEM((T_blk * B, H), jnp.float32))  # hidden seq
        args += [wout_t, bout]

    kernel = _make_lstm_kernel(T_blk, B, H, T, with_logits)
    outs = pl.pallas_call(
        kernel,
        grid=(n_blk,),
        in_specs=in_specs,
        out_specs=tuple(out_specs),
        out_shape=tuple(out_shape),
        scratch_shapes=scratch,
        compiler_params=pltpu.CompilerParams(
            dimension_semantics=("arbitrary",)),
    )(*args)

    if with_logits:
        h_fin, c_fin, logits_flat = outs
        V = w_out.shape[0]
        logits = logits_flat.reshape(T_pad, B, V)[:T]            # (T, B, V)
        return h_fin, c_fin, jnp.transpose(logits, (1, 0, 2))    # (B, T, V)
    h_fin, c_fin = outs
    return h_fin, c_fin


# ----------------------------------------------------------------------------
# State-fusion kernel: fuse_h / fuse_c linears on concatenated encoder states.
# ----------------------------------------------------------------------------
def _fuse_kernel(vh_ref, ah_ref, vc_ref, ac_ref,
                 wh_ref, bh_ref, wc_ref, bc_ref, h0_ref, c0_ref):
    H = vh_ref.shape[1]

    def fused(a_ref, b_ref, w_ref, bias_ref):
        # concat([a, b], -1) @ W  ==  a @ W[:H] + b @ W[H:]
        return (jnp.dot(a_ref[...].astype(jnp.bfloat16), w_ref[pl.ds(0, H), :],
                        preferred_element_type=jnp.float32)
                + jnp.dot(b_ref[...].astype(jnp.bfloat16), w_ref[pl.ds(H, H), :],
                          preferred_element_type=jnp.float32)
                + bias_ref[...])

    h0_ref[...] = fused(vh_ref, ah_ref, wh_ref, bh_ref)
    c0_ref[...] = fused(vc_ref, ac_ref, wc_ref, bc_ref)


def _fuse_states(vh, ah, vc, ac, w_h, b_h, w_c, b_c):
    B, H = vh.shape
    wh_t = jnp.transpose(w_h).astype(jnp.bfloat16)      # (2H, H)
    wc_t = jnp.transpose(w_c).astype(jnp.bfloat16)
    bh = b_h.reshape(1, H).astype(jnp.float32)
    bc = b_c.reshape(1, H).astype(jnp.float32)
    vmem = pl.BlockSpec(memory_space=pltpu.MemorySpace.VMEM)
    return pl.pallas_call(
        _fuse_kernel,
        out_shape=(jax.ShapeDtypeStruct((B, H), jnp.float32),
                   jax.ShapeDtypeStruct((B, H), jnp.float32)),
        in_specs=[vmem] * 8,
        out_specs=(vmem, vmem),
    )(vh, ah, vc, ac, wh_t, bh, wc_t, bc)


# ----------------------------------------------------------------------------
# Full MultiModalLSTM forward.
# ----------------------------------------------------------------------------
def multimodal_lstm_forward(params, video_feats, audio_feats, text_tokens, *,
                            t_blk=8):
    B = video_feats.shape[0]
    H = params['video']['w_hh'].shape[1]
    zeros = jnp.zeros((B, H), jnp.float32)

    pv = params['video']
    vh, vc = _lstm_pallas(video_feats, pv['w_ih'], pv['w_hh'], pv['b_ih'],
                          pv['b_hh'], zeros, zeros, t_blk=t_blk)
    pa = params['audio']
    ah, ac = _lstm_pallas(audio_feats, pa['w_ih'], pa['w_hh'], pa['b_ih'],
                          pa['b_hh'], zeros, zeros, t_blk=t_blk)

    h0, c0 = _fuse_states(vh, ah, vc, ac,
                          params['fuse_h']['w'], params['fuse_h']['b'],
                          params['fuse_c']['w'], params['fuse_c']['b'])

    # TODO(synk): the nn.Embedding gather stays in XLA (plain jnp indexing); a
    # Pallas scalar-prefetch gather buys nothing at this embedding size.
    emb = params['embedding'][text_tokens].astype(jnp.float32)   # (B, S, E)

    pd = params['decoder']
    _, _, logits = _lstm_pallas(emb, pd['w_ih'], pd['w_hh'], pd['b_ih'],
                                pd['b_hh'], h0, c0,
                                w_out=params['out_fc']['w'],
                                b_out=params['out_fc']['b'], t_blk=t_blk)
    return logits


# ----------------------------------------------------------------------------
# Pure-JAX f32 reference (matches the PyTorch module).
# ----------------------------------------------------------------------------
def _lstm_ref(x, w_ih, w_hh, b_ih, b_hh, h0, c0):
    H = w_hh.shape[1]

    def step(carry, x_t):
        h, c = carry
        gates = x_t @ w_ih.T + h @ w_hh.T + b_ih + b_hh
        i = jax.nn.sigmoid(gates[:, 0 * H:1 * H])
        f = jax.nn.sigmoid(gates[:, 1 * H:2 * H])
        g = jnp.tanh(gates[:, 2 * H:3 * H])
        o = jax.nn.sigmoid(gates[:, 3 * H:4 * H])
        c_new = f * c + i * g
        h_new = o * jnp.tanh(c_new)
        return (h_new, c_new), h_new

    (h_f, c_f), hs = lax.scan(step, (h0, c0), jnp.transpose(x, (1, 0, 2)))
    return h_f, c_f, jnp.transpose(hs, (1, 0, 2))        # hs: (B, T, H)


def _multimodal_ref(params, video, audio, tokens):
    B = video.shape[0]
    H = params['video']['w_hh'].shape[1]
    z = jnp.zeros((B, H), jnp.float32)

    pv = params['video']
    vh, vc, _ = _lstm_ref(video, pv['w_ih'], pv['w_hh'], pv['b_ih'], pv['b_hh'], z, z)
    pa = params['audio']
    ah, ac, _ = _lstm_ref(audio, pa['w_ih'], pa['w_hh'], pa['b_ih'], pa['b_hh'], z, z)

    fused_h = jnp.concatenate([vh, ah], -1) @ params['fuse_h']['w'].T + params['fuse_h']['b']
    fused_c = jnp.concatenate([vc, ac], -1) @ params['fuse_c']['w'].T + params['fuse_c']['b']

    emb = params['embedding'][tokens]
    pd = params['decoder']
    _, _, hs = _lstm_ref(emb, pd['w_ih'], pd['w_hh'], pd['b_ih'], pd['b_hh'],
                         fused_h, fused_c)
    return hs @ params['out_fc']['w'].T + params['out_fc']['b']


if __name__ == "__main__":
    B, H, V, E = 8, 128, 256, 64
    DV, DA = 32, 16          # video / audio feature dims
    TV, TA, TS = 12, 8, 10   # video frames / audio frames / text length

    ks = list(jax.random.split(jax.random.PRNGKey(0), 10))

    def lstm_params(kk, D, Hd):
        bound = 1.0 / float(Hd) ** 0.5
        k1, k2, k3, k4 = jax.random.split(kk, 4)
        return dict(
            w_ih=jax.random.uniform(k1, (4 * Hd, D), jnp.float32, -bound, bound),
            w_hh=jax.random.uniform(k2, (4 * Hd, Hd), jnp.float32, -bound, bound),
            b_ih=jax.random.uniform(k3, (4 * Hd,), jnp.float32, -bound, bound),
            b_hh=jax.random.uniform(k4, (4 * Hd,), jnp.float32, -bound, bound),
        )

    def linear_params(kk, d_in, d_out):
        bound = 1.0 / float(d_in) ** 0.5
        k1, k2 = jax.random.split(kk)
        return dict(
            w=jax.random.uniform(k1, (d_out, d_in), jnp.float32, -bound, bound),
            b=jax.random.uniform(k2, (d_out,), jnp.float32, -bound, bound),
        )

    params = dict(
        video=lstm_params(ks[0], DV, H),
        audio=lstm_params(ks[1], DA, H),
        decoder=lstm_params(ks[2], E, H),
        fuse_h=linear_params(ks[3], 2 * H, H),
        fuse_c=linear_params(ks[4], 2 * H, H),
        out_fc=linear_params(ks[5], H, V),
        embedding=jax.random.normal(ks[6], (V, E), jnp.float32),
    )

    video = jax.random.normal(ks[7], (B, TV, DV), jnp.float32)
    audio = jax.random.normal(ks[8], (B, TA, DA), jnp.float32)
    tokens = jax.random.randint(ks[9], (B, TS), 0, V, dtype=jnp.int32)

    fwd = jax.jit(multimodal_lstm_forward)
    logits = fwd(params, video, audio, tokens)
    jax.block_until_ready(logits)

    logits_ref = _multimodal_ref(params, video, audio, tokens)
    assert logits.shape == (B, TS, V)
    err = float(jnp.max(jnp.abs(logits - logits_ref)))
    assert err < 5e-2, f"max abs err {err}"  # bf16 MXU inputs, f32 accumulate
    print("KERNEL_OK")
</pallas_src>

<mosaic_0001>
module attributes {stable_mosaic.version = 11 : i64} {
  func.func @kernel(%arg0: i32, %arg1: memref<64x32xbf16, #tpu.memory_space<vmem>>, %arg2: memref<32x512xbf16, #tpu.memory_space<vmem>>, %arg3: memref<128x512xbf16, #tpu.memory_space<vmem>>, %arg4: memref<1x512xf32, #tpu.memory_space<vmem>>, %arg5: memref<8x128xf32, #tpu.memory_space<vmem>>, %arg6: memref<8x128xf32, #tpu.memory_space<vmem>>, %arg7: memref<8x128xf32, #tpu.memory_space<vmem>>, %arg8: memref<8x128xf32, #tpu.memory_space<vmem>>, %arg9: memref<64x512xf32, #tpu.memory_space<vmem>>, %arg10: memref<8x128xf32, #tpu.memory_space<vmem>>, %arg11: memref<8x128xf32, #tpu.memory_space<vmem>>) attributes {dimension_semantics = [#tpu.dimension_semantics<arbitrary>], iteration_bounds = array<i64: 2>, scalar_prefetch = 0 : i64, scratch_operands = 3 : i64, tpu.core_type = #tpu.core_type<tc>, window_params = [{transform_indices = @transform_0, window_bounds = array<i64: 64, 32>}, {pipeline_mode = #tpu.pipeline_mode<synchronous>, transform_indices = @transform_1, window_bounds = array<i64: 32, 512>}, {pipeline_mode = #tpu.pipeline_mode<synchronous>, transform_indices = @transform_2, window_bounds = array<i64: 128, 512>}, {pipeline_mode = #tpu.pipeline_mode<synchronous>, transform_indices = @transform_3, window_bounds = array<i64: 1, 512>}, {pipeline_mode = #tpu.pipeline_mode<synchronous>, transform_indices = @transform_4, window_bounds = array<i64: 8, 128>}, {pipeline_mode = #tpu.pipeline_mode<synchronous>, transform_indices = @transform_5, window_bounds = array<i64: 8, 128>}, {pipeline_mode = #tpu.pipeline_mode<synchronous>, transform_indices = @transform_6, window_bounds = array<i64: 8, 128>}, {pipeline_mode = #tpu.pipeline_mode<synchronous>, transform_indices = @transform_7, window_bounds = array<i64: 8, 128>}]} {
    %c0_i32 = arith.constant 0 : i32
    %0 = arith.cmpi eq, %arg0, %c0_i32 : i32
    %1 = arith.extui %0 : i1 to i32
    %c0_i32_0 = arith.constant 0 : i32
    %2 = arith.cmpi ne, %1, %c0_i32_0 : i32
    scf.if %2 {
      %c0_138 = arith.constant 0 : index
      %c0_139 = arith.constant 0 : index
      %345 = vector.load %arg5[%c0_138, %c0_139] : memref<8x128xf32, #tpu.memory_space<vmem>>, vector<8x128xf32>
      %c0_140 = arith.constant 0 : index
      %c0_141 = arith.constant 0 : index
      %346 = vector.load %arg10[%c0_140, %c0_141] : memref<8x128xf32, #tpu.memory_space<vmem>>, vector<8x128xf32>
      tpu.vector_store %arg10[%c0_140, %c0_141], %345 {strides = array<i32>} : memref<8x128xf32, #tpu.memory_space<vmem>>, vector<8x128xf32>,
      %c0_142 = arith.constant 0 : index
      %c0_143 = arith.constant 0 : index
      %347 = vector.load %arg6[%c0_142, %c0_143] : memref<8x128xf32, #tpu.memory_space<vmem>>, vector<8x128xf32>
      %c0_144 = arith.constant 0 : index
      %c0_145 = arith.constant 0 : index
      %348 = vector.load %arg11[%c0_144, %c0_145] : memref<8x128xf32, #tpu.memory_space<vmem>>, vector<8x128xf32>
      tpu.vector_store %arg11[%c0_144, %c0_145], %347 {strides = array<i32>} : memref<8x128xf32, #tpu.memory_space<vmem>>, vector<8x128xf32>,
    } else {
    }
    %c0 = arith.constant 0 : index
    %c0_1 = arith.constant 0 : index
    %3 = vector.load %arg1[%c0, %c0_1] : memref<64x32xbf16, #tpu.memory_space<vmem>>, vector<64x32xbf16>
    %c0_2 = arith.constant 0 : index
    %c0_3 = arith.constant 0 : index
    %4 = vector.load %arg2[%c0_2, %c0_3] : memref<32x512xbf16, #tpu.memory_space<vmem>>, vector<32x512xbf16>
    %cst = arith.constant dense<0.000000e+00> : vector<64x512xf32>
    %5 = tpu.matmul %3, %4, %cst {dimension_numbers = #tpu.dot_dimension_numbers<[1], [0], [0], [1], [0, 0, 1, 1], [], []>} : vector<64x32xbf16>, vector<32x512xbf16>, vector<64x512xf32> -> vector<64x512xf32>
    %c0_4 = arith.constant 0 : index
    %c0_5 = arith.constant 0 : index
    %6 = vector.load %arg4[%c0_4, %c0_5] : memref<1x512xf32, #tpu.memory_space<vmem>>, vector<1x512xf32>
    %7 = vector.broadcast %6 : vector<1x512xf32> to vector<64x512xf32>
    %8 = arith.addf %5, %7 : vector<64x512xf32>
    %c0_6 = arith.constant 0 : index
    %c0_7 = arith.constant 0 : index
    %9 = vector.load %arg9[%c0_6, %c0_7] : memref<64x512xf32, #tpu.memory_space<vmem>>, vector<64x512xf32>
    tpu.vector_store %arg9[%c0_6, %c0_7], %8 {strides = array<i32>} : memref<64x512xf32, #tpu.memory_space<vmem>>, vector<64x512xf32>,
    %c0_8 = arith.constant 0 : index
    %c0_9 = arith.constant 0 : index
    %10 = vector.load %arg10[%c0_8, %c0_9] : memref<8x128xf32, #tpu.memory_space<vmem>>, vector<8x128xf32>
    %c0_10 = arith.constant 0 : index
    %c0_11 = arith.constant 0 : index
    %11 = vector.load %arg11[%c0_10, %c0_11] : memref<8x128xf32, #tpu.memory_space<vmem>>, vector<8x128xf32>
    %c0_12 = arith.constant 0 : index
    %c0_13 = arith.constant 0 : index
    %12 = vector.load %arg9[%c0_12, %c0_13] : memref<64x512xf32, #tpu.memory_space<vmem>>, vector<8x512xf32>
    %13 = arith.truncf %10 : vector<8x128xf32> to vector<8x128xbf16>
    %c0_14 = arith.constant 0 : index
    %c0_15 = arith.constant 0 : index
    %14 = vector.load %arg3[%c0_14, %c0_15] : memref<128x512xbf16, #tpu.memory_space<vmem>>, vector<128x512xbf16>
    %cst_16 = arith.constant dense<0.000000e+00> : vector<8x512xf32>
    %15 = tpu.matmul %13, %14, %cst_16 {dimension_numbers = #tpu.dot_dimension_numbers<[1], [0], [0], [1], [0, 0, 1, 1], [], []>} : vector<8x128xbf16>, vector<128x512xbf16>, vector<8x512xf32> -> vector<8x512xf32>
    %16 = arith.addf %12, %15 : vector<8x512xf32>
    %17 = vector.extract_strided_slice %16 {offsets = [0, 0], sizes = [8, 128], strides = [1, 1]} : vector<8x512xf32> to vector<8x128xf32>
    %cst_17 = arith.constant 5.000000e-01 : f32
    %18 = vector.broadcast %cst_17 : f32 to vector<8x128xf32>
    %19 = arith.mulf %18, %17 : vector<8x128xf32>
    %20 = math.tanh %19 : vector<8x128xf32>
    %cst_18 = arith.constant 5.000000e-01 : f32
    %21 = vector.broadcast %cst_18 : f32 to vector<8x128xf32>
    %22 = arith.mulf %21, %20 : vector<8x128xf32>
    %cst_19 = arith.constant 5.000000e-01 : f32
    %23 = vector.broadcast %cst_19 : f32 to vector<8x128xf32>
    %24 = arith.addf %22, %23 : vector<8x128xf32>
    %25 = vector.extract_strided_slice %16 {offsets = [0, 128], sizes = [8, 128], strides = [1, 1]} : vector<8x512xf32> to vector<8x128xf32>
    %cst_20 = arith.constant 5.000000e-01 : f32
    %26 = vector.broadcast %cst_20 : f32 to vector<8x128xf32>
    %27 = arith.mulf %26, %25 : vector<8x128xf32>
    %28 = math.tanh %27 : vector<8x128xf32>
    %cst_21 = arith.constant 5.000000e-01 : f32
    %29 = vector.broadcast %cst_21 : f32 to vector<8x128xf32>
    %30 = arith.mulf %29, %28 : vector<8x128xf32>
    %cst_22 = arith.constant 5.000000e-01 : f32
    %31 = vector.broadcast %cst_22 : f32 to vector<8x128xf32>
    %32 = arith.addf %30, %31 : vector<8x128xf32>
    %33 = vector.extract_strided_slice %16 {offsets = [0, 256], sizes = [8, 128], strides = [1, 1]} : vector<8x512xf32> to vector<8x128xf32>
    %34 = math.tanh %33 : vector<8x128xf32>
    %35 = vector.extract_strided_slice %16 {offsets = [0, 384], sizes = [8, 128], strides = [1, 1]} : vector<8x512xf32> to vector<8x128xf32>
    %cst_23 = arith.constant 5.000000e-01 : f32
    %36 = vector.broadcast %cst_23 : f32 to vector<8x128xf32>
    %37 = arith.mulf %36, %35 : vector<8x128xf32>
    %38 = math.tanh %37 : vector<8x128xf32>
    %cst_24 = arith.constant 5.000000e-01 : f32
    %39 = vector.broadcast %cst_24 : f32 to vector<8x128xf32>
    %40 = arith.mulf %39, %38 : vector<8x128xf32>
    %cst_25 = arith.constant 5.000000e-01 : f32
    %41 = vector.broadcast %cst_25 : f32 to vector<8x128xf32>
    %42 = arith.addf %40, %41 : vector<8x128xf32>
    %43 = arith.mulf %32, %11 : vector<8x128xf32>
    %44 = arith.mulf %24, %34 : vector<8x128xf32>
    %45 = arith.addf %43, %44 : vector<8x128xf32>
    %46 = math.tanh %45 : vector<8x128xf32>
    %47 = arith.mulf %42, %46 : vector<8x128xf32>
    %c8_i32 = arith.constant 8 : i32
    %48 = arith.muli %arg0, %c8_i32 : i32
    %c0_i32_26 = arith.constant 0 : i32
    %49 = arith.addi %48, %c0_i32_26 : i32
    %c12_i32 = arith.constant 12 : i32
    %50 = arith.cmpi slt, %49, %c12_i32 : i32
    %51 = arith.select %50, %47, %10 : vector<8x128xf32>
    %52 = arith.select %50, %45, %11 : vector<8x128xf32>
    %c8 = arith.constant 8 : index
    %c0_27 = arith.constant 0 : index
    %53 = vector.load %arg9[%c8, %c0_27] : memref<64x512xf32, #tpu.memory_space<vmem>>, vector<8x512xf32>
    %54 = arith.truncf %51 : vector<8x128xf32> to vector<8x128xbf16>
    %c0_28 = arith.constant 0 : index
    %c0_29 = arith.constant 0 : index
    %55 = vector.load %arg3[%c0_28, %c0_29] : memref<128x512xbf16, #tpu.memory_space<vmem>>, vector<128x512xbf16>
    %cst_30 = arith.constant dense<0.000000e+00> : vector<8x512xf32>
    %56 = tpu.matmul %54, %55, %cst_30 {dimension_numbers = #tpu.dot_dimension_numbers<[1], [0], [0], [1], [0, 0, 1, 1], [], []>} : vector<8x128xbf16>, vector<128x512xbf16>, vector<8x512xf32> -> vector<8x512xf32>
    %57 = arith.addf %53, %56 : vector<8x512xf32>
    %58 = vector.extract_strided_slice %57 {offsets = [0, 0], sizes = [8, 128], strides = [1, 1]} : vector<8x512xf32> to vector<8x128xf32>
    %cst_31 = arith.constant 5.000000e-01 : f32
    %59 = vector.broadcast %cst_31 : f32 to vector<8x128xf32>
    %60 = arith.mulf %59, %58 : vector<8x128xf32>
    %61 = math.tanh %60 : vector<8x128xf32>
    %cst_32 = arith.constant 5.000000e-01 : f32
    %62 = vector.broadcast %cst_32 : f32 to vector<8x128xf32>
    %63 = arith.mulf %62, %61 : vector<8x128xf32>
    %cst_33 = arith.constant 5.000000e-01 : f32
    %64 = vector.broadcast %cst_33 : f32 to vector<8x128xf32>
    %65 = arith.addf %63, %64 : vector<8x128xf32>
    %66 = vector.extract_strided_slice %57 {offsets = [0, 128], sizes = [8, 128], strides = [1, 1]} : vector<8x512xf32> to vector<8x128xf32>
    %cst_34 = arith.constant 5.000000e-01 : f32
    %67 = vector.broadcast %cst_34 : f32 to vector<8x128xf32>
    %68 = arith.mulf %67, %66 : vector<8x128xf32>
    %69 = math.tanh %68 : vector<8x128xf32>
    %cst_35 = arith.constant 5.000000e-01 : f32
    %70 = vector.broadcast %cst_35 : f32 to vector<8x128xf32>
    %71 = arith.mulf %70, %69 : vector<8x128xf32>
    %cst_36 = arith.constant 5.000000e-01 : f32
    %72 = vector.broadcast %cst_36 : f32 to vector<8x128xf32>
    %73 = arith.addf %71, %72 : vector<8x128xf32>
    %74 = vector.extract_strided_slice %57 {offsets = [0, 256], sizes = [8, 128], strides = [1, 1]} : vector<8x512xf32> to vector<8x128xf32>
    %75 = math.tanh %74 : vector<8x128xf32>
    %76 = vector.extract_strided_slice %57 {offsets = [0, 384], sizes = [8, 128], strides = [1, 1]} : vector<8x512xf32> to vector<8x128xf32>
    %cst_37 = arith.constant 5.000000e-01 : f32
    %77 = vector.broadcast %cst_37 : f32 to vector<8x128xf32>
    %78 = arith.mulf %77, %76 : vector<8x128xf32>
    %79 = math.tanh %78 : vector<8x128xf32>
    %cst_38 = arith.constant 5.000000e-01 : f32
    %80 = vector.broadcast %cst_38 : f32 to vector<8x128xf32>
    %81 = arith.mulf %80, %79 : vector<8x128xf32>
    %cst_39 = arith.constant 5.000000e-01 : f32
    %82 = vector.broadcast %cst_39 : f32 to vector<8x128xf32>
    %83 = arith.addf %81, %82 : vector<8x128xf32>
    %84 = arith.mulf %73, %52 : vector<8x128xf32>
    %85 = arith.mulf %65, %75 : vector<8x128xf32>
    %86 = arith.addf %84, %85 : vector<8x128xf32>
    %87 = math.tanh %86 : vector<8x128xf32>
    %88 = arith.mulf %83, %87 : vector<8x128xf32>
    %c8_i32_40 = arith.constant 8 : i32
    %89 = arith.muli %arg0, %c8_i32_40 : i32
    %c1_i32 = arith.constant 1 : i32
    %90 = arith.addi %89, %c1_i32 : i32
    %c12_i32_41 = arith.constant 12 : i32
    %91 = arith.cmpi slt, %90, %c12_i32_41 : i32
    %92 = arith.select %91, %88, %51 : vector<8x128xf32>
    %93 = arith.select %91, %86, %52 : vector<8x128xf32>
    %c16 = arith.constant 16 : index
    %c0_42 = arith.constant 0 : index
    %94 = vector.load %arg9[%c16, %c0_42] : memref<64x512xf32, #tpu.memory_space<vmem>>, vector<8x512xf32>
    %95 = arith.truncf %92 : vector<8x128xf32> to vector<8x128xbf16>
    %c0_43 = arith.constant 0 : index
    %c0_44 = arith.constant 0 : index
    %96 = vector.load %arg3[%c0_43, %c0_44] : memref<128x512xbf16, #tpu.memory_space<vmem>>, vector<128x512xbf16>
    %cst_45 = arith.constant dense<0.000000e+00> : vector<8x512xf32>
    %97 = tpu.matmul %95, %96, %cst_45 {dimension_numbers = #tpu.dot_dimension_numbers<[1], [0], [0], [1], [0, 0, 1, 1], [], []>} : vector<8x128xbf16>, vector<128x512xbf16>, vector<8x512xf32> -> vector<8x512xf32>
    %98 = arith.addf %94, %97 : vector<8x512xf32>
    %99 = vector.extract_strided_slice %98 {offsets = [0, 0], sizes = [8, 128], strides = [1, 1]} : vector<8x512xf32> to vector<8x128xf32>
    %cst_46 = arith.constant 5.000000e-01 : f32
    %100 = vector.broadcast %cst_46 : f32 to vector<8x128xf32>
    %101 = arith.mulf %100, %99 : vector<8x128xf32>
    %102 = math.tanh %101 : vector<8x128xf32>
    %cst_47 = arith.constant 5.000000e-01 : f32
    %103 = vector.broadcast %cst_47 : f32 to vector<8x128xf32>
    %104 = arith.mulf %103, %102 : vector<8x128xf32>
    %cst_48 = arith.constant 5.000000e-01 : f32
    %105 = vector.broadcast %cst_48 : f32 to vector<8x128xf32>
    %106 = arith.addf %104, %105 : vector<8x128xf32>
    %107 = vector.extract_strided_slice %98 {offsets = [0, 128], sizes = [8, 128], strides = [1, 1]} : vector<8x512xf32> to vector<8x128xf32>
    %cst_49 = arith.constant 5.000000e-01 : f32
    %108 = vector.broadcast %cst_49 : f32 to vector<8x128xf32>
    %109 = arith.mulf %108, %107 : vector<8x128xf32>
    %110 = math.tanh %109 : vector<8x128xf32>
    %cst_50 = arith.constant 5.000000e-01 : f32
    %111 = vector.broadcast %cst_50 : f32 to vector<8x128xf32>
    %112 = arith.mulf %111, %110 : vector<8x128xf32>
    %cst_51 = arith.constant 5.000000e-01 : f32
    %113 = vector.broadcast %cst_51 : f32 to vector<8x128xf32>
    %114 = arith.addf %112, %113 : vector<8x128xf32>
    %115 = vector.extract_strided_slice %98 {offsets = [0, 256], sizes = [8, 128], strides = [1, 1]} : vector<8x512xf32> to vector<8x128xf32>
    %116 = math.tanh %115 : vector<8x128xf32>
    %117 = vector.extract_strided_slice %98 {offsets = [0, 384], sizes = [8, 128], strides = [1, 1]} : vector<8x512xf32> to vector<8x128xf32>
    %cst_52 = arith.constant 5.000000e-01 : f32
    %118 = vector.broadcast %cst_52 : f32 to vector<8x128xf32>
    %119 = arith.mulf %118, %117 : vector<8x128xf32>
    %120 = math.tanh %119 : vector<8x128xf32>
    %cst_53 = arith.constant 5.000000e-01 : f32
    %121 = vector.broadcast %cst_53 : f32 to vector<8x128xf32>
    %122 = arith.mulf %121, %120 : vector<8x128xf32>
    %cst_54 = arith.constant 5.000000e-01 : f32
    %123 = vector.broadcast %cst_54 : f32 to vector<8x128xf32>
    %124 = arith.addf %122, %123 : vector<8x128xf32>
    %125 = arith.mulf %114, %93 : vector<8x128xf32>
    %126 = arith.mulf %106, %116 : vector<8x128xf32>
    %127 = arith.addf %125, %126 : vector<8x128xf32>
    %128 = math.tanh %127 : vector<8x128xf32>
    %129 = arith.mulf %124, %128 : vector<8x128xf32>
    %c8_i32_55 = arith.constant 8 : i32
    %130 = arith.muli %arg0, %c8_i32_55 : i32
    %c2_i32 = arith.constant 2 : i32
    %131 = arith.addi %130, %c2_i32 : i32
    %c12_i32_56 = arith.constant 12 : i32
    %132 = arith.cmpi slt, %131, %c12_i32_56 : i32
    %133 = arith.select %132, %129, %92 : vector<8x128xf32>
    %134 = arith.select %132, %127, %93 : vector<8x128xf32>
    %c24 = arith.constant 24 : index
    %c0_57 = arith.constant 0 : index
    %135 = vector.load %arg9[%c24, %c0_57] : memref<64x512xf32, #tpu.memory_space<vmem>>, vector<8x512xf32>
    %136 = arith.truncf %133 : vector<8x128xf32> to vector<8x128xbf16>
    %c0_58 = arith.constant 0 : index
    %c0_59 = arith.constant 0 : index
    %137 = vector.load %arg3[%c0_58, %c0_59] : memref<128x512xbf16, #tpu.memory_space<vmem>>, vector<128x512xbf16>
    %cst_60 = arith.constant dense<0.000000e+00> : vector<8x512xf32>
    %138 = tpu.matmul %136, %137, %cst_60 {dimension_numbers = #tpu.dot_dimension_numbers<[1], [0], [0], [1], [0, 0, 1, 1], [], []>} : vector<8x128xbf16>, vector<128x512xbf16>, vector<8x512xf32> -> vector<8x512xf32>
    %139 = arith.addf %135, %138 : vector<8x512xf32>
    %140 = vector.extract_strided_slice %139 {offsets = [0, 0], sizes = [8, 128], strides = [1, 1]} : vector<8x512xf32> to vector<8x128xf32>
    %cst_61 = arith.constant 5.000000e-01 : f32
    %141 = vector.broadcast %cst_61 : f32 to vector<8x128xf32>
    %142 = arith.mulf %141, %140 : vector<8x128xf32>
    %143 = math.tanh %142 : vector<8x128xf32>
    %cst_62 = arith.constant 5.000000e-01 : f32
    %144 = vector.broadcast %cst_62 : f32 to vector<8x128xf32>
    %145 = arith.mulf %144, %143 : vector<8x128xf32>
    %cst_63 = arith.constant 5.000000e-01 : f32
    %146 = vector.broadcast %cst_63 : f32 to vector<8x128xf32>
    %147 = arith.addf %145, %146 : vector<8x128xf32>
    %148 = vector.extract_strided_slice %139 {offsets = [0, 128], sizes = [8, 128], strides = [1, 1]} : vector<8x512xf32> to vector<8x128xf32>
    %cst_64 = arith.constant 5.000000e-01 : f32
    %149 = vector.broadcast %cst_64 : f32 to vector<8x128xf32>
    %150 = arith.mulf %149, %148 : vector<8x128xf32>
    %151 = math.tanh %150 : vector<8x128xf32>
    %cst_65 = arith.constant 5.000000e-01 : f32
    %152 = vector.broadcast %cst_65 : f32 to vector<8x128xf32>
    %153 = arith.mulf %152, %151 : vector<8x128xf32>
    %cst_66 = arith.constant 5.000000e-01 : f32
    %154 = vector.broadcast %cst_66 : f32 to vector<8x128xf32>
    %155 = arith.addf %153, %154 : vector<8x128xf32>
    %156 = vector.extract_strided_slice %139 {offsets = [0, 256], sizes = [8, 128], strides = [1, 1]} : vector<8x512xf32> to vector<8x128xf32>
    %157 = math.tanh %156 : vector<8x128xf32>
    %158 = vector.extract_strided_slice %139 {offsets = [0, 384], sizes = [8, 128], strides = [1, 1]} : vector<8x512xf32> to vector<8x128xf32>
    %cst_67 = arith.constant 5.000000e-01 : f32
    %159 = vector.broadcast %cst_67 : f32 to vector<8x128xf32>
    %160 = arith.mulf %159, %158 : vector<8x128xf32>
    %161 = math.tanh %160 : vector<8x128xf32>
    %cst_68 = arith.constant 5.000000e-01 : f32
    %162 = vector.broadcast %cst_68 : f32 to vector<8x128xf32>
    %163 = arith.mulf %162, %161 : vector<8x128xf32>
    %cst_69 = arith.constant 5.000000e-01 : f32
    %164 = vector.broadcast %cst_69 : f32 to vector<8x128xf32>
    %165 = arith.addf %163, %164 : vector<8x128xf32>
    %166 = arith.mulf %155, %134 : vector<8x128xf32>
    %167 = arith.mulf %147, %157 : vector<8x128xf32>
    %168 = arith.addf %166, %167 : vector<8x128xf32>
    %169 = math.tanh %168 : vector<8x128xf32>
    %170 = arith.mulf %165, %169 : vector<8x128xf32>
    %c8_i32_70 = arith.constant 8 : i32
    %171 = arith.muli %arg0, %c8_i32_70 : i32
    %c3_i32 = arith.constant 3 : i32
    %172 = arith.addi %171, %c3_i32 : i32
    %c12_i32_71 = arith.constant 12 : i32
    %173 = arith.cmpi slt, %172, %c12_i32_71 : i32
    %174 = arith.select %173, %170, %133 : vector<8x128xf32>
    %175 = arith.select %173, %168, %134 : vector<8x128xf32>
    %c32 = arith.constant 32 : index
    %c0_72 = arith.constant 0 : index
    %176 = vector.load %arg9[%c32, %c0_72] : memref<64x512xf32, #tpu.memory_space<vmem>>, vector<8x512xf32>
    %177 = arith.truncf %174 : vector<8x128xf32> to vector<8x128xbf16>
    %c0_73 = arith.constant 0 : index
    %c0_74 = arith.constant 0 : index
    %178 = vector.load %arg3[%c0_73, %c0_74] : memref<128x512xbf16, #tpu.memory_space<vmem>>, vector<128x512xbf16>
    %cst_75 = arith.constant dense<0.000000e+00> : vector<8x512xf32>
    %179 = tpu.matmul %177, %178, %cst_75 {dimension_numbers = #tpu.dot_dimension_numbers<[1], [0], [0], [1], [0, 0, 1, 1], [], []>} : vector<8x128xbf16>, vector<128x512xbf16>, vector<8x512xf32> -> vector<8x512xf32>
    %180 = arith.addf %176, %179 : vector<8x512xf32>
    %181 = vector.extract_strided_slice %180 {offsets = [0, 0], sizes = [8, 128], strides = [1, 1]} : vector<8x512xf32> to vector<8x128xf32>
    %cst_76 = arith.constant 5.000000e-01 : f32
    %182 = vector.broadcast %cst_76 : f32 to vector<8x128xf32>
    %183 = arith.mulf %182, %181 : vector<8x128xf32>
    %184 = math.tanh %183 : vector<8x128xf32>
    %cst_77 = arith.constant 5.000000e-01 : f32
    %185 = vector.broadcast %cst_77 : f32 to vector<8x128xf32>
    %186 = arith.mulf %185, %184 : vector<8x128xf32>
    %cst_78 = arith.constant 5.000000e-01 : f32
    %187 = vector.broadcast %cst_78 : f32 to vector<8x128xf32>
    %188 = arith.addf %186, %187 : vector<8x128xf32>
    %189 = vector.extract_strided_slice %180 {offsets = [0, 128], sizes = [8, 128], strides = [1, 1]} : vector<8x512xf32> to vector<8x128xf32>
    %cst_79 = arith.constant 5.000000e-01 : f32
    %190 = vector.broadcast %cst_79 : f32 to vector<8x128xf32>
    %191 = arith.mulf %190, %189 : vector<8x128xf32>
    %192 = math.tanh %191 : vector<8x128xf32>
    %cst_80 = arith.constant 5.000000e-01 : f32
    %193 = vector.broadcast %cst_80 : f32 to vector<8x128xf32>
    %194 = arith.mulf %193, %192 : vector<8x128xf32>
    %cst_81 = arith.constant 5.000000e-01 : f32
    %195 = vector.broadcast %cst_81 : f32 to vector<8x128xf32>
    %196 = arith.addf %194, %195 : vector<8x128xf32>
    %197 = vector.extract_strided_slice %180 {offsets = [0, 256], sizes = [8, 128], strides = [1, 1]} : vector<8x512xf32> to vector<8x128xf32>
    %198 = math.tanh %197 : vector<8x128xf32>
    %199 = vector.extract_strided_slice %180 {offsets = [0, 384], sizes = [8, 128], strides = [1, 1]} : vector<8x512xf32> to vector<8x128xf32>
    %cst_82 = arith.constant 5.000000e-01 : f32
    %200 = vector.broadcast %cst_82 : f32 to vector<8x128xf32>
    %201 = arith.mulf %200, %199 : vector<8x128xf32>
    %202 = math.tanh %201 : vector<8x128xf32>
    %cst_83 = arith.constant 5.000000e-01 : f32
    %203 = vector.broadcast %cst_83 : f32 to vector<8x128xf32>
    %204 = arith.mulf %203, %202 : vector<8x128xf32>
    %cst_84 = arith.constant 5.000000e-01 : f32
    %205 = vector.broadcast %cst_84 : f32 to vector<8x128xf32>
    %206 = arith.addf %204, %205 : vector<8x128xf32>
    %207 = arith.mulf %196, %175 : vector<8x128xf32>
    %208 = arith.mulf %188, %198 : vector<8x128xf32>
    %209 = arith.addf %207, %208 : vector<8x128xf32>
    %210 = math.tanh %209 : vector<8x128xf32>
    %211 = arith.mulf %206, %210 : vector<8x128xf32>
    %c8_i32_85 = arith.constant 8 : i32
    %212 = arith.muli %arg0, %c8_i32_85 : i32
    %c4_i32 = arith.constant 4 : i32
    %213 = arith.addi %212, %c4_i32 : i32
    %c12_i32_86 = arith.constant 12 : i32
    %214 = arith.cmpi slt, %213, %c12_i32_86 : i32
    %215 = arith.select %214, %211, %174 : vector<8x128xf32>
    %216 = arith.select %214, %209, %175 : vector<8x128xf32>
    %c40 = arith.constant 40 : index
    %c0_87 = arith.constant 0 : index
    %217 = vector.load %arg9[%c40, %c0_87] : memref<64x512xf32, #tpu.memory_space<vmem>>, vector<8x512xf32>
    %218 = arith.truncf %215 : vector<8x128xf32> to vector<8x128xbf16>
    %c0_88 = arith.constant 0 : index
    %c0_89 = arith.constant 0 : index
    %219 = vector.load %arg3[%c0_88, %c0_89] : memref<128x512xbf16, #tpu.memory_space<vmem>>, vector<128x512xbf16>
    %cst_90 = arith.constant dense<0.000000e+00> : vector<8x512xf32>
    %220 = tpu.matmul %218, %219, %cst_90 {dimension_numbers = #tpu.dot_dimension_numbers<[1], [0], [0], [1], [0, 0, 1, 1], [], []>} : vector<8x128xbf16>, vector<128x512xbf16>, vector<8x512xf32> -> vector<8x512xf32>
    %221 = arith.addf %217, %220 : vector<8x512xf32>
    %222 = vector.extract_strided_slice %221 {offsets = [0, 0], sizes = [8, 128], strides = [1, 1]} : vector<8x512xf32> to vector<8x128xf32>
    %cst_91 = arith.constant 5.000000e-01 : f32
    %223 = vector.broadcast %cst_91 : f32 to vector<8x128xf32>
    %224 = arith.mulf %223, %222 : vector<8x128xf32>
    %225 = math.tanh %224 : vector<8x128xf32>
    %cst_92 = arith.constant 5.000000e-01 : f32
    %226 = vector.broadcast %cst_92 : f32 to vector<8x128xf32>
    %227 = arith.mulf %226, %225 : vector<8x128xf32>
    %cst_93 = arith.constant 5.000000e-01 : f32
    %228 = vector.broadcast %cst_93 : f32 to vector<8x128xf32>
    %229 = arith.addf %227, %228 : vector<8x128xf32>
    %230 = vector.extract_strided_slice %221 {offsets = [0, 128], sizes = [8, 128], strides = [1, 1]} : vector<8x512xf32> to vector<8x128xf32>
    %cst_94 = arith.constant 5.000000e-01 : f32
    %231 = vector.broadcast %cst_94 : f32 to vector<8x128xf32>
    %232 = arith.mulf %231, %230 : vector<8x128xf32>
    %233 = math.tanh %232 : vector<8x128xf32>
    %cst_95 = arith.constant 5.000000e-01 : f32
    %234 = vector.broadcast %cst_95 : f32 to vector<8x128xf32>
    %235 = arith.mulf %234, %233 : vector<8x128xf32>
    %cst_96 = arith.constant 5.000000e-01 : f32
    %236 = vector.broadcast %cst_96 : f32 to vector<8x128xf32>
    %237 = arith.addf %235, %236 : vector<8x128xf32>
    %238 = vector.extract_strided_slice %221 {offsets = [0, 256], sizes = [8, 128], strides = [1, 1]} : vector<8x512xf32> to vector<8x128xf32>
    %239 = math.tanh %238 : vector<8x128xf32>
    %240 = vector.extract_strided_slice %221 {offsets = [0, 384], sizes = [8, 128], strides = [1, 1]} : vector<8x512xf32> to vector<8x128xf32>
    %cst_97 = arith.constant 5.000000e-01 : f32
    %241 = vector.broadcast %cst_97 : f32 to vector<8x128xf32>
    %242 = arith.mulf %241, %240 : vector<8x128xf32>
    %243 = math.tanh %242 : vector<8x128xf32>
    %cst_98 = arith.constant 5.000000e-01 : f32
    %244 = vector.broadcast %cst_98 : f32 to vector<8x128xf32>
    %245 = arith.mulf %244, %243 : vector<8x128xf32>
    %cst_99 = arith.constant 5.000000e-01 : f32
    %246 = vector.broadcast %cst_99 : f32 to vector<8x128xf32>
    %247 = arith.addf %245, %246 : vector<8x128xf32>
    %248 = arith.mulf %237, %216 : vector<8x128xf32>
    %249 = arith.mulf %229, %239 : vector<8x128xf32>
    %250 = arith.addf %248, %249 : vector<8x128xf32>
    %251 = math.tanh %250 : vector<8x128xf32>
    %252 = arith.mulf %247, %251 : vector<8x128xf32>
    %c8_i32_100 = arith.constant 8 : i32
    %253 = arith.muli %arg0, %c8_i32_100 : i32
    %c5_i32 = arith.constant 5 : i32
    %254 = arith.addi %253, %c5_i32 : i32
    %c12_i32_101 = arith.constant 12 : i32
    %255 = arith.cmpi slt, %254, %c12_i32_101 : i32
    %256 = arith.select %255, %252, %215 : vector<8x128xf32>
    %257 = arith.select %255, %250, %216 : vector<8x128xf32>
    %c48 = arith.constant 48 : index
    %c0_102 = arith.constant 0 : index
    %258 = vector.load %arg9[%c48, %c0_102] : memref<64x512xf32, #tpu.memory_space<vmem>>, vector<8x512xf32>
    %259 = arith.truncf %256 : vector<8x128xf32> to vector<8x128xbf16>
    %c0_103 = arith.constant 0 : index
    %c0_104 = arith.constant 0 : index
    %260 = vector.load %arg3[%c0_103, %c0_104] : memref<128x512xbf16, #tpu.memory_space<vmem>>, vector<128x512xbf16>
    %cst_105 = arith.constant dense<0.000000e+00> : vector<8x512xf32>
    %261 = tpu.matmul %259, %260, %cst_105 {dimension_numbers = #tpu.dot_dimension_numbers<[1], [0], [0], [1], [0, 0, 1, 1], [], []>} : vector<8x128xbf16>, vector<128x512xbf16>, vector<8x512xf32> -> vector<8x512xf32>
    %262 = arith.addf %258, %261 : vector<8x512xf32>
    %263 = vector.extract_strided_slice %262 {offsets = [0, 0], sizes = [8, 128], strides = [1, 1]} : vector<8x512xf32> to vector<8x128xf32>
    %cst_106 = arith.constant 5.000000e-01 : f32
    %264 = vector.broadcast %cst_106 : f32 to vector<8x128xf32>
    %265 = arith.mulf %264, %263 : vector<8x128xf32>
    %266 = math.tanh %265 : vector<8x128xf32>
    %cst_107 = arith.constant 5.000000e-01 : f32
    %267 = vector.broadcast %cst_107 : f32 to vector<8x128xf32>
    %268 = arith.mulf %267, %266 : vector<8x128xf32>
    %cst_108 = arith.constant 5.000000e-01 : f32
    %269 = vector.broadcast %cst_108 : f32 to vector<8x128xf32>
    %270 = arith.addf %268, %269 : vector<8x128xf32>
    %271 = vector.extract_strided_slice %262 {offsets = [0, 128], sizes = [8, 128], strides = [1, 1]} : vector<8x512xf32> to vector<8x128xf32>
    %cst_109 = arith.constant 5.000000e-01 : f32
    %272 = vector.broadcast %cst_109 : f32 to vector<8x128xf32>
    %273 = arith.mulf %272, %271 : vector<8x128xf32>
    %274 = math.tanh %273 : vector<8x128xf32>
    %cst_110 = arith.constant 5.000000e-01 : f32
    %275 = vector.broadcast %cst_110 : f32 to vector<8x128xf32>
    %276 = arith.mulf %275, %274 : vector<8x128xf32>
    %cst_111 = arith.constant 5.000000e-01 : f32
    %277 = vector.broadcast %cst_111 : f32 to vector<8x128xf32>
    %278 = arith.addf %276, %277 : vector<8x128xf32>
    %279 = vector.extract_strided_slice %262 {offsets = [0, 256], sizes = [8, 128], strides = [1, 1]} : vector<8x512xf32> to vector<8x128xf32>
    %280 = math.tanh %279 : vector<8x128xf32>
    %281 = vector.extract_strided_slice %262 {offsets = [0, 384], sizes = [8, 128], strides = [1, 1]} : vector<8x512xf32> to vector<8x128xf32>
    %cst_112 = arith.constant 5.000000e-01 : f32
    %282 = vector.broadcast %cst_112 : f32 to vector<8x128xf32>
    %283 = arith.mulf %282, %281 : vector<8x128xf32>
    %284 = math.tanh %283 : vector<8x128xf32>
    %cst_113 = arith.constant 5.000000e-01 : f32
    %285 = vector.broadcast %cst_113 : f32 to vector<8x128xf32>
    %286 = arith.mulf %285, %284 : vector<8x128xf32>
    %cst_114 = arith.constant 5.000000e-01 : f32
    %287 = vector.broadcast %cst_114 : f32 to vector<8x128xf32>
    %288 = arith.addf %286, %287 : vector<8x128xf32>
    %289 = arith.mulf %278, %257 : vector<8x128xf32>
    %290 = arith.mulf %270, %280 : vector<8x128xf32>
    %291 = arith.addf %289, %290 : vector<8x128xf32>
    %292 = math.tanh %291 : vector<8x128xf32>
    %293 = arith.mulf %288, %292 : vector<8x128xf32>
    %c8_i32_115 = arith.constant 8 : i32
    %294 = arith.muli %arg0, %c8_i32_115 : i32
    %c6_i32 = arith.constant 6 : i32
    %295 = arith.addi %294, %c6_i32 : i32
    %c12_i32_116 = arith.constant 12 : i32
    %296 = arith.cmpi slt, %295, %c12_i32_116 : i32
    %297 = arith.select %296, %293, %256 : vector<8x128xf32>
    %298 = arith.select %296, %291, %257 : vector<8x128xf32>
    %c56 = arith.constant 56 : index
    %c0_117 = arith.constant 0 : index
    %299 = vector.load %arg9[%c56, %c0_117] : memref<64x512xf32, #tpu.memory_space<vmem>>, vector<8x512xf32>
    %300 = arith.truncf %297 : vector<8x128xf32> to vector<8x128xbf16>
    %c0_118 = arith.constant 0 : index
    %c0_119 = arith.constant 0 : index
    %301 = vector.load %arg3[%c0_118, %c0_119] : memref<128x512xbf16, #tpu.memory_space<vmem>>, vector<128x512xbf16>
    %cst_120 = arith.constant dense<0.000000e+00> : vector<8x512xf32>
    %302 = tpu.matmul %300, %301, %cst_120 {dimension_numbers = #tpu.dot_dimension_numbers<[1], [0], [0], [1], [0, 0, 1, 1], [], []>} : vector<8x128xbf16>, vector<128x512xbf16>, vector<8x512xf32> -> vector<8x512xf32>
    %303 = arith.addf %299, %302 : vector<8x512xf32>
    %304 = vector.extract_strided_slice %303 {offsets = [0, 0], sizes = [8, 128], strides = [1, 1]} : vector<8x512xf32> to vector<8x128xf32>
    %cst_121 = arith.constant 5.000000e-01 : f32
    %305 = vector.broadcast %cst_121 : f32 to vector<8x128xf32>
    %306 = arith.mulf %305, %304 : vector<8x128xf32>
    %307 = math.tanh %306 : vector<8x128xf32>
    %cst_122 = arith.constant 5.000000e-01 : f32
    %308 = vector.broadcast %cst_122 : f32 to vector<8x128xf32>
    %309 = arith.mulf %308, %307 : vector<8x128xf32>
    %cst_123 = arith.constant 5.000000e-01 : f32
    %310 = vector.broadcast %cst_123 : f32 to vector<8x128xf32>
    %311 = arith.addf %309, %310 : vector<8x128xf32>
    %312 = vector.extract_strided_slice %303 {offsets = [0, 128], sizes = [8, 128], strides = [1, 1]} : vector<8x512xf32> to vector<8x128xf32>
    %cst_124 = arith.constant 5.000000e-01 : f32
    %313 = vector.broadcast %cst_124 : f32 to vector<8x128xf32>
    %314 = arith.mulf %313, %312 : vector<8x128xf32>
    %315 = math.tanh %314 : vector<8x128xf32>
    %cst_125 = arith.constant 5.000000e-01 : f32
    %316 = vector.broadcast %cst_125 : f32 to vector<8x128xf32>
    %317 = arith.mulf %316, %315 : vector<8x128xf32>
    %cst_126 = arith.constant 5.000000e-01 : f32
    %318 = vector.broadcast %cst_126 : f32 to vector<8x128xf32>
    %319 = arith.addf %317, %318 : vector<8x128xf32>
    %320 = vector.extract_strided_slice %303 {offsets = [0, 256], sizes = [8, 128], strides = [1, 1]} : vector<8x512xf32> to vector<8x128xf32>
    %321 = math.tanh %320 : vector<8x128xf32>
    %322 = vector.extract_strided_slice %303 {offsets = [0, 384], sizes = [8, 128], strides = [1, 1]} : vector<8x512xf32> to vector<8x128xf32>
    %cst_127 = arith.constant 5.000000e-01 : f32
    %323 = vector.broadcast %cst_127 : f32 to vector<8x128xf32>
    %324 = arith.mulf %323, %322 : vector<8x128xf32>
    %325 = math.tanh %324 : vector<8x128xf32>
    %cst_128 = arith.constant 5.000000e-01 : f32
    %326 = vector.broadcast %cst_128 : f32 to vector<8x128xf32>
    %327 = arith.mulf %326, %325 : vector<8x128xf32>
    %cst_129 = arith.constant 5.000000e-01 : f32
    %328 = vector.broadcast %cst_129 : f32 to vector<8x128xf32>
    %329 = arith.addf %327, %328 : vector<8x128xf32>
    %330 = arith.mulf %319, %298 : vector<8x128xf32>
    %331 = arith.mulf %311, %321 : vector<8x128xf32>
    %332 = arith.addf %330, %331 : vector<8x128xf32>
    %333 = math.tanh %332 : vector<8x128xf32>
    %334 = arith.mulf %329, %333 : vector<8x128xf32>
    %c8_i32_130 = arith.constant 8 : i32
    %335 = arith.muli %arg0, %c8_i32_130 : i32
    %c7_i32 = arith.constant 7 : i32
    %336 = arith.addi %335, %c7_i32 : i32
    %c12_i32_131 = arith.constant 12 : i32
    %337 = arith.cmpi slt, %336, %c12_i32_131 : i32
    %338 = arith.select %337, %334, %297 : vector<8x128xf32>
    %339 = arith.select %337, %332, %298 : vector<8x128xf32>
    %c0_132 = arith.constant 0 : index
    %c0_133 = arith.constant 0 : index
    %340 = vector.load %arg10[%c0_132, %c0_133] : memref<8x128xf32, #tpu.memory_space<vmem>>, vector<8x128xf32>
    tpu.vector_store %arg10[%c0_132, %c0_133], %338 {strides = array<i32>} : memref<8x128xf32, #tpu.memory_space<vmem>>, vector<8x128xf32>,
    %c0_134 = arith.constant 0 : index
    %c0_135 = arith.constant 0 : index
    %341 = vector.load %arg11[%c0_134, %c0_135] : memref<8x128xf32, #tpu.memory_space<vmem>>, vector<8x128xf32>
    tpu.vector_store %arg11[%c0_134, %c0_135], %339 {strides = array<i32>} : memref<8x128xf32, #tpu.memory_space<vmem>>, vector<8x128xf32>,
    %c1_i32_136 = arith.constant 1 : i32
    %342 = arith.cmpi eq, %arg0, %c1_i32_136 : i32
    %343 = arith.extui %342 : i1 to i32
    %c0_i32_137 = arith.constant 0 : i32
    %344 = arith.cmpi ne, %343, %c0_i32_137 : i32
    scf.if %344 {
      %c0_138 = arith.constant 0 : index
      %c0_139 = arith.constant 0 : index
      %345 = vector.load %arg7[%c0_138, %c0_139] : memref<8x128xf32, #tpu.memory_space<vmem>>, vector<8x128xf32>
      tpu.vector_store %arg7[%c0_138, %c0_139], %338 {strides = array<i32>} : memref<8x128xf32, #tpu.memory_space<vmem>>, vector<8x128xf32>,
      %c0_140 = arith.constant 0 : index
      %c0_141 = arith.constant 0 : index
      %346 = vector.load %arg8[%c0_140, %c0_141] : memref<8x128xf32, #tpu.memory_space<vmem>>, vector<8x128xf32>
      tpu.vector_store %arg8[%c0_140, %c0_141], %339 {strides = array<i32>} : memref<8x128xf32, #tpu.memory_space<vmem>>, vector<8x128xf32>,
    } else {
    }
    return
  }
  func.func @transform_0(%arg0: i32) -> (i32, i32) {
    %c0_i32 = arith.constant 0 : i32
    %c0_i32_0 = arith.constant 0 : i32
    return %arg0, %c0_i32 : i32, i32
  }
  func.func @transform_1(%arg0: i32) -> (i32, i32) {
    %c0_i32 = arith.constant 0 : i32
    %c0_i32_0 = arith.constant 0 : i32
    %c0_i32_1 = arith.constant 0 : i32
    return %c0_i32, %c0_i32_0 : i32, i32
  }
  func.func @transform_2(%arg0: i32) -> (i32, i32) {
    %c0_i32 = arith.constant 0 : i32
    %c0_i32_0 = arith.constant 0 : i32
    %c0_i32_1 = arith.constant 0 : i32
    return %c0_i32, %c0_i32_0 : i32, i32
  }
  func.func @transform_3(%arg0: i32) -> (i32, i32) {
    %c0_i32 = arith.constant 0 : i32
    %c0_i32_0 = arith.constant 0 : i32
    %c0_i32_1 = arith.constant 0 : i32
    return %c0_i32, %c0_i32_0 : i32, i32
  }
  func.func @transform_4(%arg0: i32) -> (i32, i32) {
    %c0_i32 = arith.constant 0 : i32
    %c0_i32_0 = arith.constant 0 : i32
    %c0_i32_1 = arith.constant 0 : i32
    return %c0_i32, %c0_i32_0 : i32, i32
  }
  func.func @transform_5(%arg0: i32) -> (i32, i32) {
    %c0_i32 = arith.constant 0 : i32
    %c0_i32_0 = arith.constant 0 : i32
    %c0_i32_1 = arith.constant 0 : i32
    return %c0_i32, %c0_i32_0 : i32, i32
  }
  func.func @transform_6(%arg0: i32) -> (i32, i32) {
    %c0_i32 = arith.constant 0 : i32
    %c0_i32_0 = arith.constant 0 : i32
    %c0_i32_1 = arith.constant 0 : i32
    return %c0_i32, %c0_i32_0 : i32, i32
  }
  func.func @transform_7(%arg0: i32) -> (i32, i32) {
    %c0_i32 = arith.constant 0 : i32
    %c0_i32_0 = arith.constant 0 : i32
    %c0_i32_1 = arith.constant 0 : i32
    return %c0_i32, %c0_i32_0 : i32, i32
  }
}

module attributes {stable_mosaic.version = 11 : i64} {
  func.func @kernel(%arg0: i32, %arg1: memref<64x16xbf16, #tpu.memory_space<vmem>>, %arg2: memref<16x512xbf16, #tpu.memory_space<vmem>>, %arg3: memref<128x512xbf16, #tpu.memory_space<vmem>>, %arg4: memref<1x512xf32, #tpu.memory_space<vmem>>, %arg5: memref<8x128xf32, #tpu.memory_space<vmem>>, %arg6: memref<8x128xf32, #tpu.memory_space<vmem>>, %arg7: memref<8x128xf32, #tpu.memory_space<vmem>>, %arg8: memref<8x128xf32, #tpu.memory_space<vmem>>, %arg9: memref<64x512xf32, #tpu.memory_space<vmem>>, %arg10: memref<8x128xf32, #tpu.memory_space<vmem>>, %arg11: memref<8x128xf32, #tpu.memory_space<vmem>>) attributes {dimension_semantics = [#tpu.dimension_semantics<arbitrary>], iteration_bounds = array<i64: 1>, scalar_prefetch = 0 : i64, scratch_operands = 3 : i64, tpu.core_type = #tpu.core_type<tc>, window_params = [{transform_indices = @transform_0, window_bounds = array<i64: 64, 16>}, {pipeline_mode = #tpu.pipeline_mode<synchronous>, transform_indices = @transform_1, window_bounds = array<i64: 16, 512>}, {pipeline_mode = #tpu.pipeline_mode<synchronous>, transform_indices = @transform_2, window_bounds = array<i64: 128, 512>}, {pipeline_mode = #tpu.pipeline_mode<synchronous>, transform_indices = @transform_3, window_bounds = array<i64: 1, 512>}, {pipeline_mode = #tpu.pipeline_mode<synchronous>, transform_indices = @transform_4, window_bounds = array<i64: 8, 128>}, {pipeline_mode = #tpu.pipeline_mode<synchronous>, transform_indices = @transform_5, window_bounds = array<i64: 8, 128>}, {pipeline_mode = #tpu.pipeline_mode<synchronous>, transform_indices = @transform_6, window_bounds = array<i64: 8, 128>}, {pipeline_mode = #tpu.pipeline_mode<synchronous>, transform_indices = @transform_7, window_bounds = array<i64: 8, 128>}]} {
    %c0_i32 = arith.constant 0 : i32
    %0 = arith.cmpi eq, %arg0, %c0_i32 : i32
    %1 = arith.extui %0 : i1 to i32
    %c0_i32_0 = arith.constant 0 : i32
    %2 = arith.cmpi ne, %1, %c0_i32_0 : i32
    scf.if %2 {
      %c0_123 = arith.constant 0 : index
      %c0_124 = arith.constant 0 : index
      %305 = vector.load %arg5[%c0_123, %c0_124] : memref<8x128xf32, #tpu.memory_space<vmem>>, vector<8x128xf32>
      %c0_125 = arith.constant 0 : index
      %c0_126 = arith.constant 0 : index
      %306 = vector.load %arg10[%c0_125, %c0_126] : memref<8x128xf32, #tpu.memory_space<vmem>>, vector<8x128xf32>
      tpu.vector_store %arg10[%c0_125, %c0_126], %305 {strides = array<i32>} : memref<8x128xf32, #tpu.memory_space<vmem>>, vector<8x128xf32>,
      %c0_127 = arith.constant 0 : index
      %c0_128 = arith.constant 0 : index
      %307 = vector.load %arg6[%c0_127, %c0_128] : memref<8x128xf32, #tpu.memory_space<vmem>>, vector<8x128xf32>
      %c0_129 = arith.constant 0 : index
      %c0_130 = arith.constant 0 : index
      %308 = vector.load %arg11[%c0_129, %c0_130] : memref<8x128xf32, #tpu.memory_space<vmem>>, vector<8x128xf32>
      tpu.vector_store %arg11[%c0_129, %c0_130], %307 {strides = array<i32>} : memref<8x128xf32, #tpu.memory_space<vmem>>, vector<8x128xf32>,
    } else {
    }
    %c0 = arith.constant 0 : index
    %c0_1 = arith.constant 0 : index
    %3 = vector.load %arg1[%c0, %c0_1] : memref<64x16xbf16, #tpu.memory_space<vmem>>, vector<64x16xbf16>
    %c0_2 = arith.constant 0 : index
    %c0_3 = arith.constant 0 : index
    %4 = vector.load %arg2[%c0_2, %c0_3] : memref<16x512xbf16, #tpu.memory_space<vmem>>, vector<16x512xbf16>
    %cst = arith.constant dense<0.000000e+00> : vector<64x512xf32>
    %5 = tpu.matmul %3, %4, %cst {dimension_numbers = #tpu.dot_dimension_numbers<[1], [0], [0], [1], [0, 0, 1, 1], [], []>} : vector<64x16xbf16>, vector<16x512xbf16>, vector<64x512xf32> -> vector<64x512xf32>
    %c0_4 = arith.constant 0 : index
    %c0_5 = arith.constant 0 : index
    %6 = vector.load %arg4[%c0_4, %c0_5] : memref<1x512xf32, #tpu.memory_space<vmem>>, vector<1x512xf32>
    %7 = vector.broadcast %6 : vector<1x512xf32> to vector<64x512xf32>
    %8 = arith.addf %5, %7 : vector<64x512xf32>
    %c0_6 = arith.constant 0 : index
    %c0_7 = arith.constant 0 : index
    %9 = vector.load %arg9[%c0_6, %c0_7] : memref<64x512xf32, #tpu.memory_space<vmem>>, vector<64x512xf32>
    tpu.vector_store %arg9[%c0_6, %c0_7], %8 {strides = array<i32>} : memref<64x512xf32, #tpu.memory_space<vmem>>, vector<64x512xf32>,
    %c0_8 = arith.constant 0 : index
    %c0_9 = arith.constant 0 : index
    %10 = vector.load %arg10[%c0_8, %c0_9] : memref<8x128xf32, #tpu.memory_space<vmem>>, vector<8x128xf32>
    %c0_10 = arith.constant 0 : index
    %c0_11 = arith.constant 0 : index
    %11 = vector.load %arg11[%c0_10, %c0_11] : memref<8x128xf32, #tpu.memory_space<vmem>>, vector<8x128xf32>
    %c0_12 = arith.constant 0 : index
    %c0_13 = arith.constant 0 : index
    %12 = vector.load %arg9[%c0_12, %c0_13] : memref<64x512xf32, #tpu.memory_space<vmem>>, vector<8x512xf32>
    %13 = arith.truncf %10 : vector<8x128xf32> to vector<8x128xbf16>
    %c0_14 = arith.constant 0 : index
    %c0_15 = arith.constant 0 : index
    %14 = vector.load %arg3[%c0_14, %c0_15] : memref<128x512xbf16, #tpu.memory_space<vmem>>, vector<128x512xbf16>
    %cst_16 = arith.constant dense<0.000000e+00> : vector<8x512xf32>
    %15 = tpu.matmul %13, %14, %cst_16 {dimension_numbers = #tpu.dot_dimension_numbers<[1], [0], [0], [1], [0, 0, 1, 1], [], []>} : vector<8x128xbf16>, vector<128x512xbf16>, vector<8x512xf32> -> vector<8x512xf32>
    %16 = arith.addf %12, %15 : vector<8x512xf32>
    %17 = vector.extract_strided_slice %16 {offsets = [0, 0], sizes = [8, 128], strides = [1, 1]} : vector<8x512xf32> to vector<8x128xf32>
    %cst_17 = arith.constant 5.000000e-01 : f32
    %18 = vector.broadcast %cst_17 : f32 to vector<8x128xf32>
    %19 = arith.mulf %18, %17 : vector<8x128xf32>
    %20 = math.tanh %19 : vector<8x128xf32>
    %cst_18 = arith.constant 5.000000e-01 : f32
    %21 = vector.broadcast %cst_18 : f32 to vector<8x128xf32>
    %22 = arith.mulf %21, %20 : vector<8x128xf32>
    %cst_19 = arith.constant 5.000000e-01 : f32
    %23 = vector.broadcast %cst_19 : f32 to vector<8x128xf32>
    %24 = arith.addf %22, %23 : vector<8x128xf32>
    %25 = vector.extract_strided_slice %16 {offsets = [0, 128], sizes = [8, 128], strides = [1, 1]} : vector<8x512xf32> to vector<8x128xf32>
    %cst_20 = arith.constant 5.000000e-01 : f32
    %26 = vector.broadcast %cst_20 : f32 to vector<8x128xf32>
    %27 = arith.mulf %26, %25 : vector<8x128xf32>
    %28 = math.tanh %27 : vector<8x128xf32>
    %cst_21 = arith.constant 5.000000e-01 : f32
    %29 = vector.broadcast %cst_21 : f32 to vector<8x128xf32>
    %30 = arith.mulf %29, %28 : vector<8x128xf32>
    %cst_22 = arith.constant 5.000000e-01 : f32
    %31 = vector.broadcast %cst_22 : f32 to vector<8x128xf32>
    %32 = arith.addf %30, %31 : vector<8x128xf32>
    %33 = vector.extract_strided_slice %16 {offsets = [0, 256], sizes = [8, 128], strides = [1, 1]} : vector<8x512xf32> to vector<8x128xf32>
    %34 = math.tanh %33 : vector<8x128xf32>
    %35 = vector.extract_strided_slice %16 {offsets = [0, 384], sizes = [8, 128], strides = [1, 1]} : vector<8x512xf32> to vector<8x128xf32>
    %cst_23 = arith.constant 5.000000e-01 : f32
    %36 = vector.broadcast %cst_23 : f32 to vector<8x128xf32>
    %37 = arith.mulf %36, %35 : vector<8x128xf32>
    %38 = math.tanh %37 : vector<8x128xf32>
    %cst_24 = arith.constant 5.000000e-01 : f32
    %39 = vector.broadcast %cst_24 : f32 to vector<8x128xf32>
    %40 = arith.mulf %39, %38 : vector<8x128xf32>
    %cst_25 = arith.constant 5.000000e-01 : f32
    %41 = vector.broadcast %cst_25 : f32 to vector<8x128xf32>
    %42 = arith.addf %40, %41 : vector<8x128xf32>
    %43 = arith.mulf %32, %11 : vector<8x128xf32>
    %44 = arith.mulf %24, %34 : vector<8x128xf32>
    %45 = arith.addf %43, %44 : vector<8x128xf32>
    %46 = math.tanh %45 : vector<8x128xf32>
    %47 = arith.mulf %42, %46 : vector<8x128xf32>
    %c8 = arith.constant 8 : index
    %c0_26 = arith.constant 0 : index
    %48 = vector.load %arg9[%c8, %c0_26] : memref<64x512xf32, #tpu.memory_space<vmem>>, vector<8x512xf32>
    %49 = arith.truncf %47 : vector<8x128xf32> to vector<8x128xbf16>
    %c0_27 = arith.constant 0 : index
    %c0_28 = arith.constant 0 : index
    %50 = vector.load %arg3[%c0_27, %c0_28] : memref<128x512xbf16, #tpu.memory_space<vmem>>, vector<128x512xbf16>
    %cst_29 = arith.constant dense<0.000000e+00> : vector<8x512xf32>
    %51 = tpu.matmul %49, %50, %cst_29 {dimension_numbers = #tpu.dot_dimension_numbers<[1], [0], [0], [1], [0, 0, 1, 1], [], []>} : vector<8x128xbf16>, vector<128x512xbf16>, vector<8x512xf32> -> vector<8x512xf32>
    %52 = arith.addf %48, %51 : vector<8x512xf32>
    %53 = vector.extract_strided_slice %52 {offsets = [0, 0], sizes = [8, 128], strides = [1, 1]} : vector<8x512xf32> to vector<8x128xf32>
    %cst_30 = arith.constant 5.000000e-01 : f32
    %54 = vector.broadcast %cst_30 : f32 to vector<8x128xf32>
    %55 = arith.mulf %54, %53 : vector<8x128xf32>
    %56 = math.tanh %55 : vector<8x128xf32>
    %cst_31 = arith.constant 5.000000e-01 : f32
    %57 = vector.broadcast %cst_31 : f32 to vector<8x128xf32>
    %58 = arith.mulf %57, %56 : vector<8x128xf32>
    %cst_32 = arith.constant 5.000000e-01 : f32
    %59 = vector.broadcast %cst_32 : f32 to vector<8x128xf32>
    %60 = arith.addf %58, %59 : vector<8x128xf32>
    %61 = vector.extract_strided_slice %52 {offsets = [0, 128], sizes = [8, 128], strides = [1, 1]} : vector<8x512xf32> to vector<8x128xf32>
    %cst_33 = arith.constant 5.000000e-01 : f32
    %62 = vector.broadcast %cst_33 : f32 to vector<8x128xf32>
    %63 = arith.mulf %62, %61 : vector<8x128xf32>
    %64 = math.tanh %63 : vector<8x128xf32>
    %cst_34 = arith.constant 5.000000e-01 : f32
    %65 = vector.broadcast %cst_34 : f32 to vector<8x128xf32>
    %66 = arith.mulf %65, %64 : vector<8x128xf32>
    %cst_35 = arith.constant 5.000000e-01 : f32
    %67 = vector.broadcast %cst_35 : f32 to vector<8x128xf32>
    %68 = arith.addf %66, %67 : vector<8x128xf32>
    %69 = vector.extract_strided_slice %52 {offsets = [0, 256], sizes = [8, 128], strides = [1, 1]} : vector<8x512xf32> to vector<8x128xf32>
    %70 = math.tanh %69 : vector<8x128xf32>
    %71 = vector.extract_strided_slice %52 {offsets = [0, 384], sizes = [8, 128], strides = [1, 1]} : vector<8x512xf32> to vector<8x128xf32>
    %cst_36 = arith.constant 5.000000e-01 : f32
    %72 = vector.broadcast %cst_36 : f32 to vector<8x128xf32>
    %73 = arith.mulf %72, %71 : vector<8x128xf32>
    %74 = math.tanh %73 : vector<8x128xf32>
    %cst_37 = arith.constant 5.000000e-01 : f32
    %75 = vector.broadcast %cst_37 : f32 to vector<8x128xf32>
    %76 = arith.mulf %75, %74 : vector<8x128xf32>
    %cst_38 = arith.constant 5.000000e-01 : f32
    %77 = vector.broadcast %cst_38 : f32 to vector<8x128xf32>
    %78 = arith.addf %76, %77 : vector<8x128xf32>
    %79 = arith.mulf %68, %45 : vector<8x128xf32>
    %80 = arith.mulf %60, %70 : vector<8x128xf32>
    %81 = arith.addf %79, %80 : vector<8x128xf32>
    %82 = math.tanh %81 : vector<8x128xf32>
    %83 = arith.mulf %78, %82 : vector<8x128xf32>
    %c16 = arith.constant 16 : index
    %c0_39 = arith.constant 0 : index
    %84 = vector.load %arg9[%c16, %c0_39] : memref<64x512xf32, #tpu.memory_space<vmem>>, vector<8x512xf32>
    %85 = arith.truncf %83 : vector<8x128xf32> to vector<8x128xbf16>
    %c0_40 = arith.constant 0 : index
    %c0_41 = arith.constant 0 : index
    %86 = vector.load %arg3[%c0_40, %c0_41] : memref<128x512xbf16, #tpu.memory_space<vmem>>, vector<128x512xbf16>
    %cst_42 = arith.constant dense<0.000000e+00> : vector<8x512xf32>
    %87 = tpu.matmul %85, %86, %cst_42 {dimension_numbers = #tpu.dot_dimension_numbers<[1], [0], [0], [1], [0, 0, 1, 1], [], []>} : vector<8x128xbf16>, vector<128x512xbf16>, vector<8x512xf32> -> vector<8x512xf32>
    %88 = arith.addf %84, %87 : vector<8x512xf32>
    %89 = vector.extract_strided_slice %88 {offsets = [0, 0], sizes = [8, 128], strides = [1, 1]} : vector<8x512xf32> to vector<8x128xf32>
    %cst_43 = arith.constant 5.000000e-01 : f32
    %90 = vector.broadcast %cst_43 : f32 to vector<8x128xf32>
    %91 = arith.mulf %90, %89 : vector<8x128xf32>
    %92 = math.tanh %91 : vector<8x128xf32>
    %cst_44 = arith.constant 5.000000e-01 : f32
    %93 = vector.broadcast %cst_44 : f32 to vector<8x128xf32>
    %94 = arith.mulf %93, %92 : vector<8x128xf32>
    %cst_45 = arith.constant 5.000000e-01 : f32
    %95 = vector.broadcast %cst_45 : f32 to vector<8x128xf32>
    %96 = arith.addf %94, %95 : vector<8x128xf32>
    %97 = vector.extract_strided_slice %88 {offsets = [0, 128], sizes = [8, 128], strides = [1, 1]} : vector<8x512xf32> to vector<8x128xf32>
    %cst_46 = arith.constant 5.000000e-01 : f32
    %98 = vector.broadcast %cst_46 : f32 to vector<8x128xf32>
    %99 = arith.mulf %98, %97 : vector<8x128xf32>
    %100 = math.tanh %99 : vector<8x128xf32>
    %cst_47 = arith.constant 5.000000e-01 : f32
    %101 = vector.broadcast %cst_47 : f32 to vector<8x128xf32>
    %102 = arith.mulf %101, %100 : vector<8x128xf32>
    %cst_48 = arith.constant 5.000000e-01 : f32
    %103 = vector.broadcast %cst_48 : f32 to vector<8x128xf32>
    %104 = arith.addf %102, %103 : vector<8x128xf32>
    %105 = vector.extract_strided_slice %88 {offsets = [0, 256], sizes = [8, 128], strides = [1, 1]} : vector<8x512xf32> to vector<8x128xf32>
    %106 = math.tanh %105 : vector<8x128xf32>
    %107 = vector.extract_strided_slice %88 {offsets = [0, 384], sizes = [8, 128], strides = [1, 1]} : vector<8x512xf32> to vector<8x128xf32>
    %cst_49 = arith.constant 5.000000e-01 : f32
    %108 = vector.broadcast %cst_49 : f32 to vector<8x128xf32>
    %109 = arith.mulf %108, %107 : vector<8x128xf32>
    %110 = math.tanh %109 : vector<8x128xf32>
    %cst_50 = arith.constant 5.000000e-01 : f32
    %111 = vector.broadcast %cst_50 : f32 to vector<8x128xf32>
    %112 = arith.mulf %111, %110 : vector<8x128xf32>
    %cst_51 = arith.constant 5.000000e-01 : f32
    %113 = vector.broadcast %cst_51 : f32 to vector<8x128xf32>
    %114 = arith.addf %112, %113 : vector<8x128xf32>
    %115 = arith.mulf %104, %81 : vector<8x128xf32>
    %116 = arith.mulf %96, %106 : vector<8x128xf32>
    %117 = arith.addf %115, %116 : vector<8x128xf32>
    %118 = math.tanh %117 : vector<8x128xf32>
    %119 = arith.mulf %114, %118 : vector<8x128xf32>
    %c24 = arith.constant 24 : index
    %c0_52 = arith.constant 0 : index
    %120 = vector.load %arg9[%c24, %c0_52] : memref<64x512xf32, #tpu.memory_space<vmem>>, vector<8x512xf32>
    %121 = arith.truncf %119 : vector<8x128xf32> to vector<8x128xbf16>
    %c0_53 = arith.constant 0 : index
    %c0_54 = arith.constant 0 : index
    %122 = vector.load %arg3[%c0_53, %c0_54] : memref<128x512xbf16, #tpu.memory_space<vmem>>, vector<128x512xbf16>
    %cst_55 = arith.constant dense<0.000000e+00> : vector<8x512xf32>
    %123 = tpu.matmul %121, %122, %cst_55 {dimension_numbers = #tpu.dot_dimension_numbers<[1], [0], [0], [1], [0, 0, 1, 1], [], []>} : vector<8x128xbf16>, vector<128x512xbf16>, vector<8x512xf32> -> vector<8x512xf32>
    %124 = arith.addf %120, %123 : vector<8x512xf32>
    %125 = vector.extract_strided_slice %124 {offsets = [0, 0], sizes = [8, 128], strides = [1, 1]} : vector<8x512xf32> to vector<8x128xf32>
    %cst_56 = arith.constant 5.000000e-01 : f32
    %126 = vector.broadcast %cst_56 : f32 to vector<8x128xf32>
    %127 = arith.mulf %126, %125 : vector<8x128xf32>
    %128 = math.tanh %127 : vector<8x128xf32>
    %cst_57 = arith.constant 5.000000e-01 : f32
    %129 = vector.broadcast %cst_57 : f32 to vector<8x128xf32>
    %130 = arith.mulf %129, %128 : vector<8x128xf32>
    %cst_58 = arith.constant 5.000000e-01 : f32
    %131 = vector.broadcast %cst_58 : f32 to vector<8x128xf32>
    %132 = arith.addf %130, %131 : vector<8x128xf32>
    %133 = vector.extract_strided_slice %124 {offsets = [0, 128], sizes = [8, 128], strides = [1, 1]} : vector<8x512xf32> to vector<8x128xf32>
    %cst_59 = arith.constant 5.000000e-01 : f32
    %134 = vector.broadcast %cst_59 : f32 to vector<8x128xf32>
    %135 = arith.mulf %134, %133 : vector<8x128xf32>
    %136 = math.tanh %135 : vector<8x128xf32>
    %cst_60 = arith.constant 5.000000e-01 : f32
    %137 = vector.broadcast %cst_60 : f32 to vector<8x128xf32>
    %138 = arith.mulf %137, %136 : vector<8x128xf32>
    %cst_61 = arith.constant 5.000000e-01 : f32
    %139 = vector.broadcast %cst_61 : f32 to vector<8x128xf32>
    %140 = arith.addf %138, %139 : vector<8x128xf32>
    %141 = vector.extract_strided_slice %124 {offsets = [0, 256], sizes = [8, 128], strides = [1, 1]} : vector<8x512xf32> to vector<8x128xf32>
    %142 = math.tanh %141 : vector<8x128xf32>
    %143 = vector.extract_strided_slice %124 {offsets = [0, 384], sizes = [8, 128], strides = [1, 1]} : vector<8x512xf32> to vector<8x128xf32>
    %cst_62 = arith.constant 5.000000e-01 : f32
    %144 = vector.broadcast %cst_62 : f32 to vector<8x128xf32>
    %145 = arith.mulf %144, %143 : vector<8x128xf32>
    %146 = math.tanh %145 : vector<8x128xf32>
    %cst_63 = arith.constant 5.000000e-01 : f32
    %147 = vector.broadcast %cst_63 : f32 to vector<8x128xf32>
    %148 = arith.mulf %147, %146 : vector<8x128xf32>
    %cst_64 = arith.constant 5.000000e-01 : f32
    %149 = vector.broadcast %cst_64 : f32 to vector<8x128xf32>
    %150 = arith.addf %148, %149 : vector<8x128xf32>
    %151 = arith.mulf %140, %117 : vector<8x128xf32>
    %152 = arith.mulf %132, %142 : vector<8x128xf32>
    %153 = arith.addf %151, %152 : vector<8x128xf32>
    %154 = math.tanh %153 : vector<8x128xf32>
    %155 = arith.mulf %150, %154 : vector<8x128xf32>
    %c32 = arith.constant 32 : index
    %c0_65 = arith.constant 0 : index
    %156 = vector.load %arg9[%c32, %c0_65] : memref<64x512xf32, #tpu.memory_space<vmem>>, vector<8x512xf32>
    %157 = arith.truncf %155 : vector<8x128xf32> to vector<8x128xbf16>
    %c0_66 = arith.constant 0 : index
    %c0_67 = arith.constant 0 : index
    %158 = vector.load %arg3[%c0_66, %c0_67] : memref<128x512xbf16, #tpu.memory_space<vmem>>, vector<128x512xbf16>
    %cst_68 = arith.constant dense<0.000000e+00> : vector<8x512xf32>
    %159 = tpu.matmul %157, %158, %cst_68 {dimension_numbers = #tpu.dot_dimension_numbers<[1], [0], [0], [1], [0, 0, 1, 1], [], []>} : vector<8x128xbf16>, vector<128x512xbf16>, vector<8x512xf32> -> vector<8x512xf32>
    %160 = arith.addf %156, %159 : vector<8x512xf32>
    %161 = vector.extract_strided_slice %160 {offsets = [0, 0], sizes = [8, 128], strides = [1, 1]} : vector<8x512xf32> to vector<8x128xf32>
    %cst_69 = arith.constant 5.000000e-01 : f32
    %162 = vector.broadcast %cst_69 : f32 to vector<8x128xf32>
    %163 = arith.mulf %162, %161 : vector<8x128xf32>
    %164 = math.tanh %163 : vector<8x128xf32>
    %cst_70 = arith.constant 5.000000e-01 : f32
    %165 = vector.broadcast %cst_70 : f32 to vector<8x128xf32>
    %166 = arith.mulf %165, %164 : vector<8x128xf32>
    %cst_71 = arith.constant 5.000000e-01 : f32
    %167 = vector.broadcast %cst_71 : f32 to vector<8x128xf32>
    %168 = arith.addf %166, %167 : vector<8x128xf32>
    %169 = vector.extract_strided_slice %160 {offsets = [0, 128], sizes = [8, 128], strides = [1, 1]} : vector<8x512xf32> to vector<8x128xf32>
    %cst_72 = arith.constant 5.000000e-01 : f32
    %170 = vector.broadcast %cst_72 : f32 to vector<8x128xf32>
    %171 = arith.mulf %170, %169 : vector<8x128xf32>
    %172 = math.tanh %171 : vector<8x128xf32>
    %cst_73 = arith.constant 5.000000e-01 : f32
    %173 = vector.broadcast %cst_73 : f32 to vector<8x128xf32>
    %174 = arith.mulf %173, %172 : vector<8x128xf32>
    %cst_74 = arith.constant 5.000000e-01 : f32
    %175 = vector.broadcast %cst_74 : f32 to vector<8x128xf32>
    %176 = arith.addf %174, %175 : vector<8x128xf32>
    %177 = vector.extract_strided_slice %160 {offsets = [0, 256], sizes = [8, 128], strides = [1, 1]} : vector<8x512xf32> to vector<8x128xf32>
    %178 = math.tanh %177 : vector<8x128xf32>
    %179 = vector.extract_strided_slice %160 {offsets = [0, 384], sizes = [8, 128], strides = [1, 1]} : vector<8x512xf32> to vector<8x128xf32>
    %cst_75 = arith.constant 5.000000e-01 : f32
    %180 = vector.broadcast %cst_75 : f32 to vector<8x128xf32>
    %181 = arith.mulf %180, %179 : vector<8x128xf32>
    %182 = math.tanh %181 : vector<8x128xf32>
    %cst_76 = arith.constant 5.000000e-01 : f32
    %183 = vector.broadcast %cst_76 : f32 to vector<8x128xf32>
    %184 = arith.mulf %183, %182 : vector<8x128xf32>
    %cst_77 = arith.constant 5.000000e-01 : f32
    %185 = vector.broadcast %cst_77 : f32 to vector<8x128xf32>
    %186 = arith.addf %184, %185 : vector<8x128xf32>
    %187 = arith.mulf %176, %153 : vector<8x128xf32>
    %188 = arith.mulf %168, %178 : vector<8x128xf32>
    %189 = arith.addf %187, %188 : vector<8x128xf32>
    %190 = math.tanh %189 : vector<8x128xf32>
    %191 = arith.mulf %186, %190 : vector<8x128xf32>
    %c40 = arith.constant 40 : index
    %c0_78 = arith.constant 0 : index
    %192 = vector.load %arg9[%c40, %c0_78] : memref<64x512xf32, #tpu.memory_space<vmem>>, vector<8x512xf32>
    %193 = arith.truncf %191 : vector<8x128xf32> to vector<8x128xbf16>
    %c0_79 = arith.constant 0 : index
    %c0_80 = arith.constant 0 : index
    %194 = vector.load %arg3[%c0_79, %c0_80] : memref<128x512xbf16, #tpu.memory_space<vmem>>, vector<128x512xbf16>
    %cst_81 = arith.constant dense<0.000000e+00> : vector<8x512xf32>
    %195 = tpu.matmul %193, %194, %cst_81 {dimension_numbers = #tpu.dot_dimension_numbers<[1], [0], [0], [1], [0, 0, 1, 1], [], []>} : vector<8x128xbf16>, vector<128x512xbf16>, vector<8x512xf32> -> vector<8x512xf32>
    %196 = arith.addf %192, %195 : vector<8x512xf32>
    %197 = vector.extract_strided_slice %196 {offsets = [0, 0], sizes = [8, 128], strides = [1, 1]} : vector<8x512xf32> to vector<8x128xf32>
    %cst_82 = arith.constant 5.000000e-01 : f32
    %198 = vector.broadcast %cst_82 : f32 to vector<8x128xf32>
    %199 = arith.mulf %198, %197 : vector<8x128xf32>
    %200 = math.tanh %199 : vector<8x128xf32>
    %cst_83 = arith.constant 5.000000e-01 : f32
    %201 = vector.broadcast %cst_83 : f32 to vector<8x128xf32>
    %202 = arith.mulf %201, %200 : vector<8x128xf32>
    %cst_84 = arith.constant 5.000000e-01 : f32
    %203 = vector.broadcast %cst_84 : f32 to vector<8x128xf32>
    %204 = arith.addf %202, %203 : vector<8x128xf32>
    %205 = vector.extract_strided_slice %196 {offsets = [0, 128], sizes = [8, 128], strides = [1, 1]} : vector<8x512xf32> to vector<8x128xf32>
    %cst_85 = arith.constant 5.000000e-01 : f32
    %206 = vector.broadcast %cst_85 : f32 to vector<8x128xf32>
    %207 = arith.mulf %206, %205 : vector<8x128xf32>
    %208 = math.tanh %207 : vector<8x128xf32>
    %cst_86 = arith.constant 5.000000e-01 : f32
    %209 = vector.broadcast %cst_86 : f32 to vector<8x128xf32>
    %210 = arith.mulf %209, %208 : vector<8x128xf32>
    %cst_87 = arith.constant 5.000000e-01 : f32
    %211 = vector.broadcast %cst_87 : f32 to vector<8x128xf32>
    %212 = arith.addf %210, %211 : vector<8x128xf32>
    %213 = vector.extract_strided_slice %196 {offsets = [0, 256], sizes = [8, 128], strides = [1, 1]} : vector<8x512xf32> to vector<8x128xf32>
    %214 = math.tanh %213 : vector<8x128xf32>
    %215 = vector.extract_strided_slice %196 {offsets = [0, 384], sizes = [8, 128], strides = [1, 1]} : vector<8x512xf32> to vector<8x128xf32>
    %cst_88 = arith.constant 5.000000e-01 : f32
    %216 = vector.broadcast %cst_88 : f32 to vector<8x128xf32>
    %217 = arith.mulf %216, %215 : vector<8x128xf32>
    %218 = math.tanh %217 : vector<8x128xf32>
    %cst_89 = arith.constant 5.000000e-01 : f32
    %219 = vector.broadcast %cst_89 : f32 to vector<8x128xf32>
    %220 = arith.mulf %219, %218 : vector<8x128xf32>
    %cst_90 = arith.constant 5.000000e-01 : f32
    %221 = vector.broadcast %cst_90 : f32 to vector<8x128xf32>
    %222 = arith.addf %220, %221 : vector<8x128xf32>
    %223 = arith.mulf %212, %189 : vector<8x128xf32>
    %224 = arith.mulf %204, %214 : vector<8x128xf32>
    %225 = arith.addf %223, %224 : vector<8x128xf32>
    %226 = math.tanh %225 : vector<8x128xf32>
    %227 = arith.mulf %222, %226 : vector<8x128xf32>
    %c48 = arith.constant 48 : index
    %c0_91 = arith.constant 0 : index
    %228 = vector.load %arg9[%c48, %c0_91] : memref<64x512xf32, #tpu.memory_space<vmem>>, vector<8x512xf32>
    %229 = arith.truncf %227 : vector<8x128xf32> to vector<8x128xbf16>
    %c0_92 = arith.constant 0 : index
    %c0_93 = arith.constant 0 : index
    %230 = vector.load %arg3[%c0_92, %c0_93] : memref<128x512xbf16, #tpu.memory_space<vmem>>, vector<128x512xbf16>
    %cst_94 = arith.constant dense<0.000000e+00> : vector<8x512xf32>
    %231 = tpu.matmul %229, %230, %cst_94 {dimension_numbers = #tpu.dot_dimension_numbers<[1], [0], [0], [1], [0, 0, 1, 1], [], []>} : vector<8x128xbf16>, vector<128x512xbf16>, vector<8x512xf32> -> vector<8x512xf32>
    %232 = arith.addf %228, %231 : vector<8x512xf32>
    %233 = vector.extract_strided_slice %232 {offsets = [0, 0], sizes = [8, 128], strides = [1, 1]} : vector<8x512xf32> to vector<8x128xf32>
    %cst_95 = arith.constant 5.000000e-01 : f32
    %234 = vector.broadcast %cst_95 : f32 to vector<8x128xf32>
    %235 = arith.mulf %234, %233 : vector<8x128xf32>
    %236 = math.tanh %235 : vector<8x128xf32>
    %cst_96 = arith.constant 5.000000e-01 : f32
    %237 = vector.broadcast %cst_96 : f32 to vector<8x128xf32>
    %238 = arith.mulf %237, %236 : vector<8x128xf32>
    %cst_97 = arith.constant 5.000000e-01 : f32
    %239 = vector.broadcast %cst_97 : f32 to vector<8x128xf32>
    %240 = arith.addf %238, %239 : vector<8x128xf32>
    %241 = vector.extract_strided_slice %232 {offsets = [0, 128], sizes = [8, 128], strides = [1, 1]} : vector<8x512xf32> to vector<8x128xf32>
    %cst_98 = arith.constant 5.000000e-01 : f32
    %242 = vector.broadcast %cst_98 : f32 to vector<8x128xf32>
    %243 = arith.mulf %242, %241 : vector<8x128xf32>
    %244 = math.tanh %243 : vector<8x128xf32>
    %cst_99 = arith.constant 5.000000e-01 : f32
    %245 = vector.broadcast %cst_99 : f32 to vector<8x128xf32>
    %246 = arith.mulf %245, %244 : vector<8x128xf32>
    %cst_100 = arith.constant 5.000000e-01 : f32
    %247 = vector.broadcast %cst_100 : f32 to vector<8x128xf32>
    %248 = arith.addf %246, %247 : vector<8x128xf32>
    %249 = vector.extract_strided_slice %232 {offsets = [0, 256], sizes = [8, 128], strides = [1, 1]} : vector<8x512xf32> to vector<8x128xf32>
    %250 = math.tanh %249 : vector<8x128xf32>
    %251 = vector.extract_strided_slice %232 {offsets = [0, 384], sizes = [8, 128], strides = [1, 1]} : vector<8x512xf32> to vector<8x128xf32>
    %cst_101 = arith.constant 5.000000e-01 : f32
    %252 = vector.broadcast %cst_101 : f32 to vector<8x128xf32>
    %253 = arith.mulf %252, %251 : vector<8x128xf32>
    %254 = math.tanh %253 : vector<8x128xf32>
    %cst_102 = arith.constant 5.000000e-01 : f32
    %255 = vector.broadcast %cst_102 : f32 to vector<8x128xf32>
    %256 = arith.mulf %255, %254 : vector<8x128xf32>
    %cst_103 = arith.constant 5.000000e-01 : f32
    %257 = vector.broadcast %cst_103 : f32 to vector<8x128xf32>
    %258 = arith.addf %256, %257 : vector<8x128xf32>
    %259 = arith.mulf %248, %225 : vector<8x128xf32>
    %260 = arith.mulf %240, %250 : vector<8x128xf32>
    %261 = arith.addf %259, %260 : vector<8x128xf32>
    %262 = math.tanh %261 : vector<8x128xf32>
    %263 = arith.mulf %258, %262 : vector<8x128xf32>
    %c56 = arith.constant 56 : index
    %c0_104 = arith.constant 0 : index
    %264 = vector.load %arg9[%c56, %c0_104] : memref<64x512xf32, #tpu.memory_space<vmem>>, vector<8x512xf32>
    %265 = arith.truncf %263 : vector<8x128xf32> to vector<8x128xbf16>
    %c0_105 = arith.constant 0 : index
    %c0_106 = arith.constant 0 : index
    %266 = vector.load %arg3[%c0_105, %c0_106] : memref<128x512xbf16, #tpu.memory_space<vmem>>, vector<128x512xbf16>
    %cst_107 = arith.constant dense<0.000000e+00> : vector<8x512xf32>
    %267 = tpu.matmul %265, %266, %cst_107 {dimension_numbers = #tpu.dot_dimension_numbers<[1], [0], [0], [1], [0, 0, 1, 1], [], []>} : vector<8x128xbf16>, vector<128x512xbf16>, vector<8x512xf32> -> vector<8x512xf32>
    %268 = arith.addf %264, %267 : vector<8x512xf32>
    %269 = vector.extract_strided_slice %268 {offsets = [0, 0], sizes = [8, 128], strides = [1, 1]} : vector<8x512xf32> to vector<8x128xf32>
    %cst_108 = arith.constant 5.000000e-01 : f32
    %270 = vector.broadcast %cst_108 : f32 to vector<8x128xf32>
    %271 = arith.mulf %270, %269 : vector<8x128xf32>
    %272 = math.tanh %271 : vector<8x128xf32>
    %cst_109 = arith.constant 5.000000e-01 : f32
    %273 = vector.broadcast %cst_109 : f32 to vector<8x128xf32>
    %274 = arith.mulf %273, %272 : vector<8x128xf32>
    %cst_110 = arith.constant 5.000000e-01 : f32
    %275 = vector.broadcast %cst_110 : f32 to vector<8x128xf32>
    %276 = arith.addf %274, %275 : vector<8x128xf32>
    %277 = vector.extract_strided_slice %268 {offsets = [0, 128], sizes = [8, 128], strides = [1, 1]} : vector<8x512xf32> to vector<8x128xf32>
    %cst_111 = arith.constant 5.000000e-01 : f32
    %278 = vector.broadcast %cst_111 : f32 to vector<8x128xf32>
    %279 = arith.mulf %278, %277 : vector<8x128xf32>
    %280 = math.tanh %279 : vector<8x128xf32>
    %cst_112 = arith.constant 5.000000e-01 : f32
    %281 = vector.broadcast %cst_112 : f32 to vector<8x128xf32>
    %282 = arith.mulf %281, %280 : vector<8x128xf32>
    %cst_113 = arith.constant 5.000000e-01 : f32
    %283 = vector.broadcast %cst_113 : f32 to vector<8x128xf32>
    %284 = arith.addf %282, %283 : vector<8x128xf32>
    %285 = vector.extract_strided_slice %268 {offsets = [0, 256], sizes = [8, 128], strides = [1, 1]} : vector<8x512xf32> to vector<8x128xf32>
    %286 = math.tanh %285 : vector<8x128xf32>
    %287 = vector.extract_strided_slice %268 {offsets = [0, 384], sizes = [8, 128], strides = [1, 1]} : vector<8x512xf32> to vector<8x128xf32>
    %cst_114 = arith.constant 5.000000e-01 : f32
    %288 = vector.broadcast %cst_114 : f32 to vector<8x128xf32>
    %289 = arith.mulf %288, %287 : vector<8x128xf32>
    %290 = math.tanh %289 : vector<8x128xf32>
    %cst_115 = arith.constant 5.000000e-01 : f32
    %291 = vector.broadcast %cst_115 : f32 to vector<8x128xf32>
    %292 = arith.mulf %291, %290 : vector<8x128xf32>
    %cst_116 = arith.constant 5.000000e-01 : f32
    %293 = vector.broadcast %cst_116 : f32 to vector<8x128xf32>
    %294 = arith.addf %292, %293 : vector<8x128xf32>
    %295 = arith.mulf %284, %261 : vector<8x128xf32>
    %296 = arith.mulf %276, %286 : vector<8x128xf32>
    %297 = arith.addf %295, %296 : vector<8x128xf32>
    %298 = math.tanh %297 : vector<8x128xf32>
    %299 = arith.mulf %294, %298 : vector<8x128xf32>
    %c0_117 = arith.constant 0 : index
    %c0_118 = arith.constant 0 : index
    %300 = vector.load %arg10[%c0_117, %c0_118] : memref<8x128xf32, #tpu.memory_space<vmem>>, vector<8x128xf32>
    tpu.vector_store %arg10[%c0_117, %c0_118], %299 {strides = array<i32>} : memref<8x128xf32, #tpu.memory_space<vmem>>, vector<8x128xf32>,
    %c0_119 = arith.constant 0 : index
    %c0_120 = arith.constant 0 : index
    %301 = vector.load %arg11[%c0_119, %c0_120] : memref<8x128xf32, #tpu.memory_space<vmem>>, vector<8x128xf32>
    tpu.vector_store %arg11[%c0_119, %c0_120], %297 {strides = array<i32>} : memref<8x128xf32, #tpu.memory_space<vmem>>, vector<8x128xf32>,
    %c0_i32_121 = arith.constant 0 : i32
    %302 = arith.cmpi eq, %arg0, %c0_i32_121 : i32
    %303 = arith.extui %302 : i1 to i32
    %c0_i32_122 = arith.constant 0 : i32
    %304 = arith.cmpi ne, %303, %c0_i32_122 : i32
    scf.if %304 {
      %c0_123 = arith.constant 0 : index
      %c0_124 = arith.constant 0 : index
      %305 = vector.load %arg7[%c0_123, %c0_124] : memref<8x128xf32, #tpu.memory_space<vmem>>, vector<8x128xf32>
      tpu.vector_store %arg7[%c0_123, %c0_124], %299 {strides = array<i32>} : memref<8x128xf32, #tpu.memory_space<vmem>>, vector<8x128xf32>,
      %c0_125 = arith.constant 0 : index
      %c0_126 = arith.constant 0 : index
      %306 = vector.load %arg8[%c0_125, %c0_126] : memref<8x128xf32, #tpu.memory_space<vmem>>, vector<8x128xf32>
      tpu.vector_store %arg8[%c0_125, %c0_126], %297 {strides = array<i32>} : memref<8x128xf32, #tpu.memory_space<vmem>>, vector<8x128xf32>,
    } else {
    }
    return
  }
  func.func @transform_0(%arg0: i32) -> (i32, i32) {
    %c0_i32 = arith.constant 0 : i32
    %c0_i32_0 = arith.constant 0 : i32
    return %arg0, %c0_i32 : i32, i32
  }
  func.func @transform_1(%arg0: i32) -> (i32, i32) {
    %c0_i32 = arith.constant 0 : i32
    %c0_i32_0 = arith.constant 0 : i32
    %c0_i32_1 = arith.constant 0 : i32
    return %c0_i32, %c0_i32_0 : i32, i32
  }
  func.func @transform_2(%arg0: i32) -> (i32, i32) {
    %c0_i32 = arith.constant 0 : i32
    %c0_i32_0 = arith.constant 0 : i32
    %c0_i32_1 = arith.constant 0 : i32
    return %c0_i32, %c0_i32_0 : i32, i32
  }
  func.func @transform_3(%arg0: i32) -> (i32, i32) {
    %c0_i32 = arith.constant 0 : i32
    %c0_i32_0 = arith.constant 0 : i32
    %c0_i32_1 = arith.constant 0 : i32
    return %c0_i32, %c0_i32_0 : i32, i32
  }
  func.func @transform_4(%arg0: i32) -> (i32, i32) {
    %c0_i32 = arith.constant 0 : i32
    %c0_i32_0 = arith.constant 0 : i32
    %c0_i32_1 = arith.constant 0 : i32
    return %c0_i32, %c0_i32_0 : i32, i32
  }
  func.func @transform_5(%arg0: i32) -> (i32, i32) {
    %c0_i32 = arith.constant 0 : i32
    %c0_i32_0 = arith.constant 0 : i32
    %c0_i32_1 = arith.constant 0 : i32
    return %c0_i32, %c0_i32_0 : i32, i32
  }
  func.func @transform_6(%arg0: i32) -> (i32, i32) {
    %c0_i32 = arith.constant 0 : i32
    %c0_i32_0 = arith.constant 0 : i32
    %c0_i32_1 = arith.constant 0 : i32
    return %c0_i32, %c0_i32_0 : i32, i32
  }
  func.func @transform_7(%arg0: i32) -> (i32, i32) {
    %c0_i32 = arith.constant 0 : i32
    %c0_i32_0 = arith.constant 0 : i32
    %c0_i32_1 = arith.constant 0 : i32
    return %c0_i32, %c0_i32_0 : i32, i32
  }
}

module attributes {stable_mosaic.version = 11 : i64} {
  func.func @_fuse_kernel(%arg0: memref<8x128xf32, #tpu.memory_space<vmem>>, %arg1: memref<8x128xf32, #tpu.memory_space<vmem>>, %arg2: memref<8x128xf32, #tpu.memory_space<vmem>>, %arg3: memref<8x128xf32, #tpu.memory_space<vmem>>, %arg4: memref<256x128xbf16, #tpu.memory_space<vmem>>, %arg5: memref<1x128xf32, #tpu.memory_space<vmem>>, %arg6: memref<256x128xbf16, #tpu.memory_space<vmem>>, %arg7: memref<1x128xf32, #tpu.memory_space<vmem>>, %arg8: memref<8x128xf32, #tpu.memory_space<vmem>>, %arg9: memref<8x128xf32, #tpu.memory_space<vmem>>) attributes {dimension_semantics = [], scalar_prefetch = 0 : i64, scratch_operands = 0 : i64, tpu.core_type = #tpu.core_type<tc>} {
    %c0 = arith.constant 0 : index
    %c0_0 = arith.constant 0 : index
    %0 = vector.load %arg0[%c0, %c0_0] : memref<8x128xf32, #tpu.memory_space<vmem>>, vector<8x128xf32>
    %1 = arith.truncf %0 : vector<8x128xf32> to vector<8x128xbf16>
    %c0_1 = arith.constant 0 : index
    %c0_2 = arith.constant 0 : index
    %2 = vector.load %arg4[%c0_1, %c0_2] : memref<256x128xbf16, #tpu.memory_space<vmem>>, vector<128x128xbf16>
    %cst = arith.constant dense<0.000000e+00> : vector<8x128xf32>
    %3 = tpu.matmul %1, %2, %cst {dimension_numbers = #tpu.dot_dimension_numbers<[1], [0], [0], [1], [0, 0, 1, 1], [], []>} : vector<8x128xbf16>, vector<128x128xbf16>, vector<8x128xf32> -> vector<8x128xf32>
    %c0_3 = arith.constant 0 : index
    %c0_4 = arith.constant 0 : index
    %4 = vector.load %arg1[%c0_3, %c0_4] : memref<8x128xf32, #tpu.memory_space<vmem>>, vector<8x128xf32>
    %5 = arith.truncf %4 : vector<8x128xf32> to vector<8x128xbf16>
    %c128 = arith.constant 128 : index
    %c0_5 = arith.constant 0 : index
    %6 = vector.load %arg4[%c128, %c0_5] : memref<256x128xbf16, #tpu.memory_space<vmem>>, vector<128x128xbf16>
    %cst_6 = arith.constant dense<0.000000e+00> : vector<8x128xf32>
    %7 = tpu.matmul %5, %6, %cst_6 {dimension_numbers = #tpu.dot_dimension_numbers<[1], [0], [0], [1], [0, 0, 1, 1], [], []>} : vector<8x128xbf16>, vector<128x128xbf16>, vector<8x128xf32> -> vector<8x128xf32>
    %8 = arith.addf %3, %7 : vector<8x128xf32>
    %c0_7 = arith.constant 0 : index
    %c0_8 = arith.constant 0 : index
    %9 = vector.load %arg5[%c0_7, %c0_8] : memref<1x128xf32, #tpu.memory_space<vmem>>, vector<1x128xf32>
    %10 = vector.broadcast %9 : vector<1x128xf32> to vector<8x128xf32>
    %11 = arith.addf %8, %10 : vector<8x128xf32>
    %c0_9 = arith.constant 0 : index
    %c0_10 = arith.constant 0 : index
    %12 = vector.load %arg8[%c0_9, %c0_10] : memref<8x128xf32, #tpu.memory_space<vmem>>, vector<8x128xf32>
    tpu.vector_store %arg8[%c0_9, %c0_10], %11 {strides = array<i32>} : memref<8x128xf32, #tpu.memory_space<vmem>>, vector<8x128xf32>,
    %c0_11 = arith.constant 0 : index
    %c0_12 = arith.constant 0 : index
    %13 = vector.load %arg2[%c0_11, %c0_12] : memref<8x128xf32, #tpu.memory_space<vmem>>, vector<8x128xf32>
    %14 = arith.truncf %13 : vector<8x128xf32> to vector<8x128xbf16>
    %c0_13 = arith.constant 0 : index
    %c0_14 = arith.constant 0 : index
    %15 = vector.load %arg6[%c0_13, %c0_14] : memref<256x128xbf16, #tpu.memory_space<vmem>>, vector<128x128xbf16>
    %cst_15 = arith.constant dense<0.000000e+00> : vector<8x128xf32>
    %16 = tpu.matmul %14, %15, %cst_15 {dimension_numbers = #tpu.dot_dimension_numbers<[1], [0], [0], [1], [0, 0, 1, 1], [], []>} : vector<8x128xbf16>, vector<128x128xbf16>, vector<8x128xf32> -> vector<8x128xf32>
    %c0_16 = arith.constant 0 : index
    %c0_17 = arith.constant 0 : index
    %17 = vector.load %arg3[%c0_16, %c0_17] : memref<8x128xf32, #tpu.memory_space<vmem>>, vector<8x128xf32>
    %18 = arith.truncf %17 : vector<8x128xf32> to vector<8x128xbf16>
    %c128_18 = arith.constant 128 : index
    %c0_19 = arith.constant 0 : index
    %19 = vector.load %arg6[%c128_18, %c0_19] : memref<256x128xbf16, #tpu.memory_space<vmem>>, vector<128x128xbf16>
    %cst_20 = arith.constant dense<0.000000e+00> : vector<8x128xf32>
    %20 = tpu.matmul %18, %19, %cst_20 {dimension_numbers = #tpu.dot_dimension_numbers<[1], [0], [0], [1], [0, 0, 1, 1], [], []>} : vector<8x128xbf16>, vector<128x128xbf16>, vector<8x128xf32> -> vector<8x128xf32>
    %21 = arith.addf %16, %20 : vector<8x128xf32>
    %c0_21 = arith.constant 0 : index
    %c0_22 = arith.constant 0 : index
    %22 = vector.load %arg7[%c0_21, %c0_22] : memref<1x128xf32, #tpu.memory_space<vmem>>, vector<1x128xf32>
    %23 = vector.broadcast %22 : vector<1x128xf32> to vector<8x128xf32>
    %24 = arith.addf %21, %23 : vector<8x128xf32>
    %c0_23 = arith.constant 0 : index
    %c0_24 = arith.constant 0 : index
    %25 = vector.load %arg9[%c0_23, %c0_24] : memref<8x128xf32, #tpu.memory_space<vmem>>, vector<8x128xf32>
    tpu.vector_store %arg9[%c0_23, %c0_24], %24 {strides = array<i32>} : memref<8x128xf32, #tpu.memory_space<vmem>>, vector<8x128xf32>,
    return
  }
}

module attributes {stable_mosaic.version = 11 : i64} {
  func.func @kernel(%arg0: i32, %arg1: memref<64x64xbf16, #tpu.memory_space<vmem>>, %arg2: memref<64x512xbf16, #tpu.memory_space<vmem>>, %arg3: memref<128x512xbf16, #tpu.memory_space<vmem>>, %arg4: memref<1x512xf32, #tpu.memory_space<vmem>>, %arg5: memref<8x128xf32, #tpu.memory_space<vmem>>, %arg6: memref<8x128xf32, #tpu.memory_space<vmem>>, %arg7: memref<128x256xbf16, #tpu.memory_space<vmem>>, %arg8: memref<1x256xf32, #tpu.memory_space<vmem>>, %arg9: memref<8x128xf32, #tpu.memory_space<vmem>>, %arg10: memref<8x128xf32, #tpu.memory_space<vmem>>, %arg11: memref<64x256xf32, #tpu.memory_space<vmem>>, %arg12: memref<64x512xf32, #tpu.memory_space<vmem>>, %arg13: memref<8x128xf32, #tpu.memory_space<vmem>>, %arg14: memref<8x128xf32, #tpu.memory_space<vmem>>, %arg15: memref<64x128xf32, #tpu.memory_space<vmem>>) attributes {dimension_semantics = [#tpu.dimension_semantics<arbitrary>], iteration_bounds = array<i64: 2>, scalar_prefetch = 0 : i64, scratch_operands = 4 : i64, tpu.core_type = #tpu.core_type<tc>, window_params = [{transform_indices = @transform_0, window_bounds = array<i64: 64, 64>}, {pipeline_mode = #tpu.pipeline_mode<synchronous>, transform_indices = @transform_1, window_bounds = array<i64: 64, 512>}, {pipeline_mode = #tpu.pipeline_mode<synchronous>, transform_indices = @transform_2, window_bounds = array<i64: 128, 512>}, {pipeline_mode = #tpu.pipeline_mode<synchronous>, transform_indices = @transform_3, window_bounds = array<i64: 1, 512>}, {pipeline_mode = #tpu.pipeline_mode<synchronous>, transform_indices = @transform_4, window_bounds = array<i64: 8, 128>}, {pipeline_mode = #tpu.pipeline_mode<synchronous>, transform_indices = @transform_5, window_bounds = array<i64: 8, 128>}, {pipeline_mode = #tpu.pipeline_mode<synchronous>, transform_indices = @transform_6, window_bounds = array<i64: 128, 256>}, {pipeline_mode = #tpu.pipeline_mode<synchronous>, transform_indices = @transform_7, window_bounds = array<i64: 1, 256>}, {pipeline_mode = #tpu.pipeline_mode<synchronous>, transform_indices = @transform_8, window_bounds = array<i64: 8, 128>}, {pipeline_mode = #tpu.pipeline_mode<synchronous>, transform_indices = @transform_9, window_bounds = array<i64: 8, 128>}, {transform_indices = @transform_10, window_bounds = array<i64: 64, 256>}]} {
    %c0_i32 = arith.constant 0 : i32
    %0 = arith.cmpi eq, %arg0, %c0_i32 : i32
    %1 = arith.extui %0 : i1 to i32
    %c0_i32_0 = arith.constant 0 : i32
    %2 = arith.cmpi ne, %1, %c0_i32_0 : i32
    scf.if %2 {
      %c0_163 = arith.constant 0 : index
      %c0_164 = arith.constant 0 : index
      %361 = vector.load %arg5[%c0_163, %c0_164] : memref<8x128xf32, #tpu.memory_space<vmem>>, vector<8x128xf32>
      %c0_165 = arith.constant 0 : index
      %c0_166 = arith.constant 0 : index
      %362 = vector.load %arg13[%c0_165, %c0_166] : memref<8x128xf32, #tpu.memory_space<vmem>>, vector<8x128xf32>
      tpu.vector_store %arg13[%c0_165, %c0_166], %361 {strides = array<i32>} : memref<8x128xf32, #tpu.memory_space<vmem>>, vector<8x128xf32>,
      %c0_167 = arith.constant 0 : index
      %c0_168 = arith.constant 0 : index
      %363 = vector.load %arg6[%c0_167, %c0_168] : memref<8x128xf32, #tpu.memory_space<vmem>>, vector<8x128xf32>
      %c0_169 = arith.constant 0 : index
      %c0_170 = arith.constant 0 : index
      %364 = vector.load %arg14[%c0_169, %c0_170] : memref<8x128xf32, #tpu.memory_space<vmem>>, vector<8x128xf32>
      tpu.vector_store %arg14[%c0_169, %c0_170], %363 {strides = array<i32>} : memref<8x128xf32, #tpu.memory_space<vmem>>, vector<8x128xf32>,
    } else {
    }
    %c0 = arith.constant 0 : index
    %c0_1 = arith.constant 0 : index
    %3 = vector.load %arg1[%c0, %c0_1] : memref<64x64xbf16, #tpu.memory_space<vmem>>, vector<64x64xbf16>
    %c0_2 = arith.constant 0 : index
    %c0_3 = arith.constant 0 : index
    %4 = vector.load %arg2[%c0_2, %c0_3] : memref<64x512xbf16, #tpu.memory_space<vmem>>, vector<64x512xbf16>
    %cst = arith.constant dense<0.000000e+00> : vector<64x512xf32>
    %5 = tpu.matmul %3, %4, %cst {dimension_numbers = #tpu.dot_dimension_numbers<[1], [0], [0], [1], [0, 0, 1, 1], [], []>} : vector<64x64xbf16>, vector<64x512xbf16>, vector<64x512xf32> -> vector<64x512xf32>
    %c0_4 = arith.constant 0 : index
    %c0_5 = arith.constant 0 : index
    %6 = vector.load %arg4[%c0_4, %c0_5] : memref<1x512xf32, #tpu.memory_space<vmem>>, vector<1x512xf32>
    %7 = vector.broadcast %6 : vector<1x512xf32> to vector<64x512xf32>
    %8 = arith.addf %5, %7 : vector<64x512xf32>
    %c0_6 = arith.constant 0 : index
    %c0_7 = arith.constant 0 : index
    %9 = vector.load %arg12[%c0_6, %c0_7] : memref<64x512xf32, #tpu.memory_space<vmem>>, vector<64x512xf32>
    tpu.vector_store %arg12[%c0_6, %c0_7], %8 {strides = array<i32>} : memref<64x512xf32, #tpu.memory_space<vmem>>, vector<64x512xf32>,
    %c0_8 = arith.constant 0 : index
    %c0_9 = arith.constant 0 : index
    %10 = vector.load %arg13[%c0_8, %c0_9] : memref<8x128xf32, #tpu.memory_space<vmem>>, vector<8x128xf32>
    %c0_10 = arith.constant 0 : index
    %c0_11 = arith.constant 0 : index
    %11 = vector.load %arg14[%c0_10, %c0_11] : memref<8x128xf32, #tpu.memory_space<vmem>>, vector<8x128xf32>
    %c0_12 = arith.constant 0 : index
    %c0_13 = arith.constant 0 : index
    %12 = vector.load %arg12[%c0_12, %c0_13] : memref<64x512xf32, #tpu.memory_space<vmem>>, vector<8x512xf32>
    %13 = arith.truncf %10 : vector<8x128xf32> to vector<8x128xbf16>
    %c0_14 = arith.constant 0 : index
    %c0_15 = arith.constant 0 : index
    %14 = vector.load %arg3[%c0_14, %c0_15] : memref<128x512xbf16, #tpu.memory_space<vmem>>, vector<128x512xbf16>
    %cst_16 = arith.constant dense<0.000000e+00> : vector<8x512xf32>
    %15 = tpu.matmul %13, %14, %cst_16 {dimension_numbers = #tpu.dot_dimension_numbers<[1], [0], [0], [1], [0, 0, 1, 1], [], []>} : vector<8x128xbf16>, vector<128x512xbf16>, vector<8x512xf32> -> vector<8x512xf32>
    %16 = arith.addf %12, %15 : vector<8x512xf32>
    %17 = vector.extract_strided_slice %16 {offsets = [0, 0], sizes = [8, 128], strides = [1, 1]} : vector<8x512xf32> to vector<8x128xf32>
    %cst_17 = arith.constant 5.000000e-01 : f32
    %18 = vector.broadcast %cst_17 : f32 to vector<8x128xf32>
    %19 = arith.mulf %18, %17 : vector<8x128xf32>
    %20 = math.tanh %19 : vector<8x128xf32>
    %cst_18 = arith.constant 5.000000e-01 : f32
    %21 = vector.broadcast %cst_18 : f32 to vector<8x128xf32>
    %22 = arith.mulf %21, %20 : vector<8x128xf32>
    %cst_19 = arith.constant 5.000000e-01 : f32
    %23 = vector.broadcast %cst_19 : f32 to vector<8x128xf32>
    %24 = arith.addf %22, %23 : vector<8x128xf32>
    %25 = vector.extract_strided_slice %16 {offsets = [0, 128], sizes = [8, 128], strides = [1, 1]} : vector<8x512xf32> to vector<8x128xf32>
    %cst_20 = arith.constant 5.000000e-01 : f32
    %26 = vector.broadcast %cst_20 : f32 to vector<8x128xf32>
    %27 = arith.mulf %26, %25 : vector<8x128xf32>
    %28 = math.tanh %27 : vector<8x128xf32>
    %cst_21 = arith.constant 5.000000e-01 : f32
    %29 = vector.broadcast %cst_21 : f32 to vector<8x128xf32>
    %30 = arith.mulf %29, %28 : vector<8x128xf32>
    %cst_22 = arith.constant 5.000000e-01 : f32
    %31 = vector.broadcast %cst_22 : f32 to vector<8x128xf32>
    %32 = arith.addf %30, %31 : vector<8x128xf32>
    %33 = vector.extract_strided_slice %16 {offsets = [0, 256], sizes = [8, 128], strides = [1, 1]} : vector<8x512xf32> to vector<8x128xf32>
    %34 = math.tanh %33 : vector<8x128xf32>
    %35 = vector.extract_strided_slice %16 {offsets = [0, 384], sizes = [8, 128], strides = [1, 1]} : vector<8x512xf32> to vector<8x128xf32>
    %cst_23 = arith.constant 5.000000e-01 : f32
    %36 = vector.broadcast %cst_23 : f32 to vector<8x128xf32>
    %37 = arith.mulf %36, %35 : vector<8x128xf32>
    %38 = math.tanh %37 : vector<8x128xf32>
    %cst_24 = arith.constant 5.000000e-01 : f32
    %39 = vector.broadcast %cst_24 : f32 to vector<8x128xf32>
    %40 = arith.mulf %39, %38 : vector<8x128xf32>
    %cst_25 = arith.constant 5.000000e-01 : f32
    %41 = vector.broadcast %cst_25 : f32 to vector<8x128xf32>
    %42 = arith.addf %40, %41 : vector<8x128xf32>
    %43 = arith.mulf %32, %11 : vector<8x128xf32>
    %44 = arith.mulf %24, %34 : vector<8x128xf32>
    %45 = arith.addf %43, %44 : vector<8x128xf32>
    %46 = math.tanh %45 : vector<8x128xf32>
    %47 = arith.mulf %42, %46 : vector<8x128xf32>
    %c8_i32 = arith.constant 8 : i32
    %48 = arith.muli %arg0, %c8_i32 : i32
    %c0_i32_26 = arith.constant 0 : i32
    %49 = arith.addi %48, %c0_i32_26 : i32
    %c10_i32 = arith.constant 10 : i32
    %50 = arith.cmpi slt, %49, %c10_i32 : i32
    %51 = arith.select %50, %47, %10 : vector<8x128xf32>
    %52 = arith.select %50, %45, %11 : vector<8x128xf32>
    %c0_27 = arith.constant 0 : index
    %c0_28 = arith.constant 0 : index
    %53 = vector.load %arg15[%c0_27, %c0_28] : memref<64x128xf32, #tpu.memory_space<vmem>>, vector<8x128xf32>
    tpu.vector_store %arg15[%c0_27, %c0_28], %51 {strides = array<i32>} : memref<64x128xf32, #tpu.memory_space<vmem>>, vector<8x128xf32>,
    %c8 = arith.constant 8 : index
    %c0_29 = arith.constant 0 : index
    %54 = vector.load %arg12[%c8, %c0_29] : memref<64x512xf32, #tpu.memory_space<vmem>>, vector<8x512xf32>
    %55 = arith.truncf %51 : vector<8x128xf32> to vector<8x128xbf16>
    %c0_30 = arith.constant 0 : index
    %c0_31 = arith.constant 0 : index
    %56 = vector.load %arg3[%c0_30, %c0_31] : memref<128x512xbf16, #tpu.memory_space<vmem>>, vector<128x512xbf16>
    %cst_32 = arith.constant dense<0.000000e+00> : vector<8x512xf32>
    %57 = tpu.matmul %55, %56, %cst_32 {dimension_numbers = #tpu.dot_dimension_numbers<[1], [0], [0], [1], [0, 0, 1, 1], [], []>} : vector<8x128xbf16>, vector<128x512xbf16>, vector<8x512xf32> -> vector<8x512xf32>
    %58 = arith.addf %54, %57 : vector<8x512xf32>
    %59 = vector.extract_strided_slice %58 {offsets = [0, 0], sizes = [8, 128], strides = [1, 1]} : vector<8x512xf32> to vector<8x128xf32>
    %cst_33 = arith.constant 5.000000e-01 : f32
    %60 = vector.broadcast %cst_33 : f32 to vector<8x128xf32>
    %61 = arith.mulf %60, %59 : vector<8x128xf32>
    %62 = math.tanh %61 : vector<8x128xf32>
    %cst_34 = arith.constant 5.000000e-01 : f32
    %63 = vector.broadcast %cst_34 : f32 to vector<8x128xf32>
    %64 = arith.mulf %63, %62 : vector<8x128xf32>
    %cst_35 = arith.constant 5.000000e-01 : f32
    %65 = vector.broadcast %cst_35 : f32 to vector<8x128xf32>
    %66 = arith.addf %64, %65 : vector<8x128xf32>
    %67 = vector.extract_strided_slice %58 {offsets = [0, 128], sizes = [8, 128], strides = [1, 1]} : vector<8x512xf32> to vector<8x128xf32>
    %cst_36 = arith.constant 5.000000e-01 : f32
    %68 = vector.broadcast %cst_36 : f32 to vector<8x128xf32>
    %69 = arith.mulf %68, %67 : vector<8x128xf32>
    %70 = math.tanh %69 : vector<8x128xf32>
    %cst_37 = arith.constant 5.000000e-01 : f32
    %71 = vector.broadcast %cst_37 : f32 to vector<8x128xf32>
    %72 = arith.mulf %71, %70 : vector<8x128xf32>
    %cst_38 = arith.constant 5.000000e-01 : f32
    %73 = vector.broadcast %cst_38 : f32 to vector<8x128xf32>
    %74 = arith.addf %72, %73 : vector<8x128xf32>
    %75 = vector.extract_strided_slice %58 {offsets = [0, 256], sizes = [8, 128], strides = [1, 1]} : vector<8x512xf32> to vector<8x128xf32>
    %76 = math.tanh %75 : vector<8x128xf32>
    %77 = vector.extract_strided_slice %58 {offsets = [0, 384], sizes = [8, 128], strides = [1, 1]} : vector<8x512xf32> to vector<8x128xf32>
    %cst_39 = arith.constant 5.000000e-01 : f32
    %78 = vector.broadcast %cst_39 : f32 to vector<8x128xf32>
    %79 = arith.mulf %78, %77 : vector<8x128xf32>
    %80 = math.tanh %79 : vector<8x128xf32>
    %cst_40 = arith.constant 5.000000e-01 : f32
    %81 = vector.broadcast %cst_40 : f32 to vector<8x128xf32>
    %82 = arith.mulf %81, %80 : vector<8x128xf32>
    %cst_41 = arith.constant 5.000000e-01 : f32
    %83 = vector.broadcast %cst_41 : f32 to vector<8x128xf32>
    %84 = arith.addf %82, %83 : vector<8x128xf32>
    %85 = arith.mulf %74, %52 : vector<8x128xf32>
    %86 = arith.mulf %66, %76 : vector<8x128xf32>
    %87 = arith.addf %85, %86 : vector<8x128xf32>
    %88 = math.tanh %87 : vector<8x128xf32>
    %89 = arith.mulf %84, %88 : vector<8x128xf32>
    %c8_i32_42 = arith.constant 8 : i32
    %90 = arith.muli %arg0, %c8_i32_42 : i32
    %c1_i32 = arith.constant 1 : i32
    %91 = arith.addi %90, %c1_i32 : i32
    %c10_i32_43 = arith.constant 10 : i32
    %92 = arith.cmpi slt, %91, %c10_i32_43 : i32
    %93 = arith.select %92, %89, %51 : vector<8x128xf32>
    %94 = arith.select %92, %87, %52 : vector<8x128xf32>
    %c8_44 = arith.constant 8 : index
    %c0_45 = arith.constant 0 : index
    %95 = vector.load %arg15[%c8_44, %c0_45] : memref<64x128xf32, #tpu.memory_space<vmem>>, vector<8x128xf32>
    tpu.vector_store %arg15[%c8_44, %c0_45], %93 {strides = array<i32>} : memref<64x128xf32, #tpu.memory_space<vmem>>, vector<8x128xf32>,
    %c16 = arith.constant 16 : index
    %c0_46 = arith.constant 0 : index
    %96 = vector.load %arg12[%c16, %c0_46] : memref<64x512xf32, #tpu.memory_space<vmem>>, vector<8x512xf32>
    %97 = arith.truncf %93 : vector<8x128xf32> to vector<8x128xbf16>
    %c0_47 = arith.constant 0 : index
    %c0_48 = arith.constant 0 : index
    %98 = vector.load %arg3[%c0_47, %c0_48] : memref<128x512xbf16, #tpu.memory_space<vmem>>, vector<128x512xbf16>
    %cst_49 = arith.constant dense<0.000000e+00> : vector<8x512xf32>
    %99 = tpu.matmul %97, %98, %cst_49 {dimension_numbers = #tpu.dot_dimension_numbers<[1], [0], [0], [1], [0, 0, 1, 1], [], []>} : vector<8x128xbf16>, vector<128x512xbf16>, vector<8x512xf32> -> vector<8x512xf32>
    %100 = arith.addf %96, %99 : vector<8x512xf32>
    %101 = vector.extract_strided_slice %100 {offsets = [0, 0], sizes = [8, 128], strides = [1, 1]} : vector<8x512xf32> to vector<8x128xf32>
    %cst_50 = arith.constant 5.000000e-01 : f32
    %102 = vector.broadcast %cst_50 : f32 to vector<8x128xf32>
    %103 = arith.mulf %102, %101 : vector<8x128xf32>
    %104 = math.tanh %103 : vector<8x128xf32>
    %cst_51 = arith.constant 5.000000e-01 : f32
    %105 = vector.broadcast %cst_51 : f32 to vector<8x128xf32>
    %106 = arith.mulf %105, %104 : vector<8x128xf32>
    %cst_52 = arith.constant 5.000000e-01 : f32
    %107 = vector.broadcast %cst_52 : f32 to vector<8x128xf32>
    %108 = arith.addf %106, %107 : vector<8x128xf32>
    %109 = vector.extract_strided_slice %100 {offsets = [0, 128], sizes = [8, 128], strides = [1, 1]} : vector<8x512xf32> to vector<8x128xf32>
    %cst_53 = arith.constant 5.000000e-01 : f32
    %110 = vector.broadcast %cst_53 : f32 to vector<8x128xf32>
    %111 = arith.mulf %110, %109 : vector<8x128xf32>
    %112 = math.tanh %111 : vector<8x128xf32>
    %cst_54 = arith.constant 5.000000e-01 : f32
    %113 = vector.broadcast %cst_54 : f32 to vector<8x128xf32>
    %114 = arith.mulf %113, %112 : vector<8x128xf32>
    %cst_55 = arith.constant 5.000000e-01 : f32
    %115 = vector.broadcast %cst_55 : f32 to vector<8x128xf32>
    %116 = arith.addf %114, %115 : vector<8x128xf32>
    %117 = vector.extract_strided_slice %100 {offsets = [0, 256], sizes = [8, 128], strides = [1, 1]} : vector<8x512xf32> to vector<8x128xf32>
    %118 = math.tanh %117 : vector<8x128xf32>
    %119 = vector.extract_strided_slice %100 {offsets = [0, 384], sizes = [8, 128], strides = [1, 1]} : vector<8x512xf32> to vector<8x128xf32>
    %cst_56 = arith.constant 5.000000e-01 : f32
    %120 = vector.broadcast %cst_56 : f32 to vector<8x128xf32>
    %121 = arith.mulf %120, %119 : vector<8x128xf32>
    %122 = math.tanh %121 : vector<8x128xf32>
    %cst_57 = arith.constant 5.000000e-01 : f32
    %123 = vector.broadcast %cst_57 : f32 to vector<8x128xf32>
    %124 = arith.mulf %123, %122 : vector<8x128xf32>
    %cst_58 = arith.constant 5.000000e-01 : f32
    %125 = vector.broadcast %cst_58 : f32 to vector<8x128xf32>
    %126 = arith.addf %124, %125 : vector<8x128xf32>
    %127 = arith.mulf %116, %94 : vector<8x128xf32>
    %128 = arith.mulf %108, %118 : vector<8x128xf32>
    %129 = arith.addf %127, %128 : vector<8x128xf32>
    %130 = math.tanh %129 : vector<8x128xf32>
    %131 = arith.mulf %126, %130 : vector<8x128xf32>
    %c8_i32_59 = arith.constant 8 : i32
    %132 = arith.muli %arg0, %c8_i32_59 : i32
    %c2_i32 = arith.constant 2 : i32
    %133 = arith.addi %132, %c2_i32 : i32
    %c10_i32_60 = arith.constant 10 : i32
    %134 = arith.cmpi slt, %133, %c10_i32_60 : i32
    %135 = arith.select %134, %131, %93 : vector<8x128xf32>
    %136 = arith.select %134, %129, %94 : vector<8x128xf32>
    %c16_61 = arith.constant 16 : index
    %c0_62 = arith.constant 0 : index
    %137 = vector.load %arg15[%c16_61, %c0_62] : memref<64x128xf32, #tpu.memory_space<vmem>>, vector<8x128xf32>
    tpu.vector_store %arg15[%c16_61, %c0_62], %135 {strides = array<i32>} : memref<64x128xf32, #tpu.memory_space<vmem>>, vector<8x128xf32>,
    %c24 = arith.constant 24 : index
    %c0_63 = arith.constant 0 : index
    %138 = vector.load %arg12[%c24, %c0_63] : memref<64x512xf32, #tpu.memory_space<vmem>>, vector<8x512xf32>
    %139 = arith.truncf %135 : vector<8x128xf32> to vector<8x128xbf16>
    %c0_64 = arith.constant 0 : index
    %c0_65 = arith.constant 0 : index
    %140 = vector.load %arg3[%c0_64, %c0_65] : memref<128x512xbf16, #tpu.memory_space<vmem>>, vector<128x512xbf16>
    %cst_66 = arith.constant dense<0.000000e+00> : vector<8x512xf32>
    %141 = tpu.matmul %139, %140, %cst_66 {dimension_numbers = #tpu.dot_dimension_numbers<[1], [0], [0], [1], [0, 0, 1, 1], [], []>} : vector<8x128xbf16>, vector<128x512xbf16>, vector<8x512xf32> -> vector<8x512xf32>
    %142 = arith.addf %138, %141 : vector<8x512xf32>
    %143 = vector.extract_strided_slice %142 {offsets = [0, 0], sizes = [8, 128], strides = [1, 1]} : vector<8x512xf32> to vector<8x128xf32>
    %cst_67 = arith.constant 5.000000e-01 : f32
    %144 = vector.broadcast %cst_67 : f32 to vector<8x128xf32>
    %145 = arith.mulf %144, %143 : vector<8x128xf32>
    %146 = math.tanh %145 : vector<8x128xf32>
    %cst_68 = arith.constant 5.000000e-01 : f32
    %147 = vector.broadcast %cst_68 : f32 to vector<8x128xf32>
    %148 = arith.mulf %147, %146 : vector<8x128xf32>
    %cst_69 = arith.constant 5.000000e-01 : f32
    %149 = vector.broadcast %cst_69 : f32 to vector<8x128xf32>
    %150 = arith.addf %148, %149 : vector<8x128xf32>
    %151 = vector.extract_strided_slice %142 {offsets = [0, 128], sizes = [8, 128], strides = [1, 1]} : vector<8x512xf32> to vector<8x128xf32>
    %cst_70 = arith.constant 5.000000e-01 : f32
    %152 = vector.broadcast %cst_70 : f32 to vector<8x128xf32>
    %153 = arith.mulf %152, %151 : vector<8x128xf32>
    %154 = math.tanh %153 : vector<8x128xf32>
    %cst_71 = arith.constant 5.000000e-01 : f32
    %155 = vector.broadcast %cst_71 : f32 to vector<8x128xf32>
    %156 = arith.mulf %155, %154 : vector<8x128xf32>
    %cst_72 = arith.constant 5.000000e-01 : f32
    %157 = vector.broadcast %cst_72 : f32 to vector<8x128xf32>
    %158 = arith.addf %156, %157 : vector<8x128xf32>
    %159 = vector.extract_strided_slice %142 {offsets = [0, 256], sizes = [8, 128], strides = [1, 1]} : vector<8x512xf32> to vector<8x128xf32>
    %160 = math.tanh %159 : vector<8x128xf32>
    %161 = vector.extract_strided_slice %142 {offsets = [0, 384], sizes = [8, 128], strides = [1, 1]} : vector<8x512xf32> to vector<8x128xf32>
    %cst_73 = arith.constant 5.000000e-01 : f32
    %162 = vector.broadcast %cst_73 : f32 to vector<8x128xf32>
    %163 = arith.mulf %162, %161 : vector<8x128xf32>
    %164 = math.tanh %163 : vector<8x128xf32>
    %cst_74 = arith.constant 5.000000e-01 : f32
    %165 = vector.broadcast %cst_74 : f32 to vector<8x128xf32>
    %166 = arith.mulf %165, %164 : vector<8x128xf32>
    %cst_75 = arith.constant 5.000000e-01 : f32
    %167 = vector.broadcast %cst_75 : f32 to vector<8x128xf32>
    %168 = arith.addf %166, %167 : vector<8x128xf32>
    %169 = arith.mulf %158, %136 : vector<8x128xf32>
    %170 = arith.mulf %150, %160 : vector<8x128xf32>
    %171 = arith.addf %169, %170 : vector<8x128xf32>
    %172 = math.tanh %171 : vector<8x128xf32>
    %173 = arith.mulf %168, %172 : vector<8x128xf32>
    %c8_i32_76 = arith.constant 8 : i32
    %174 = arith.muli %arg0, %c8_i32_76 : i32
    %c3_i32 = arith.constant 3 : i32
    %175 = arith.addi %174, %c3_i32 : i32
    %c10_i32_77 = arith.constant 10 : i32
    %176 = arith.cmpi slt, %175, %c10_i32_77 : i32
    %177 = arith.select %176, %173, %135 : vector<8x128xf32>
    %178 = arith.select %176, %171, %136 : vector<8x128xf32>
    %c24_78 = arith.constant 24 : index
    %c0_79 = arith.constant 0 : index
    %179 = vector.load %arg15[%c24_78, %c0_79] : memref<64x128xf32, #tpu.memory_space<vmem>>, vector<8x128xf32>
    tpu.vector_store %arg15[%c24_78, %c0_79], %177 {strides = array<i32>} : memref<64x128xf32, #tpu.memory_space<vmem>>, vector<8x128xf32>,
    %c32 = arith.constant 32 : index
    %c0_80 = arith.constant 0 : index
    %180 = vector.load %arg12[%c32, %c0_80] : memref<64x512xf32, #tpu.memory_space<vmem>>, vector<8x512xf32>
    %181 = arith.truncf %177 : vector<8x128xf32> to vector<8x128xbf16>
    %c0_81 = arith.constant 0 : index
    %c0_82 = arith.constant 0 : index
    %182 = vector.load %arg3[%c0_81, %c0_82] : memref<128x512xbf16, #tpu.memory_space<vmem>>, vector<128x512xbf16>
    %cst_83 = arith.constant dense<0.000000e+00> : vector<8x512xf32>
    %183 = tpu.matmul %181, %182, %cst_83 {dimension_numbers = #tpu.dot_dimension_numbers<[1], [0], [0], [1], [0, 0, 1, 1], [], []>} : vector<8x128xbf16>, vector<128x512xbf16>, vector<8x512xf32> -> vector<8x512xf32>
    %184 = arith.addf %180, %183 : vector<8x512xf32>
    %185 = vector.extract_strided_slice %184 {offsets = [0, 0], sizes = [8, 128], strides = [1, 1]} : vector<8x512xf32> to vector<8x128xf32>
    %cst_84 = arith.constant 5.000000e-01 : f32
    %186 = vector.broadcast %cst_84 : f32 to vector<8x128xf32>
    %187 = arith.mulf %186, %185 : vector<8x128xf32>
    %188 = math.tanh %187 : vector<8x128xf32>
    %cst_85 = arith.constant 5.000000e-01 : f32
    %189 = vector.broadcast %cst_85 : f32 to vector<8x128xf32>
    %190 = arith.mulf %189, %188 : vector<8x128xf32>
    %cst_86 = arith.constant 5.000000e-01 : f32
    %191 = vector.broadcast %cst_86 : f32 to vector<8x128xf32>
    %192 = arith.addf %190, %191 : vector<8x128xf32>
    %193 = vector.extract_strided_slice %184 {offsets = [0, 128], sizes = [8, 128], strides = [1, 1]} : vector<8x512xf32> to vector<8x128xf32>
    %cst_87 = arith.constant 5.000000e-01 : f32
    %194 = vector.broadcast %cst_87 : f32 to vector<8x128xf32>
    %195 = arith.mulf %194, %193 : vector<8x128xf32>
    %196 = math.tanh %195 : vector<8x128xf32>
    %cst_88 = arith.constant 5.000000e-01 : f32
    %197 = vector.broadcast %cst_88 : f32 to vector<8x128xf32>
    %198 = arith.mulf %197, %196 : vector<8x128xf32>
    %cst_89 = arith.constant 5.000000e-01 : f32
    %199 = vector.broadcast %cst_89 : f32 to vector<8x128xf32>
    %200 = arith.addf %198, %199 : vector<8x128xf32>
    %201 = vector.extract_strided_slice %184 {offsets = [0, 256], sizes = [8, 128], strides = [1, 1]} : vector<8x512xf32> to vector<8x128xf32>
    %202 = math.tanh %201 : vector<8x128xf32>
    %203 = vector.extract_strided_slice %184 {offsets = [0, 384], sizes = [8, 128], strides = [1, 1]} : vector<8x512xf32> to vector<8x128xf32>
    %cst_90 = arith.constant 5.000000e-01 : f32
    %204 = vector.broadcast %cst_90 : f32 to vector<8x128xf32>
    %205 = arith.mulf %204, %203 : vector<8x128xf32>
    %206 = math.tanh %205 : vector<8x128xf32>
    %cst_91 = arith.constant 5.000000e-01 : f32
    %207 = vector.broadcast %cst_91 : f32 to vector<8x128xf32>
    %208 = arith.mulf %207, %206 : vector<8x128xf32>
    %cst_92 = arith.constant 5.000000e-01 : f32
    %209 = vector.broadcast %cst_92 : f32 to vector<8x128xf32>
    %210 = arith.addf %208, %209 : vector<8x128xf32>
    %211 = arith.mulf %200, %178 : vector<8x128xf32>
    %212 = arith.mulf %192, %202 : vector<8x128xf32>
    %213 = arith.addf %211, %212 : vector<8x128xf32>
    %214 = math.tanh %213 : vector<8x128xf32>
    %215 = arith.mulf %210, %214 : vector<8x128xf32>
    %c8_i32_93 = arith.constant 8 : i32
    %216 = arith.muli %arg0, %c8_i32_93 : i32
    %c4_i32 = arith.constant 4 : i32
    %217 = arith.addi %216, %c4_i32 : i32
    %c10_i32_94 = arith.constant 10 : i32
    %218 = arith.cmpi slt, %217, %c10_i32_94 : i32
    %219 = arith.select %218, %215, %177 : vector<8x128xf32>
    %220 = arith.select %218, %213, %178 : vector<8x128xf32>
    %c32_95 = arith.constant 32 : index
    %c0_96 = arith.constant 0 : index
    %221 = vector.load %arg15[%c32_95, %c0_96] : memref<64x128xf32, #tpu.memory_space<vmem>>, vector<8x128xf32>
    tpu.vector_store %arg15[%c32_95, %c0_96], %219 {strides = array<i32>} : memref<64x128xf32, #tpu.memory_space<vmem>>, vector<8x128xf32>,
    %c40 = arith.constant 40 : index
    %c0_97 = arith.constant 0 : index
    %222 = vector.load %arg12[%c40, %c0_97] : memref<64x512xf32, #tpu.memory_space<vmem>>, vector<8x512xf32>
    %223 = arith.truncf %219 : vector<8x128xf32> to vector<8x128xbf16>
    %c0_98 = arith.constant 0 : index
    %c0_99 = arith.constant 0 : index
    %224 = vector.load %arg3[%c0_98, %c0_99] : memref<128x512xbf16, #tpu.memory_space<vmem>>, vector<128x512xbf16>
    %cst_100 = arith.constant dense<0.000000e+00> : vector<8x512xf32>
    %225 = tpu.matmul %223, %224, %cst_100 {dimension_numbers = #tpu.dot_dimension_numbers<[1], [0], [0], [1], [0, 0, 1, 1], [], []>} : vector<8x128xbf16>, vector<128x512xbf16>, vector<8x512xf32> -> vector<8x512xf32>
    %226 = arith.addf %222, %225 : vector<8x512xf32>
    %227 = vector.extract_strided_slice %226 {offsets = [0, 0], sizes = [8, 128], strides = [1, 1]} : vector<8x512xf32> to vector<8x128xf32>
    %cst_101 = arith.constant 5.000000e-01 : f32
    %228 = vector.broadcast %cst_101 : f32 to vector<8x128xf32>
    %229 = arith.mulf %228, %227 : vector<8x128xf32>
    %230 = math.tanh %229 : vector<8x128xf32>
    %cst_102 = arith.constant 5.000000e-01 : f32
    %231 = vector.broadcast %cst_102 : f32 to vector<8x128xf32>
    %232 = arith.mulf %231, %230 : vector<8x128xf32>
    %cst_103 = arith.constant 5.000000e-01 : f32
    %233 = vector.broadcast %cst_103 : f32 to vector<8x128xf32>
    %234 = arith.addf %232, %233 : vector<8x128xf32>
    %235 = vector.extract_strided_slice %226 {offsets = [0, 128], sizes = [8, 128], strides = [1, 1]} : vector<8x512xf32> to vector<8x128xf32>
    %cst_104 = arith.constant 5.000000e-01 : f32
    %236 = vector.broadcast %cst_104 : f32 to vector<8x128xf32>
    %237 = arith.mulf %236, %235 : vector<8x128xf32>
    %238 = math.tanh %237 : vector<8x128xf32>
    %cst_105 = arith.constant 5.000000e-01 : f32
    %239 = vector.broadcast %cst_105 : f32 to vector<8x128xf32>
    %240 = arith.mulf %239, %238 : vector<8x128xf32>
    %cst_106 = arith.constant 5.000000e-01 : f32
    %241 = vector.broadcast %cst_106 : f32 to vector<8x128xf32>
    %242 = arith.addf %240, %241 : vector<8x128xf32>
    %243 = vector.extract_strided_slice %226 {offsets = [0, 256], sizes = [8, 128], strides = [1, 1]} : vector<8x512xf32> to vector<8x128xf32>
    %244 = math.tanh %243 : vector<8x128xf32>
    %245 = vector.extract_strided_slice %226 {offsets = [0, 384], sizes = [8, 128], strides = [1, 1]} : vector<8x512xf32> to vector<8x128xf32>
    %cst_107 = arith.constant 5.000000e-01 : f32
    %246 = vector.broadcast %cst_107 : f32 to vector<8x128xf32>
    %247 = arith.mulf %246, %245 : vector<8x128xf32>
    %248 = math.tanh %247 : vector<8x128xf32>
    %cst_108 = arith.constant 5.000000e-01 : f32
    %249 = vector.broadcast %cst_108 : f32 to vector<8x128xf32>
    %250 = arith.mulf %249, %248 : vector<8x128xf32>
    %cst_109 = arith.constant 5.000000e-01 : f32
    %251 = vector.broadcast %cst_109 : f32 to vector<8x128xf32>
    %252 = arith.addf %250, %251 : vector<8x128xf32>
    %253 = arith.mulf %242, %220 : vector<8x128xf32>
    %254 = arith.mulf %234, %244 : vector<8x128xf32>
    %255 = arith.addf %253, %254 : vector<8x128xf32>
    %256 = math.tanh %255 : vector<8x128xf32>
    %257 = arith.mulf %252, %256 : vector<8x128xf32>
    %c8_i32_110 = arith.constant 8 : i32
    %258 = arith.muli %arg0, %c8_i32_110 : i32
    %c5_i32 = arith.constant 5 : i32
    %259 = arith.addi %258, %c5_i32 : i32
    %c10_i32_111 = arith.constant 10 : i32
    %260 = arith.cmpi slt, %259, %c10_i32_111 : i32
    %261 = arith.select %260, %257, %219 : vector<8x128xf32>
    %262 = arith.select %260, %255, %220 : vector<8x128xf32>
    %c40_112 = arith.constant 40 : index
    %c0_113 = arith.constant 0 : index
    %263 = vector.load %arg15[%c40_112, %c0_113] : memref<64x128xf32, #tpu.memory_space<vmem>>, vector<8x128xf32>
    tpu.vector_store %arg15[%c40_112, %c0_113], %261 {strides = array<i32>} : memref<64x128xf32, #tpu.memory_space<vmem>>, vector<8x128xf32>,
    %c48 = arith.constant 48 : index
    %c0_114 = arith.constant 0 : index
    %264 = vector.load %arg12[%c48, %c0_114] : memref<64x512xf32, #tpu.memory_space<vmem>>, vector<8x512xf32>
    %265 = arith.truncf %261 : vector<8x128xf32> to vector<8x128xbf16>
    %c0_115 = arith.constant 0 : index
    %c0_116 = arith.constant 0 : index
    %266 = vector.load %arg3[%c0_115, %c0_116] : memref<128x512xbf16, #tpu.memory_space<vmem>>, vector<128x512xbf16>
    %cst_117 = arith.constant dense<0.000000e+00> : vector<8x512xf32>
    %267 = tpu.matmul %265, %266, %cst_117 {dimension_numbers = #tpu.dot_dimension_numbers<[1], [0], [0], [1], [0, 0, 1, 1], [], []>} : vector<8x128xbf16>, vector<128x512xbf16>, vector<8x512xf32> -> vector<8x512xf32>
    %268 = arith.addf %264, %267 : vector<8x512xf32>
    %269 = vector.extract_strided_slice %268 {offsets = [0, 0], sizes = [8, 128], strides = [1, 1]} : vector<8x512xf32> to vector<8x128xf32>
    %cst_118 = arith.constant 5.000000e-01 : f32
    %270 = vector.broadcast %cst_118 : f32 to vector<8x128xf32>
    %271 = arith.mulf %270, %269 : vector<8x128xf32>
    %272 = math.tanh %271 : vector<8x128xf32>
    %cst_119 = arith.constant 5.000000e-01 : f32
    %273 = vector.broadcast %cst_119 : f32 to vector<8x128xf32>
    %274 = arith.mulf %273, %272 : vector<8x128xf32>
    %cst_120 = arith.constant 5.000000e-01 : f32
    %275 = vector.broadcast %cst_120 : f32 to vector<8x128xf32>
    %276 = arith.addf %274, %275 : vector<8x128xf32>
    %277 = vector.extract_strided_slice %268 {offsets = [0, 128], sizes = [8, 128], strides = [1, 1]} : vector<8x512xf32> to vector<8x128xf32>
    %cst_121 = arith.constant 5.000000e-01 : f32
    %278 = vector.broadcast %cst_121 : f32 to vector<8x128xf32>
    %279 = arith.mulf %278, %277 : vector<8x128xf32>
    %280 = math.tanh %279 : vector<8x128xf32>
    %cst_122 = arith.constant 5.000000e-01 : f32
    %281 = vector.broadcast %cst_122 : f32 to vector<8x128xf32>
    %282 = arith.mulf %281, %280 : vector<8x128xf32>
    %cst_123 = arith.constant 5.000000e-01 : f32
    %283 = vector.broadcast %cst_123 : f32 to vector<8x128xf32>
    %284 = arith.addf %282, %283 : vector<8x128xf32>
    %285 = vector.extract_strided_slice %268 {offsets = [0, 256], sizes = [8, 128], strides = [1, 1]} : vector<8x512xf32> to vector<8x128xf32>
    %286 = math.tanh %285 : vector<8x128xf32>
    %287 = vector.extract_strided_slice %268 {offsets = [0, 384], sizes = [8, 128], strides = [1, 1]} : vector<8x512xf32> to vector<8x128xf32>
    %cst_124 = arith.constant 5.000000e-01 : f32
    %288 = vector.broadcast %cst_124 : f32 to vector<8x128xf32>
    %289 = arith.mulf %288, %287 : vector<8x128xf32>
    %290 = math.tanh %289 : vector<8x128xf32>
    %cst_125 = arith.constant 5.000000e-01 : f32
    %291 = vector.broadcast %cst_125 : f32 to vector<8x128xf32>
    %292 = arith.mulf %291, %290 : vector<8x128xf32>
    %cst_126 = arith.constant 5.000000e-01 : f32
    %293 = vector.broadcast %cst_126 : f32 to vector<8x128xf32>
    %294 = arith.addf %292, %293 : vector<8x128xf32>
    %295 = arith.mulf %284, %262 : vector<8x128xf32>
    %296 = arith.mulf %276, %286 : vector<8x128xf32>
    %297 = arith.addf %295, %296 : vector<8x128xf32>
    %298 = math.tanh %297 : vector<8x128xf32>
    %299 = arith.mulf %294, %298 : vector<8x128xf32>
    %c8_i32_127 = arith.constant 8 : i32
    %300 = arith.muli %arg0, %c8_i32_127 : i32
    %c6_i32 = arith.constant 6 : i32
    %301 = arith.addi %300, %c6_i32 : i32
    %c10_i32_128 = arith.constant 10 : i32
    %302 = arith.cmpi slt, %301, %c10_i32_128 : i32
    %303 = arith.select %302, %299, %261 : vector<8x128xf32>
    %304 = arith.select %302, %297, %262 : vector<8x128xf32>
    %c48_129 = arith.constant 48 : index
    %c0_130 = arith.constant 0 : index
    %305 = vector.load %arg15[%c48_129, %c0_130] : memref<64x128xf32, #tpu.memory_space<vmem>>, vector<8x128xf32>
    tpu.vector_store %arg15[%c48_129, %c0_130], %303 {strides = array<i32>} : memref<64x128xf32, #tpu.memory_space<vmem>>, vector<8x128xf32>,
    %c56 = arith.constant 56 : index
    %c0_131 = arith.constant 0 : index
    %306 = vector.load %arg12[%c56, %c0_131] : memref<64x512xf32, #tpu.memory_space<vmem>>, vector<8x512xf32>
    %307 = arith.truncf %303 : vector<8x128xf32> to vector<8x128xbf16>
    %c0_132 = arith.constant 0 : index
    %c0_133 = arith.constant 0 : index
    %308 = vector.load %arg3[%c0_132, %c0_133] : memref<128x512xbf16, #tpu.memory_space<vmem>>, vector<128x512xbf16>
    %cst_134 = arith.constant dense<0.000000e+00> : vector<8x512xf32>
    %309 = tpu.matmul %307, %308, %cst_134 {dimension_numbers = #tpu.dot_dimension_numbers<[1], [0], [0], [1], [0, 0, 1, 1], [], []>} : vector<8x128xbf16>, vector<128x512xbf16>, vector<8x512xf32> -> vector<8x512xf32>
    %310 = arith.addf %306, %309 : vector<8x512xf32>
    %311 = vector.extract_strided_slice %310 {offsets = [0, 0], sizes = [8, 128], strides = [1, 1]} : vector<8x512xf32> to vector<8x128xf32>
    %cst_135 = arith.constant 5.000000e-01 : f32
    %312 = vector.broadcast %cst_135 : f32 to vector<8x128xf32>
    %313 = arith.mulf %312, %311 : vector<8x128xf32>
    %314 = math.tanh %313 : vector<8x128xf32>
    %cst_136 = arith.constant 5.000000e-01 : f32
    %315 = vector.broadcast %cst_136 : f32 to vector<8x128xf32>
    %316 = arith.mulf %315, %314 : vector<8x128xf32>
    %cst_137 = arith.constant 5.000000e-01 : f32
    %317 = vector.broadcast %cst_137 : f32 to vector<8x128xf32>
    %318 = arith.addf %316, %317 : vector<8x128xf32>
    %319 = vector.extract_strided_slice %310 {offsets = [0, 128], sizes = [8, 128], strides = [1, 1]} : vector<8x512xf32> to vector<8x128xf32>
    %cst_138 = arith.constant 5.000000e-01 : f32
    %320 = vector.broadcast %cst_138 : f32 to vector<8x128xf32>
    %321 = arith.mulf %320, %319 : vector<8x128xf32>
    %322 = math.tanh %321 : vector<8x128xf32>
    %cst_139 = arith.constant 5.000000e-01 : f32
    %323 = vector.broadcast %cst_139 : f32 to vector<8x128xf32>
    %324 = arith.mulf %323, %322 : vector<8x128xf32>
    %cst_140 = arith.constant 5.000000e-01 : f32
    %325 = vector.broadcast %cst_140 : f32 to vector<8x128xf32>
    %326 = arith.addf %324, %325 : vector<8x128xf32>
    %327 = vector.extract_strided_slice %310 {offsets = [0, 256], sizes = [8, 128], strides = [1, 1]} : vector<8x512xf32> to vector<8x128xf32>
    %328 = math.tanh %327 : vector<8x128xf32>
    %329 = vector.extract_strided_slice %310 {offsets = [0, 384], sizes = [8, 128], strides = [1, 1]} : vector<8x512xf32> to vector<8x128xf32>
    %cst_141 = arith.constant 5.000000e-01 : f32
    %330 = vector.broadcast %cst_141 : f32 to vector<8x128xf32>
    %331 = arith.mulf %330, %329 : vector<8x128xf32>
    %332 = math.tanh %331 : vector<8x128xf32>
    %cst_142 = arith.constant 5.000000e-01 : f32
    %333 = vector.broadcast %cst_142 : f32 to vector<8x128xf32>
    %334 = arith.mulf %333, %332 : vector<8x128xf32>
    %cst_143 = arith.constant 5.000000e-01 : f32
    %335 = vector.broadcast %cst_143 : f32 to vector<8x128xf32>
    %336 = arith.addf %334, %335 : vector<8x128xf32>
    %337 = arith.mulf %326, %304 : vector<8x128xf32>
    %338 = arith.mulf %318, %328 : vector<8x128xf32>
    %339 = arith.addf %337, %338 : vector<8x128xf32>
    %340 = math.tanh %339 : vector<8x128xf32>
    %341 = arith.mulf %336, %340 : vector<8x128xf32>
    %c8_i32_144 = arith.constant 8 : i32
    %342 = arith.muli %arg0, %c8_i32_144 : i32
    %c7_i32 = arith.constant 7 : i32
    %343 = arith.addi %342, %c7_i32 : i32
    %c10_i32_145 = arith.constant 10 : i32
    %344 = arith.cmpi slt, %343, %c10_i32_145 : i32
    %345 = arith.select %344, %341, %303 : vector<8x128xf32>
    %346 = arith.select %344, %339, %304 : vector<8x128xf32>
    %c56_146 = arith.constant 56 : index
    %c0_147 = arith.constant 0 : index
    %347 = vector.load %arg15[%c56_146, %c0_147] : memref<64x128xf32, #tpu.memory_space<vmem>>, vector<8x128xf32>
    tpu.vector_store %arg15[%c56_146, %c0_147], %345 {strides = array<i32>} : memref<64x128xf32, #tpu.memory_space<vmem>>, vector<8x128xf32>,
    %c0_148 = arith.constant 0 : index
    %c0_149 = arith.constant 0 : index
    %348 = vector.load %arg13[%c0_148, %c0_149] : memref<8x128xf32, #tpu.memory_space<vmem>>, vector<8x128xf32>
    tpu.vector_store %arg13[%c0_148, %c0_149], %345 {strides = array<i32>} : memref<8x128xf32, #tpu.memory_space<vmem>>, vector<8x128xf32>,
    %c0_150 = arith.constant 0 : index
    %c0_151 = arith.constant 0 : index
    %349 = vector.load %arg14[%c0_150, %c0_151] : memref<8x128xf32, #tpu.memory_space<vmem>>, vector<8x128xf32>
    tpu.vector_store %arg14[%c0_150, %c0_151], %346 {strides = array<i32>} : memref<8x128xf32, #tpu.memory_space<vmem>>, vector<8x128xf32>,
    %c1_i32_152 = arith.constant 1 : i32
    %350 = arith.cmpi eq, %arg0, %c1_i32_152 : i32
    %351 = arith.extui %350 : i1 to i32
    %c0_i32_153 = arith.constant 0 : i32
    %352 = arith.cmpi ne, %351, %c0_i32_153 : i32
    scf.if %352 {
      %c0_163 = arith.constant 0 : index
      %c0_164 = arith.constant 0 : index
      %361 = vector.load %arg9[%c0_163, %c0_164] : memref<8x128xf32, #tpu.memory_space<vmem>>, vector<8x128xf32>
      tpu.vector_store %arg9[%c0_163, %c0_164], %345 {strides = array<i32>} : memref<8x128xf32, #tpu.memory_space<vmem>>, vector<8x128xf32>,
      %c0_165 = arith.constant 0 : index
      %c0_166 = arith.constant 0 : index
      %362 = vector.load %arg10[%c0_165, %c0_166] : memref<8x128xf32, #tpu.memory_space<vmem>>, vector<8x128xf32>
      tpu.vector_store %arg10[%c0_165, %c0_166], %346 {strides = array<i32>} : memref<8x128xf32, #tpu.memory_space<vmem>>, vector<8x128xf32>,
    } else {
    }
    %c0_154 = arith.constant 0 : index
    %c0_155 = arith.constant 0 : index
    %353 = vector.load %arg15[%c0_154, %c0_155] : memref<64x128xf32, #tpu.memory_space<vmem>>, vector<64x128xf32>
    %354 = arith.truncf %353 : vector<64x128xf32> to vector<64x128xbf16>
    %c0_156 = arith.constant 0 : index
    %c0_157 = arith.constant 0 : index
    %355 = vector.load %arg7[%c0_156, %c0_157] : memref<128x256xbf16, #tpu.memory_space<vmem>>, vector<128x256xbf16>
    %cst_158 = arith.constant dense<0.000000e+00> : vector<64x256xf32>
    %356 = tpu.matmul %354, %355, %cst_158 {dimension_numbers = #tpu.dot_dimension_numbers<[1], [0], [0], [1], [0, 0, 1, 1], [], []>} : vector<64x128xbf16>, vector<128x256xbf16>, vector<64x256xf32> -> vector<64x256xf32>
    %c0_159 = arith.constant 0 : index
    %c0_160 = arith.constant 0 : index
    %357 = vector.load %arg8[%c0_159, %c0_160] : memref<1x256xf32, #tpu.memory_space<vmem>>, vector<1x256xf32>
    %358 = vector.broadcast %357 : vector<1x256xf32> to vector<64x256xf32>
    %359 = arith.addf %356, %358 : vector<64x256xf32>
    %c0_161 = arith.constant 0 : index
    %c0_162 = arith.constant 0 : index
    %360 = vector.load %arg11[%c0_161, %c0_162] : memref<64x256xf32, #tpu.memory_space<vmem>>, vector<64x256xf32>
    tpu.vector_store %arg11[%c0_161, %c0_162], %359 {strides = array<i32>} : memref<64x256xf32, #tpu.memory_space<vmem>>, vector<64x256xf32>,
    return
  }
  func.func @transform_0(%arg0: i32) -> (i32, i32) {
    %c0_i32 = arith.constant 0 : i32
    %c0_i32_0 = arith.constant 0 : i32
    return %arg0, %c0_i32 : i32, i32
  }
  func.func @transform_1(%arg0: i32) -> (i32, i32) {
    %c0_i32 = arith.constant 0 : i32
    %c0_i32_0 = arith.constant 0 : i32
    %c0_i32_1 = arith.constant 0 : i32
    return %c0_i32, %c0_i32_0 : i32, i32
  }
  func.func @transform_2(%arg0: i32) -> (i32, i32) {
    %c0_i32 = arith.constant 0 : i32
    %c0_i32_0 = arith.constant 0 : i32
    %c0_i32_1 = arith.constant 0 : i32
    return %c0_i32, %c0_i32_0 : i32, i32
  }
  func.func @transform_3(%arg0: i32) -> (i32, i32) {
    %c0_i32 = arith.constant 0 : i32
    %c0_i32_0 = arith.constant 0 : i32
    %c0_i32_1 = arith.constant 0 : i32
    return %c0_i32, %c0_i32_0 : i32, i32
  }
  func.func @transform_4(%arg0: i32) -> (i32, i32) {
    %c0_i32 = arith.constant 0 : i32
    %c0_i32_0 = arith.constant 0 : i32
    %c0_i32_1 = arith.constant 0 : i32
    return %c0_i32, %c0_i32_0 : i32, i32
  }
  func.func @transform_5(%arg0: i32) -> (i32, i32) {
    %c0_i32 = arith.constant 0 : i32
    %c0_i32_0 = arith.constant 0 : i32
    %c0_i32_1 = arith.constant 0 : i32
    return %c0_i32, %c0_i32_0 : i32, i32
  }
  func.func @transform_6(%arg0: i32) -> (i32, i32) {
    %c0_i32 = arith.constant 0 : i32
    %c0_i32_0 = arith.constant 0 : i32
    %c0_i32_1 = arith.constant 0 : i32
    return %c0_i32, %c0_i32_0 : i32, i32
  }
  func.func @transform_7(%arg0: i32) -> (i32, i32) {
    %c0_i32 = arith.constant 0 : i32
    %c0_i32_0 = arith.constant 0 : i32
    %c0_i32_1 = arith.constant 0 : i32
    return %c0_i32, %c0_i32_0 : i32, i32
  }
  func.func @transform_8(%arg0: i32) -> (i32, i32) {
    %c0_i32 = arith.constant 0 : i32
    %c0_i32_0 = arith.constant 0 : i32
    %c0_i32_1 = arith.constant 0 : i32
    return %c0_i32, %c0_i32_0 : i32, i32
  }
  func.func @transform_9(%arg0: i32) -> (i32, i32) {
    %c0_i32 = arith.constant 0 : i32
    %c0_i32_0 = arith.constant 0 : i32
    %c0_i32_1 = arith.constant 0 : i32
    return %c0_i32, %c0_i32_0 : i32, i32
  }
  func.func @transform_10(%arg0: i32) -> (i32, i32) {
    %c0_i32 = arith.constant 0 : i32
    %c0_i32_0 = arith.constant 0 : i32
    return %arg0, %c0_i32 : i32, i32
  }
}

</mosaic_0001>

<bundles_post_ra>
// kernel: multimodal_lstm_forward.6
= control target key start
LH: loop header
LB: loop body
LE: loop exit
PB: predicated region body
PF: predicated region fallthrough
CT: control target
= control target key end

     0   :  { %v666_v0 = vmov 0.0   ;;  %vm667_vm0 = vmmov 0   ;;  %s878_s4 = inlined_call_operand.vmem [shape: bf16[256,128], index: 4, kind: input, shape index: {}]   ;;  %s879_s6 = inlined_call_operand.vmem [shape: bf16[256,128], index: 6, kind: input, shape index: {}]   ;;  %s880_s1 = inlined_call_operand.vmem [shape: f32[8,128], index: 1, kind: input, shape index: {}]   ;;  %s881_s0 = inlined_call_operand.vmem [shape: f32[8,128], index: 0, kind: input, shape index: {}]   ;;  %s882_s3 = inlined_call_operand.vmem [shape: f32[8,128], index: 3, kind: input, shape index: {}]   ;;  %s883_s2 = inlined_call_operand.vmem [shape: f32[8,128], index: 2, kind: input, shape index: {}]   ;;  %s884_s5 = inlined_call_operand.vmem [shape: f32[1,128], index: 5, kind: input, shape index: {}]   ;;  %s885_s8 = inlined_call_operand.vmem [shape: f32[8,128], index: 8, kind: output, shape index: {0}]   ;;  %s886_s7 = inlined_call_operand.vmem [shape: f32[1,128], index: 7, kind: input, shape index: {}]   ;;  %s887_s9 = inlined_call_operand.vmem [shape: f32[8,128], index: 9, kind: output, shape index: {1}]  }
   0x1   :  { %552 = vmatprep.subr.bf16.mxu0 %v666_v0  ;;  %572 = vmatprep.subr.bf16.mxu1 %v666_v0  ;;  %v634_v1 = vld [vmem:[%s878_s4 + $0x40] sm:$0xff]   ;;  %v636_v3 = vld [vmem:[%s878_s4 + $0x48] sm:$0xff]   ;;  %v638_v5 = vld [vmem:[%s878_s4 + $0x50] sm:$0xff]  }
   0x2   :  { %v635_v2 = vld [vmem:[%s878_s4] sm:$0xff]   ;;  %568 = vmatprep.mubr.msk.bf16.mxu0 %vm667_vm0, %v666_v0  ;;  %588 = vmatprep.mubr.msk.bf16.mxu1 %vm667_vm0, %v666_v0  ;;  %v637_v4 = vld [vmem:[%s878_s4 + $0x8] sm:$0xff]   ;;  %v639_v6 = vld [vmem:[%s878_s4 + $0x10] sm:$0xff]  }
   0x3   :  { %553 = vmatpush3.bf16.msra.mxu0 %v634_v1  ;;  %573 = vmatpush3.bf16.msra.mxu1 %v635_v2  ;;  %v640_v7 = vld [vmem:[%s878_s4 + $0x58] sm:$0xff]   ;;  %v642_v9 = vld [vmem:[%s878_s4 + $0x60] sm:$0xff]   ;;  %v644_v11 = vld [vmem:[%s878_s4 + $0x68] sm:$0xff]  }
   0x4   :  { %554 = vmatprep.subr.bf16.mxu0 %v666_v0  ;;  %574 = vmatprep.subr.bf16.mxu1 %v666_v0  ;;  %v641_v8 = vld [vmem:[%s878_s4 + $0x18] sm:$0xff]   ;;  %v643_v10 = vld [vmem:[%s878_s4 + $0x20] sm:$0xff]   ;;  %v645_v12 = vld [vmem:[%s878_s4 + $0x28] sm:$0xff]  }
   0x5   :  { %v646_v13 = vld [vmem:[%s878_s4 + $0x70] sm:$0xff]   ;;  %v648_v15 = vld [vmem:[%s878_s4 + $0x78] sm:$0xff]   ;;  %v50_v17 = vld [vmem:[%s880_s1] sm:$0xff] }
   0x6   :  { %v647_v14 = vld [vmem:[%s878_s4 + $0x30] sm:$0xff]   ;;  %v649_v16 = vld [vmem:[%s878_s4 + $0x38] sm:$0xff]   ;;  %v32_v18 = vld [vmem:[%s881_s0] sm:$0xff]  ;;  %v51_v19 = vpack.c.bf16 %v50_v17, %v50_v17 }
   0x7   :  { %555 = vmatpush3.bf16.msra.mxu0 %v636_v3  ;;  %575 = vmatpush3.bf16.msra.mxu1 %v637_v4  ;;  %v33_v20 = vpack.c.bf16 %v32_v18, %v32_v18  ;;  %v650_v21 = vld [vmem:[%s879_s6 + $0x40] sm:$0xff]   ;;  %v652_v23 = vld [vmem:[%s879_s6 + $0x48] sm:$0xff]   ;;  %v654_v25 = vld [vmem:[%s879_s6 + $0x50] sm:$0xff]  }
   0x8   :  { %556 = vmatprep.subr.bf16.mxu0 %v666_v0  ;;  %576 = vmatprep.subr.bf16.mxu1 %v666_v0  ;;  %v651_v22 = vld [vmem:[%s879_s6] sm:$0xff]   ;;  %v653_v24 = vld [vmem:[%s879_s6 + $0x8] sm:$0xff]   ;;  %v655_v26 = vld [vmem:[%s879_s6 + $0x10] sm:$0xff]  }
   0x9   :  { %v656_v27 = vld [vmem:[%s879_s6 + $0x58] sm:$0xff]   ;;  %v658_v29 = vld [vmem:[%s879_s6 + $0x60] sm:$0xff]   ;;  %v660_v31 = vld [vmem:[%s879_s6 + $0x68] sm:$0xff]  }
   0xa   :  { %v657_v28 = vld [vmem:[%s879_s6 + $0x18] sm:$0xff]   ;;  %v659_v30 = vld [vmem:[%s879_s6 + $0x20] sm:$0xff]   ;;  %v661_v32 = vld [vmem:[%s879_s6 + $0x28] sm:$0xff]  }
   0xb   :  { %557 = vmatpush3.bf16.msra.mxu0 %v638_v5  ;;  %577 = vmatpush3.bf16.msra.mxu1 %v639_v6  ;;  %v662_v33 = vld [vmem:[%s879_s6 + $0x70] sm:$0xff]   ;;  %v664_v35 = vld [vmem:[%s879_s6 + $0x78] sm:$0xff]   ;;  %v271_v36 = vld [vmem:[%s882_s3] sm:$0xff] }
   0xc   :  { %558 = vmatprep.subr.bf16.mxu0 %v666_v0  ;;  %578 = vmatprep.subr.bf16.mxu1 %v666_v0  ;;  %v663_v34 = vld [vmem:[%s879_s6 + $0x30] sm:$0xff]   ;;  %v665_v37 = vld [vmem:[%s879_s6 + $0x38] sm:$0xff]   ;;  %v253_v38 = vld [vmem:[%s883_s2] sm:$0xff]  ;;  %v272_v39 = vpack.c.bf16 %v271_v36, %v271_v36 }
   0xd   :  { %v254_v40 = vpack.c.bf16 %v253_v38, %v253_v38  ;;  %v498_v43 = vld [vmem:[%s884_s5] ss:$0 sm:$0xff] }
   0xe   :  { %v515_v54 = vld [vmem:[%s886_s7] ss:$0 sm:$0xff] }
   0xf   :  { %559 = vmatpush3.bf16.msra.mxu0 %v640_v7  ;;  %579 = vmatpush3.bf16.msra.mxu1 %v641_v8 }
  0x10   :  { %560 = vmatprep.subr.bf16.mxu0 %v666_v0  ;;  %580 = vmatprep.subr.bf16.mxu1 %v666_v0 }
  0x13   :  { %561 = vmatpush3.bf16.msra.mxu0 %v642_v9  ;;  %581 = vmatpush3.bf16.msra.mxu1 %v643_v10 }
  0x14   :  { %562 = vmatprep.subr.bf16.mxu0 %v666_v0  ;;  %582 = vmatprep.subr.bf16.mxu1 %v666_v0 }
  0x17   :  { %563 = vmatpush3.bf16.msra.mxu0 %v644_v11  ;;  %583 = vmatpush3.bf16.msra.mxu1 %v645_v12 }
  0x18   :  { %564 = vmatprep.subr.bf16.mxu0 %v666_v0  ;;  %584 = vmatprep.subr.bf16.mxu1 %v666_v0 }
  0x1b   :  { %565 = vmatpush3.bf16.msra.mxu0 %v646_v13  ;;  %585 = vmatpush3.bf16.msra.mxu1 %v647_v14 }
  0x1c   :  { %566 = vmatprep.subr.bf16.mxu0 %v666_v0  ;;  %586 = vmatprep.subr.bf16.mxu1 %v666_v0 }
  0x1f   :  { %567 = vmatpush3.bf16.msra.mxu0 %v648_v15  ;;  %587 = vmatpush3.bf16.msra.mxu1 %v649_v16 }
  0x20   :  { %592 = vmatprep.subr.bf16.mxu0 %v666_v0  ;;  %612 = vmatprep.subr.bf16.mxu1 %v666_v0 }
  0x22   :  { %569 = vmatmul.mubr.bf16.vlgmr.msra.gmra.mrb[0].mxu0 %v51_v19  ;;  %589 = vmatmul.mubr.bf16.vlgmr.msra.gmra.mrb[0].mxu1 %v33_v20 }
  0x23   :  { %593 = vmatpush3.bf16.msra.mxu0 %v650_v21  ;;  %613 = vmatpush3.bf16.msra.mxu1 %v651_v22 }
  0x24   :  { %594 = vmatprep.subr.bf16.mxu0 %v666_v0  ;;  %614 = vmatprep.subr.bf16.mxu1 %v666_v0 }
  0x25   :  { %608 = vmatprep.mubr.msk.bf16.mxu0 %vm667_vm0, %v666_v0  ;;  %628 = vmatprep.mubr.msk.bf16.mxu1 %vm667_vm0, %v666_v0 }
  0x27   :  { %595 = vmatpush3.bf16.msra.mxu0 %v652_v23  ;;  %615 = vmatpush3.bf16.msra.mxu1 %v653_v24 }
  0x28   :  { %596 = vmatprep.subr.bf16.mxu0 %v666_v0  ;;  %616 = vmatprep.subr.bf16.mxu1 %v666_v0 }
  0x2b   :  { %597 = vmatpush3.bf16.msra.mxu0 %v654_v25  ;;  %617 = vmatpush3.bf16.msra.mxu1 %v655_v26 }
  0x2c   :  { %598 = vmatprep.subr.bf16.mxu0 %v666_v0  ;;  %618 = vmatprep.subr.bf16.mxu1 %v666_v0 }
  0x2f   :  { %599 = vmatpush3.bf16.msra.mxu0 %v656_v27  ;;  %619 = vmatpush3.bf16.msra.mxu1 %v657_v28 }
  0x30   :  { %600 = vmatprep.subr.bf16.mxu0 %v666_v0  ;;  %620 = vmatprep.subr.bf16.mxu1 %v666_v0 }
  0x33   :  { %601 = vmatpush3.bf16.msra.mxu0 %v658_v29  ;;  %621 = vmatpush3.bf16.msra.mxu1 %v659_v30 }
  0x34   :  { %602 = vmatprep.subr.bf16.mxu0 %v666_v0  ;;  %622 = vmatprep.subr.bf16.mxu1 %v666_v0 }
  0x37   :  { %603 = vmatpush3.bf16.msra.mxu0 %v660_v31  ;;  %623 = vmatpush3.bf16.msra.mxu1 %v661_v32 }
  0x38   :  { %604 = vmatprep.subr.bf16.mxu0 %v666_v0  ;;  %624 = vmatprep.subr.bf16.mxu1 %v666_v0 }
  0x3b   :  { %605 = vmatpush3.bf16.msra.mxu0 %v662_v33  ;;  %625 = vmatpush3.bf16.msra.mxu1 %v663_v34 }
  0x3c   :  { %606 = vmatprep.subr.bf16.mxu0 %v666_v0  ;;  %626 = vmatprep.subr.bf16.mxu1 %v666_v0 }
  0x3f   :  { %607 = vmatpush3.bf16.msra.mxu0 %v664_v35  ;;  %627 = vmatpush3.bf16.msra.mxu1 %v665_v37 }
  0x42   :  { %609 = vmatmul.mubr.bf16.vlgmr.msra.gmra.mrb[4].mxu0 %v272_v39  ;;  %629 = vmatmul.mubr.bf16.vlgmr.msra.gmra.mrb[4].mxu1 %v254_v40 }
  0xf5   :  { %v150_v41 = vpop.f32.mrb[0].mxu0  ;;  %v238_v42 = vpop.f32.mrb[0].mxu1 }
  0xf6   :  { %v570_v44 = vpop.f32.mrb[1].mxu0  ;;  %v239_v45 = vadd.f32 %v238_v42, %v150_v41  ;;  %v590_v46 = vpop.f32.mrb[1].mxu1 }
  0xf7   :  { %v153_v47 = vpop.f32.mrb[2].mxu0  ;;  %v241_v48 = vpop.f32.mrb[2].mxu1 }
  0xf8   :  { %v571_v49 = vpop.f32.mrb[3].mxu0  ;;  %v251_v50 = vadd.f32 %v498_v43, %v239_v45  ;;  %v591_v51 = vpop.f32.mrb[3].mxu1 }
  0xfa   :  { %252 = vst [vmem:[%s885_s8] sm:$0xff] %v251_v50 }
 0x115   :  { %v371_v52 = vpop.f32.mrb[4].mxu0  ;;  %v459_v53 = vpop.f32.mrb[4].mxu1 }
 0x116   :  { %v610_v55 = vpop.f32.mrb[5].mxu0  ;;  %v460_v56 = vadd.f32 %v459_v53, %v371_v52  ;;  %v630_v57 = vpop.f32.mrb[5].mxu1 }
 0x117   :  { %v374_v58 = vpop.f32.mrb[6].mxu0  ;;  %v462_v59 = vpop.f32.mrb[6].mxu1 }
 0x118   :  { %v611_v60 = vpop.f32.mrb[7].mxu0  ;;  %v472_v61 = vadd.f32 %v515_v54, %v460_v56  ;;  %v631_v62 = vpop.f32.mrb[7].mxu1 }
 0x11a   :  { %473 = vst [vmem:[%s887_s9] sm:$0xff] %v472_v61 }

// kernel: multimodal_lstm_forward.5
= control target key start
LH: loop header
LB: loop body
LE: loop exit
PB: predicated region body
PF: predicated region fallthrough
CT: control target
= control target key end

     0   :  { %v2390_v1 = vmov 0   ;;  %vm108_vm0 = vcmask 130048   ;;  %v48_v43 = vlaneseq  ;;  %s2382_s1 = inlined_call_operand.vmem [shape: bf16[16,512], index: 1, kind: input, shape index: {}]   ;;  %s2383_s0 = inlined_call_operand.vmem [shape: bf16[64,16], index: 0, kind: input, shape index: {}]   ;;  %s2384_s2 = inlined_call_operand.vmem [shape: bf16[128,512], index: 2, kind: input, shape index: {}]   ;;  %s2385_s4 = inlined_call_operand.vmem [shape: f32[8,128], index: 4, kind: input, shape index: {}, may-alias: {4,5}]   ;;  %s2386_s3 = inlined_call_operand.vmem [shape: f32[1,512], index: 3, kind: input, shape index: {}]   ;;  %s2387_s5 = inlined_call_operand.vmem [shape: f32[8,128], index: 5, kind: input, shape index: {}, may-alias: {4,5}]   ;;  %s2388_s7 = inlined_call_operand.vmem [shape: f32[8,128], index: 7, kind: output, shape index: {1}]   ;;  %s2389_s6 = inlined_call_operand.vmem [shape: f32[8,128], index: 6, kind: output, shape index: {0}]  }
   0x1   :  { %v1429_v0 = vld [vmem:[%s2382_s1 + $0x4] ss:$16 sps:$4 sm:$0xff]   ;;  %153 = vmatprep.mubr.bf16.mxu0 %v2390_v1  ;;  %226 = vmatprep.mubr.bf16.mxu1 %v2390_v1  ;;  %v1431_v2 = vld [vmem:[%s2382_s1 + $0xc] ss:$16 sps:$4 sm:$0xff]   ;;  %v1433_v3 = vld [vmem:[%s2382_s1] ss:$16 sps:$4 sm:$0xff]  }
   0x2   :  { %121 = vmatprep.subr.bf16.mxu0 %v1429_v0  ;;  %v1434_v4 = vld [vmem:[%s2382_s1 + $0x8] ss:$16 sps:$4 sm:$0xff]   ;;  %194 = vmatprep.subr.bf16.mxu1 %v1431_v2  ;;  %v1435_v5 = vld [vmem:[%s2383_s0] sm:$0xff]   ;;  %v1665_v7 = vld [vmem:[%s2384_s2 + $0xc] ss:$16 sps:$4 sm:$0xff]   ;;  %v49_v44 = vshrl.u32 %v48_v43, 7 }
   0x3   :  { %122 = vmatpush1.bf16.msra.mxu0 %v1433_v3  ;;  %195 = vmatpush1.bf16.msra.mxu1 %v1434_v4  ;;  %v1660_v6 = vld [vmem:[%s2384_s2 + $0x4] ss:$16 sps:$4 sm:$0xff]   ;;  %v1670_v8 = vld [vmem:[%s2384_s2] ss:$16 sps:$4 sm:$0xff]   ;;  %v1676_v9 = vld [vmem:[%s2384_s2 + $0x8] ss:$16 sps:$4 sm:$0xff]  }
   0x4   :  { %498 = vmatprep.subr.bf16.mxu0 %v1660_v6  ;;  %v1683_v10 = vld [vmem:[%s2384_s2 + $0x24] ss:$16 sps:$4 sm:$0xff]   ;;  %539 = vmatprep.subr.bf16.mxu1 %v1665_v7  ;;  %v1690_v11 = vld [vmem:[%s2384_s2 + $0x2c] ss:$16 sps:$4 sm:$0xff]   ;;  %v1695_v12 = vld [vmem:[%s2384_s2 + $0x20] ss:$16 sps:$4 sm:$0xff]  }
   0x5   :  { %v1700_v13 = vld [vmem:[%s2384_s2 + $0x28] ss:$16 sps:$4 sm:$0xff]   ;;  %v1712_v15 = vld [vmem:[%s2384_s2 + $0x44] ss:$16 sps:$4 sm:$0xff]   ;;  %v1718_v16 = vld [vmem:[%s2384_s2 + $0x4c] ss:$16 sps:$4 sm:$0xff]  }
   0x6   :  { %1388 = vmatmul.mubr.msk.bf16.vlgmr.msra.gmra.mrb[0].mxu0 %vm108_vm0, %v1435_v5  ;;  %1392 = vmatmul.mubr.msk.bf16.vlgmr.msra.gmra.mrb[0].mxu1 %vm108_vm0, %v1435_v5  ;;  %v1448_v14 = vld [vmem:[%s2383_s0 + $0x8] sm:$0xff]   ;;  %v1724_v17 = vld [vmem:[%s2384_s2 + $0x40] ss:$16 sps:$4 sm:$0xff]   ;;  %v1736_v19 = vld [vmem:[%s2384_s2 + $0x64] ss:$16 sps:$4 sm:$0xff]   ;;  %v58_v45 = vsub.s32 2, %v49_v44 }
   0x7   :  { %499 = vmatpush1.bf16.msra.mxu0 %v1670_v8  ;;  %540 = vmatpush1.bf16.msra.mxu1 %v1676_v9  ;;  %v1729_v18 = vld [vmem:[%s2384_s2 + $0x48] ss:$16 sps:$4 sm:$0xff]   ;;  %v1742_v20 = vld [vmem:[%s2384_s2 + $0x6c] ss:$16 sps:$4 sm:$0xff]   ;;  %v1749_v21 = vld [vmem:[%s2384_s2 + $0x60] ss:$16 sps:$4 sm:$0xff]  }
   0x8   :  { %500 = vmatprep.subr.bf16.mxu0 %v1683_v10  ;;  %541 = vmatprep.subr.bf16.mxu1 %v1690_v11  ;;  %v1755_v22 = vld [vmem:[%s2384_s2 + $0x68] ss:$16 sps:$4 sm:$0xff]   ;;  %v1763_v23 = vld [vmem:[%s2384_s2 + $0x84] ss:$16 sps:$4 sm:$0xff]   ;;  %v1770_v24 = vld [vmem:[%s2384_s2 + $0x8c] ss:$16 sps:$4 sm:$0xff]  }
   0x9   :  { %163 = vmatprep.mubr.bf16.mxu0 %v2390_v1  ;;  %236 = vmatprep.mubr.bf16.mxu1 %v2390_v1  ;;  %v1461_v25 = vld [vmem:[%s2383_s0 + $0x10] sm:$0xff]   ;;  %v1786_v27 = vld [vmem:[%s2384_s2 + $0x88] ss:$16 sps:$4 sm:$0xff]   ;;  %v1797_v29 = vld [vmem:[%s2384_s2 + $0xac] ss:$16 sps:$4 sm:$0xff]   ;;  %v62_v46 = vsub.s32 3, %v49_v44 }
   0xa   :  { %v1779_v26 = vld [vmem:[%s2384_s2 + $0x80] ss:$16 sps:$4 sm:$0xff]   ;;  %v1791_v28 = vld [vmem:[%s2384_s2 + $0xa4] ss:$16 sps:$4 sm:$0xff]   ;;  %v1810_v31 = vld [vmem:[%s2384_s2 + $0xa8] ss:$16 sps:$4 sm:$0xff]  }
   0xb   :  { %501 = vmatpush1.bf16.msra.mxu0 %v1695_v12  ;;  %542 = vmatpush1.bf16.msra.mxu1 %v1700_v13  ;;  %v1805_v30 = vld [vmem:[%s2384_s2 + $0xa0] ss:$16 sps:$4 sm:$0xff]   ;;  %v1818_v32 = vld [vmem:[%s2384_s2 + $0xc4] ss:$16 sps:$4 sm:$0xff]   ;;  %v1825_v33 = vld [vmem:[%s2384_s2 + $0xcc] ss:$16 sps:$4 sm:$0xff]  }
   0xc   :  { %502 = vmatprep.subr.bf16.mxu0 %v1712_v15  ;;  %543 = vmatprep.subr.bf16.mxu1 %v1718_v16  ;;  %v1474_v34 = vld [vmem:[%s2383_s0 + $0x18] sm:$0xff]   ;;  %v1834_v35 = vld [vmem:[%s2384_s2 + $0xc0] ss:$16 sps:$4 sm:$0xff]   ;;  %v1846_v37 = vld [vmem:[%s2384_s2 + $0xe4] ss:$16 sps:$4 sm:$0xff]   ;;  %v50_v47 = vsub.s32 0, %v49_v44 }
   0xd   :  { %v1841_v36 = vld [vmem:[%s2384_s2 + $0xc8] ss:$16 sps:$4 sm:$0xff]   ;;  %v1852_v38 = vld [vmem:[%s2384_s2 + $0xec] ss:$16 sps:$4 sm:$0xff]   ;;  %v1860_v39 = vld [vmem:[%s2384_s2 + $0xe0] ss:$16 sps:$4 sm:$0xff]  }
   0xe   :  { %1389 = vmatmul.mubr.msk.bf16.gmra.mrb[4].mxu0 %vm108_vm0, %v1448_v14  ;;  %1393 = vmatmul.mubr.msk.bf16.gmra.mrb[4].mxu1 %vm108_vm0, %v1448_v14  ;;  %v30_v40 = vld [vmem:[%s2385_s4] sm:$0xff]  ;;  %v1871_v41 = vld [vmem:[%s2384_s2 + $0xe8] ss:$16 sps:$4 sm:$0xff]   ;;  %v54_v49 = vsub.s32 1, %v49_v44 }
   0xf   :  { %503 = vmatpush1.bf16.msra.mxu0 %v1724_v17  ;;  %173 = vmatprep.mubr.bf16.mxu0 %v2390_v1  ;;  %v305_v42 = vpack.c.bf16 %v30_v40, %v30_v40  ;;  %v46_v48 = vld [vmem:[%s2386_s3] sm:$0xf] }
  0x10   :  { %544 = vmatpush1.bf16.msra.mxu1 %v1729_v18  ;;  %504 = vmatprep.subr.bf16.mxu0 %v1736_v19  ;;  %v1916_v50 = vrot.slane %v46_v48, %v58_v45  ;;  %v1922_v53 = vrot.slane %v46_v48, %v62_v46  ;;  %v51_v54 = vrot.slane %v46_v48, %v50_v47 }
  0x11   :  { %545 = vmatprep.subr.bf16.mxu1 %v1742_v20  ;;  %246 = vmatprep.mubr.bf16.mxu1 %v2390_v1  ;;  %v55_v57 = vrot.slane %v46_v48, %v54_v49 }
  0x13   :  { %505 = vmatpush1.bf16.msra.mxu0 %v1749_v21 }
  0x14   :  { %546 = vmatpush1.bf16.msra.mxu1 %v1755_v22  ;;  %506 = vmatprep.subr.bf16.mxu0 %v1763_v23 }
  0x15   :  { %547 = vmatprep.subr.bf16.mxu1 %v1770_v24 }
  0x16   :  { %1390 = vmatmul.mubr.msk.bf16.gmra.mrb[8].mxu0 %vm108_vm0, %v1461_v25  ;;  %1394 = vmatmul.mubr.msk.bf16.gmra.mrb[8].mxu1 %vm108_vm0, %v1461_v25 }
  0x17   :  { %507 = vmatpush1.bf16.msra.mxu0 %v1779_v26  ;;  %183 = vmatprep.mubr.bf16.mxu0 %v2390_v1 }
  0x18   :  { %548 = vmatpush1.bf16.msra.mxu1 %v1786_v27  ;;  %508 = vmatprep.subr.bf16.mxu0 %v1791_v28 }
  0x19   :  { %549 = vmatprep.subr.bf16.mxu1 %v1797_v29  ;;  %256 = vmatprep.mubr.bf16.mxu1 %v2390_v1 }
  0x1b   :  { %509 = vmatpush1.bf16.msra.mxu0 %v1805_v30 }
  0x1c   :  { %550 = vmatpush1.bf16.msra.mxu1 %v1810_v31  ;;  %510 = vmatprep.subr.bf16.mxu0 %v1818_v32 }
  0x1d   :  { %551 = vmatprep.subr.bf16.mxu1 %v1825_v33 }
  0x1e   :  { %1391 = vmatmul.mubr.msk.bf16.gmra.mrb[12].mxu0 %vm108_vm0, %v1474_v34  ;;  %1395 = vmatmul.mubr.msk.bf16.gmra.mrb[12].mxu1 %vm108_vm0, %v1474_v34 }
  0x1f   :  { %511 = vmatpush1.bf16.msra.mxu0 %v1834_v35  ;;  %530 = vmatprep.mubr.bf16.mxu0 %v2390_v1 }
  0x20   :  { %552 = vmatpush1.bf16.msra.mxu1 %v1841_v36  ;;  %512 = vmatprep.subr.bf16.mxu0 %v1846_v37 }
  0x21   :  { %553 = vmatprep.subr.bf16.mxu1 %v1852_v38  ;;  %571 = vmatprep.mubr.bf16.mxu1 %v2390_v1 }
  0x23   :  { %513 = vmatpush1.bf16.msra.mxu0 %v1860_v39 }
  0x24   :  { %554 = vmatpush1.bf16.msra.mxu1 %v1871_v41  ;;  %607 = vmatprep.subr.bf16.mxu0 %v1660_v6 }
  0x25   :  { %648 = vmatprep.subr.bf16.mxu1 %v1665_v7 }
  0x26   :  { %531 = vmatmul.mubr.bf16.vlgmr.msra.gmra.mrb[16].mxu0 %v305_v42 }
  0x27   :  { %572 = vmatmul.mubr.bf16.vlgmr.msra.gmra.mrb[16].mxu1 %v305_v42  ;;  %608 = vmatpush1.bf16.msra.mxu0 %v1670_v8 }
  0x28   :  { %649 = vmatpush1.bf16.msra.mxu1 %v1676_v9  ;;  %609 = vmatprep.subr.bf16.mxu0 %v1683_v10 }
  0x29   :  { %650 = vmatprep.subr.bf16.mxu1 %v1690_v11  ;;  %639 = vmatprep.mubr.bf16.mxu0 %v2390_v1 }
  0x2a   :  { %680 = vmatprep.mubr.bf16.mxu1 %v2390_v1 }
  0x2b   :  { %610 = vmatpush1.bf16.msra.mxu0 %v1695_v12 }
  0x2c   :  { %651 = vmatpush1.bf16.msra.mxu1 %v1700_v13  ;;  %611 = vmatprep.subr.bf16.mxu0 %v1712_v15 }
  0x2d   :  { %652 = vmatprep.subr.bf16.mxu1 %v1718_v16 }
  0x2f   :  { %612 = vmatpush1.bf16.msra.mxu0 %v1724_v17 }
  0x30   :  { %653 = vmatpush1.bf16.msra.mxu1 %v1729_v18  ;;  %613 = vmatprep.subr.bf16.mxu0 %v1736_v19 }
  0x31   :  { %654 = vmatprep.subr.bf16.mxu1 %v1742_v20 }
  0x33   :  { %614 = vmatpush1.bf16.msra.mxu0 %v1749_v21 }
  0x34   :  { %655 = vmatpush1.bf16.msra.mxu1 %v1755_v22  ;;  %615 = vmatprep.subr.bf16.mxu0 %v1763_v23 }
  0x35   :  { %656 = vmatprep.subr.bf16.mxu1 %v1770_v24 }
  0x37   :  { %616 = vmatpush1.bf16.msra.mxu0 %v1779_v26 }
  0x38   :  { %657 = vmatpush1.bf16.msra.mxu1 %v1786_v27  ;;  %617 = vmatprep.subr.bf16.mxu0 %v1791_v28 }
  0x39   :  { %658 = vmatprep.subr.bf16.mxu1 %v1797_v29 }
  0x3b   :  { %618 = vmatpush1.bf16.msra.mxu0 %v1805_v30 }
  0x3c   :  { %659 = vmatpush1.bf16.msra.mxu1 %v1810_v31  ;;  %619 = vmatprep.subr.bf16.mxu0 %v1818_v32 }
  0x3d   :  { %660 = vmatprep.subr.bf16.mxu1 %v1825_v33 }
  0x3f   :  { %620 = vmatpush1.bf16.msra.mxu0 %v1834_v35 }
  0x40   :  { %661 = vmatpush1.bf16.msra.mxu1 %v1841_v36  ;;  %621 = vmatprep.subr.bf16.mxu0 %v1846_v37 }
  0x41   :  { %662 = vmatprep.subr.bf16.mxu1 %v1852_v38 }
  0x43   :  { %622 = vmatpush1.bf16.msra.mxu0 %v1860_v39 }
  0x44   :  { %663 = vmatpush1.bf16.msra.mxu1 %v1871_v41  ;;  %716 = vmatprep.subr.bf16.mxu0 %v1660_v6 }
  0x45   :  { %757 = vmatprep.subr.bf16.mxu1 %v1665_v7 }
  0xd9   :  { %v1918_v51 = vpop.f32.mrb[0].mxu0  ;;  %v1920_v52 = vpop.f32.mrb[0].mxu1 }
  0xda   :  { %v157_v55 = vpop.f32.mrb[1].mxu0  ;;  %v230_v56 = vpop.f32.mrb[1].mxu1 }
  0xdb   :  { %v159_v58 = vpop.f32.mrb[2].mxu0  ;;  %v232_v59 = vpop.f32.mrb[2].mxu1 }
  0xdc   :  { %v1924_v60 = vadd.f32 %v159_v58, %v51_v54  ;;  %v161_v61 = vpop.f32.mrb[3].mxu0  ;;  %v1927_v62 = vadd.f32 %v232_v59, %v1916_v50  ;;  %v234_v63 = vpop.f32.mrb[3].mxu1 }
  0xdd   :  { %v1929_v0 = vadd.f32 %v161_v61, %v55_v57  ;;  %v1932_v2 = vadd.f32 %v234_v63, %v1922_v53 }
  0xe1   :  { %v165_v3 = vpop.f32.mrb[4].mxu0  ;;  %v238_v4 = vpop.f32.mrb[4].mxu1 }
  0xe2   :  { %v1934_v5 = vadd.f32 %v165_v3, %v51_v54  ;;  %v167_v14 = vpop.f32.mrb[5].mxu0  ;;  %v1937_v25 = vadd.f32 %v238_v4, %v1916_v50  ;;  %v240_v34 = vpop.f32.mrb[5].mxu1 }
  0xe3   :  { %v1939_v40 = vadd.f32 %v167_v14, %v55_v57  ;;  %v169_v42 = vpop.f32.mrb[6].mxu0  ;;  %v1942_v43 = vadd.f32 %v240_v34, %v1922_v53  ;;  %v242_v44 = vpop.f32.mrb[6].mxu1 }
  0xe4   :  { %v1944_v45 = vadd.f32 %v169_v42, %v51_v54  ;;  %v171_v46 = vpop.f32.mrb[7].mxu0  ;;  %v1947_v47 = vadd.f32 %v242_v44, %v1916_v50  ;;  %v244_v48 = vpop.f32.mrb[7].mxu1 }
  0xe5   :  { %2392 = vst [vmem:[#allocation5_spill] sm:$0xff] %v1942_v43  ;;  %v1949_v49 = vadd.f32 %v171_v46, %v55_v57  ;;  %v1952_v58 = vadd.f32 %v244_v48, %v1922_v53 }
  0xe6   :  { %2393 = vst [vmem:[#allocation6_spill] sm:$0xff] %v1944_v45  ;;  %2394 = vst [vmem:[#allocation7_spill] sm:$0xff] %v1947_v47 }
  0xe7   :  { %2395 = vst [vmem:[#allocation8_spill] sm:$0xff] %v1949_v49  ;;  %2396 = vst [vmem:[#allocation9_spill] sm:$0xff] %v1952_v58 }
  0xe9   :  { %v175_v59 = vpop.f32.mrb[8].mxu0  ;;  %v248_v61 = vpop.f32.mrb[8].mxu1 }
  0xea   :  { %v1954_v63 = vadd.f32 %v175_v59, %v51_v54  ;;  %v177_v3 = vpop.f32.mrb[9].mxu0  ;;  %v1957_v4 = vadd.f32 %v248_v61, %v1916_v50  ;;  %v250_v14 = vpop.f32.mrb[9].mxu1 }
  0xeb   :  { %v1959_v34 = vadd.f32 %v177_v3, %v55_v57  ;;  %v179_v42 = vpop.f32.mrb[10].mxu0  ;;  %v1962_v44 = vadd.f32 %v250_v14, %v1922_v53  ;;  %v252_v46 = vpop.f32.mrb[10].mxu1 }
  0xec   :  { %2397 = vst [vmem:[#allocation10_spill] sm:$0xff] %v1954_v63  ;;  %2398 = vst [vmem:[#allocation11_spill] sm:$0xff] %v1957_v4  ;;  %v1964_v1 = vadd.f32 %v179_v42, %v51_v54  ;;  %v181_v48 = vpop.f32.mrb[11].mxu0  ;;  %v1967_v58 = vadd.f32 %v252_v46, %v1916_v50  ;;  %v254_v59 = vpop.f32.mrb[11].mxu1 }
  0xed   :  { %2399 = vst [vmem:[#allocation12_spill] sm:$0xff] %v1959_v34  ;;  %2400 = vst [vmem:[#allocation13_spill] sm:$0xff] %v1962_v44  ;;  %v1969_v63 = vadd.f32 %v181_v48, %v55_v57  ;;  %v1972_v61 = vadd.f32 %v254_v59, %v1922_v53 }
  0xee   :  { %2401 = vst [vmem:[#allocation14_spill] sm:$0xff] %v1964_v1  ;;  %2402 = vst [vmem:[#allocation15_spill] sm:$0xff] %v1967_v58 }
  0xef   :  { %2403 = vst [vmem:[#allocation16_spill] sm:$0xff] %v1969_v63  ;;  %2404 = vst [vmem:[#allocation17_spill] sm:$0xff] %v1972_v61 }
  0xf1   :  { %v185_v4 = vpop.f32.mrb[12].mxu0  ;;  %v258_v3 = vpop.f32.mrb[12].mxu1 }
  0xf2   :  { %v1974_v34 = vadd.f32 %v185_v4, %v51_v54  ;;  %v187_v49 = vpop.f32.mrb[13].mxu0  ;;  %v1977_v14 = vadd.f32 %v258_v3, %v1916_v50  ;;  %v260_v42 = vpop.f32.mrb[13].mxu1 }
  0xf3   :  { %v1979_v1 = vadd.f32 %v187_v49, %v55_v57  ;;  %v189_v44 = vpop.f32.mrb[14].mxu0  ;;  %v1982_v46 = vadd.f32 %v260_v42, %v1922_v53  ;;  %v262_v48 = vpop.f32.mrb[14].mxu1  ;;  %v156_v49 = vadd.f32 %v1918_v51, %v51_v54  ;;  %v229_v42 = vadd.f32 %v1920_v52, %v1916_v50 }
  0xf4   :  { %2405 = vst [vmem:[#allocation18_spill] sm:$0xff] %v1974_v34  ;;  %2406 = vst [vmem:[#allocation19_spill] sm:$0xff] %v1977_v14  ;;  %v1984_v63 = vadd.f32 %v189_v44, %v51_v54  ;;  %v191_v59 = vpop.f32.mrb[15].mxu0  ;;  %v1987_v61 = vadd.f32 %v262_v48, %v1916_v50  ;;  %v264_v4 = vpop.f32.mrb[15].mxu1  ;;  %v231_v44 = vadd.f32 %v230_v56, %v1922_v53 }
  0xf5   :  { %2407 = vst [vmem:[#allocation20_spill] sm:$0xff] %v1979_v1  ;;  %2408 = vst [vmem:[#allocation21_spill] sm:$0xff] %v1982_v46  ;;  %v1989_v34 = vadd.f32 %v191_v59, %v55_v57  ;;  %v1992_v3 = vadd.f32 %v264_v4, %v1922_v53  ;;  %v158_v1 = vadd.f32 %v157_v55, %v55_v57 }
  0xf6   :  { %2409 = vst [vmem:[#allocation22_spill] sm:$0xff] %v1984_v63  ;;  %2410 = vst [vmem:[#allocation23_spill] sm:$0xff] %v1987_v61 }
  0xf7   :  { %2411 = vst [vmem:[#allocation24_spill] sm:$0xff] %v1989_v34  ;;  %2412 = vst [vmem:[#allocation25_spill] sm:$0xff] %v1992_v3 }
  0xf9   :  { %v532_v46 = vpop.f32.mrb[16].mxu0 }
  0xfa   :  { %v580_v63 = vadd.f32 %v532_v46, %v156_v49  ;;  %v573_v14 = vpop.f32.mrb[16].mxu1  ;;  %v534_v58 = vpop.f32.mrb[17].mxu0  ;;  %v2413_v49 = vmov 0  }
  0xfb   :  { %v582_v48 = vadd.f32 %v573_v14, %v229_v42  ;;  %v581_v61 = vadd.f32 %v534_v58, %v158_v1  ;;  %v575_v47 = vpop.f32.mrb[17].mxu1  ;;  %v536_v59 = vpop.f32.mrb[18].mxu0  ;;  %v32_v1 = vld [vmem:[%s2387_s5] sm:$0xff] }
  0xfc   :  { %v584_v34 = vmul.f32 0.5, %v580_v63  ;;  %v583_v45 = vadd.f32 %v575_v47, %v231_v44  ;;  %v537_v4 = vpop.f32.mrb[19].mxu0  ;;  %v577_v3 = vpop.f32.mrb[18].mxu1 }
  0xfd   :  { %v588_v43 = vmul.f32 0.5, %v581_v61  ;;  %v578_v51 = vpop.f32.mrb[19].mxu1 }
  0xfe   :  { %1487 = vtanh.f32 %v584_v34  ;;  %v593_v50 = vmul.f32 0.5, %v583_v45 }
  0xff   :  { %1489 = vtanh.f32 %v588_v43 }
 0x100   :  { %1491 = vtanh.f32 %v582_v48 }
 0x101   :  { %1493 = vtanh.f32 %v593_v50 }
 0x108   :  { %v1488_v52 = vpop.eup %1487 }
 0x109   :  { %v1490_v54 = vpop.eup %1489  ;;  %v586_v53 = vmul.f32 0.5, %v1488_v52 }
 0x10a   :  { %v590_v55 = vmul.f32 0.5, %v1490_v54  ;;  %v1492_v57 = vpop.eup %1491 }
 0x10b   :  { %v587_v56 = vadd.f32 0.5, %v586_v53  ;;  %v1494_v43 = vpop.eup %1493 }
 0x10c   :  { %v591_v47 = vadd.f32 0.5, %v590_v55  ;;  %v595_v45 = vmul.f32 0.5, %v1494_v43 }
 0x10d   :  { %v598_v58 = vmul.f32 %v1492_v57, %v587_v56 }
 0x10e   :  { %v597_v63 = vmul.f32 %v591_v47, %v32_v1  ;;  %v596_v34 = vadd.f32 0.5, %v595_v45 }
 0x110   :  { %v2001_v61 = vadd.f32 %v598_v58, %v597_v63 }
 0x112   :  { %1495 = vtanh.f32 %v2001_v61 }
 0x11c   :  { %v1496_v14 = vpop.eup %1495 }
 0x11d   :  { %v601_v46 = vmul.f32 %v1496_v14, %v596_v34 }
 0x11f   :  { %v606_v3 = vpack.c.bf16 %v601_v46, %v601_v46 }
 0x121   :  { %640 = vmatmul.mubr.bf16.vlgmr.msra.gmra.mrb[20].mxu0 %v606_v3  ;;  %681 = vmatmul.mubr.bf16.vlgmr.msra.gmra.mrb[20].mxu1 %v606_v3 }
 0x122   :  { %717 = vmatpush1.bf16.msra.mxu0 %v1670_v8  ;;  %758 = vmatpush1.bf16.msra.mxu1 %v1676_v9 }
 0x123   :  { %718 = vmatprep.subr.bf16.mxu0 %v1683_v10  ;;  %759 = vmatprep.subr.bf16.mxu1 %v1690_v11 }
 0x124   :  { %748 = vmatprep.mubr.bf16.mxu0 %v2413_v49  ;;  %789 = vmatprep.mubr.bf16.mxu1 %v2413_v49 }
 0x126   :  { %719 = vmatpush1.bf16.msra.mxu0 %v1695_v12  ;;  %760 = vmatpush1.bf16.msra.mxu1 %v1700_v13 }
 0x127   :  { %720 = vmatprep.subr.bf16.mxu0 %v1712_v15  ;;  %761 = vmatprep.subr.bf16.mxu1 %v1718_v16 }
 0x12a   :  { %721 = vmatpush1.bf16.msra.mxu0 %v1724_v17  ;;  %762 = vmatpush1.bf16.msra.mxu1 %v1729_v18 }
 0x12b   :  { %722 = vmatprep.subr.bf16.mxu0 %v1736_v19  ;;  %763 = vmatprep.subr.bf16.mxu1 %v1742_v20 }
 0x12e   :  { %723 = vmatpush1.bf16.msra.mxu0 %v1749_v21  ;;  %764 = vmatpush1.bf16.msra.mxu1 %v1755_v22 }
 0x12f   :  { %724 = vmatprep.subr.bf16.mxu0 %v1763_v23  ;;  %765 = vmatprep.subr.bf16.mxu1 %v1770_v24 }
 0x132   :  { %725 = vmatpush1.bf16.msra.mxu0 %v1779_v26  ;;  %766 = vmatpush1.bf16.msra.mxu1 %v1786_v27 }
 0x133   :  { %726 = vmatprep.subr.bf16.mxu0 %v1791_v28  ;;  %767 = vmatprep.subr.bf16.mxu1 %v1797_v29 }
 0x136   :  { %727 = vmatpush1.bf16.msra.mxu0 %v1805_v30  ;;  %768 = vmatpush1.bf16.msra.mxu1 %v1810_v31 }
 0x137   :  { %728 = vmatprep.subr.bf16.mxu0 %v1818_v32  ;;  %769 = vmatprep.subr.bf16.mxu1 %v1825_v33 }
 0x13a   :  { %729 = vmatpush1.bf16.msra.mxu0 %v1834_v35  ;;  %770 = vmatpush1.bf16.msra.mxu1 %v1841_v36 }
 0x13b   :  { %730 = vmatprep.subr.bf16.mxu0 %v1846_v37  ;;  %771 = vmatprep.subr.bf16.mxu1 %v1852_v38 }
 0x13e   :  { %731 = vmatpush1.bf16.msra.mxu0 %v1860_v39  ;;  %772 = vmatpush1.bf16.msra.mxu1 %v1871_v41 }
 0x13f   :  { %825 = vmatprep.subr.bf16.mxu0 %v1660_v6  ;;  %866 = vmatprep.subr.bf16.mxu1 %v1665_v7 }
 0x1f4   :  { %v641_v42 = vpop.f32.mrb[20].mxu0  ;;  %v682_v44 = vpop.f32.mrb[20].mxu1 }
 0x1f5   :  { %v689_v48 = vadd.f32 %v641_v42, %v1924_v60  ;;  %v691_v59 = vadd.f32 %v682_v44, %v1927_v62  ;;  %v643_v4 = vpop.f32.mrb[21].mxu0  ;;  %v684_v51 = vpop.f32.mrb[21].mxu1 }
 0x1f6   :  { %v690_v50 = vadd.f32 %v643_v4, %v1929_v0  ;;  %v692_v52 = vadd.f32 %v684_v51, %v1932_v2  ;;  %v645_v54 = vpop.f32.mrb[22].mxu0  ;;  %v686_v53 = vpop.f32.mrb[22].mxu1 }
 0x1f7   :  { %v693_v55 = vmul.f32 0.5, %v689_v48  ;;  %v646_v56 = vpop.f32.mrb[23].mxu0  ;;  %v687_v1 = vpop.f32.mrb[23].mxu1 }
 0x1f8   :  { %v697_v57 = vmul.f32 0.5, %v690_v50  ;;  %v702_v47 = vmul.f32 0.5, %v692_v52 }
 0x1f9   :  { %1497 = vtanh.f32 %v693_v55  ;;  %v2414_v55 = vld [vmem:[#allocation5_spill] sm:$0xff] }
 0x1fa   :  { %1499 = vtanh.f32 %v697_v57 }
 0x1fb   :  { %1501 = vtanh.f32 %v691_v59 }
 0x1fc   :  { %1503 = vtanh.f32 %v702_v47 }
 0x203   :  { %v1498_v58 = vpop.eup %1497 }
 0x204   :  { %v1500_v60 = vpop.eup %1499  ;;  %v695_v63 = vmul.f32 0.5, %v1498_v58 }
 0x205   :  { %v699_v62 = vmul.f32 0.5, %v1500_v60  ;;  %v1502_v45 = vpop.eup %1501 }
 0x206   :  { %v696_v43 = vadd.f32 0.5, %v695_v63  ;;  %v1504_v46 = vpop.eup %1503 }
 0x207   :  { %v700_v0 = vadd.f32 0.5, %v699_v62  ;;  %v704_v3 = vmul.f32 0.5, %v1504_v46 }
 0x208   :  { %v707_v34 = vmul.f32 %v1502_v45, %v696_v43 }
 0x209   :  { %v706_v2 = vmul.f32 %v700_v0, %v2001_v61  ;;  %v705_v42 = vadd.f32 0.5, %v704_v3 }
 0x20b   :  { %v2043_v14 = vadd.f32 %v707_v34, %v706_v2 }
 0x20d   :  { %1505 = vtanh.f32 %v2043_v14 }
 0x217   :  { %v1506_v44 = vpop.eup %1505 }
 0x218   :  { %v710_v48 = vmul.f32 %v1506_v44, %v705_v42 }
 0x21a   :  { %v715_v59 = vpack.c.bf16 %v710_v48, %v710_v48 }
 0x21c   :  { %749 = vmatmul.mubr.bf16.vlgmr.msra.gmra.mrb[24].mxu0 %v715_v59  ;;  %790 = vmatmul.mubr.bf16.vlgmr.msra.gmra.mrb[24].mxu1 %v715_v59 }
 0x21d   :  { %826 = vmatpush1.bf16.msra.mxu0 %v1670_v8  ;;  %867 = vmatpush1.bf16.msra.mxu1 %v1676_v9 }
 0x21e   :  { %827 = vmatprep.subr.bf16.mxu0 %v1683_v10  ;;  %868 = vmatprep.subr.bf16.mxu1 %v1690_v11 }
 0x21f   :  { %857 = vmatprep.mubr.bf16.mxu0 %v2413_v49  ;;  %898 = vmatprep.mubr.bf16.mxu1 %v2413_v49 }
 0x221   :  { %828 = vmatpush1.bf16.msra.mxu0 %v1695_v12  ;;  %869 = vmatpush1.bf16.msra.mxu1 %v1700_v13 }
 0x222   :  { %829 = vmatprep.subr.bf16.mxu0 %v1712_v15  ;;  %870 = vmatprep.subr.bf16.mxu1 %v1718_v16 }
 0x225   :  { %830 = vmatpush1.bf16.msra.mxu0 %v1724_v17  ;;  %871 = vmatpush1.bf16.msra.mxu1 %v1729_v18 }
 0x226   :  { %831 = vmatprep.subr.bf16.mxu0 %v1736_v19  ;;  %872 = vmatprep.subr.bf16.mxu1 %v1742_v20 }
 0x229   :  { %832 = vmatpush1.bf16.msra.mxu0 %v1749_v21  ;;  %873 = vmatpush1.bf16.msra.mxu1 %v1755_v22 }
 0x22a   :  { %833 = vmatprep.subr.bf16.mxu0 %v1763_v23  ;;  %874 = vmatprep.subr.bf16.mxu1 %v1770_v24 }
 0x22d   :  { %834 = vmatpush1.bf16.msra.mxu0 %v1779_v26  ;;  %875 = vmatpush1.bf16.msra.mxu1 %v1786_v27 }
 0x22e   :  { %835 = vmatprep.subr.bf16.mxu0 %v1791_v28  ;;  %876 = vmatprep.subr.bf16.mxu1 %v1797_v29 }
 0x231   :  { %836 = vmatpush1.bf16.msra.mxu0 %v1805_v30  ;;  %877 = vmatpush1.bf16.msra.mxu1 %v1810_v31 }
 0x232   :  { %837 = vmatprep.subr.bf16.mxu0 %v1818_v32  ;;  %878 = vmatprep.subr.bf16.mxu1 %v1825_v33 }
 0x235   :  { %838 = vmatpush1.bf16.msra.mxu0 %v1834_v35  ;;  %879 = vmatpush1.bf16.msra.mxu1 %v1841_v36 }
 0x236   :  { %839 = vmatprep.subr.bf16.mxu0 %v1846_v37  ;;  %880 = vmatprep.subr.bf16.mxu1 %v1852_v38 }
 0x239   :  { %840 = vmatpush1.bf16.msra.mxu0 %v1860_v39  ;;  %881 = vmatpush1.bf16.msra.mxu1 %v1871_v41 }
 0x23a   :  { %934 = vmatprep.subr.bf16.mxu0 %v1660_v6  ;;  %975 = vmatprep.subr.bf16.mxu1 %v1665_v7 }
 0x2ef   :  { %v750_v61 = vpop.f32.mrb[24].mxu0  ;;  %v791_v4 = vpop.f32.mrb[24].mxu1 }
 0x2f0   :  { %v798_v51 = vadd.f32 %v750_v61, %v1934_v5  ;;  %v800_v50 = vadd.f32 %v791_v4, %v1937_v25  ;;  %v752_v52 = vpop.f32.mrb[25].mxu0  ;;  %v793_v54 = vpop.f32.mrb[25].mxu1 }
 0x2f1   :  { %v799_v53 = vadd.f32 %v752_v52, %v1939_v40  ;;  %v801_v56 = vadd.f32 %v793_v54, %v2414_v55  ;;  %v754_v1 = vpop.f32.mrb[26].mxu0  ;;  %v795_v57 = vpop.f32.mrb[26].mxu1  ;;  %v2416_v54 = vld [vmem:[#allocation7_spill] sm:$0xff] }
 0x2f2   :  { %v802_v47 = vmul.f32 0.5, %v798_v51  ;;  %v755_v58 = vpop.f32.mrb[27].mxu0  ;;  %v796_v60 = vpop.f32.mrb[27].mxu1  ;;  %v2417_v1 = vld [vmem:[#allocation8_spill] sm:$0xff] }
 0x2f3   :  { %v806_v63 = vmul.f32 0.5, %v799_v53  ;;  %v811_v62 = vmul.f32 0.5, %v801_v56 }
 0x2f4   :  { %1507 = vtanh.f32 %v802_v47  ;;  %v2418_v47 = vld [vmem:[#allocation9_spill] sm:$0xff] }
 0x2f5   :  { %1509 = vtanh.f32 %v806_v63 }
 0x2f6   :  { %1511 = vtanh.f32 %v800_v50  ;;  %v2415_v50 = vld [vmem:[#allocation6_spill] sm:$0xff] }
 0x2f7   :  { %1513 = vtanh.f32 %v811_v62 }
 0x2fe   :  { %v1508_v43 = vpop.eup %1507 }
 0x2ff   :  { %v1510_v5 = vpop.eup %1509  ;;  %v804_v45 = vmul.f32 0.5, %v1508_v43 }
 0x300   :  { %v808_v25 = vmul.f32 0.5, %v1510_v5  ;;  %v1512_v34 = vpop.eup %1511 }
 0x301   :  { %v805_v0 = vadd.f32 0.5, %v804_v45  ;;  %v1514_v42 = vpop.eup %1513 }
 0x302   :  { %v809_v40 = vadd.f32 0.5, %v808_v25  ;;  %v813_v44 = vmul.f32 0.5, %v1514_v42 }
 0x303   :  { %v816_v2 = vmul.f32 %v1512_v34, %v805_v0 }
 0x304   :  { %v815_v46 = vmul.f32 %v809_v40, %v2043_v14  ;;  %v814_v48 = vadd.f32 0.5, %v813_v44 }
 0x306   :  { %v2085_v3 = vadd.f32 %v816_v2, %v815_v46 }
 0x308   :  { %1515 = vtanh.f32 %v2085_v3 }
 0x312   :  { %v1516_v59 = vpop.eup %1515 }
 0x313   :  { %v819_v61 = vmul.f32 %v1516_v59, %v814_v48 }
 0x315   :  { %v824_v4 = vpack.c.bf16 %v819_v61, %v819_v61 }
 0x317   :  { %858 = vmatmul.mubr.bf16.vlgmr.msra.gmra.mrb[28].mxu0 %v824_v4  ;;  %899 = vmatmul.mubr.bf16.vlgmr.msra.gmra.mrb[28].mxu1 %v824_v4 }
 0x318   :  { %935 = vmatpush1.bf16.msra.mxu0 %v1670_v8  ;;  %976 = vmatpush1.bf16.msra.mxu1 %v1676_v9 }
 0x319   :  { %936 = vmatprep.subr.bf16.mxu0 %v1683_v10  ;;  %977 = vmatprep.subr.bf16.mxu1 %v1690_v11 }
 0x31a   :  { %966 = vmatprep.mubr.bf16.mxu0 %v2413_v49  ;;  %1007 = vmatprep.mubr.bf16.mxu1 %v2413_v49 }
 0x31c   :  { %937 = vmatpush1.bf16.msra.mxu0 %v1695_v12  ;;  %978 = vmatpush1.bf16.msra.mxu1 %v1700_v13 }
 0x31d   :  { %938 = vmatprep.subr.bf16.mxu0 %v1712_v15  ;;  %979 = vmatprep.subr.bf16.mxu1 %v1718_v16 }
 0x320   :  { %939 = vmatpush1.bf16.msra.mxu0 %v1724_v17  ;;  %980 = vmatpush1.bf16.msra.mxu1 %v1729_v18 }
 0x321   :  { %940 = vmatprep.subr.bf16.mxu0 %v1736_v19  ;;  %981 = vmatprep.subr.bf16.mxu1 %v1742_v20 }
 0x324   :  { %941 = vmatpush1.bf16.msra.mxu0 %v1749_v21  ;;  %982 = vmatpush1.bf16.msra.mxu1 %v1755_v22 }
 0x325   :  { %942 = vmatprep.subr.bf16.mxu0 %v1763_v23  ;;  %983 = vmatprep.subr.bf16.mxu1 %v1770_v24 }
 0x328   :  { %943 = vmatpush1.bf16.msra.mxu0 %v1779_v26  ;;  %984 = vmatpush1.bf16.msra.mxu1 %v1786_v27 }
 0x329   :  { %944 = vmatprep.subr.bf16.mxu0 %v1791_v28  ;;  %985 = vmatprep.subr.bf16.mxu1 %v1797_v29 }
 0x32c   :  { %945 = vmatpush1.bf16.msra.mxu0 %v1805_v30  ;;  %986 = vmatpush1.bf16.msra.mxu1 %v1810_v31 }
 0x32d   :  { %946 = vmatprep.subr.bf16.mxu0 %v1818_v32  ;;  %987 = vmatprep.subr.bf16.mxu1 %v1825_v33 }
 0x330   :  { %947 = vmatpush1.bf16.msra.mxu0 %v1834_v35  ;;  %988 = vmatpush1.bf16.msra.mxu1 %v1841_v36 }
 0x331   :  { %948 = vmatprep.subr.bf16.mxu0 %v1846_v37  ;;  %989 = vmatprep.subr.bf16.mxu1 %v1852_v38 }
 0x334   :  { %949 = vmatpush1.bf16.msra.mxu0 %v1860_v39  ;;  %990 = vmatpush1.bf16.msra.mxu1 %v1871_v41 }
 0x335   :  { %1043 = vmatprep.subr.bf16.mxu0 %v1660_v6  ;;  %1084 = vmatprep.subr.bf16.mxu1 %v1665_v7 }
 0x3ea   :  { %v859_v14 = vpop.f32.mrb[28].mxu0  ;;  %v900_v51 = vpop.f32.mrb[28].mxu1 }
 0x3eb   :  { %v907_v52 = vadd.f32 %v859_v14, %v2415_v50  ;;  %v909_v53 = vadd.f32 %v900_v51, %v2416_v54  ;;  %v861_v55 = vpop.f32.mrb[29].mxu0  ;;  %v902_v56 = vpop.f32.mrb[29].mxu1 }
 0x3ec   :  { %v908_v57 = vadd.f32 %v861_v55, %v2417_v1  ;;  %v910_v58 = vadd.f32 %v902_v56, %v2418_v47  ;;  %v863_v60 = vpop.f32.mrb[30].mxu0  ;;  %v904_v63 = vpop.f32.mrb[30].mxu1 }
 0x3ed   :  { %v911_v62 = vmul.f32 0.5, %v907_v52  ;;  %v864_v43 = vpop.f32.mrb[31].mxu0  ;;  %v905_v5 = vpop.f32.mrb[31].mxu1 }
 0x3ee   :  { %v915_v6 = vmul.f32 0.5, %v908_v57  ;;  %v920_v7 = vmul.f32 0.5, %v910_v58 }
 0x3ef   :  { %1517 = vtanh.f32 %v911_v62 }
 0x3f0   :  { %1519 = vtanh.f32 %v915_v6 }
 0x3f1   :  { %1521 = vtanh.f32 %v909_v53 }
 0x3f2   :  { %1523 = vtanh.f32 %v920_v7 }
 0x3f9   :  { %v1518_v45 = vpop.eup %1517 }
 0x3fa   :  { %v1520_v25 = vpop.eup %1519  ;;  %v913_v0 = vmul.f32 0.5, %v1518_v45 }
 0x3fb   :  { %v917_v34 = vmul.f32 0.5, %v1520_v25  ;;  %v1522_v2 = vpop.eup %1521 }
 0x3fc   :  { %v914_v40 = vadd.f32 0.5, %v913_v0  ;;  %v1524_v59 = vpop.eup %1523 }
 0x3fd   :  { %v918_v46 = vadd.f32 0.5, %v917_v34  ;;  %v922_v61 = vmul.f32 0.5, %v1524_v59  ;;  %v2185_v34 = vld [vmem:[%s2384_s2] ss:$16 sps:$4 sm:$0xff]   ;;  %v2229_v59 = vld [vmem:[%s2384_s2 + $0x4c] ss:$16 sps:$4 sm:$0xff]  }
 0x3fe   :  { %v925_v42 = vmul.f32 %v1522_v2, %v914_v40  ;;  %v2191_v40 = vld [vmem:[%s2384_s2 + $0x8] ss:$16 sps:$4 sm:$0xff]   ;;  %v2197_v2 = vld [vmem:[%s2384_s2 + $0x24] ss:$16 sps:$4 sm:$0xff]  }
 0x3ff   :  { %v924_v44 = vmul.f32 %v918_v46, %v2085_v3  ;;  %v923_v4 = vadd.f32 0.5, %v922_v61  ;;  %v2203_v46 = vld [vmem:[%s2384_s2 + $0x2c] ss:$16 sps:$4 sm:$0xff]   ;;  %v2235_v61 = vld [vmem:[%s2384_s2 + $0x40] ss:$16 sps:$4 sm:$0xff]  }
 0x401   :  { %v2127_v48 = vadd.f32 %v925_v42, %v924_v44  ;;  %v2211_v42 = vld [vmem:[%s2384_s2 + $0x20] ss:$16 sps:$4 sm:$0xff]   ;;  %v2217_v44 = vld [vmem:[%s2384_s2 + $0x28] ss:$16 sps:$4 sm:$0xff]  }
 0x403   :  { %1525 = vtanh.f32 %v2127_v48 }
 0x40d   :  { %v1526_v14 = vpop.eup %1525 }
 0x40e   :  { %v928_v51 = vmul.f32 %v1526_v14, %v923_v4  ;;  %v2241_v4 = vld [vmem:[%s2384_s2 + $0x48] ss:$16 sps:$4 sm:$0xff]   ;;  %v2247_v14 = vld [vmem:[%s2384_s2 + $0x64] ss:$16 sps:$4 sm:$0xff]  }
 0x410   :  { %v933_v50 = vpack.c.bf16 %v928_v51, %v928_v51  ;;  %v2253_v51 = vld [vmem:[%s2384_s2 + $0x6c] ss:$16 sps:$4 sm:$0xff]  }
 0x412   :  { %967 = vmatmul.mubr.bf16.vlgmr.msra.gmra.mrb[32].mxu0 %v933_v50  ;;  %1008 = vmatmul.mubr.bf16.vlgmr.msra.gmra.mrb[32].mxu1 %v933_v50  ;;  %v2259_v50 = vld [vmem:[%s2384_s2 + $0x60] ss:$16 sps:$4 sm:$0xff]  }
 0x413   :  { %1044 = vmatpush1.bf16.msra.mxu0 %v1670_v8  ;;  %1085 = vmatpush1.bf16.msra.mxu1 %v1676_v9  ;;  %v2165_v8 = vld [vmem:[%s2384_s2 + $0x4] ss:$16 sps:$4 sm:$0xff]   ;;  %v2171_v9 = vld [vmem:[%s2384_s2 + $0xc] ss:$16 sps:$4 sm:$0xff]  }
 0x414   :  { %1045 = vmatprep.subr.bf16.mxu0 %v1683_v10  ;;  %1086 = vmatprep.subr.bf16.mxu1 %v1690_v11 }
 0x415   :  { %1075 = vmatprep.mubr.bf16.mxu0 %v2413_v49  ;;  %1116 = vmatprep.mubr.bf16.mxu1 %v2413_v49 }
 0x417   :  { %1046 = vmatpush1.bf16.msra.mxu0 %v1695_v12  ;;  %1087 = vmatpush1.bf16.msra.mxu1 %v1700_v13  ;;  %v2419_v12 = vld [vmem:[#allocation10_spill] sm:$0xff] }
 0x418   :  { %1047 = vmatprep.subr.bf16.mxu0 %v1712_v15  ;;  %1088 = vmatprep.subr.bf16.mxu1 %v1718_v16  ;;  %v2420_v15 = vld [vmem:[#allocation11_spill] sm:$0xff] }
 0x41b   :  { %1048 = vmatpush1.bf16.msra.mxu0 %v1724_v17  ;;  %1089 = vmatpush1.bf16.msra.mxu1 %v1729_v18 }
 0x41c   :  { %1049 = vmatprep.subr.bf16.mxu0 %v1736_v19  ;;  %1090 = vmatprep.subr.bf16.mxu1 %v1742_v20  ;;  %v2421_v19 = vld [vmem:[#allocation12_spill] sm:$0xff] }
 0x41f   :  { %1050 = vmatpush1.bf16.msra.mxu0 %v1749_v21  ;;  %1091 = vmatpush1.bf16.msra.mxu1 %v1755_v22  ;;  %v2422_v21 = vld [vmem:[#allocation13_spill] sm:$0xff] }
 0x420   :  { %1051 = vmatprep.subr.bf16.mxu0 %v1763_v23  ;;  %1092 = vmatprep.subr.bf16.mxu1 %v1770_v24 }
 0x423   :  { %1052 = vmatpush1.bf16.msra.mxu0 %v1779_v26  ;;  %1093 = vmatpush1.bf16.msra.mxu1 %v1786_v27 }
 0x424   :  { %1053 = vmatprep.subr.bf16.mxu0 %v1791_v28  ;;  %1094 = vmatprep.subr.bf16.mxu1 %v1797_v29 }
 0x427   :  { %1054 = vmatpush1.bf16.msra.mxu0 %v1805_v30  ;;  %1095 = vmatpush1.bf16.msra.mxu1 %v1810_v31 }
 0x428   :  { %1055 = vmatprep.subr.bf16.mxu0 %v1818_v32  ;;  %1096 = vmatprep.subr.bf16.mxu1 %v1825_v33 }
 0x42b   :  { %1056 = vmatpush1.bf16.msra.mxu0 %v1834_v35  ;;  %1097 = vmatpush1.bf16.msra.mxu1 %v1841_v36 }
 0x42c   :  { %1057 = vmatprep.subr.bf16.mxu0 %v1846_v37  ;;  %1098 = vmatprep.subr.bf16.mxu1 %v1852_v38 }
 0x42f   :  { %1058 = vmatpush1.bf16.msra.mxu0 %v1860_v39  ;;  %1099 = vmatpush1.bf16.msra.mxu1 %v1871_v41 }
 0x430   :  { %1152 = vmatprep.subr.bf16.mxu0 %v2165_v8  ;;  %1193 = vmatprep.subr.bf16.mxu1 %v2171_v9 }
 0x4e5   :  { %v968_v10 = vpop.f32.mrb[32].mxu0  ;;  %v1009_v11 = vpop.f32.mrb[32].mxu1 }
 0x4e6   :  { %v1016_v13 = vadd.f32 %v968_v10, %v2419_v12  ;;  %v1018_v16 = vadd.f32 %v1009_v11, %v2420_v15  ;;  %v970_v17 = vpop.f32.mrb[33].mxu0  ;;  %v1011_v18 = vpop.f32.mrb[33].mxu1  ;;  %v2265_v10 = vld [vmem:[%s2384_s2 + $0x68] ss:$16 sps:$4 sm:$0xff]   ;;  %v2271_v11 = vld [vmem:[%s2384_s2 + $0x84] ss:$16 sps:$4 sm:$0xff]  }
 0x4e7   :  { %v1017_v20 = vadd.f32 %v970_v17, %v2421_v19  ;;  %v1019_v22 = vadd.f32 %v1011_v18, %v2422_v21  ;;  %v972_v23 = vpop.f32.mrb[34].mxu0  ;;  %v1013_v24 = vpop.f32.mrb[34].mxu1  ;;  %v2277_v12 = vld [vmem:[%s2384_s2 + $0x8c] ss:$16 sps:$4 sm:$0xff]   ;;  %v2426_v15 = vld [vmem:[#allocation17_spill] sm:$0xff] }
 0x4e8   :  { %v1020_v26 = vmul.f32 0.5, %v1016_v13  ;;  %v973_v3 = vpop.f32.mrb[35].mxu0  ;;  %v1014_v52 = vpop.f32.mrb[35].mxu1  ;;  %v2283_v13 = vld [vmem:[%s2384_s2 + $0x80] ss:$16 sps:$4 sm:$0xff]  }
 0x4e9   :  { %v1024_v54 = vmul.f32 0.5, %v1017_v20  ;;  %v1029_v53 = vmul.f32 0.5, %v1019_v22 }
 0x4ea   :  { %1527 = vtanh.f32 %v1020_v26 }
 0x4eb   :  { %1529 = vtanh.f32 %v1024_v54 }
 0x4ec   :  { %1531 = vtanh.f32 %v1018_v16 }
 0x4ed   :  { %1533 = vtanh.f32 %v1029_v53 }
 0x4f4   :  { %v1528_v55 = vpop.eup %1527 }
 0x4f5   :  { %v1530_v56 = vpop.eup %1529  ;;  %v1022_v1 = vmul.f32 0.5, %v1528_v55 }
 0x4f6   :  { %v1026_v57 = vmul.f32 0.5, %v1530_v56  ;;  %v1532_v58 = vpop.eup %1531 }
 0x4f7   :  { %v1023_v47 = vadd.f32 0.5, %v1022_v1  ;;  %v1534_v5 = vpop.eup %1533 }
 0x4f8   :  { %v1027_v60 = vadd.f32 0.5, %v1026_v57  ;;  %v1031_v6 = vmul.f32 0.5, %v1534_v5  ;;  %v1592_v5 = vld [vmem:[%s2384_s2 + $0xcc] ss:$16 sps:$4 sm:$0xff]  }
 0x4f9   :  { %v1034_v63 = vmul.f32 %v1532_v58, %v1023_v47  ;;  %v1587_v58 = vld [vmem:[%s2384_s2 + $0xa4] ss:$16 sps:$4 sm:$0xff]  }
 0x4fa   :  { %v1033_v62 = vmul.f32 %v1027_v60, %v2127_v48  ;;  %v1032_v7 = vadd.f32 0.5, %v1031_v6  ;;  %v2223_v48 = vld [vmem:[%s2384_s2 + $0x44] ss:$16 sps:$4 sm:$0xff]   ;;  %v1588_v60 = vld [vmem:[%s2384_s2 + $0xac] ss:$16 sps:$4 sm:$0xff]  }
 0x4fb   :  { %v1593_v6 = vld [vmem:[%s2384_s2 + $0xc0] ss:$16 sps:$4 sm:$0xff]  }
 0x4fc   :  { %v2179_v43 = vadd.f32 %v1034_v63, %v1033_v62  ;;  %v1589_v63 = vld [vmem:[%s2384_s2 + $0xa0] ss:$16 sps:$4 sm:$0xff]   ;;  %v1590_v62 = vld [vmem:[%s2384_s2 + $0xa8] ss:$16 sps:$4 sm:$0xff]  }
 0x4fe   :  { %1535 = vtanh.f32 %v2179_v43 }
 0x508   :  { %v1536_v45 = vpop.eup %1535 }
 0x509   :  { %v1037_v25 = vmul.f32 %v1536_v45, %v1032_v7  ;;  %v1594_v7 = vld [vmem:[%s2384_s2 + $0xc8] ss:$16 sps:$4 sm:$0xff]   ;;  %v1595_v45 = vld [vmem:[%s2384_s2 + $0xe4] ss:$16 sps:$4 sm:$0xff]  }
 0x50b   :  { %v1042_v0 = vpack.c.bf16 %v1037_v25, %v1037_v25  ;;  %v1596_v25 = vld [vmem:[%s2384_s2 + $0xec] ss:$16 sps:$4 sm:$0xff]  }
 0x50d   :  { %1076 = vmatmul.mubr.bf16.vlgmr.msra.gmra.mrb[36].mxu0 %v1042_v0  ;;  %1117 = vmatmul.mubr.bf16.vlgmr.msra.gmra.mrb[36].mxu1 %v1042_v0  ;;  %v1597_v0 = vld [vmem:[%s2384_s2 + $0xe0] ss:$16 sps:$4 sm:$0xff]  }
 0x50e   :  { %1153 = vmatpush1.bf16.msra.mxu0 %v2185_v34  ;;  %1194 = vmatpush1.bf16.msra.mxu1 %v2191_v40 }
 0x50f   :  { %1154 = vmatprep.subr.bf16.mxu0 %v2197_v2  ;;  %1195 = vmatprep.subr.bf16.mxu1 %v2203_v46 }
 0x510   :  { %1184 = vmatprep.mubr.bf16.mxu0 %v2413_v49  ;;  %1225 = vmatprep.mubr.bf16.mxu1 %v2413_v49 }
 0x512   :  { %1155 = vmatpush1.bf16.msra.mxu0 %v2211_v42  ;;  %1196 = vmatpush1.bf16.msra.mxu1 %v2217_v44 }
 0x513   :  { %1156 = vmatprep.subr.bf16.mxu0 %v2223_v48  ;;  %1197 = vmatprep.subr.bf16.mxu1 %v2229_v59 }
 0x516   :  { %1157 = vmatpush1.bf16.msra.mxu0 %v2235_v61  ;;  %1198 = vmatpush1.bf16.msra.mxu1 %v2241_v4 }
 0x517   :  { %1158 = vmatprep.subr.bf16.mxu0 %v2247_v14  ;;  %1199 = vmatprep.subr.bf16.mxu1 %v2253_v51 }
 0x51a   :  { %1159 = vmatpush1.bf16.msra.mxu0 %v2259_v50  ;;  %1200 = vmatpush1.bf16.msra.mxu1 %v2265_v10 }
 0x51b   :  { %1160 = vmatprep.subr.bf16.mxu0 %v2271_v11  ;;  %1201 = vmatprep.subr.bf16.mxu1 %v2277_v12 }
 0x51e   :  { %1161 = vmatpush1.bf16.msra.mxu0 %v2283_v13  ;;  %1202 = vmatpush1.bf16.msra.mxu1 %v1786_v27 }
 0x51f   :  { %1162 = vmatprep.subr.bf16.mxu0 %v1791_v28  ;;  %1203 = vmatprep.subr.bf16.mxu1 %v1797_v29  ;;  %v2423_v29 = vld [vmem:[#allocation14_spill] sm:$0xff] }
 0x522   :  { %1163 = vmatpush1.bf16.msra.mxu0 %v1805_v30  ;;  %1204 = vmatpush1.bf16.msra.mxu1 %v1810_v31  ;;  %v2424_v31 = vld [vmem:[#allocation15_spill] sm:$0xff] }
 0x523   :  { %1164 = vmatprep.subr.bf16.mxu0 %v1818_v32  ;;  %1205 = vmatprep.subr.bf16.mxu1 %v1825_v33 }
 0x526   :  { %1165 = vmatpush1.bf16.msra.mxu0 %v1834_v35  ;;  %1206 = vmatpush1.bf16.msra.mxu1 %v1841_v36  ;;  %v2425_v36 = vld [vmem:[#allocation16_spill] sm:$0xff] }
 0x527   :  { %1166 = vmatprep.subr.bf16.mxu0 %v1846_v37  ;;  %1207 = vmatprep.subr.bf16.mxu1 %v1852_v38 }
 0x52a   :  { %1167 = vmatpush1.bf16.msra.mxu0 %v1860_v39  ;;  %1208 = vmatpush1.bf16.msra.mxu1 %v1871_v41 }
 0x52b   :  { %1261 = vmatprep.subr.bf16.mxu0 %v2165_v8  ;;  %1302 = vmatprep.subr.bf16.mxu1 %v2171_v9 }
 0x5e0   :  { %v1077_v27 = vpop.f32.mrb[36].mxu0  ;;  %v1118_v28 = vpop.f32.mrb[36].mxu1 }
 0x5e1   :  { %v1125_v30 = vadd.f32 %v1077_v27, %v2423_v29  ;;  %v1127_v32 = vadd.f32 %v1118_v28, %v2424_v31  ;;  %v1079_v33 = vpop.f32.mrb[37].mxu0  ;;  %v1120_v35 = vpop.f32.mrb[37].mxu1 }
 0x5e2   :  { %v1126_v37 = vadd.f32 %v1079_v33, %v2425_v36  ;;  %v1128_v38 = vadd.f32 %v1120_v35, %v2426_v15  ;;  %v1081_v16 = vpop.f32.mrb[38].mxu0  ;;  %v1122_v39 = vpop.f32.mrb[38].mxu1 }
 0x5e3   :  { %v1129_v17 = vmul.f32 0.5, %v1125_v30  ;;  %v1082_v41 = vpop.f32.mrb[39].mxu0  ;;  %v1123_v18 = vpop.f32.mrb[39].mxu1 }
 0x5e4   :  { %v1133_v8 = vmul.f32 0.5, %v1126_v37  ;;  %v1138_v9 = vmul.f32 0.5, %v1128_v38 }
 0x5e5   :  { %1537 = vtanh.f32 %v1129_v17 }
 0x5e6   :  { %1539 = vtanh.f32 %v1133_v8 }
 0x5e7   :  { %1541 = vtanh.f32 %v1127_v32 }
 0x5e8   :  { %1543 = vtanh.f32 %v1138_v9 }
 0x5ef   :  { %v1538_v19 = vpop.eup %1537 }
 0x5f0   :  { %v1540_v20 = vpop.eup %1539  ;;  %v1131_v21 = vmul.f32 0.5, %v1538_v19 }
 0x5f1   :  { %v1135_v22 = vmul.f32 0.5, %v1540_v20  ;;  %v1542_v24 = vpop.eup %1541 }
 0x5f2   :  { %v1132_v23 = vadd.f32 0.5, %v1131_v21  ;;  %v1544_v53 = vpop.eup %1543  ;;  %v2431_v21 = vld [vmem:[#allocation22_spill] sm:$0xff] }
 0x5f3   :  { %v1136_v26 = vadd.f32 0.5, %v1135_v22  ;;  %v1140_v55 = vmul.f32 0.5, %v1544_v53  ;;  %v2434_v53 = vld [vmem:[#allocation25_spill] sm:$0xff] }
 0x5f4   :  { %v1143_v3 = vmul.f32 %v1542_v24, %v1132_v23  ;;  %v2432_v23 = vld [vmem:[#allocation23_spill] sm:$0xff] }
 0x5f5   :  { %v1142_v52 = vmul.f32 %v1136_v26, %v2179_v43  ;;  %v1141_v56 = vadd.f32 0.5, %v1140_v55  ;;  %v1591_v43 = vld [vmem:[%s2384_s2 + $0xc4] ss:$16 sps:$4 sm:$0xff]  }
 0x5f7   :  { %v2306_v54 = vadd.f32 %v1143_v3, %v1142_v52  ;;  %v2433_v52 = vld [vmem:[#allocation24_spill] sm:$0xff] }
 0x5f9   :  { %1545 = vtanh.f32 %v2306_v54 }
 0x603   :  { %v1546_v1 = vpop.eup %1545 }
 0x604   :  { %v1146_v57 = vmul.f32 %v1546_v1, %v1141_v56 }
 0x606   :  { %v1151_v47 = vpack.c.bf16 %v1146_v57, %v1146_v57 }
 0x608   :  { %1185 = vmatmul.mubr.bf16.vlgmr.msra.gmra.mrb[40].mxu0 %v1151_v47  ;;  %1226 = vmatmul.mubr.bf16.vlgmr.msra.gmra.mrb[40].mxu1 %v1151_v47 }
 0x609   :  { %1262 = vmatpush1.bf16.msra.mxu0 %v2185_v34  ;;  %1303 = vmatpush1.bf16.msra.mxu1 %v2191_v40  ;;  %v1598_v34 = vld [vmem:[%s2384_s2 + $0xe8] ss:$16 sps:$4 sm:$0xff]  }
 0x60a   :  { %1263 = vmatprep.subr.bf16.mxu0 %v2197_v2  ;;  %1304 = vmatprep.subr.bf16.mxu1 %v2203_v46  ;;  %v2427_v46 = vld [vmem:[#allocation18_spill] sm:$0xff] }
 0x60b   :  { %1293 = vmatprep.mubr.bf16.mxu0 %v2413_v49  ;;  %1334 = vmatprep.mubr.bf16.mxu1 %v2413_v49  ;;  %v1586_v49 = vld [vmem:[%s2384_s2 + $0x88] ss:$16 sps:$4 sm:$0xff]  }
 0x60d   :  { %1264 = vmatpush1.bf16.msra.mxu0 %v2211_v42  ;;  %1305 = vmatpush1.bf16.msra.mxu1 %v2217_v44  ;;  %v2428_v44 = vld [vmem:[#allocation19_spill] sm:$0xff] }
 0x60e   :  { %1265 = vmatprep.subr.bf16.mxu0 %v2223_v48  ;;  %1306 = vmatprep.subr.bf16.mxu1 %v2229_v59 }
 0x611   :  { %1266 = vmatpush1.bf16.msra.mxu0 %v2235_v61  ;;  %1307 = vmatpush1.bf16.msra.mxu1 %v2241_v4  ;;  %v2429_v4 = vld [vmem:[#allocation20_spill] sm:$0xff] }
 0x612   :  { %1267 = vmatprep.subr.bf16.mxu0 %v2247_v14  ;;  %1308 = vmatprep.subr.bf16.mxu1 %v2253_v51  ;;  %v2430_v51 = vld [vmem:[#allocation21_spill] sm:$0xff] }
 0x615   :  { %1268 = vmatpush1.bf16.msra.mxu0 %v2259_v50  ;;  %1309 = vmatpush1.bf16.msra.mxu1 %v2265_v10 }
 0x616   :  { %1269 = vmatprep.subr.bf16.mxu0 %v2271_v11  ;;  %1310 = vmatprep.subr.bf16.mxu1 %v2277_v12 }
 0x619   :  { %1270 = vmatpush1.bf16.msra.mxu0 %v2283_v13  ;;  %1311 = vmatpush1.bf16.msra.mxu1 %v1586_v49 }
 0x61a   :  { %1271 = vmatprep.subr.bf16.mxu0 %v1587_v58  ;;  %1312 = vmatprep.subr.bf16.mxu1 %v1588_v60 }
 0x61d   :  { %1272 = vmatpush1.bf16.msra.mxu0 %v1589_v63  ;;  %1313 = vmatpush1.bf16.msra.mxu1 %v1590_v62 }
 0x61e   :  { %1273 = vmatprep.subr.bf16.mxu0 %v1591_v43  ;;  %1314 = vmatprep.subr.bf16.mxu1 %v1592_v5 }
 0x621   :  { %1274 = vmatpush1.bf16.msra.mxu0 %v1593_v6  ;;  %1315 = vmatpush1.bf16.msra.mxu1 %v1594_v7 }
 0x622   :  { %1275 = vmatprep.subr.bf16.mxu0 %v1595_v45  ;;  %1316 = vmatprep.subr.bf16.mxu1 %v1596_v25 }
 0x625   :  { %1276 = vmatpush1.bf16.msra.mxu0 %v1597_v0  ;;  %1317 = vmatpush1.bf16.msra.mxu1 %v1598_v34 }
 0x6db   :  { %v1186_v40 = vpop.f32.mrb[40].mxu0  ;;  %v1227_v2 = vpop.f32.mrb[40].mxu1 }
 0x6dc   :  { %v1234_v42 = vadd.f32 %v1186_v40, %v2427_v46  ;;  %v1236_v48 = vadd.f32 %v1227_v2, %v2428_v44  ;;  %v1188_v59 = vpop.f32.mrb[41].mxu0  ;;  %v1229_v61 = vpop.f32.mrb[41].mxu1 }
 0x6dd   :  { %v1235_v14 = vadd.f32 %v1188_v59, %v2429_v4  ;;  %v1237_v50 = vadd.f32 %v1229_v61, %v2430_v51  ;;  %v1190_v10 = vpop.f32.mrb[42].mxu0  ;;  %v1231_v11 = vpop.f32.mrb[42].mxu1 }
 0x6de   :  { %v1238_v12 = vmul.f32 0.5, %v1234_v42  ;;  %v1191_v13 = vpop.f32.mrb[43].mxu0  ;;  %v1232_v27 = vpop.f32.mrb[43].mxu1 }
 0x6df   :  { %v1242_v28 = vmul.f32 0.5, %v1235_v14  ;;  %v1247_v29 = vmul.f32 0.5, %v1237_v50 }
 0x6e0   :  { %1547 = vtanh.f32 %v1238_v12 }
 0x6e1   :  { %1549 = vtanh.f32 %v1242_v28 }
 0x6e2   :  { %1551 = vtanh.f32 %v1236_v48 }
 0x6e3   :  { %1553 = vtanh.f32 %v1247_v29 }
 0x6ea   :  { %v1548_v30 = vpop.eup %1547 }
 0x6eb   :  { %v1550_v31 = vpop.eup %1549  ;;  %v1240_v32 = vmul.f32 0.5, %v1548_v30 }
 0x6ec   :  { %v1244_v33 = vmul.f32 0.5, %v1550_v31  ;;  %v1552_v36 = vpop.eup %1551 }
 0x6ed   :  { %v1241_v35 = vadd.f32 0.5, %v1240_v32  ;;  %v1554_v39 = vpop.eup %1553 }
 0x6ee   :  { %v1245_v37 = vadd.f32 0.5, %v1244_v33  ;;  %v1249_v17 = vmul.f32 0.5, %v1554_v39 }
 0x6ef   :  { %v1252_v15 = vmul.f32 %v1552_v36, %v1241_v35 }
 0x6f0   :  { %v1251_v38 = vmul.f32 %v1245_v37, %v2306_v54  ;;  %v1250_v41 = vadd.f32 0.5, %v1249_v17 }
 0x6f2   :  { %v1253_v16 = vadd.f32 %v1252_v15, %v1251_v38 }
 0x6f4   :  { %1555 = vtanh.f32 %v1253_v16 }
 0x6fe   :  { %v1556_v18 = vpop.eup %1555 }
 0x6ff   :  { %v1255_v8 = vmul.f32 %v1556_v18, %v1250_v41 }
 0x701   :  { %v1260_v9 = vpack.c.bf16 %v1255_v8, %v1255_v8 }
 0x703   :  { %1294 = vmatmul.mubr.bf16.vlgmr.msra.gmra.mrb[44].mxu0 %v1260_v9  ;;  %1335 = vmatmul.mubr.bf16.vlgmr.msra.gmra.mrb[44].mxu1 %v1260_v9 }
 0x7d6   :  { %v1295_v19 = vpop.f32.mrb[44].mxu0  ;;  %v1336_v20 = vpop.f32.mrb[44].mxu1 }
 0x7d7   :  { %v1343_v22 = vadd.f32 %v1295_v19, %v2431_v21  ;;  %v1345_v24 = vadd.f32 %v1336_v20, %v2432_v23  ;;  %v1297_v26 = vpop.f32.mrb[45].mxu0  ;;  %v1338_v3 = vpop.f32.mrb[45].mxu1 }
 0x7d8   :  { %v1344_v54 = vadd.f32 %v1297_v26, %v2433_v52  ;;  %v1346_v55 = vadd.f32 %v1338_v3, %v2434_v53  ;;  %v1299_v56 = vpop.f32.mrb[46].mxu0  ;;  %v1340_v1 = vpop.f32.mrb[46].mxu1 }
 0x7d9   :  { %v1347_v57 = vmul.f32 0.5, %v1343_v22  ;;  %v1300_v47 = vpop.f32.mrb[47].mxu0  ;;  %v1341_v49 = vpop.f32.mrb[47].mxu1 }
 0x7da   :  { %v1351_v58 = vmul.f32 0.5, %v1344_v54  ;;  %v1356_v60 = vmul.f32 0.5, %v1346_v55 }
 0x7db   :  { %1557 = vtanh.f32 %v1347_v57 }
 0x7dc   :  { %1559 = vtanh.f32 %v1351_v58 }
 0x7dd   :  { %1561 = vtanh.f32 %v1345_v24 }
 0x7de   :  { %1563 = vtanh.f32 %v1356_v60 }
 0x7e5   :  { %v1558_v63 = vpop.eup %1557 }
 0x7e6   :  { %v1560_v62 = vpop.eup %1559  ;;  %v1349_v43 = vmul.f32 0.5, %v1558_v63 }
 0x7e7   :  { %v1353_v5 = vmul.f32 0.5, %v1560_v62  ;;  %v1562_v7 = vpop.eup %1561 }
 0x7e8   :  { %v1350_v6 = vadd.f32 0.5, %v1349_v43  ;;  %v1564_v40 = vpop.eup %1563 }
 0x7e9   :  { %v1354_v45 = vadd.f32 0.5, %v1353_v5  ;;  %v1358_v2 = vmul.f32 0.5, %v1564_v40 }
 0x7ea   :  { %v1361_v25 = vmul.f32 %v1562_v7, %v1350_v6 }
 0x7eb   :  { %v1360_v0 = vmul.f32 %v1354_v45, %v1253_v16  ;;  %v1359_v46 = vadd.f32 0.5, %v1358_v2 }
 0x7ed   :  { %v1362_v34 = vadd.f32 %v1361_v25, %v1360_v0 }
 0x7ef   :  { %1565 = vtanh.f32 %v1362_v34  ;;  %1371 = vst [vmem:[%s2388_s7] sm:$0xff] %v1362_v34 }
 0x7f9   :  { %v1566_v42 = vpop.eup %1565 }
 0x7fa   :  { %v1364_v44 = vmul.f32 %v1566_v42, %v1359_v46 }
 0x7fc   :  { %1370 = vst [vmem:[%s2389_s6] sm:$0xff] %v1364_v44 }

// kernel: multimodal_lstm_forward.4
= control target key start
LH: loop header
LB: loop body
LE: loop exit
PB: predicated region body
PF: predicated region fallthrough
CT: control target
= control target key end

     0   :  { %s2023_s24 = smov 0   ;;  %s2876_s0 = inlined_call_operand.vmem [shape: bf16[128,32], index: 0, kind: input, shape index: {}]   ;;  %s2877_s1 = inlined_call_operand.vmem [shape: bf16[32,512], index: 1, kind: input, shape index: {}]   ;;  %s2878_s2 = inlined_call_operand.vmem [shape: bf16[128,512], index: 2, kind: input, shape index: {}]   ;;  %s2879_s3 = inlined_call_operand.vmem [shape: f32[1,512], index: 3, kind: input, shape index: {}]   ;;  %s2880_s4 = inlined_call_operand.vmem [shape: f32[8,128], index: 4, kind: input, shape index: {}, may-alias: {4,5}]   ;;  %s2881_s5 = inlined_call_operand.vmem [shape: f32[8,128], index: 5, kind: input, shape index: {}, may-alias: {4,5}]   ;;  %s2882_s6 = inlined_call_operand.vmem [shape: f32[8,128], index: 6, kind: output, shape index: {0}]   ;;  %s2883_s7 = inlined_call_operand.vmem [shape: f32[8,128], index: 7, kind: output, shape index: {1}]  }
   0x1 LB: > { %s2029_s25 = sadd.s32 4294967295, %s1980_s24   ;;  %p1729_p0 = scmp.ge.s32.totalorder %s1980_s24, 1  ;;  %s1980_s24 = sphi %s2023_s24, %s18_s24  }
   0x2   : > { %p231_p1 = scmp.lt.s32.totalorder %s1980_s24, 3 }
   0x4   : > { %p232_p2 = pnand %p1729_p0, %p231_p1 }
   0x6   : > { %235 = sbr.rel (%p232_p2) target bundleno = 2079 (0x81f), region = 44 }
   0xd   : > { %s2034_s26 = sshll.u32 %s2029_s25, 3  ;;  %p1732_p4 = scmp.ne.s32.totalorder %s2029_s25, 0 }
   0xe   : > { %p259_p3 = scmp.lt.s32.totalorder %s2034_s26, 15  ;;  %v269_v0 = vld [vmem:[%s2880_s4] sm:$0xff] (!%p1732_p4) }
   0xf   : > { %268 = sbr.rel (%p1732_p4) target bundleno = 22 (0x16), region = 48  ;;  %v271_v1 = vld [vmem:[%s2881_s5] sm:$0xff] (!%p1732_p4)  ;;  %270 = vst [vmem:[#allocation3] sm:$0xff] (!%p1732_p4), %v269_v0 }
  0x10   : > { %s260_s27 = scalar_select %p259_p3, %s2034_s26, 15 }
  0x11   : > { %272 = vst [vmem:[#allocation4] sm:$0xff] (!%p1732_p4), %v271_v1 }
  0x12   : > { %s1731_s28 = sshll.u32 %s260_s27, 2 }
  0x13   : > { %s2041_s8 = scalar_lea.vmem %s2876_s0, %s1731_s28 }
  0x16 PF: > { %v1798_v2 = vld [vmem:[%s2877_s1 + $0x4] ss:$16 sps:$4 sm:$0xff]   ;;  %v1800_v3 = vld [vmem:[%s2877_s1 + $0xc] ss:$16 sps:$4 sm:$0xff]   ;;  %v2884_v4 = vmov 0   ;;  %vm371_vm0 = vcmask 261120   ;;  %v291_v49 = vlaneseq }
  0x17   : > { %416 = vmatprep.mubr.bf16.mxu0 %v2884_v4  ;;  %489 = vmatprep.mubr.bf16.mxu1 %v2884_v4  ;;  %v1802_v5 = vld [vmem:[%s2877_s1] ss:$16 sps:$4 sm:$0xff]   ;;  %v1803_v6 = vld [vmem:[%s2877_s1 + $0x8] ss:$16 sps:$4 sm:$0xff]   ;;  %v1804_v7 = vld [vmem:[%s2877_s1 + $0x24] ss:$16 sps:$4 sm:$0xff]  }
  0x18   : > { %384 = vmatprep.subr.bf16.mxu0 %v1798_v2  ;;  %457 = vmatprep.subr.bf16.mxu1 %v1800_v3  ;;  %v1806_v8 = vld [vmem:[%s2877_s1 + $0x2c] ss:$16 sps:$4 sm:$0xff]   ;;  %v1808_v9 = vld [vmem:[%s2877_s1 + $0x20] ss:$16 sps:$4 sm:$0xff]   ;;  %v1809_v10 = vld [vmem:[%s2877_s1 + $0x28] ss:$16 sps:$4 sm:$0xff]  }
  0x19   : > { %385 = vmatpush1.bf16.msra.mxu0 %v1802_v5  ;;  %458 = vmatpush1.bf16.msra.mxu1 %v1803_v6  ;;  %v1810_v11 = vld [vmem:[%s2041_s8] sm:$0xff]   ;;  %v2085_v13 = vld [vmem:[%s2878_s2 + $0xc] ss:$16 sps:$4 sm:$0xff]   ;;  %v2095_v15 = vld [vmem:[%s2878_s2 + $0x8] ss:$16 sps:$4 sm:$0xff]   ;;  %v292_v50 = vshrl.u32 %v291_v49, 7 }
  0x1a   : > { %386 = vmatprep.subr.bf16.mxu0 %v1804_v7  ;;  %459 = vmatprep.subr.bf16.mxu1 %v1806_v8  ;;  %v2080_v12 = vld [vmem:[%s2878_s2 + $0x4] ss:$16 sps:$4 sm:$0xff]   ;;  %v2090_v14 = vld [vmem:[%s2878_s2] ss:$16 sps:$4 sm:$0xff]   ;;  %v2107_v17 = vld [vmem:[%s2878_s2 + $0x2c] ss:$16 sps:$4 sm:$0xff]  }
  0x1b   : > { %v2101_v16 = vld [vmem:[%s2878_s2 + $0x24] ss:$16 sps:$4 sm:$0xff]   ;;  %v2114_v18 = vld [vmem:[%s2878_s2 + $0x20] ss:$16 sps:$4 sm:$0xff]   ;;  %v2121_v19 = vld [vmem:[%s2878_s2 + $0x28] ss:$16 sps:$4 sm:$0xff]  }
  0x1c   : > { %v2128_v20 = vld [vmem:[%s2878_s2 + $0x44] ss:$16 sps:$4 sm:$0xff]   ;;  %v1823_v21 = vld [vmem:[%s2041_s8 + $0x8] sm:$0xff]   ;;  %v2141_v23 = vld [vmem:[%s2878_s2 + $0x40] ss:$16 sps:$4 sm:$0xff]   ;;  %v301_v51 = vsub.s32 2, %v292_v50 }
  0x1d   : > { %387 = vmatpush1.bf16.msra.mxu0 %v1808_v9  ;;  %460 = vmatpush1.bf16.msra.mxu1 %v1809_v10  ;;  %v2136_v22 = vld [vmem:[%s2878_s2 + $0x4c] ss:$16 sps:$4 sm:$0xff]   ;;  %v2148_v24 = vld [vmem:[%s2878_s2 + $0x48] ss:$16 sps:$4 sm:$0xff]   ;;  %v2155_v25 = vld [vmem:[%s2878_s2 + $0x64] ss:$16 sps:$4 sm:$0xff]  }
  0x1e   : > { %761 = vmatprep.subr.bf16.mxu0 %v2080_v12  ;;  %802 = vmatprep.subr.bf16.mxu1 %v2085_v13  ;;  %v2160_v26 = vld [vmem:[%s2878_s2 + $0x6c] ss:$16 sps:$4 sm:$0xff]   ;;  %v2167_v27 = vld [vmem:[%s2878_s2 + $0x60] ss:$16 sps:$4 sm:$0xff]   ;;  %v2174_v28 = vld [vmem:[%s2878_s2 + $0x68] ss:$16 sps:$4 sm:$0xff]  }
  0x1f   : > { %v2181_v29 = vld [vmem:[%s2878_s2 + $0x84] ss:$16 sps:$4 sm:$0xff]   ;;  %v2186_v30 = vld [vmem:[%s2878_s2 + $0x8c] ss:$16 sps:$4 sm:$0xff]   ;;  %v2194_v32 = vld [vmem:[%s2878_s2 + $0x80] ss:$16 sps:$4 sm:$0xff]  }
  0x20   : > { %1745 = vmatmul.mubr.msk.bf16.vlgmr.msra.gmra.mrb[0].mxu0 %vm371_vm0, %v1810_v11  ;;  %1749 = vmatmul.mubr.msk.bf16.vlgmr.msra.gmra.mrb[0].mxu1 %vm371_vm0, %v1810_v11  ;;  %v1836_v31 = vld [vmem:[%s2041_s8 + $0x10] sm:$0xff]   ;;  %v2199_v33 = vld [vmem:[%s2878_s2 + $0x88] ss:$16 sps:$4 sm:$0xff]   ;;  %v2213_v35 = vld [vmem:[%s2878_s2 + $0xac] ss:$16 sps:$4 sm:$0xff]   ;;  %v305_v52 = vsub.s32 3, %v292_v50 }
  0x21   : > { %762 = vmatpush1.bf16.msra.mxu0 %v2090_v14  ;;  %803 = vmatpush1.bf16.msra.mxu1 %v2095_v15  ;;  %v2206_v34 = vld [vmem:[%s2878_s2 + $0xa4] ss:$16 sps:$4 sm:$0xff]   ;;  %v2220_v36 = vld [vmem:[%s2878_s2 + $0xa0] ss:$16 sps:$4 sm:$0xff]   ;;  %v2225_v37 = vld [vmem:[%s2878_s2 + $0xa8] ss:$16 sps:$4 sm:$0xff]  }
  0x22   : > { %763 = vmatprep.subr.bf16.mxu0 %v2101_v16  ;;  %804 = vmatprep.subr.bf16.mxu1 %v2107_v17  ;;  %v2232_v38 = vld [vmem:[%s2878_s2 + $0xc4] ss:$16 sps:$4 sm:$0xff]   ;;  %v2239_v39 = vld [vmem:[%s2878_s2 + $0xcc] ss:$16 sps:$4 sm:$0xff]   ;;  %v2249_v41 = vld [vmem:[%s2878_s2 + $0xc0] ss:$16 sps:$4 sm:$0xff]  }
  0x23   : > { %426 = vmatprep.mubr.bf16.mxu0 %v2884_v4  ;;  %499 = vmatprep.mubr.bf16.mxu1 %v2884_v4  ;;  %v1849_v40 = vld [vmem:[%s2041_s8 + $0x18] sm:$0xff]   ;;  %v2261_v43 = vld [vmem:[%s2878_s2 + $0xe4] ss:$16 sps:$4 sm:$0xff]   ;;  %v2275_v45 = vld [vmem:[%s2878_s2 + $0xe0] ss:$16 sps:$4 sm:$0xff]   ;;  %v293_v53 = vsub.s32 0, %v292_v50 }
  0x24   : > { %v2254_v42 = vld [vmem:[%s2878_s2 + $0xc8] ss:$16 sps:$4 sm:$0xff]   ;;  %v2266_v44 = vld [vmem:[%s2878_s2 + $0xec] ss:$16 sps:$4 sm:$0xff]   ;;  %v2282_v47 = vld [vmem:[#allocation3] sm:$0xff]  ;;  %v297_v55 = vsub.s32 1, %v292_v50 }
  0x25   : > { %764 = vmatpush1.bf16.msra.mxu0 %v2114_v18  ;;  %805 = vmatpush1.bf16.msra.mxu1 %v2121_v19  ;;  %v2280_v46 = vld [vmem:[%s2878_s2 + $0xe8] ss:$16 sps:$4 sm:$0xff]   ;;  %v568_v48 = vpack.c.bf16 %v2282_v47, %v2282_v47  ;;  %v289_v54 = vld [vmem:[%s2879_s3] sm:$0xf]  ;;  %p866_p5 = scmp.lt.s32.totalorder %s2034_s26, 12  ;;  %s981_s19 = sadd.s32 1, %s2034_s26 }
  0x26   : > { %765 = vmatprep.subr.bf16.mxu0 %v2128_v20  ;;  %806 = vmatprep.subr.bf16.mxu1 %v2136_v22  ;;  %v2331_v56 = vrot.slane %v289_v54, %v301_v51  ;;  %v2337_v59 = vrot.slane %v289_v54, %v305_v52  ;;  %v294_v60 = vrot.slane %v289_v54, %v293_v53  ;;  %p982_p6 = scmp.lt.s32.totalorder %s981_s19, 12  ;;  %s1097_s21 = sadd.s32 2, %s2034_s26 }
  0x27   : > { %v298_v63 = vrot.slane %v289_v54, %v297_v55  ;;  %s867_s18 = scalar_select %p866_p5, 1, 0 }
  0x28   : > { %1746 = vmatmul.mubr.msk.bf16.gmra.mrb[4].mxu0 %vm371_vm0, %v1823_v21  ;;  %1750 = vmatmul.mubr.msk.bf16.gmra.mrb[4].mxu1 %vm371_vm0, %v1823_v21  ;;  %s983_s20 = scalar_select %p982_p6, 1, 0 }
  0x29   : > { %766 = vmatpush1.bf16.msra.mxu0 %v2141_v23  ;;  %807 = vmatpush1.bf16.msra.mxu1 %v2148_v24  ;;  %p1098_p7 = scmp.lt.s32.totalorder %s1097_s21, 12  ;;  %s1213_s23 = sadd.s32 3, %s2034_s26 }
  0x2a   : > { %767 = vmatprep.subr.bf16.mxu0 %v2155_v25  ;;  %808 = vmatprep.subr.bf16.mxu1 %v2160_v26  ;;  %p1214_p8 = scmp.lt.s32.totalorder %s1213_s23, 12  ;;  %s1329_s13 = sadd.s32 4, %s2034_s26 }
  0x2b   : > { %436 = vmatprep.mubr.bf16.mxu0 %v2884_v4  ;;  %509 = vmatprep.mubr.bf16.mxu1 %v2884_v4  ;;  %s1099_s22 = scalar_select %p1098_p7, 1, 0 }
  0x2c   : > { %s1215_s27 = scalar_select %p1214_p8, 1, 0 }
  0x2d   : > { %768 = vmatpush1.bf16.msra.mxu0 %v2167_v27  ;;  %809 = vmatpush1.bf16.msra.mxu1 %v2174_v28  ;;  %p1330_p9 = scmp.lt.s32.totalorder %s1329_s13, 12  ;;  %s1445_s11 = sadd.s32 5, %s2034_s26 }
  0x2e   : > { %769 = vmatprep.subr.bf16.mxu0 %v2181_v29  ;;  %810 = vmatprep.subr.bf16.mxu1 %v2186_v30  ;;  %p1446_p10 = scmp.lt.s32.totalorder %s1445_s11, 12  ;;  %s1561_s13 = sadd.s32 6, %s2034_s26 }
  0x2f   : > { %s1331_s14 = scalar_select %p1330_p9, 1, 0 }
  0x30   : > { %1747 = vmatmul.mubr.msk.bf16.gmra.mrb[8].mxu0 %vm371_vm0, %v1836_v31  ;;  %1751 = vmatmul.mubr.msk.bf16.gmra.mrb[8].mxu1 %vm371_vm0, %v1836_v31  ;;  %s1447_s12 = scalar_select %p1446_p10, 1, 0 }
  0x31   : > { %770 = vmatpush1.bf16.msra.mxu0 %v2194_v32  ;;  %811 = vmatpush1.bf16.msra.mxu1 %v2199_v33  ;;  %p1562_p11 = scmp.lt.s32.totalorder %s1561_s13, 12  ;;  %s1677_s15 = sadd.s32 7, %s2034_s26 }
  0x32   : > { %771 = vmatprep.subr.bf16.mxu0 %v2206_v34  ;;  %812 = vmatprep.subr.bf16.mxu1 %v2213_v35  ;;  %p1678_p12 = scmp.lt.s32.totalorder %s1677_s15, 12  ;;  %p1786_p13 = scmp.ne.s32.totalorder %s2029_s25, 1 }
  0x33   : > { %446 = vmatprep.mubr.bf16.mxu0 %v2884_v4  ;;  %519 = vmatprep.mubr.bf16.mxu1 %v2884_v4 }
  0x34   : > { %s1679_s16 = scalar_select %p1678_p12, 1, 0 }
  0x35   : > { %772 = vmatpush1.bf16.msra.mxu0 %v2220_v36  ;;  %813 = vmatpush1.bf16.msra.mxu1 %v2225_v37 }
  0x36   : > { %773 = vmatprep.subr.bf16.mxu0 %v2232_v38  ;;  %814 = vmatprep.subr.bf16.mxu1 %v2239_v39 }
  0x38   : > { %1748 = vmatmul.mubr.msk.bf16.gmra.mrb[12].mxu0 %vm371_vm0, %v1849_v40  ;;  %1752 = vmatmul.mubr.msk.bf16.gmra.mrb[12].mxu1 %vm371_vm0, %v1849_v40 }
  0x39   : > { %774 = vmatpush1.bf16.msra.mxu0 %v2249_v41  ;;  %815 = vmatpush1.bf16.msra.mxu1 %v2254_v42 }
  0x3a   : > { %775 = vmatprep.subr.bf16.mxu0 %v2261_v43  ;;  %816 = vmatprep.subr.bf16.mxu1 %v2266_v44 }
  0x3b   : > { %793 = vmatprep.mubr.bf16.mxu0 %v2884_v4  ;;  %834 = vmatprep.mubr.bf16.mxu1 %v2884_v4 }
  0x3d   : > { %776 = vmatpush1.bf16.msra.mxu0 %v2275_v45  ;;  %817 = vmatpush1.bf16.msra.mxu1 %v2280_v46 }
  0x3e   : > { %877 = vmatprep.subr.bf16.mxu0 %v2080_v12  ;;  %918 = vmatprep.subr.bf16.mxu1 %v2085_v13 }
  0x40   : > { %794 = vmatmul.mubr.bf16.vlgmr.msra.gmra.mrb[16].mxu0 %v568_v48  ;;  %835 = vmatmul.mubr.bf16.vlgmr.msra.gmra.mrb[16].mxu1 %v568_v48 }
  0x41   : > { %878 = vmatpush1.bf16.msra.mxu0 %v2090_v14  ;;  %919 = vmatpush1.bf16.msra.mxu1 %v2095_v15 }
  0x42   : > { %879 = vmatprep.subr.bf16.mxu0 %v2101_v16  ;;  %920 = vmatprep.subr.bf16.mxu1 %v2107_v17 }
  0x43   : > { %909 = vmatprep.mubr.bf16.mxu0 %v2884_v4  ;;  %950 = vmatprep.mubr.bf16.mxu1 %v2884_v4 }
  0x45   : > { %880 = vmatpush1.bf16.msra.mxu0 %v2114_v18  ;;  %921 = vmatpush1.bf16.msra.mxu1 %v2121_v19 }
  0x46   : > { %881 = vmatprep.subr.bf16.mxu0 %v2128_v20  ;;  %922 = vmatprep.subr.bf16.mxu1 %v2136_v22 }
  0x49   : > { %882 = vmatpush1.bf16.msra.mxu0 %v2141_v23  ;;  %923 = vmatpush1.bf16.msra.mxu1 %v2148_v24 }
  0x4a   : > { %883 = vmatprep.subr.bf16.mxu0 %v2155_v25  ;;  %924 = vmatprep.subr.bf16.mxu1 %v2160_v26 }
  0x4d   : > { %884 = vmatpush1.bf16.msra.mxu0 %v2167_v27  ;;  %925 = vmatpush1.bf16.msra.mxu1 %v2174_v28 }
  0x4e   : > { %885 = vmatprep.subr.bf16.mxu0 %v2181_v29  ;;  %926 = vmatprep.subr.bf16.mxu1 %v2186_v30 }
  0x51   : > { %886 = vmatpush1.bf16.msra.mxu0 %v2194_v32  ;;  %927 = vmatpush1.bf16.msra.mxu1 %v2199_v33 }
  0x52   : > { %887 = vmatprep.subr.bf16.mxu0 %v2206_v34  ;;  %928 = vmatprep.subr.bf16.mxu1 %v2213_v35 }
  0x55   : > { %888 = vmatpush1.bf16.msra.mxu0 %v2220_v36  ;;  %929 = vmatpush1.bf16.msra.mxu1 %v2225_v37 }
  0x56   : > { %889 = vmatprep.subr.bf16.mxu0 %v2232_v38  ;;  %930 = vmatprep.subr.bf16.mxu1 %v2239_v39 }
  0x59   : > { %890 = vmatpush1.bf16.msra.mxu0 %v2249_v41  ;;  %931 = vmatpush1.bf16.msra.mxu1 %v2254_v42 }
  0x5a   : > { %891 = vmatprep.subr.bf16.mxu0 %v2261_v43  ;;  %932 = vmatprep.subr.bf16.mxu1 %v2266_v44 }
  0x5d   : > { %892 = vmatpush1.bf16.msra.mxu0 %v2275_v45  ;;  %933 = vmatpush1.bf16.msra.mxu1 %v2280_v46 }
  0x5e   : > { %993 = vmatprep.subr.bf16.mxu0 %v2080_v12  ;;  %1034 = vmatprep.subr.bf16.mxu1 %v2085_v13 }
  0xf3   : > { %v2333_v57 = vpop.f32.mrb[0].mxu0  ;;  %v2335_v58 = vpop.f32.mrb[0].mxu1 }
  0xf4   : > { %v420_v61 = vpop.f32.mrb[1].mxu0  ;;  %v493_v62 = vpop.f32.mrb[1].mxu1 }
  0xf5   : > { %v422_v0 = vpop.f32.mrb[2].mxu0  ;;  %v495_v1 = vpop.f32.mrb[2].mxu1 }
  0xf6   : > { %v2339_v2 = vadd.f32 %v422_v0, %v294_v60  ;;  %v424_v3 = vpop.f32.mrb[3].mxu0  ;;  %v2342_v5 = vadd.f32 %v495_v1, %v2331_v56  ;;  %v497_v6 = vpop.f32.mrb[3].mxu1 }
  0xf7   : > { %v2344_v7 = vadd.f32 %v424_v3, %v298_v63  ;;  %v2347_v8 = vadd.f32 %v497_v6, %v2337_v59 }
  0xfb   : > { %v428_v9 = vpop.f32.mrb[4].mxu0  ;;  %v501_v10 = vpop.f32.mrb[4].mxu1 }
  0xfc   : > { %v2349_v11 = vadd.f32 %v428_v9, %v294_v60  ;;  %v430_v21 = vpop.f32.mrb[5].mxu0  ;;  %v2352_v31 = vadd.f32 %v501_v10, %v2331_v56  ;;  %v503_v40 = vpop.f32.mrb[5].mxu1 }
  0xfd   : > { %v2354_v48 = vadd.f32 %v430_v21, %v298_v63  ;;  %v432_v49 = vpop.f32.mrb[6].mxu0  ;;  %v2357_v50 = vadd.f32 %v503_v40, %v2337_v59  ;;  %v505_v51 = vpop.f32.mrb[6].mxu1 }
  0xfe   : > { %v2359_v52 = vadd.f32 %v432_v49, %v294_v60  ;;  %v434_v53 = vpop.f32.mrb[7].mxu0  ;;  %v2362_v54 = vadd.f32 %v505_v51, %v2331_v56  ;;  %v507_v55 = vpop.f32.mrb[7].mxu1 }
  0xff   : > { %2886 = vst [vmem:[#allocation5_spill] sm:$0xff] %v2357_v50  ;;  %v2364_v0 = vadd.f32 %v434_v53, %v298_v63  ;;  %v2367_v1 = vadd.f32 %v507_v55, %v2337_v59 }
 0x100   : > { %2887 = vst [vmem:[#allocation6_spill] sm:$0xff] %v2359_v52  ;;  %2888 = vst [vmem:[#allocation7_spill] sm:$0xff] %v2362_v54 }
 0x101   : > { %2889 = vst [vmem:[#allocation8_spill] sm:$0xff] %v2364_v0  ;;  %2890 = vst [vmem:[#allocation9_spill] sm:$0xff] %v2367_v1 }
 0x103   : > { %v438_v3 = vpop.f32.mrb[8].mxu0  ;;  %v511_v6 = vpop.f32.mrb[8].mxu1 }
 0x104   : > { %v2369_v9 = vadd.f32 %v438_v3, %v294_v60  ;;  %v440_v10 = vpop.f32.mrb[9].mxu0  ;;  %v2372_v21 = vadd.f32 %v511_v6, %v2331_v56  ;;  %v513_v40 = vpop.f32.mrb[9].mxu1 }
 0x105   : > { %v2374_v49 = vadd.f32 %v440_v10, %v298_v63  ;;  %v442_v4 = vpop.f32.mrb[10].mxu0  ;;  %v2377_v51 = vadd.f32 %v513_v40, %v2337_v59  ;;  %v515_v53 = vpop.f32.mrb[10].mxu1 }
 0x106   : > { %2891 = vst [vmem:[#allocation10_spill] sm:$0xff] %v2369_v9  ;;  %2892 = vst [vmem:[#allocation11_spill] sm:$0xff] %v2372_v21  ;;  %v2379_v0 = vadd.f32 %v442_v4, %v294_v60  ;;  %v444_v55 = vpop.f32.mrb[11].mxu0  ;;  %v2382_v1 = vadd.f32 %v515_v53, %v2331_v56  ;;  %v517_v3 = vpop.f32.mrb[11].mxu1 }
 0x107   : > { %2893 = vst [vmem:[#allocation12_spill] sm:$0xff] %v2374_v49  ;;  %2894 = vst [vmem:[#allocation13_spill] sm:$0xff] %v2377_v51  ;;  %v2384_v9 = vadd.f32 %v444_v55, %v298_v63  ;;  %v2387_v6 = vadd.f32 %v517_v3, %v2337_v59 }
 0x108   : > { %2895 = vst [vmem:[#allocation14_spill] sm:$0xff] %v2379_v0  ;;  %2896 = vst [vmem:[#allocation15_spill] sm:$0xff] %v2382_v1 }
 0x109   : > { %2897 = vst [vmem:[#allocation16_spill] sm:$0xff] %v2384_v9  ;;  %2898 = vst [vmem:[#allocation17_spill] sm:$0xff] %v2387_v6 }
 0x10b   : > { %v448_v21 = vpop.f32.mrb[12].mxu0  ;;  %v521_v10 = vpop.f32.mrb[12].mxu1 }
 0x10c   : > { %v2389_v49 = vadd.f32 %v448_v21, %v294_v60  ;;  %v450_v54 = vpop.f32.mrb[13].mxu0  ;;  %v2392_v40 = vadd.f32 %v521_v10, %v2331_v56  ;;  %v523_v4 = vpop.f32.mrb[13].mxu1 }
 0x10d   : > { %v2394_v0 = vadd.f32 %v450_v54, %v298_v63  ;;  %v452_v51 = vpop.f32.mrb[14].mxu0  ;;  %v2397_v53 = vadd.f32 %v523_v4, %v2337_v59  ;;  %v525_v55 = vpop.f32.mrb[14].mxu1  ;;  %v419_v54 = vadd.f32 %v2333_v57, %v294_v60  ;;  %v421_v4 = vadd.f32 %v420_v61, %v298_v63 }
 0x10e   : > { %2899 = vst [vmem:[#allocation18_spill] sm:$0xff] %v2389_v49  ;;  %2900 = vst [vmem:[#allocation19_spill] sm:$0xff] %v2392_v40  ;;  %v2399_v9 = vadd.f32 %v452_v51, %v294_v60  ;;  %v454_v3 = vpop.f32.mrb[15].mxu0  ;;  %v2402_v6 = vadd.f32 %v525_v55, %v2331_v56  ;;  %v527_v21 = vpop.f32.mrb[15].mxu1 }
 0x10f   : > { %2901 = vst [vmem:[#allocation20_spill] sm:$0xff] %v2394_v0  ;;  %2902 = vst [vmem:[#allocation21_spill] sm:$0xff] %v2397_v53  ;;  %v2404_v49 = vadd.f32 %v454_v3, %v298_v63  ;;  %v2407_v10 = vadd.f32 %v527_v21, %v2337_v59  ;;  %v492_v0 = vadd.f32 %v2335_v58, %v2331_v56 }
 0x110   : > { %2903 = vst [vmem:[#allocation22_spill] sm:$0xff] %v2399_v9  ;;  %2904 = vst [vmem:[#allocation23_spill] sm:$0xff] %v2402_v6  ;;  %v494_v53 = vadd.f32 %v493_v62, %v2337_v59 }
 0x111   : > { %2905 = vst [vmem:[#allocation24_spill] sm:$0xff] %v2404_v49  ;;  %2906 = vst [vmem:[#allocation25_spill] sm:$0xff] %v2407_v10 }
 0x113   : > { %v795_v51 = vpop.f32.mrb[16].mxu0  ;;  %v836_v9 = vpop.f32.mrb[16].mxu1 }
 0x114   : > { %v843_v40 = vadd.f32 %v795_v51, %v419_v54  ;;  %v845_v55 = vadd.f32 %v836_v9, %v492_v0  ;;  %v797_v6 = vpop.f32.mrb[17].mxu0  ;;  %v838_v1 = vpop.f32.mrb[17].mxu1  ;;  %v563_v0 = vld [vmem:[#allocation4] sm:$0xff]  ;;  %v868_v9 = vstv %s867_s18 }
 0x115   : > { %v844_v3 = vadd.f32 %v797_v6, %v421_v4  ;;  %v846_v49 = vadd.f32 %v838_v1, %v494_v53  ;;  %v799_v52 = vpop.f32.mrb[18].mxu0  ;;  %v840_v21 = vpop.f32.mrb[18].mxu1  ;;  %vm869_vm1 = vcmp.eq.s32.totalorder %v868_v9, 1 }
 0x116   : > { %v847_v10 = vmul.f32 0.5, %v843_v40  ;;  %v800_v50 = vpop.f32.mrb[19].mxu0  ;;  %v841_v57 = vpop.f32.mrb[19].mxu1  ;;  %v2907_v21 = vmov 0  }
 0x117   : > { %v851_v60 = vmul.f32 0.5, %v844_v3  ;;  %v856_v56 = vmul.f32 0.5, %v846_v49 }
 0x118   : > { %1862 = vtanh.f32 %v847_v10 }
 0x119   : > { %1864 = vtanh.f32 %v851_v60 }
 0x11a   : > { %1866 = vtanh.f32 %v845_v55 }
 0x11b   : > { %1868 = vtanh.f32 %v856_v56 }
 0x122   : > { %v1863_v58 = vpop.eup %1862 }
 0x123   : > { %v1865_v59 = vpop.eup %1864  ;;  %v849_v61 = vmul.f32 0.5, %v1863_v58 }
 0x124   : > { %v853_v62 = vmul.f32 0.5, %v1865_v59  ;;  %v1867_v1 = vpop.eup %1866 }
 0x125   : > { %v850_v63 = vadd.f32 0.5, %v849_v61  ;;  %v1869_v10 = vpop.eup %1868 }
 0x126   : > { %v854_v52 = vadd.f32 0.5, %v853_v62  ;;  %v858_v49 = vmul.f32 0.5, %v1869_v10 }
 0x127   : > { %v861_v6 = vmul.f32 %v1867_v1, %v850_v63 }
 0x128   : > { %v860_v50 = vmul.f32 %v854_v52, %v563_v0  ;;  %v859_v54 = vadd.f32 0.5, %v858_v49 }
 0x12a   : > { %v862_v40 = vadd.f32 %v861_v6, %v860_v50 }
 0x12c   : > { %1870 = vtanh.f32 %v862_v40  ;;  %v2414_v53 = vsel %vm869_vm1, %v862_v40, %v563_v0 }
 0x136   : > { %v1871_v4 = vpop.eup %1870 }
 0x137   : > { %v864_v51 = vmul.f32 %v1871_v4, %v859_v54  ;;  %v984_v54 = vstv %s983_s20 }
 0x138   : > { %vm985_vm2 = vcmp.eq.s32.totalorder %v984_v54, 1 }
 0x139   : > { %v2417_v55 = vsel %vm869_vm1, %v864_v51, %v2282_v47 }
 0x13a   : > { %v876_v3 = vpack.c.bf16 %v2417_v55, %v2417_v55 }
 0x13c   : > { %910 = vmatmul.mubr.bf16.vlgmr.msra.gmra.mrb[20].mxu0 %v876_v3  ;;  %951 = vmatmul.mubr.bf16.vlgmr.msra.gmra.mrb[20].mxu1 %v876_v3 }
 0x13d   : > { %994 = vmatpush1.bf16.msra.mxu0 %v2090_v14  ;;  %1035 = vmatpush1.bf16.msra.mxu1 %v2095_v15 }
 0x13e   : > { %995 = vmatprep.subr.bf16.mxu0 %v2101_v16  ;;  %1036 = vmatprep.subr.bf16.mxu1 %v2107_v17 }
 0x13f   : > { %1025 = vmatprep.mubr.bf16.mxu0 %v2907_v21  ;;  %1066 = vmatprep.mubr.bf16.mxu1 %v2907_v21 }
 0x141   : > { %996 = vmatpush1.bf16.msra.mxu0 %v2114_v18  ;;  %1037 = vmatpush1.bf16.msra.mxu1 %v2121_v19 }
 0x142   : > { %997 = vmatprep.subr.bf16.mxu0 %v2128_v20  ;;  %1038 = vmatprep.subr.bf16.mxu1 %v2136_v22 }
 0x145   : > { %998 = vmatpush1.bf16.msra.mxu0 %v2141_v23  ;;  %1039 = vmatpush1.bf16.msra.mxu1 %v2148_v24 }
 0x146   : > { %999 = vmatprep.subr.bf16.mxu0 %v2155_v25  ;;  %1040 = vmatprep.subr.bf16.mxu1 %v2160_v26 }
 0x149   : > { %1000 = vmatpush1.bf16.msra.mxu0 %v2167_v27  ;;  %1041 = vmatpush1.bf16.msra.mxu1 %v2174_v28 }
 0x14a   : > { %1001 = vmatprep.subr.bf16.mxu0 %v2181_v29  ;;  %1042 = vmatprep.subr.bf16.mxu1 %v2186_v30 }
 0x14d   : > { %1002 = vmatpush1.bf16.msra.mxu0 %v2194_v32  ;;  %1043 = vmatpush1.bf16.msra.mxu1 %v2199_v33 }
 0x14e   : > { %1003 = vmatprep.subr.bf16.mxu0 %v2206_v34  ;;  %1044 = vmatprep.subr.bf16.mxu1 %v2213_v35 }
 0x151   : > { %1004 = vmatpush1.bf16.msra.mxu0 %v2220_v36  ;;  %1045 = vmatpush1.bf16.msra.mxu1 %v2225_v37 }
 0x152   : > { %1005 = vmatprep.subr.bf16.mxu0 %v2232_v38  ;;  %1046 = vmatprep.subr.bf16.mxu1 %v2239_v39 }
 0x155   : > { %1006 = vmatpush1.bf16.msra.mxu0 %v2249_v41  ;;  %1047 = vmatpush1.bf16.msra.mxu1 %v2254_v42 }
 0x156   : > { %1007 = vmatprep.subr.bf16.mxu0 %v2261_v43  ;;  %1048 = vmatprep.subr.bf16.mxu1 %v2266_v44 }
 0x159   : > { %1008 = vmatpush1.bf16.msra.mxu0 %v2275_v45  ;;  %1049 = vmatpush1.bf16.msra.mxu1 %v2280_v46 }
 0x15a   : > { %1109 = vmatprep.subr.bf16.mxu0 %v2080_v12  ;;  %1150 = vmatprep.subr.bf16.mxu1 %v2085_v13 }
 0x20f   : > { %v911_v47 = vpop.f32.mrb[20].mxu0  ;;  %v952_v57 = vpop.f32.mrb[20].mxu1 }
 0x210   : > { %v959_v60 = vadd.f32 %v911_v47, %v2339_v2  ;;  %v961_v56 = vadd.f32 %v952_v57, %v2342_v5  ;;  %v913_v58 = vpop.f32.mrb[21].mxu0  ;;  %v954_v59 = vpop.f32.mrb[21].mxu1 }
 0x211   : > { %v960_v61 = vadd.f32 %v913_v58, %v2344_v7  ;;  %v962_v62 = vadd.f32 %v954_v59, %v2347_v8  ;;  %v915_v63 = vpop.f32.mrb[22].mxu0  ;;  %v956_v0 = vpop.f32.mrb[22].mxu1 }
 0x212   : > { %v963_v1 = vmul.f32 0.5, %v959_v60  ;;  %v916_v52 = vpop.f32.mrb[23].mxu0  ;;  %v957_v9 = vpop.f32.mrb[23].mxu1 }
 0x213   : > { %v967_v6 = vmul.f32 0.5, %v960_v61  ;;  %v972_v2 = vmul.f32 0.5, %v962_v62 }
 0x214   : > { %1872 = vtanh.f32 %v963_v1 }
 0x215   : > { %1874 = vtanh.f32 %v967_v6  ;;  %v2908_v6 = vld [vmem:[#allocation5_spill] sm:$0xff] }
 0x216   : > { %1876 = vtanh.f32 %v961_v56 }
 0x217   : > { %1878 = vtanh.f32 %v972_v2 }
 0x21e   : > { %v1873_v50 = vpop.eup %1872 }
 0x21f   : > { %v1875_v5 = vpop.eup %1874  ;;  %v965_v40 = vmul.f32 0.5, %v1873_v50 }
 0x220   : > { %v969_v10 = vmul.f32 0.5, %v1875_v5  ;;  %v1877_v8 = vpop.eup %1876 }
 0x221   : > { %v966_v7 = vadd.f32 0.5, %v965_v40  ;;  %v1879_v57 = vpop.eup %1878 }
 0x222   : > { %v970_v49 = vadd.f32 0.5, %v969_v10  ;;  %v974_v60 = vmul.f32 0.5, %v1879_v57  ;;  %v1100_v57 = vstv %s1099_s22 }
 0x223   : > { %v977_v4 = vmul.f32 %v1877_v8, %v966_v7  ;;  %vm1101_vm3 = vcmp.eq.s32.totalorder %v1100_v57, 1 }
 0x224   : > { %v976_v51 = vmul.f32 %v970_v49, %v2414_v53  ;;  %v975_v56 = vadd.f32 0.5, %v974_v60 }
 0x226   : > { %v978_v3 = vadd.f32 %v977_v4, %v976_v51 }
 0x228   : > { %1880 = vtanh.f32 %v978_v3  ;;  %v2462_v47 = vsel %vm985_vm2, %v978_v3, %v2414_v53 }
 0x232   : > { %v1881_v58 = vpop.eup %1880 }
 0x233   : > { %v980_v59 = vmul.f32 %v1881_v58, %v975_v56 }
 0x235   : > { %v2465_v61 = vsel %vm985_vm2, %v980_v59, %v2417_v55 }
 0x236   : > { %v992_v62 = vpack.c.bf16 %v2465_v61, %v2465_v61 }
 0x238   : > { %1026 = vmatmul.mubr.bf16.vlgmr.msra.gmra.mrb[24].mxu0 %v992_v62  ;;  %1067 = vmatmul.mubr.bf16.vlgmr.msra.gmra.mrb[24].mxu1 %v992_v62 }
 0x239   : > { %1110 = vmatpush1.bf16.msra.mxu0 %v2090_v14  ;;  %1151 = vmatpush1.bf16.msra.mxu1 %v2095_v15 }
 0x23a   : > { %1111 = vmatprep.subr.bf16.mxu0 %v2101_v16  ;;  %1152 = vmatprep.subr.bf16.mxu1 %v2107_v17 }
 0x23b   : > { %1141 = vmatprep.mubr.bf16.mxu0 %v2907_v21  ;;  %1182 = vmatprep.mubr.bf16.mxu1 %v2907_v21 }
 0x23d   : > { %1112 = vmatpush1.bf16.msra.mxu0 %v2114_v18  ;;  %1153 = vmatpush1.bf16.msra.mxu1 %v2121_v19 }
 0x23e   : > { %1113 = vmatprep.subr.bf16.mxu0 %v2128_v20  ;;  %1154 = vmatprep.subr.bf16.mxu1 %v2136_v22 }
 0x241   : > { %1114 = vmatpush1.bf16.msra.mxu0 %v2141_v23  ;;  %1155 = vmatpush1.bf16.msra.mxu1 %v2148_v24 }
 0x242   : > { %1115 = vmatprep.subr.bf16.mxu0 %v2155_v25  ;;  %1156 = vmatprep.subr.bf16.mxu1 %v2160_v26 }
 0x245   : > { %1116 = vmatpush1.bf16.msra.mxu0 %v2167_v27  ;;  %1157 = vmatpush1.bf16.msra.mxu1 %v2174_v28 }
 0x246   : > { %1117 = vmatprep.subr.bf16.mxu0 %v2181_v29  ;;  %1158 = vmatprep.subr.bf16.mxu1 %v2186_v30 }
 0x249   : > { %1118 = vmatpush1.bf16.msra.mxu0 %v2194_v32  ;;  %1159 = vmatpush1.bf16.msra.mxu1 %v2199_v33 }
 0x24a   : > { %1119 = vmatprep.subr.bf16.mxu0 %v2206_v34  ;;  %1160 = vmatprep.subr.bf16.mxu1 %v2213_v35 }
 0x24d   : > { %1120 = vmatpush1.bf16.msra.mxu0 %v2220_v36  ;;  %1161 = vmatpush1.bf16.msra.mxu1 %v2225_v37 }
 0x24e   : > { %1121 = vmatprep.subr.bf16.mxu0 %v2232_v38  ;;  %1162 = vmatprep.subr.bf16.mxu1 %v2239_v39 }
 0x251   : > { %1122 = vmatpush1.bf16.msra.mxu0 %v2249_v41  ;;  %1163 = vmatpush1.bf16.msra.mxu1 %v2254_v42 }
 0x252   : > { %1123 = vmatprep.subr.bf16.mxu0 %v2261_v43  ;;  %1164 = vmatprep.subr.bf16.mxu1 %v2266_v44 }
 0x255   : > { %1124 = vmatpush1.bf16.msra.mxu0 %v2275_v45  ;;  %1165 = vmatpush1.bf16.msra.mxu1 %v2280_v46 }
 0x256   : > { %1225 = vmatprep.subr.bf16.mxu0 %v2080_v12  ;;  %1266 = vmatprep.subr.bf16.mxu1 %v2085_v13 }
 0x30b   : > { %v1027_v53 = vpop.f32.mrb[24].mxu0  ;;  %v1068_v55 = vpop.f32.mrb[24].mxu1 }
 0x30c   : > { %v1075_v63 = vadd.f32 %v1027_v53, %v2349_v11  ;;  %v1077_v0 = vadd.f32 %v1068_v55, %v2352_v31  ;;  %v1029_v1 = vpop.f32.mrb[25].mxu0  ;;  %v1070_v52 = vpop.f32.mrb[25].mxu1 }
 0x30d   : > { %v1076_v9 = vadd.f32 %v1029_v1, %v2354_v48  ;;  %v1078_v2 = vadd.f32 %v1070_v52, %v2908_v6  ;;  %v1031_v50 = vpop.f32.mrb[26].mxu0  ;;  %v1072_v5 = vpop.f32.mrb[26].mxu1 }
 0x30e   : > { %v1079_v40 = vmul.f32 0.5, %v1075_v63  ;;  %v1032_v10 = vpop.f32.mrb[27].mxu0  ;;  %v1073_v7 = vpop.f32.mrb[27].mxu1  ;;  %v2911_v5 = vld [vmem:[#allocation8_spill] sm:$0xff] }
 0x30f   : > { %v1083_v8 = vmul.f32 0.5, %v1076_v9  ;;  %v1088_v11 = vmul.f32 0.5, %v1078_v2  ;;  %v2910_v9 = vld [vmem:[#allocation7_spill] sm:$0xff]  ;;  %v2912_v10 = vld [vmem:[#allocation9_spill] sm:$0xff] }
 0x310   : > { %1882 = vtanh.f32 %v1079_v40 }
 0x311   : > { %1884 = vtanh.f32 %v1083_v8 }
 0x312   : > { %1886 = vtanh.f32 %v1077_v0 }
 0x313   : > { %1888 = vtanh.f32 %v1088_v11 }
 0x31a   : > { %v1883_v49 = vpop.eup %1882 }
 0x31b   : > { %v1885_v31 = vpop.eup %1884  ;;  %v1081_v54 = vmul.f32 0.5, %v1883_v49 }
 0x31c   : > { %v1085_v4 = vmul.f32 0.5, %v1885_v31  ;;  %v1887_v51 = vpop.eup %1886 }
 0x31d   : > { %v1082_v48 = vadd.f32 0.5, %v1081_v54  ;;  %v1889_v62 = vpop.eup %1888 }
 0x31e   : > { %v1086_v3 = vadd.f32 0.5, %v1085_v4  ;;  %v1090_v53 = vmul.f32 0.5, %v1889_v62 }
 0x31f   : > { %v1093_v60 = vmul.f32 %v1887_v51, %v1082_v48 }
 0x320   : > { %v1092_v56 = vmul.f32 %v1086_v3, %v2462_v47  ;;  %v1091_v55 = vadd.f32 0.5, %v1090_v53 }
 0x322   : > { %v1094_v58 = vadd.f32 %v1093_v60, %v1092_v56 }
 0x324   : > { %1890 = vtanh.f32 %v1094_v58  ;;  %v2510_v59 = vsel %vm1101_vm3, %v1094_v58, %v2462_v47  ;;  %v2909_v47 = vld [vmem:[#allocation6_spill] sm:$0xff]  ;;  %v1216_v58 = vstv %s1215_s27 }
 0x325   : > { %vm1217_vm4 = vcmp.eq.s32.totalorder %v1216_v58, 1  ;;  %v2694_v58 = vld [vmem:[%s2878_s2 + $0x6c] ss:$16 sps:$4 sm:$0xff]  }
 0x32e   : > { %v1891_v63 = vpop.eup %1890 }
 0x32f   : > { %v1096_v0 = vmul.f32 %v1891_v63, %v1091_v55 }
 0x331   : > { %v2513_v1 = vsel %vm1101_vm3, %v1096_v0, %v2465_v61 }
 0x332   : > { %v1108_v52 = vpack.c.bf16 %v2513_v1, %v2513_v1 }
 0x334   : > { %1142 = vmatmul.mubr.bf16.vlgmr.msra.gmra.mrb[28].mxu0 %v1108_v52  ;;  %1183 = vmatmul.mubr.bf16.vlgmr.msra.gmra.mrb[28].mxu1 %v1108_v52 }
 0x335   : > { %1226 = vmatpush1.bf16.msra.mxu0 %v2090_v14  ;;  %1267 = vmatpush1.bf16.msra.mxu1 %v2095_v15 }
 0x336   : > { %1227 = vmatprep.subr.bf16.mxu0 %v2101_v16  ;;  %1268 = vmatprep.subr.bf16.mxu1 %v2107_v17 }
 0x337   : > { %1257 = vmatprep.mubr.bf16.mxu0 %v2907_v21  ;;  %1298 = vmatprep.mubr.bf16.mxu1 %v2907_v21 }
 0x339   : > { %1228 = vmatpush1.bf16.msra.mxu0 %v2114_v18  ;;  %1269 = vmatpush1.bf16.msra.mxu1 %v2121_v19 }
 0x33a   : > { %1229 = vmatprep.subr.bf16.mxu0 %v2128_v20  ;;  %1270 = vmatprep.subr.bf16.mxu1 %v2136_v22 }
 0x33d   : > { %1230 = vmatpush1.bf16.msra.mxu0 %v2141_v23  ;;  %1271 = vmatpush1.bf16.msra.mxu1 %v2148_v24 }
 0x33e   : > { %1231 = vmatprep.subr.bf16.mxu0 %v2155_v25  ;;  %1272 = vmatprep.subr.bf16.mxu1 %v2160_v26 }
 0x341   : > { %1232 = vmatpush1.bf16.msra.mxu0 %v2167_v27  ;;  %1273 = vmatpush1.bf16.msra.mxu1 %v2174_v28 }
 0x342   : > { %1233 = vmatprep.subr.bf16.mxu0 %v2181_v29  ;;  %1274 = vmatprep.subr.bf16.mxu1 %v2186_v30 }
 0x345   : > { %1234 = vmatpush1.bf16.msra.mxu0 %v2194_v32  ;;  %1275 = vmatpush1.bf16.msra.mxu1 %v2199_v33 }
 0x346   : > { %1235 = vmatprep.subr.bf16.mxu0 %v2206_v34  ;;  %1276 = vmatprep.subr.bf16.mxu1 %v2213_v35 }
 0x349   : > { %1236 = vmatpush1.bf16.msra.mxu0 %v2220_v36  ;;  %1277 = vmatpush1.bf16.msra.mxu1 %v2225_v37 }
 0x34a   : > { %1237 = vmatprep.subr.bf16.mxu0 %v2232_v38  ;;  %1278 = vmatprep.subr.bf16.mxu1 %v2239_v39 }
 0x34d   : > { %1238 = vmatpush1.bf16.msra.mxu0 %v2249_v41  ;;  %1279 = vmatpush1.bf16.msra.mxu1 %v2254_v42 }
 0x34e   : > { %1239 = vmatprep.subr.bf16.mxu0 %v2261_v43  ;;  %1280 = vmatprep.subr.bf16.mxu1 %v2266_v44 }
 0x351   : > { %1240 = vmatpush1.bf16.msra.mxu0 %v2275_v45  ;;  %1281 = vmatpush1.bf16.msra.mxu1 %v2280_v46 }
 0x352   : > { %1341 = vmatprep.subr.bf16.mxu0 %v2080_v12  ;;  %1382 = vmatprep.subr.bf16.mxu1 %v2085_v13 }
 0x407   : > { %v1143_v14 = vpop.f32.mrb[28].mxu0  ;;  %v1184_v15 = vpop.f32.mrb[28].mxu1 }
 0x408   : > { %v1191_v61 = vadd.f32 %v1143_v14, %v2909_v47  ;;  %v1193_v6 = vadd.f32 %v1184_v15, %v2910_v9  ;;  %v1145_v2 = vpop.f32.mrb[29].mxu0  ;;  %v1186_v50 = vpop.f32.mrb[29].mxu1 }
 0x409   : > { %v1192_v40 = vadd.f32 %v1145_v2, %v2911_v5  ;;  %v1194_v7 = vadd.f32 %v1186_v50, %v2912_v10  ;;  %v1147_v8 = vpop.f32.mrb[30].mxu0  ;;  %v1188_v11 = vpop.f32.mrb[30].mxu1 }
 0x40a   : > { %v1195_v49 = vmul.f32 0.5, %v1191_v61  ;;  %v1148_v31 = vpop.f32.mrb[31].mxu0  ;;  %v1189_v12 = vpop.f32.mrb[31].mxu1 }
 0x40b   : > { %v1199_v54 = vmul.f32 0.5, %v1192_v40  ;;  %v1204_v13 = vmul.f32 0.5, %v1194_v7 }
 0x40c   : > { %1892 = vtanh.f32 %v1195_v49 }
 0x40d   : > { %1894 = vtanh.f32 %v1199_v54  ;;  %v2638_v54 = vld [vmem:[%s2878_s2 + $0x24] ss:$16 sps:$4 sm:$0xff]  }
 0x40e   : > { %1896 = vtanh.f32 %v1193_v6  ;;  %v2568_v6 = vld [vmem:[%s2878_s2] ss:$16 sps:$4 sm:$0xff]  }
 0x40f   : > { %1898 = vtanh.f32 %v1204_v13  ;;  %v2644_v13 = vld [vmem:[%s2878_s2 + $0x2c] ss:$16 sps:$4 sm:$0xff]  }
 0x416   : > { %v1893_v4 = vpop.eup %1892 }
 0x417   : > { %v1895_v48 = vpop.eup %1894  ;;  %v1197_v51 = vmul.f32 0.5, %v1893_v4  ;;  %v2652_v4 = vld [vmem:[%s2878_s2 + $0x20] ss:$16 sps:$4 sm:$0xff]  }
 0x418   : > { %v1201_v3 = vmul.f32 0.5, %v1895_v48  ;;  %v1897_v60 = vpop.eup %1896  ;;  %v2658_v48 = vld [vmem:[%s2878_s2 + $0x28] ss:$16 sps:$4 sm:$0xff]  }
 0x419   : > { %v1198_v57 = vadd.f32 0.5, %v1197_v51  ;;  %v1899_v0 = vpop.eup %1898  ;;  %v2664_v51 = vld [vmem:[%s2878_s2 + $0x44] ss:$16 sps:$4 sm:$0xff]  }
 0x41a   : > { %v1202_v56 = vadd.f32 0.5, %v1201_v3  ;;  %v1206_v52 = vmul.f32 0.5, %v1899_v0  ;;  %v2670_v3 = vld [vmem:[%s2878_s2 + $0x4c] ss:$16 sps:$4 sm:$0xff]   ;;  %v2724_v0 = vld [vmem:[%s2878_s2 + $0x80] ss:$16 sps:$4 sm:$0xff]  }
 0x41b   : > { %v1209_v62 = vmul.f32 %v1897_v60, %v1198_v57  ;;  %v2676_v57 = vld [vmem:[%s2878_s2 + $0x40] ss:$16 sps:$4 sm:$0xff]   ;;  %v2682_v60 = vld [vmem:[%s2878_s2 + $0x48] ss:$16 sps:$4 sm:$0xff]  }
 0x41c   : > { %v1208_v53 = vmul.f32 %v1202_v56, %v2510_v59  ;;  %v1207_v14 = vadd.f32 0.5, %v1206_v52  ;;  %v2688_v56 = vld [vmem:[%s2878_s2 + $0x64] ss:$16 sps:$4 sm:$0xff]   ;;  %v2730_v52 = vld [vmem:[%s2878_s2 + $0x88] ss:$16 sps:$4 sm:$0xff]  }
 0x41e   : > { %v1210_v55 = vadd.f32 %v1209_v62, %v1208_v53  ;;  %v2700_v62 = vld [vmem:[%s2878_s2 + $0x60] ss:$16 sps:$4 sm:$0xff]   ;;  %v2706_v53 = vld [vmem:[%s2878_s2 + $0x68] ss:$16 sps:$4 sm:$0xff]  }
 0x420   : > { %1900 = vtanh.f32 %v1210_v55  ;;  %v2558_v63 = vsel %vm1217_vm4, %v1210_v55, %v2510_v59  ;;  %v2574_v59 = vld [vmem:[%s2878_s2 + $0x8] ss:$16 sps:$4 sm:$0xff]   ;;  %v2712_v55 = vld [vmem:[%s2878_s2 + $0x84] ss:$16 sps:$4 sm:$0xff]  }
 0x42a   : > { %v1901_v15 = vpop.eup %1900 }
 0x42b   : > { %v1212_v47 = vmul.f32 %v1901_v15, %v1207_v14  ;;  %v2736_v14 = vld [vmem:[%s2878_s2 + $0xa4] ss:$16 sps:$4 sm:$0xff]   ;;  %v2742_v15 = vld [vmem:[%s2878_s2 + $0xac] ss:$16 sps:$4 sm:$0xff]  }
 0x42d   : > { %v2561_v61 = vsel %vm1217_vm4, %v1212_v47, %v2513_v1  ;;  %v1332_v1 = vstv %s1331_s14  ;;  %v2748_v47 = vld [vmem:[%s2878_s2 + $0xa0] ss:$16 sps:$4 sm:$0xff]   ;;  %s1563_s14 = scalar_select %p1562_p11, 1, 0 }
 0x42e   : > { %v1224_v9 = vpack.c.bf16 %v2561_v61, %v2561_v61  ;;  %vm1333_vm5 = vcmp.eq.s32.totalorder %v1332_v1, 1 }
 0x430   : > { %1258 = vmatmul.mubr.bf16.vlgmr.msra.gmra.mrb[32].mxu0 %v1224_v9  ;;  %1299 = vmatmul.mubr.bf16.vlgmr.msra.gmra.mrb[32].mxu1 %v1224_v9  ;;  %v2760_v9 = vld [vmem:[%s2878_s2 + $0xc4] ss:$16 sps:$4 sm:$0xff]  }
 0x431   : > { %1342 = vmatpush1.bf16.msra.mxu0 %v2568_v6  ;;  %1383 = vmatpush1.bf16.msra.mxu1 %v2574_v59 }
 0x432   : > { %1343 = vmatprep.subr.bf16.mxu0 %v2101_v16  ;;  %1384 = vmatprep.subr.bf16.mxu1 %v2107_v17  ;;  %v2610_v16 = vld [vmem:[%s2878_s2 + $0x4] ss:$16 sps:$4 sm:$0xff]   ;;  %v2616_v17 = vld [vmem:[%s2878_s2 + $0xc] ss:$16 sps:$4 sm:$0xff]  }
 0x433   : > { %1373 = vmatprep.mubr.bf16.mxu0 %v2907_v21  ;;  %1414 = vmatprep.mubr.bf16.mxu1 %v2907_v21 }
 0x435   : > { %1344 = vmatpush1.bf16.msra.mxu0 %v2114_v18  ;;  %1385 = vmatpush1.bf16.msra.mxu1 %v2121_v19 }
 0x436   : > { %1345 = vmatprep.subr.bf16.mxu0 %v2128_v20  ;;  %1386 = vmatprep.subr.bf16.mxu1 %v2136_v22  ;;  %v2913_v20 = vld [vmem:[#allocation10_spill] sm:$0xff] }
 0x439   : > { %1346 = vmatpush1.bf16.msra.mxu0 %v2141_v23  ;;  %1387 = vmatpush1.bf16.msra.mxu1 %v2148_v24  ;;  %v2914_v23 = vld [vmem:[#allocation11_spill] sm:$0xff] }
 0x43a   : > { %1347 = vmatprep.subr.bf16.mxu0 %v2155_v25  ;;  %1388 = vmatprep.subr.bf16.mxu1 %v2160_v26 }
 0x43d   : > { %1348 = vmatpush1.bf16.msra.mxu0 %v2167_v27  ;;  %1389 = vmatpush1.bf16.msra.mxu1 %v2174_v28  ;;  %v2915_v27 = vld [vmem:[#allocation12_spill] sm:$0xff] }
 0x43e   : > { %1349 = vmatprep.subr.bf16.mxu0 %v2181_v29  ;;  %1390 = vmatprep.subr.bf16.mxu1 %v2186_v30  ;;  %v2916_v29 = vld [vmem:[#allocation13_spill] sm:$0xff] }
 0x441   : > { %1350 = vmatpush1.bf16.msra.mxu0 %v2194_v32  ;;  %1391 = vmatpush1.bf16.msra.mxu1 %v2199_v33 }
 0x442   : > { %1351 = vmatprep.subr.bf16.mxu0 %v2206_v34  ;;  %1392 = vmatprep.subr.bf16.mxu1 %v2213_v35 }
 0x445   : > { %1352 = vmatpush1.bf16.msra.mxu0 %v2220_v36  ;;  %1393 = vmatpush1.bf16.msra.mxu1 %v2225_v37 }
 0x446   : > { %1353 = vmatprep.subr.bf16.mxu0 %v2232_v38  ;;  %1394 = vmatprep.subr.bf16.mxu1 %v2239_v39 }
 0x449   : > { %1354 = vmatpush1.bf16.msra.mxu0 %v2249_v41  ;;  %1395 = vmatpush1.bf16.msra.mxu1 %v2254_v42 }
 0x44a   : > { %1355 = vmatprep.subr.bf16.mxu0 %v2261_v43  ;;  %1396 = vmatprep.subr.bf16.mxu1 %v2266_v44 }
 0x44d   : > { %1356 = vmatpush1.bf16.msra.mxu0 %v2275_v45  ;;  %1397 = vmatpush1.bf16.msra.mxu1 %v2280_v46 }
 0x44e   : > { %1457 = vmatprep.subr.bf16.mxu0 %v2610_v16  ;;  %1498 = vmatprep.subr.bf16.mxu1 %v2616_v17 }
 0x503   : > { %v1259_v18 = vpop.f32.mrb[32].mxu0  ;;  %v1300_v19 = vpop.f32.mrb[32].mxu1 }
 0x504   : > { %v1307_v22 = vadd.f32 %v1259_v18, %v2913_v20  ;;  %v1309_v24 = vadd.f32 %v1300_v19, %v2914_v23  ;;  %v1261_v25 = vpop.f32.mrb[33].mxu0  ;;  %v1302_v26 = vpop.f32.mrb[33].mxu1  ;;  %v2766_v18 = vld [vmem:[%s2878_s2 + $0xcc] ss:$16 sps:$4 sm:$0xff]   ;;  %v2772_v19 = vld [vmem:[%s2878_s2 + $0xc0] ss:$16 sps:$4 sm:$0xff]  }
 0x505   : > { %v1308_v28 = vadd.f32 %v1261_v25, %v2915_v27  ;;  %v1310_v30 = vadd.f32 %v1302_v26, %v2916_v29  ;;  %v1263_v32 = vpop.f32.mrb[34].mxu0  ;;  %v1304_v33 = vpop.f32.mrb[34].mxu1  ;;  %v2778_v20 = vld [vmem:[%s2878_s2 + $0xc8] ss:$16 sps:$4 sm:$0xff]   ;;  %v2790_v23 = vld [vmem:[%s2878_s2 + $0xec] ss:$16 sps:$4 sm:$0xff]  }
 0x506   : > { %v1311_v34 = vmul.f32 0.5, %v1307_v22  ;;  %v1264_v35 = vpop.f32.mrb[35].mxu0  ;;  %v1305_v36 = vpop.f32.mrb[35].mxu1  ;;  %v2784_v22 = vld [vmem:[%s2878_s2 + $0xe4] ss:$16 sps:$4 sm:$0xff]  }
 0x507   : > { %v1315_v37 = vmul.f32 0.5, %v1308_v28  ;;  %v1320_v38 = vmul.f32 0.5, %v1310_v30  ;;  %v2802_v25 = vld [vmem:[%s2878_s2 + $0xe8] ss:$16 sps:$4 sm:$0xff]   ;;  %v2918_v30 = vld [vmem:[#allocation15_spill] sm:$0xff] }
 0x508   : > { %1902 = vtanh.f32 %v1311_v34  ;;  %v2917_v28 = vld [vmem:[#allocation14_spill] sm:$0xff]  ;;  %v2919_v35 = vld [vmem:[#allocation16_spill] sm:$0xff] }
 0x509   : > { %1904 = vtanh.f32 %v1315_v37  ;;  %v2920_v37 = vld [vmem:[#allocation17_spill] sm:$0xff] }
 0x50a   : > { %1906 = vtanh.f32 %v1309_v24  ;;  %v2796_v24 = vld [vmem:[%s2878_s2 + $0xe0] ss:$16 sps:$4 sm:$0xff]  }
 0x50b   : > { %1908 = vtanh.f32 %v1320_v38 }
 0x512   : > { %v1903_v39 = vpop.eup %1902 }
 0x513   : > { %v1905_v41 = vpop.eup %1904  ;;  %v1313_v42 = vmul.f32 0.5, %v1903_v39 }
 0x514   : > { %v1317_v43 = vmul.f32 0.5, %v1905_v41  ;;  %v1907_v45 = vpop.eup %1906 }
 0x515   : > { %v1314_v44 = vadd.f32 0.5, %v1313_v42  ;;  %v1909_v10 = vpop.eup %1908 }
 0x516   : > { %v1318_v46 = vadd.f32 0.5, %v1317_v43  ;;  %v1322_v7 = vmul.f32 0.5, %v1909_v10 }
 0x517   : > { %v1325_v2 = vmul.f32 %v1907_v45, %v1314_v44 }
 0x518   : > { %v1324_v50 = vmul.f32 %v1318_v46, %v2558_v63  ;;  %v1323_v8 = vadd.f32 0.5, %v1322_v7  ;;  %v1448_v7 = vstv %s1447_s12 }
 0x519   : > { %vm1449_vm6 = vcmp.eq.s32.totalorder %v1448_v7, 1 }
 0x51a   : > { %v1326_v5 = vadd.f32 %v1325_v2, %v1324_v50 }
 0x51c   : > { %1910 = vtanh.f32 %v1326_v5  ;;  %v2626_v40 = vsel %vm1333_vm5, %v1326_v5, %v2558_v63  ;;  %v2718_v63 = vld [vmem:[%s2878_s2 + $0x8c] ss:$16 sps:$4 sm:$0xff]  }
 0x526   : > { %v1911_v11 = vpop.eup %1910 }
 0x527   : > { %v1328_v49 = vmul.f32 %v1911_v11, %v1323_v8 }
 0x529   : > { %v2629_v31 = vsel %vm1333_vm5, %v1328_v49, %v2561_v61  ;;  %v2754_v61 = vld [vmem:[%s2878_s2 + $0xa8] ss:$16 sps:$4 sm:$0xff]  }
 0x52a   : > { %v1340_v12 = vpack.c.bf16 %v2629_v31, %v2629_v31 }
 0x52c   : > { %1374 = vmatmul.mubr.bf16.vlgmr.msra.gmra.mrb[36].mxu0 %v1340_v12  ;;  %1415 = vmatmul.mubr.bf16.vlgmr.msra.gmra.mrb[36].mxu1 %v1340_v12 }
 0x52d   : > { %1458 = vmatpush1.bf16.msra.mxu0 %v2568_v6  ;;  %1499 = vmatpush1.bf16.msra.mxu1 %v2574_v59 }
 0x52e   : > { %1459 = vmatprep.subr.bf16.mxu0 %v2638_v54  ;;  %1500 = vmatprep.subr.bf16.mxu1 %v2644_v13 }
 0x52f   : > { %1489 = vmatprep.mubr.bf16.mxu0 %v2907_v21  ;;  %1530 = vmatprep.mubr.bf16.mxu1 %v2907_v21 }
 0x531   : > { %1460 = vmatpush1.bf16.msra.mxu0 %v2652_v4  ;;  %1501 = vmatpush1.bf16.msra.mxu1 %v2658_v48 }
 0x532   : > { %1461 = vmatprep.subr.bf16.mxu0 %v2664_v51  ;;  %1502 = vmatprep.subr.bf16.mxu1 %v2670_v3 }
 0x535   : > { %1462 = vmatpush1.bf16.msra.mxu0 %v2676_v57  ;;  %1503 = vmatpush1.bf16.msra.mxu1 %v2682_v60 }
 0x536   : > { %1463 = vmatprep.subr.bf16.mxu0 %v2688_v56  ;;  %1504 = vmatprep.subr.bf16.mxu1 %v2694_v58 }
 0x539   : > { %1464 = vmatpush1.bf16.msra.mxu0 %v2700_v62  ;;  %1505 = vmatpush1.bf16.msra.mxu1 %v2706_v53 }
 0x53a   : > { %1465 = vmatprep.subr.bf16.mxu0 %v2712_v55  ;;  %1506 = vmatprep.subr.bf16.mxu1 %v2718_v63 }
 0x53d   : > { %1466 = vmatpush1.bf16.msra.mxu0 %v2724_v0  ;;  %1507 = vmatpush1.bf16.msra.mxu1 %v2730_v52 }
 0x53e   : > { %1467 = vmatprep.subr.bf16.mxu0 %v2736_v14  ;;  %1508 = vmatprep.subr.bf16.mxu1 %v2742_v15 }
 0x541   : > { %1468 = vmatpush1.bf16.msra.mxu0 %v2748_v47  ;;  %1509 = vmatpush1.bf16.msra.mxu1 %v2754_v61 }
 0x542   : > { %1469 = vmatprep.subr.bf16.mxu0 %v2760_v9  ;;  %1510 = vmatprep.subr.bf16.mxu1 %v2766_v18 }
 0x545   : > { %1470 = vmatpush1.bf16.msra.mxu0 %v2772_v19  ;;  %1511 = vmatpush1.bf16.msra.mxu1 %v2778_v20 }
 0x546   : > { %1471 = vmatprep.subr.bf16.mxu0 %v2784_v22  ;;  %1512 = vmatprep.subr.bf16.mxu1 %v2790_v23 }
 0x549   : > { %1472 = vmatpush1.bf16.msra.mxu0 %v2796_v24  ;;  %1513 = vmatpush1.bf16.msra.mxu1 %v2802_v25 }
 0x54a   : > { %1573 = vmatprep.subr.bf16.mxu0 %v2610_v16  ;;  %1614 = vmatprep.subr.bf16.mxu1 %v2616_v17 }
 0x5ff   : > { %v1375_v26 = vpop.f32.mrb[36].mxu0  ;;  %v1416_v27 = vpop.f32.mrb[36].mxu1 }
 0x600   : > { %v1423_v29 = vadd.f32 %v1375_v26, %v2917_v28  ;;  %v1425_v32 = vadd.f32 %v1416_v27, %v2918_v30  ;;  %v1377_v33 = vpop.f32.mrb[37].mxu0  ;;  %v1418_v34 = vpop.f32.mrb[37].mxu1 }
 0x601   : > { %v1424_v36 = vadd.f32 %v1377_v33, %v2919_v35  ;;  %v1426_v38 = vadd.f32 %v1418_v34, %v2920_v37  ;;  %v1379_v39 = vpop.f32.mrb[38].mxu0  ;;  %v1420_v41 = vpop.f32.mrb[38].mxu1 }
 0x602   : > { %v1427_v42 = vmul.f32 0.5, %v1423_v29  ;;  %v1380_v43 = vpop.f32.mrb[39].mxu0  ;;  %v1421_v16 = vpop.f32.mrb[39].mxu1 }
 0x603   : > { %v1431_v44 = vmul.f32 0.5, %v1424_v36  ;;  %v1436_v17 = vmul.f32 0.5, %v1426_v38  ;;  %v2926_v16 = vld [vmem:[#allocation23_spill] sm:$0xff] }
 0x604   : > { %1912 = vtanh.f32 %v1427_v42  ;;  %v2925_v42 = vld [vmem:[#allocation22_spill] sm:$0xff] }
 0x605   : > { %1914 = vtanh.f32 %v1431_v44 }
 0x606   : > { %1916 = vtanh.f32 %v1425_v32 }
 0x607   : > { %1918 = vtanh.f32 %v1436_v17 }
 0x60e   : > { %v1913_v45 = vpop.eup %1912 }
 0x60f   : > { %v1915_v46 = vpop.eup %1914  ;;  %v1429_v1 = vmul.f32 0.5, %v1913_v45 }
 0x610   : > { %v1433_v2 = vmul.f32 0.5, %v1915_v46  ;;  %v1917_v5 = vpop.eup %1916  ;;  %v2927_v46 = vld [vmem:[#allocation24_spill] sm:$0xff] }
 0x611   : > { %v1430_v50 = vadd.f32 0.5, %v1429_v1  ;;  %v1919_v26 = vpop.eup %1918 }
 0x612   : > { %v1434_v10 = vadd.f32 0.5, %v1433_v2  ;;  %v1438_v27 = vmul.f32 0.5, %v1919_v26  ;;  %v2928_v2 = vld [vmem:[#allocation25_spill] sm:$0xff] }
 0x613   : > { %v1441_v8 = vmul.f32 %v1917_v5, %v1430_v50 }
 0x614   : > { %v1440_v11 = vmul.f32 %v1434_v10, %v2626_v40  ;;  %v1439_v28 = vadd.f32 0.5, %v1438_v27 }
 0x616   : > { %v1442_v49 = vadd.f32 %v1441_v8, %v1440_v11 }
 0x618   : > { %1920 = vtanh.f32 %v1442_v49  ;;  %v2814_v12 = vsel %vm1449_vm6, %v1442_v49, %v2626_v40 }
 0x622   : > { %v1921_v29 = vpop.eup %1920 }
 0x623   : > { %v1444_v30 = vmul.f32 %v1921_v29, %v1439_v28 }
 0x625   : > { %v2817_v32 = vsel %vm1449_vm6, %v1444_v30, %v2629_v31  ;;  %v2922_v31 = vld [vmem:[#allocation19_spill] sm:$0xff] }
 0x626   : > { %v1456_v33 = vpack.c.bf16 %v2817_v32, %v2817_v32 }
 0x628   : > { %1490 = vmatmul.mubr.bf16.vlgmr.msra.gmra.mrb[40].mxu0 %v1456_v33  ;;  %1531 = vmatmul.mubr.bf16.vlgmr.msra.gmra.mrb[40].mxu1 %v1456_v33 }
 0x629   : > { %1574 = vmatpush1.bf16.msra.mxu0 %v2568_v6  ;;  %1615 = vmatpush1.bf16.msra.mxu1 %v2574_v59  ;;  %v2921_v59 = vld [vmem:[#allocation18_spill] sm:$0xff] }
 0x62a   : > { %1575 = vmatprep.subr.bf16.mxu0 %v2638_v54  ;;  %1616 = vmatprep.subr.bf16.mxu1 %v2644_v13 }
 0x62b   : > { %1605 = vmatprep.mubr.bf16.mxu0 %v2907_v21  ;;  %1646 = vmatprep.mubr.bf16.mxu1 %v2907_v21 }
 0x62d   : > { %1576 = vmatpush1.bf16.msra.mxu0 %v2652_v4  ;;  %1617 = vmatpush1.bf16.msra.mxu1 %v2658_v48  ;;  %v2923_v48 = vld [vmem:[#allocation20_spill] sm:$0xff] }
 0x62e   : > { %1577 = vmatprep.subr.bf16.mxu0 %v2664_v51  ;;  %1618 = vmatprep.subr.bf16.mxu1 %v2670_v3  ;;  %v2924_v3 = vld [vmem:[#allocation21_spill] sm:$0xff] }
 0x631   : > { %1578 = vmatpush1.bf16.msra.mxu0 %v2676_v57  ;;  %1619 = vmatpush1.bf16.msra.mxu1 %v2682_v60 }
 0x632   : > { %1579 = vmatprep.subr.bf16.mxu0 %v2688_v56  ;;  %1620 = vmatprep.subr.bf16.mxu1 %v2694_v58 }
 0x635   : > { %1580 = vmatpush1.bf16.msra.mxu0 %v2700_v62  ;;  %1621 = vmatpush1.bf16.msra.mxu1 %v2706_v53 }
 0x636   : > { %1581 = vmatprep.subr.bf16.mxu0 %v2712_v55  ;;  %1622 = vmatprep.subr.bf16.mxu1 %v2718_v63 }
 0x639   : > { %1582 = vmatpush1.bf16.msra.mxu0 %v2724_v0  ;;  %1623 = vmatpush1.bf16.msra.mxu1 %v2730_v52 }
 0x63a   : > { %1583 = vmatprep.subr.bf16.mxu0 %v2736_v14  ;;  %1624 = vmatprep.subr.bf16.mxu1 %v2742_v15 }
 0x63d   : > { %1584 = vmatpush1.bf16.msra.mxu0 %v2748_v47  ;;  %1625 = vmatpush1.bf16.msra.mxu1 %v2754_v61 }
 0x63e   : > { %1585 = vmatprep.subr.bf16.mxu0 %v2760_v9  ;;  %1626 = vmatprep.subr.bf16.mxu1 %v2766_v18  ;;  %v1564_v18 = vstv %s1563_s14 }
 0x63f   : > { %vm1565_vm7 = vcmp.eq.s32.totalorder %v1564_v18, 1 }
 0x641   : > { %1586 = vmatpush1.bf16.msra.mxu0 %v2772_v19  ;;  %1627 = vmatpush1.bf16.msra.mxu1 %v2778_v20 }
 0x642   : > { %1587 = vmatprep.subr.bf16.mxu0 %v2784_v22  ;;  %1628 = vmatprep.subr.bf16.mxu1 %v2790_v23 }
 0x645   : > { %1588 = vmatpush1.bf16.msra.mxu0 %v2796_v24  ;;  %1629 = vmatpush1.bf16.msra.mxu1 %v2802_v25 }
 0x6fb   : > { %v1491_v21 = vpop.f32.mrb[40].mxu0  ;;  %v1532_v6 = vpop.f32.mrb[40].mxu1 }
 0x6fc   : > { %v1539_v40 = vadd.f32 %v1491_v21, %v2921_v59  ;;  %v1541_v54 = vadd.f32 %v1532_v6, %v2922_v31  ;;  %v1493_v13 = vpop.f32.mrb[41].mxu0  ;;  %v1534_v4 = vpop.f32.mrb[41].mxu1  ;;  %v1680_v21 = vstv %s1679_s16 }
 0x6fd   : > { %v1540_v51 = vadd.f32 %v1493_v13, %v2923_v48  ;;  %v1542_v57 = vadd.f32 %v1534_v4, %v2924_v3  ;;  %v1495_v60 = vpop.f32.mrb[42].mxu0  ;;  %v1536_v56 = vpop.f32.mrb[42].mxu1  ;;  %vm1681_vm8 = vcmp.eq.s32.totalorder %v1680_v21, 1 }
 0x6fe   : > { %v1543_v58 = vmul.f32 0.5, %v1539_v40  ;;  %v1496_v62 = vpop.f32.mrb[43].mxu0  ;;  %v1537_v53 = vpop.f32.mrb[43].mxu1 }
 0x6ff   : > { %v1547_v55 = vmul.f32 0.5, %v1540_v51  ;;  %v1552_v63 = vmul.f32 0.5, %v1542_v57 }
 0x700   : > { %1922 = vtanh.f32 %v1543_v58 }
 0x701   : > { %1924 = vtanh.f32 %v1547_v55 }
 0x702   : > { %1926 = vtanh.f32 %v1541_v54 }
 0x703   : > { %1928 = vtanh.f32 %v1552_v63 }
 0x70a   : > { %v1923_v0 = vpop.eup %1922 }
 0x70b   : > { %v1925_v52 = vpop.eup %1924  ;;  %v1545_v14 = vmul.f32 0.5, %v1923_v0 }
 0x70c   : > { %v1549_v15 = vmul.f32 0.5, %v1925_v52  ;;  %v1927_v61 = vpop.eup %1926 }
 0x70d   : > { %v1546_v47 = vadd.f32 0.5, %v1545_v14  ;;  %v1929_v24 = vpop.eup %1928 }
 0x70e   : > { %v1550_v9 = vadd.f32 0.5, %v1549_v15  ;;  %v1554_v25 = vmul.f32 0.5, %v1929_v24 }
 0x70f   : > { %v1557_v19 = vmul.f32 %v1927_v61, %v1546_v47 }
 0x710   : > { %v1556_v20 = vmul.f32 %v1550_v9, %v2814_v12  ;;  %v1555_v34 = vadd.f32 0.5, %v1554_v25 }
 0x712   : > { %v1558_v22 = vadd.f32 %v1557_v19, %v1556_v20 }
 0x714   : > { %1930 = vtanh.f32 %v1558_v22  ;;  %v1567_v23 = vsel %vm1565_vm7, %v1558_v22, %v2814_v12 }
 0x71e   : > { %v1931_v35 = vpop.eup %1930 }
 0x71f   : > { %v1560_v36 = vmul.f32 %v1931_v35, %v1555_v34 }
 0x721   : > { %v1566_v37 = vsel %vm1565_vm7, %v1560_v36, %v2817_v32 }
 0x722   : > { %v1572_v38 = vpack.c.bf16 %v1566_v37, %v1566_v37 }
 0x724   : > { %1606 = vmatmul.mubr.bf16.vlgmr.msra.gmra.mrb[44].mxu0 %v1572_v38  ;;  %1647 = vmatmul.mubr.bf16.vlgmr.msra.gmra.mrb[44].mxu1 %v1572_v38 }
 0x7f7   : > { %v1607_v39 = vpop.f32.mrb[44].mxu0  ;;  %v1648_v41 = vpop.f32.mrb[44].mxu1 }
 0x7f8   : > { %v1655_v43 = vadd.f32 %v1607_v39, %v2925_v42  ;;  %v1657_v44 = vadd.f32 %v1648_v41, %v2926_v16  ;;  %v1609_v17 = vpop.f32.mrb[45].mxu0  ;;  %v1650_v45 = vpop.f32.mrb[45].mxu1 }
 0x7f9   : > { %v1656_v1 = vadd.f32 %v1609_v17, %v2927_v46  ;;  %v1658_v50 = vadd.f32 %v1650_v45, %v2928_v2  ;;  %v1611_v5 = vpop.f32.mrb[46].mxu0  ;;  %v1652_v10 = vpop.f32.mrb[46].mxu1 }
 0x7fa   : > { %v1659_v7 = vmul.f32 0.5, %v1655_v43  ;;  %v1612_v8 = vpop.f32.mrb[47].mxu0  ;;  %v1653_v11 = vpop.f32.mrb[47].mxu1 }
 0x7fb   : > { %v1663_v49 = vmul.f32 0.5, %v1656_v1  ;;  %v1668_v12 = vmul.f32 0.5, %v1658_v50 }
 0x7fc   : > { %1932 = vtanh.f32 %v1659_v7 }
 0x7fd   : > { %1934 = vtanh.f32 %v1663_v49 }
 0x7fe   : > { %1936 = vtanh.f32 %v1657_v44 }
 0x7ff   : > { %1938 = vtanh.f32 %v1668_v12 }
 0x806   : > { %v1933_v26 = vpop.eup %1932 }
 0x807   : > { %v1935_v27 = vpop.eup %1934  ;;  %v1661_v28 = vmul.f32 0.5, %v1933_v26 }
 0x808   : > { %v1665_v29 = vmul.f32 0.5, %v1935_v27  ;;  %v1937_v32 = vpop.eup %1936 }
 0x809   : > { %v1662_v30 = vadd.f32 0.5, %v1661_v28  ;;  %v1939_v54 = vpop.eup %1938 }
 0x80a   : > { %v1666_v33 = vadd.f32 0.5, %v1665_v29  ;;  %v1670_v13 = vmul.f32 0.5, %v1939_v54 }
 0x80b   : > { %v1673_v6 = vmul.f32 %v1937_v32, %v1662_v30 }
 0x80c   : > { %v1672_v59 = vmul.f32 %v1666_v33, %v1567_v23  ;;  %v1671_v4 = vadd.f32 0.5, %v1670_v13 }
 0x80e   : > { %v1674_v40 = vadd.f32 %v1673_v6, %v1672_v59 }
 0x810   : > { %1940 = vtanh.f32 %v1674_v40  ;;  %v1683_v31 = vsel %vm1681_vm8, %v1674_v40, %v1567_v23 }
 0x811   : > { %1685 = vst [vmem:[#allocation4] sm:$0xff] %v1683_v31  ;;  %1691 = vst [vmem:[%s2883_s7] sm:$0xff] (!%p1786_p13), %v1683_v31 }
 0x818   : > { %1689 = sbr.rel (%p1786_p13) target bundleno = 2079 (0x81f), region = 52 }
 0x81a   : > { %v1941_v48 = vpop.eup %1940 }
 0x81b   : > { %v1676_v51 = vmul.f32 %v1941_v48, %v1671_v4 }
 0x81d   : > { %v1682_v3 = vsel %vm1681_vm8, %v1676_v51, %v1566_v37 }
 0x81e   : > { %1684 = vst [vmem:[#allocation3] sm:$0xff] %v1682_v3  ;;  %1690 = vst [vmem:[%s2882_s6] sm:$0xff] (!%p1786_p13), %v1682_v3 }
 0x81f PF: > { %s18_s24 = sadd.s32 1, %s1980_s24  }
 0x820   : > { %p15_p0 = scmp.ge.s32.totalorder %s18_s24, 4  }
 0x822   :  { %17 = sbr.rel (!%p15_p0) target bundleno = 1 (0x1), region = 86 }

// kernel: multimodal_lstm_forward.7
= control target key start
LH: loop header
LB: loop body
LE: loop exit
PB: predicated region body
PF: predicated region fallthrough
CT: control target
= control target key end

     0   :  { %16 = vsyncpa [#allocation7], 0  ;;  %s5268_s0 = inlined_call_operand.vmem [shape: bf16[128,64], index: 0, kind: input, shape index: {}]   ;;  %s5269_s1 = inlined_call_operand.vmem [shape: bf16[64,512], index: 1, kind: input, shape index: {}]   ;;  %s5270_s2 = inlined_call_operand.vmem [shape: bf16[128,512], index: 2, kind: input, shape index: {}]   ;;  %s5271_s3 = inlined_call_operand.vmem [shape: f32[1,512], index: 3, kind: input, shape index: {}]   ;;  %s5272_s4 = inlined_call_operand.vmem [shape: f32[8,128], index: 4, kind: input, shape index: {}]   ;;  %s5273_s5 = inlined_call_operand.vmem [shape: f32[8,128], index: 5, kind: input, shape index: {}]   ;;  %s5274_s6 = inlined_call_operand.vmem [shape: bf16[128,256], index: 6, kind: input, shape index: {}]   ;;  %s5275_s7 = inlined_call_operand.vmem [shape: f32[1,256], index: 7, kind: input, shape index: {}]   ;;  %s5276_s8 = inlined_call_operand.hbm [shape: f32[8,128], index: 8, kind: output, shape index: {0}]   ;;  %s5277_s9 = inlined_call_operand.hbm [shape: f32[8,128], index: 9, kind: output, shape index: {1}]   ;;  %s5278_s10 = inlined_call_operand.vmem [shape: f32[128,256], index: 10, kind: output, shape index: {2}]  }
   0x1   :  { %17 = vsyncpa [#allocation9], 0  ;;  %s4224_s13 = smov 0  }
   0x2 LB: > { %s4230_s14 = sadd.s32 4294967295, %s4164_s13   ;;  %p3507_p0 = scmp.ge.s32.totalorder %s4164_s13, 1  ;;  %s4164_s13 = sphi %s4224_s13, %s23_s13  }
   0x3   : > { %p310_p1 = scmp.lt.s32.totalorder %s4164_s13, 3 }
   0x5   : > { %p311_p2 = pnand %p3507_p0, %p310_p1 }
   0x7   : > { %314 = sbr.rel (%p311_p2) target bundleno = 2393 (0x959), region = 52 }
   0xe   : > { %s4235_s15 = sshll.u32 %s4230_s14, 3  ;;  %p3513_p4 = scmp.ne.s32.totalorder %s4230_s14, 0 }
   0xf   : > { %p350_p3 = scmp.lt.s32.totalorder %s4235_s15, 15  ;;  %v367_v0 = vld [vmem:[%s5272_s4] sm:$0xff] (!%p3513_p4) }
  0x10   : > { %366 = sbr.rel (%p3513_p4) target bundleno = 23 (0x17), region = 56  ;;  %v369_v1 = vld [vmem:[%s5273_s5] sm:$0xff] (!%p3513_p4)  ;;  %368 = vst [vmem:[#allocation3] sm:$0xff] (!%p3513_p4), %v367_v0 }
  0x11   : > { %s351_s16 = scalar_select %p350_p3, %s4235_s15, 15 }
  0x12   : > { %370 = vst [vmem:[#allocation4] sm:$0xff] (!%p3513_p4), %v369_v1 }
  0x13   : > { %s3509_s17 = sshll.u32 %s351_s16, 2  ;;  %s3822_s18 = sshll.u32 %s351_s16, 4 }
  0x14   : > { %s4242_s21 = scalar_lea.vmem %s5268_s0, %s3509_s17  ;;  %s4247_s24 = scalar_lea.vmem %s5278_s10, %s3822_s18 }
  0x17 PF: > { %v3846_v2 = vld [vmem:[%s5269_s1 + $0xc] ss:$16 sps:$4 sm:$0xff]   ;;  %v3848_v3 = vld [vmem:[%s5269_s1 + $0x8] ss:$16 sps:$4 sm:$0xff]   ;;  %v5281_v4 = vmov 0   ;;  %v3858_v14 = vld [vmem:[%s4242_s21] sm:$0xff]   ;;  %v397_v57 = vlaneseq }
  0x18   : > { %635 = vmatprep.mubr.bf16.mxu1 %v5281_v4  ;;  %562 = vmatprep.mubr.bf16.mxu0 %v5281_v4  ;;  %v3849_v5 = vld [vmem:[%s5269_s1 + $0x2c] ss:$16 sps:$4 sm:$0xff]   ;;  %v3851_v6 = vld [vmem:[%s5269_s1 + $0x28] ss:$16 sps:$4 sm:$0xff]   ;;  %v4285_v11 = vld [vmem:[%s5270_s2 + $0x4] ss:$16 sps:$4 sm:$0xff]  }
  0x19   : > { %603 = vmatprep.subr.bf16.mxu1 %v3846_v2  ;;  %v3852_v7 = vld [vmem:[%s5269_s1 + $0x4c] ss:$16 sps:$4 sm:$0xff]   ;;  %v3854_v8 = vld [vmem:[%s5269_s1 + $0x48] ss:$16 sps:$4 sm:$0xff]   ;;  %v3872_v12 = vld [vmem:[%s5269_s1 + $0x4] ss:$16 sps:$4 sm:$0xff]  }
  0x1a   : > { %604 = vmatpush1.bf16.msra.mxu1 %v3848_v3  ;;  %v3855_v9 = vld [vmem:[%s5269_s1 + $0x6c] ss:$16 sps:$4 sm:$0xff]   ;;  %v3857_v10 = vld [vmem:[%s5269_s1 + $0x68] ss:$16 sps:$4 sm:$0xff]   ;;  %v3874_v13 = vld [vmem:[%s5269_s1] ss:$16 sps:$4 sm:$0xff]   ;;  %530 = vmatprep.subr.bf16.mxu0 %v3872_v12 }
  0x1b   : > { %605 = vmatprep.subr.bf16.mxu1 %v3849_v5  ;;  %vm517_vm0 = vcmask 523264   ;;  %v4297_v15 = vld [vmem:[%s5270_s2] ss:$16 sps:$4 sm:$0xff]   ;;  %v4303_v16 = vld [vmem:[%s5270_s2 + $0x24] ss:$16 sps:$4 sm:$0xff]   ;;  %531 = vmatpush1.bf16.msra.mxu0 %v3874_v13  ;;  %v3865_v23 = vld [vmem:[%s4242_s21 + $0x8] sm:$0xff]  }
  0x1c   : > { %v3879_v17 = vld [vmem:[%s5269_s1 + $0x24] ss:$16 sps:$4 sm:$0xff]   ;;  %v3881_v18 = vld [vmem:[%s5269_s1 + $0x20] ss:$16 sps:$4 sm:$0xff]   ;;  %v3888_v34 = vld [vmem:[%s4242_s21 + $0x18] sm:$0xff]   ;;  %v4558_v58 = vshrl.u32 %v397_v57, 7 }
  0x1d   : > { %v4315_v19 = vld [vmem:[%s5270_s2 + $0x20] ss:$16 sps:$4 sm:$0xff]   ;;  %v3885_v20 = vld [vmem:[%s5269_s1 + $0x44] ss:$16 sps:$4 sm:$0xff]   ;;  %532 = vmatprep.subr.bf16.mxu0 %v3879_v17  ;;  %v4425_v40 = vld [vmem:[%s5270_s2 + $0xc] ss:$16 sps:$4 sm:$0xff]  }
  0x1e   : > { %606 = vmatpush1.bf16.msra.mxu1 %v3851_v6  ;;  %v4326_v21 = vld [vmem:[%s5270_s2 + $0x44] ss:$16 sps:$4 sm:$0xff]   ;;  %v3887_v22 = vld [vmem:[%s5269_s1 + $0x40] ss:$16 sps:$4 sm:$0xff]   ;;  %v4434_v41 = vld [vmem:[%s5270_s2 + $0x8] ss:$16 sps:$4 sm:$0xff]  }
  0x1f   : > { %607 = vmatprep.subr.bf16.mxu1 %v3852_v7  ;;  %533 = vmatpush1.bf16.msra.mxu0 %v3881_v18  ;;  %v4336_v24 = vld [vmem:[%s5270_s2 + $0x40] ss:$16 sps:$4 sm:$0xff]   ;;  %v3892_v25 = vld [vmem:[%s5269_s1 + $0x64] ss:$16 sps:$4 sm:$0xff]   ;;  %v4442_v43 = vld [vmem:[%s5270_s2 + $0x2c] ss:$16 sps:$4 sm:$0xff]  }
  0x20   : > { %534 = vmatprep.subr.bf16.mxu0 %v3885_v20  ;;  %v4345_v26 = vld [vmem:[%s5270_s2 + $0x64] ss:$16 sps:$4 sm:$0xff]   ;;  %v3894_v27 = vld [vmem:[%s5269_s1 + $0x60] ss:$16 sps:$4 sm:$0xff]   ;;  %v4451_v44 = vld [vmem:[%s5270_s2 + $0x28] ss:$16 sps:$4 sm:$0xff]  }
  0x21   : > { %v4355_v28 = vld [vmem:[%s5270_s2 + $0x60] ss:$16 sps:$4 sm:$0xff]   ;;  %v4362_v29 = vld [vmem:[%s5270_s2 + $0x84] ss:$16 sps:$4 sm:$0xff]   ;;  %v4462_v45 = vld [vmem:[%s5270_s2 + $0x4c] ss:$16 sps:$4 sm:$0xff]  }
  0x22   : > { %608 = vmatpush1.bf16.msra.mxu1 %v3854_v8  ;;  %v3875_v30 = vld [vmem:[%s4242_s21 + $0x10] sm:$0xff]   ;;  %v4417_v39 = vld [vmem:[#allocation3] sm:$0xff]  ;;  %v4470_v46 = vld [vmem:[%s5270_s2 + $0x48] ss:$16 sps:$4 sm:$0xff]   ;;  %5286 = vst [vmem:[#allocation12_spill] sm:$0xff] %v4558_v58  ;;  %v407_v59 = vsub.s32 2, %v4558_v58 }
  0x23   : > { %609 = vmatprep.subr.bf16.mxu1 %v3855_v9  ;;  %535 = vmatpush1.bf16.msra.mxu0 %v3887_v22  ;;  %v4370_v31 = vld [vmem:[%s5270_s2 + $0x80] ss:$16 sps:$4 sm:$0xff]   ;;  %v4376_v32 = vld [vmem:[%s5270_s2 + $0xa4] ss:$16 sps:$4 sm:$0xff]   ;;  %v714_v42 = vpack.c.bf16 %v4417_v39, %v4417_v39  ;;  %v4476_v47 = vld [vmem:[%s5270_s2 + $0x6c] ss:$16 sps:$4 sm:$0xff]  }
  0x24   : > { %536 = vmatprep.subr.bf16.mxu0 %v3892_v25  ;;  %v4387_v33 = vld [vmem:[%s5270_s2 + $0xa0] ss:$16 sps:$4 sm:$0xff]   ;;  %v4395_v35 = vld [vmem:[%s5270_s2 + $0xc4] ss:$16 sps:$4 sm:$0xff]   ;;  %v4486_v48 = vld [vmem:[%s5270_s2 + $0x68] ss:$16 sps:$4 sm:$0xff]  }
  0x25   : > { %v4400_v36 = vld [vmem:[%s5270_s2 + $0xc0] ss:$16 sps:$4 sm:$0xff]   ;;  %v4406_v37 = vld [vmem:[%s5270_s2 + $0xe4] ss:$16 sps:$4 sm:$0xff]   ;;  %v4492_v49 = vld [vmem:[%s5270_s2 + $0x8c] ss:$16 sps:$4 sm:$0xff]  }
  0x26   : > { %610 = vmatpush1.bf16.msra.mxu1 %v3857_v10  ;;  %v4415_v38 = vld [vmem:[%s5270_s2 + $0xe0] ss:$16 sps:$4 sm:$0xff]   ;;  %v4500_v50 = vld [vmem:[%s5270_s2 + $0x88] ss:$16 sps:$4 sm:$0xff]   ;;  %v4506_v51 = vld [vmem:[%s5270_s2 + $0xac] ss:$16 sps:$4 sm:$0xff]  }
  0x27   : > { %907 = vmatprep.subr.bf16.mxu1 %v4285_v11  ;;  %537 = vmatpush1.bf16.msra.mxu0 %v3894_v27  ;;  %v4512_v52 = vld [vmem:[%s5270_s2 + $0xa8] ss:$16 sps:$4 sm:$0xff]   ;;  %v4518_v53 = vld [vmem:[%s5270_s2 + $0xcc] ss:$16 sps:$4 sm:$0xff]   ;;  %v395_v60 = vld [vmem:[%s5271_s3] sm:$0xf] }
  0x28   : > { %1216 = vmatprep.subr.bf16.mxu0 %v4285_v11  ;;  %v4524_v54 = vld [vmem:[%s5270_s2 + $0xc8] ss:$16 sps:$4 sm:$0xff]   ;;  %v4530_v55 = vld [vmem:[%s5270_s2 + $0xec] ss:$16 sps:$4 sm:$0xff]   ;;  %v411_v61 = vsub.s32 3, %v4558_v58  ;;  %v4565_v62 = vrot.slane %v395_v60, %v407_v59  ;;  %v5279_v18 = vsub.s32 1, %v4558_v58 }
  0x29   : > { %3538 = vmatmul.mubr.msk.bf16.vlgmr.msra.gmra.mrb[0].mxu1 %vm517_vm0, %v3858_v14  ;;  %v4536_v56 = vld [vmem:[%s5270_s2 + $0xe8] ss:$16 sps:$4 sm:$0xff]   ;;  %p1012_p5 = scmp.lt.s32.totalorder %s4235_s15, 10  ;;  %s1320_s18 = sadd.s32 1, %s4235_s15 }
  0x2a   : > { %908 = vmatpush1.bf16.msra.mxu1 %v4297_v15  ;;  %645 = vmatprep.mubr.bf16.mxu1 %v5281_v4  ;;  %v4571_v1 = vrot.slane %v395_v60, %v411_v61  ;;  %v404_v27 = vrot.slane %v395_v60, %v5279_v18  ;;  %p1321_p6 = scmp.lt.s32.totalorder %s1320_s18, 10  ;;  %s1629_s20 = sadd.s32 2, %s4235_s15 }
  0x2b   : > { %909 = vmatprep.subr.bf16.mxu1 %v4303_v16  ;;  %3534 = vmatmul.mubr.msk.bf16.vlgmr.msra.gmra.mrb[0].mxu0 %vm517_vm0, %v3858_v14  ;;  %v5280_v14 = vsub.s32 0, %v4558_v58  ;;  %s1013_s17 = scalar_select %p1012_p5, 1, 0 }
  0x2c   : > { %1217 = vmatpush1.bf16.msra.mxu0 %v4297_v15  ;;  %572 = vmatprep.mubr.bf16.mxu0 %v5281_v4  ;;  %s1322_s19 = scalar_select %p1321_p6, 1, 0 }
  0x2d   : > { %1218 = vmatprep.subr.bf16.mxu0 %v4303_v16  ;;  %v400_v22 = vrot.slane %v395_v60, %v5280_v14  ;;  %p1630_p7 = scmp.lt.s32.totalorder %s1629_s20, 10  ;;  %s1938_s23 = sadd.s32 3, %s4235_s15 }
  0x2e   : > { %910 = vmatpush1.bf16.msra.mxu1 %v4315_v19  ;;  %p1939_p8 = scmp.lt.s32.totalorder %s1938_s23, 10  ;;  %s2247_s26 = sadd.s32 4, %s4235_s15 }
  0x2f   : > { %911 = vmatprep.subr.bf16.mxu1 %v4326_v21  ;;  %s1631_s22 = scalar_select %p1630_p7, 1, 0 }
  0x30   : > { %1219 = vmatpush1.bf16.msra.mxu0 %v4315_v19  ;;  %s1940_s25 = scalar_select %p1939_p8, 1, 0 }
  0x31   : > { %3539 = vmatmul.mubr.msk.bf16.gmra.mrb[4].mxu1 %vm517_vm0, %v3865_v23  ;;  %1220 = vmatprep.subr.bf16.mxu0 %v4326_v21  ;;  %p2248_p9 = scmp.lt.s32.totalorder %s2247_s26, 10  ;;  %s2556_s28 = sadd.s32 5, %s4235_s15 }
  0x32   : > { %912 = vmatpush1.bf16.msra.mxu1 %v4336_v24  ;;  %655 = vmatprep.mubr.bf16.mxu1 %v5281_v4  ;;  %p2557_p10 = scmp.lt.s32.totalorder %s2556_s28, 10  ;;  %s2865_s30 = sadd.s32 6, %s4235_s15 }
  0x33   : > { %913 = vmatprep.subr.bf16.mxu1 %v4345_v26  ;;  %3535 = vmatmul.mubr.msk.bf16.gmra.mrb[4].mxu0 %vm517_vm0, %v3865_v23  ;;  %s2249_s27 = scalar_select %p2248_p9, 1, 0 }
  0x34   : > { %1221 = vmatpush1.bf16.msra.mxu0 %v4336_v24  ;;  %582 = vmatprep.mubr.bf16.mxu0 %v5281_v4  ;;  %s2558_s29 = scalar_select %p2557_p10, 1, 0 }
  0x35   : > { %1222 = vmatprep.subr.bf16.mxu0 %v4345_v26  ;;  %p2866_p11 = scmp.lt.s32.totalorder %s2865_s30, 10  ;;  %s3174_s11 = sadd.s32 7, %s4235_s15 }
  0x36   : > { %914 = vmatpush1.bf16.msra.mxu1 %v4355_v28  ;;  %p3175_p12 = scmp.lt.s32.totalorder %s3174_s11, 10  ;;  %p3799_p13 = scmp.ne.s32.totalorder %s4230_s14, 1 }
  0x37   : > { %915 = vmatprep.subr.bf16.mxu1 %v4362_v29  ;;  %s2867_s21 = scalar_select %p2866_p11, 1, 0 }
  0x38   : > { %1223 = vmatpush1.bf16.msra.mxu0 %v4355_v28  ;;  %s3176_s12 = scalar_select %p3175_p12, 1, 0 }
  0x39   : > { %3540 = vmatmul.mubr.msk.bf16.gmra.mrb[8].mxu1 %vm517_vm0, %v3875_v30  ;;  %1224 = vmatprep.subr.bf16.mxu0 %v4362_v29 }
  0x3a   : > { %916 = vmatpush1.bf16.msra.mxu1 %v4370_v31  ;;  %665 = vmatprep.mubr.bf16.mxu1 %v5281_v4 }
  0x3b   : > { %917 = vmatprep.subr.bf16.mxu1 %v4376_v32  ;;  %3536 = vmatmul.mubr.msk.bf16.gmra.mrb[8].mxu0 %vm517_vm0, %v3875_v30 }
  0x3c   : > { %1225 = vmatpush1.bf16.msra.mxu0 %v4370_v31  ;;  %592 = vmatprep.mubr.bf16.mxu0 %v5281_v4 }
  0x3d   : > { %1226 = vmatprep.subr.bf16.mxu0 %v4376_v32 }
  0x3e   : > { %918 = vmatpush1.bf16.msra.mxu1 %v4387_v33 }
  0x3f   : > { %919 = vmatprep.subr.bf16.mxu1 %v4395_v35 }
  0x40   : > { %1227 = vmatpush1.bf16.msra.mxu0 %v4387_v33 }
  0x41   : > { %3541 = vmatmul.mubr.msk.bf16.gmra.mrb[12].mxu1 %vm517_vm0, %v3888_v34  ;;  %1228 = vmatprep.subr.bf16.mxu0 %v4395_v35 }
  0x42   : > { %920 = vmatpush1.bf16.msra.mxu1 %v4400_v36  ;;  %939 = vmatprep.mubr.bf16.mxu1 %v5281_v4 }
  0x43   : > { %921 = vmatprep.subr.bf16.mxu1 %v4406_v37  ;;  %3537 = vmatmul.mubr.msk.bf16.gmra.mrb[12].mxu0 %vm517_vm0, %v3888_v34 }
  0x44   : > { %1229 = vmatpush1.bf16.msra.mxu0 %v4400_v36  ;;  %1248 = vmatprep.mubr.bf16.mxu0 %v5281_v4 }
  0x45   : > { %1230 = vmatprep.subr.bf16.mxu0 %v4406_v37 }
  0x46   : > { %922 = vmatpush1.bf16.msra.mxu1 %v4415_v38 }
  0x47   : > { %948 = vmatprep.subr.bf16.mxu1 %v4425_v40 }
  0x48   : > { %1231 = vmatpush1.bf16.msra.mxu0 %v4415_v38 }
  0x49   : > { %940 = vmatmul.mubr.bf16.vlgmr.msra.gmra.mrb[16].mxu1 %v714_v42  ;;  %1525 = vmatprep.subr.bf16.mxu0 %v4285_v11 }
  0x4a   : > { %949 = vmatpush1.bf16.msra.mxu1 %v4434_v41  ;;  %980 = vmatprep.mubr.bf16.mxu1 %v5281_v4 }
  0x4b   : > { %950 = vmatprep.subr.bf16.mxu1 %v4442_v43 }
  0x4e   : > { %951 = vmatpush1.bf16.msra.mxu1 %v4451_v44 }
  0x4f   : > { %952 = vmatprep.subr.bf16.mxu1 %v4462_v45 }
  0x52   : > { %953 = vmatpush1.bf16.msra.mxu1 %v4470_v46 }
  0x53   : > { %954 = vmatprep.subr.bf16.mxu1 %v4476_v47 }
  0x56   : > { %955 = vmatpush1.bf16.msra.mxu1 %v4486_v48 }
  0x57   : > { %956 = vmatprep.subr.bf16.mxu1 %v4492_v49 }
  0x5a   : > { %957 = vmatpush1.bf16.msra.mxu1 %v4500_v50 }
  0x5b   : > { %958 = vmatprep.subr.bf16.mxu1 %v4506_v51 }
  0x5e   : > { %959 = vmatpush1.bf16.msra.mxu1 %v4512_v52 }
  0x5f   : > { %960 = vmatprep.subr.bf16.mxu1 %v4518_v53 }
  0x62   : > { %961 = vmatpush1.bf16.msra.mxu1 %v4524_v54 }
  0x63   : > { %962 = vmatprep.subr.bf16.mxu1 %v4530_v55 }
  0x66   : > { %963 = vmatpush1.bf16.msra.mxu1 %v4536_v56 }
  0x67   : > { %1257 = vmatprep.subr.bf16.mxu1 %v4425_v40 }
  0x69   : > { %981 = vmatmul.mubr.bf16.vlgmr.msra.gmra.mrb[20].mxu1 %v714_v42 }
  0x6a   : > { %1258 = vmatpush1.bf16.msra.mxu1 %v4434_v41  ;;  %1289 = vmatprep.mubr.bf16.mxu1 %v5281_v4 }
  0x6b   : > { %1259 = vmatprep.subr.bf16.mxu1 %v4442_v43 }
  0x6e   : > { %1260 = vmatpush1.bf16.msra.mxu1 %v4451_v44 }
  0x6f   : > { %1261 = vmatprep.subr.bf16.mxu1 %v4462_v45 }
  0x72   : > { %1262 = vmatpush1.bf16.msra.mxu1 %v4470_v46 }
  0x73   : > { %1263 = vmatprep.subr.bf16.mxu1 %v4476_v47 }
  0x76   : > { %1264 = vmatpush1.bf16.msra.mxu1 %v4486_v48 }
  0x77   : > { %1265 = vmatprep.subr.bf16.mxu1 %v4492_v49 }
  0x7a   : > { %1266 = vmatpush1.bf16.msra.mxu1 %v4500_v50 }
  0x7b   : > { %1267 = vmatprep.subr.bf16.mxu1 %v4506_v51 }
  0x7e   : > { %1268 = vmatpush1.bf16.msra.mxu1 %v4512_v52 }
  0x7f   : > { %1269 = vmatprep.subr.bf16.mxu1 %v4518_v53 }
  0x82   : > { %1270 = vmatpush1.bf16.msra.mxu1 %v4524_v54 }
  0x83   : > { %1271 = vmatprep.subr.bf16.mxu1 %v4530_v55 }
  0x86   : > { %1272 = vmatpush1.bf16.msra.mxu1 %v4536_v56 }
  0x87   : > { %1566 = vmatprep.subr.bf16.mxu1 %v4425_v40 }
  0xfc   : > { %v4567_v63 = vpop.f32.mrb[0].mxu1 }
  0xfd   : > { %v4569_v0 = vpop.f32.mrb[1].mxu1 }
  0xfe   : > { %v641_v2 = vpop.f32.mrb[2].mxu1  ;;  %v564_v20 = vpop.f32.mrb[0].mxu0 }
  0xff   : > { %v4574_v3 = vadd.f32 %v641_v2, %v4565_v62  ;;  %v643_v5 = vpop.f32.mrb[3].mxu1  ;;  %v566_v23 = vpop.f32.mrb[1].mxu0 }
 0x100   : > { %v4577_v6 = vadd.f32 %v643_v5, %v4571_v1  ;;  %v568_v30 = vpop.f32.mrb[2].mxu0 }
 0x101   : > { %v4600_v57 = vadd.f32 %v568_v30, %v400_v22  ;;  %v570_v59 = vpop.f32.mrb[3].mxu0 }
 0x102   : > { %v4605_v5 = vadd.f32 %v570_v59, %v404_v27 }
 0x104   : > { %v647_v7 = vpop.f32.mrb[4].mxu1 }
 0x105   : > { %v4580_v8 = vadd.f32 %v647_v7, %v4565_v62  ;;  %v649_v9 = vpop.f32.mrb[5].mxu1 }
 0x106   : > { %v4583_v10 = vadd.f32 %v649_v9, %v4571_v1  ;;  %v651_v11 = vpop.f32.mrb[6].mxu1 }
 0x107   : > { %v4586_v12 = vadd.f32 %v651_v11, %v4565_v62  ;;  %v653_v13 = vpop.f32.mrb[7].mxu1  ;;  %v574_v11 = vpop.f32.mrb[4].mxu0 }
 0x108   : > { %5287 = vst [vmem:[#allocation13_spill] sm:$0xff] %v4583_v10  ;;  %v4590_v17 = vadd.f32 %v653_v13, %v4571_v1  ;;  %v4613_v13 = vadd.f32 %v574_v11, %v400_v22 }
 0x109   : > { %5288 = vst [vmem:[#allocation14_spill] sm:$0xff] %v4586_v12 }
 0x10a   : > { %5289 = vst [vmem:[#allocation15_spill] sm:$0xff] %v4590_v17 }
 0x10c   : > { %v657_v25 = vpop.f32.mrb[8].mxu1 }
 0x10d   : > { %v4598_v34 = vadd.f32 %v657_v25, %v4565_v62  ;;  %v659_v42 = vpop.f32.mrb[9].mxu1  ;;  %v576_v25 = vpop.f32.mrb[5].mxu0 }
 0x10e   : > { %v4603_v61 = vadd.f32 %v659_v42, %v4571_v1  ;;  %v661_v2 = vpop.f32.mrb[10].mxu1  ;;  %v4615_v18 = vadd.f32 %v576_v25, %v404_v27  ;;  %v578_v14 = vpop.f32.mrb[6].mxu0 }
 0x10f   : > { %5290 = vst [vmem:[#allocation16_spill] sm:$0xff] %v4598_v34  ;;  %v4608_v7 = vadd.f32 %v661_v2, %v4565_v62  ;;  %v663_v9 = vpop.f32.mrb[11].mxu1  ;;  %v4620_v4 = vadd.f32 %v578_v14, %v400_v22  ;;  %v580_v2 = vpop.f32.mrb[7].mxu0 }
 0x110   : > { %5291 = vst [vmem:[#allocation17_spill] sm:$0xff] %v4603_v61  ;;  %v4611_v60 = vadd.f32 %v663_v9, %v4571_v1  ;;  %v565_v61 = vadd.f32 %v564_v20, %v400_v22 }
 0x111   : > { %5292 = vst [vmem:[#allocation18_spill] sm:$0xff] %v4608_v7  ;;  %5295 = vst [vmem:[#allocation21_spill] sm:$0xff] %v4620_v4 }
 0x112   : > { %5293 = vst [vmem:[#allocation19_spill] sm:$0xff] %v4611_v60  ;;  %v4625_v60 = vadd.f32 %v580_v2, %v404_v27 }
 0x114   : > { %v667_v30 = vpop.f32.mrb[12].mxu1  ;;  %5297 = vst [vmem:[#allocation23_spill] sm:$0xff] %v4625_v60 }
 0x115   : > { %v4618_v42 = vadd.f32 %v667_v30, %v4565_v62  ;;  %v669_v59 = vpop.f32.mrb[13].mxu1  ;;  %v567_v30 = vadd.f32 %v566_v23, %v404_v27 }
 0x116   : > { %v4623_v58 = vadd.f32 %v669_v59, %v4571_v1  ;;  %v671_v9 = vpop.f32.mrb[14].mxu1 }
 0x117   : > { %5294 = vst [vmem:[#allocation20_spill] sm:$0xff] %v4618_v42  ;;  %v4628_v11 = vadd.f32 %v671_v9, %v4565_v62  ;;  %v673_v7 = vpop.f32.mrb[15].mxu1  ;;  %v584_v42 = vpop.f32.mrb[8].mxu0 }
 0x118   : > { %5296 = vst [vmem:[#allocation22_spill] sm:$0xff] %v4623_v58  ;;  %v4631_v25 = vadd.f32 %v673_v7, %v4571_v1  ;;  %v4633_v34 = vadd.f32 %v584_v42, %v400_v22  ;;  %v586_v14 = vpop.f32.mrb[9].mxu0 }
 0x119   : > { %5298 = vst [vmem:[#allocation24_spill] sm:$0xff] %v4628_v11  ;;  %v4635_v12 = vadd.f32 %v586_v14, %v404_v27  ;;  %v588_v59 = vpop.f32.mrb[10].mxu0 }
 0x11a   : > { %5299 = vst [vmem:[#allocation25_spill] sm:$0xff] %v4631_v25  ;;  %5300 = vst [vmem:[#allocation26_spill] sm:$0xff] %v4633_v34  ;;  %v4637_v60 = vadd.f32 %v588_v59, %v400_v22  ;;  %v590_v9 = vpop.f32.mrb[11].mxu0 }
 0x11b   : > { %5301 = vst [vmem:[#allocation27_spill] sm:$0xff] %v4635_v12  ;;  %v4639_v10 = vadd.f32 %v590_v9, %v404_v27  ;;  %v594_v20 = vpop.f32.mrb[12].mxu0 }
 0x11c   : > { %v941_v17 = vpop.f32.mrb[16].mxu1  ;;  %v4641_v23 = vadd.f32 %v594_v20, %v400_v22  ;;  %v596_v42 = vpop.f32.mrb[13].mxu0 }
 0x11d   : > { %v989_v58 = vadd.f32 %v941_v17, %v565_v61  ;;  %v943_v2 = vpop.f32.mrb[17].mxu1  ;;  %v4643_v25 = vadd.f32 %v596_v42, %v404_v27  ;;  %v598_v34 = vpop.f32.mrb[14].mxu0 }
 0x11e   : > { %v990_v11 = vadd.f32 %v943_v2, %v567_v30  ;;  %v945_v4 = vpop.f32.mrb[18].mxu1  ;;  %v4645_v14 = vadd.f32 %v598_v34, %v400_v22  ;;  %v600_v12 = vpop.f32.mrb[15].mxu0  ;;  %v640_v30 = vadd.f32 %v4569_v0, %v4571_v1 }
 0x11f   : > { %v946_v7 = vpop.f32.mrb[19].mxu1  ;;  %v4647_v17 = vadd.f32 %v600_v12, %v404_v27  ;;  %v993_v59 = vmul.f32 0.5, %v989_v58  ;;  %v638_v4 = vadd.f32 %v4567_v63, %v4565_v62  ;;  %v709_v62 = vld [vmem:[#allocation4] sm:$0xff] }
 0x120   : > { %v997_v61 = vmul.f32 0.5, %v990_v11 }
 0x122   : > { %3994 = vtanh.f32 %v997_v61 }
 0x123   : > { %3996 = vtanh.f32 %v993_v59  ;;  %v1014_v59 = vstv %s1013_s17 }
 0x124   : > { %vm1015_vm1 = vcmp.eq.s32.totalorder %v1014_v59, 1 }
 0x12c   : > { %v3995_v34 = vpop.eup %3994 }
 0x12d   : > { %v3997_v12 = vpop.eup %3996  ;;  %v999_v27 = vmul.f32 0.5, %v3995_v34 }
 0x12e   : > { %v995_v11 = vmul.f32 0.5, %v3997_v12 }
 0x12f   : > { %v1000_v61 = vadd.f32 0.5, %v999_v27  ;;  %v5302_v27 = vmov 0  }
 0x130   : > { %v996_v63 = vadd.f32 0.5, %v995_v11  ;;  %v1323_v11 = vstv %s1322_s19 }
 0x131   : > { %v1006_v1 = vmul.f32 %v1000_v61, %v709_v62  ;;  %vm1324_vm2 = vcmp.eq.s32.totalorder %v1323_v11, 1 }
 0x13c   : > { %v982_v2 = vpop.f32.mrb[20].mxu1 }
 0x13d   : > { %v991_v9 = vadd.f32 %v982_v2, %v638_v4  ;;  %v984_v7 = vpop.f32.mrb[21].mxu1 }
 0x13e   : > { %v992_v20 = vadd.f32 %v984_v7, %v640_v30  ;;  %v986_v22 = vpop.f32.mrb[22].mxu1 }
 0x13f   : > { %3998 = vtanh.f32 %v991_v9  ;;  %v987_v42 = vpop.f32.mrb[23].mxu1 }
 0x140   : > { %v1002_v58 = vmul.f32 0.5, %v992_v20 }
 0x142   : > { %4000 = vtanh.f32 %v1002_v58 }
 0x149   : > { %v3999_v0 = vpop.eup %3998 }
 0x14a   : > { %v1007_v4 = vmul.f32 %v3999_v0, %v996_v63 }
 0x14c   : > { %v1008_v30 = vadd.f32 %v1007_v4, %v1006_v1  ;;  %v4001_v9 = vpop.eup %4000 }
 0x14d   : > { %v1004_v7 = vmul.f32 0.5, %v4001_v9 }
 0x14e   : > { %4002 = vtanh.f32 %v1008_v30  ;;  %v4654_v2 = vsel %vm1015_vm1, %v1008_v30, %v709_v62 }
 0x14f   : > { %v1005_v22 = vadd.f32 0.5, %v1004_v7 }
 0x158   : > { %v4003_v34 = vpop.eup %4002 }
 0x159   : > { %v1010_v20 = vmul.f32 %v4003_v34, %v1005_v22 }
 0x15b   : > { %v4657_v42 = vsel %vm1015_vm1, %v1010_v20, %v4417_v39 }
 0x15c   : > { %1018 = vst [vmem:[#allocation5] sm:$0xff] %v4657_v42  ;;  %v1023_v12 = vpack.c.bf16 %v4657_v42, %v4657_v42 }
 0x15e   : > { %1249 = vmatmul.mubr.bf16.vlgmr.msra.gmra.mrb[16].mxu0 %v1023_v12  ;;  %1290 = vmatmul.mubr.bf16.vlgmr.msra.gmra.mrb[24].mxu1 %v1023_v12 }
 0x15f   : > { %1526 = vmatpush1.bf16.msra.mxu0 %v4297_v15  ;;  %1567 = vmatpush1.bf16.msra.mxu1 %v4434_v41 }
 0x160   : > { %1527 = vmatprep.subr.bf16.mxu0 %v4303_v16  ;;  %1568 = vmatprep.subr.bf16.mxu1 %v4442_v43 }
 0x161   : > { %1557 = vmatprep.mubr.bf16.mxu0 %v5302_v27  ;;  %1598 = vmatprep.mubr.bf16.mxu1 %v5302_v27 }
 0x163   : > { %1528 = vmatpush1.bf16.msra.mxu0 %v4315_v19  ;;  %1569 = vmatpush1.bf16.msra.mxu1 %v4451_v44 }
 0x164   : > { %1529 = vmatprep.subr.bf16.mxu0 %v4326_v21  ;;  %1570 = vmatprep.subr.bf16.mxu1 %v4462_v45 }
 0x167   : > { %1530 = vmatpush1.bf16.msra.mxu0 %v4336_v24  ;;  %1571 = vmatpush1.bf16.msra.mxu1 %v4470_v46 }
 0x168   : > { %1531 = vmatprep.subr.bf16.mxu0 %v4345_v26  ;;  %1572 = vmatprep.subr.bf16.mxu1 %v4476_v47 }
 0x16b   : > { %1532 = vmatpush1.bf16.msra.mxu0 %v4355_v28  ;;  %1573 = vmatpush1.bf16.msra.mxu1 %v4486_v48 }
 0x16c   : > { %1533 = vmatprep.subr.bf16.mxu0 %v4362_v29  ;;  %1574 = vmatprep.subr.bf16.mxu1 %v4492_v49 }
 0x16f   : > { %1534 = vmatpush1.bf16.msra.mxu0 %v4370_v31  ;;  %1575 = vmatpush1.bf16.msra.mxu1 %v4500_v50 }
 0x170   : > { %1535 = vmatprep.subr.bf16.mxu0 %v4376_v32  ;;  %1576 = vmatprep.subr.bf16.mxu1 %v4506_v51 }
 0x173   : > { %1536 = vmatpush1.bf16.msra.mxu0 %v4387_v33  ;;  %1577 = vmatpush1.bf16.msra.mxu1 %v4512_v52 }
 0x174   : > { %1537 = vmatprep.subr.bf16.mxu0 %v4395_v35  ;;  %1578 = vmatprep.subr.bf16.mxu1 %v4518_v53 }
 0x177   : > { %1538 = vmatpush1.bf16.msra.mxu0 %v4400_v36  ;;  %1579 = vmatpush1.bf16.msra.mxu1 %v4524_v54 }
 0x178   : > { %1539 = vmatprep.subr.bf16.mxu0 %v4406_v37  ;;  %1580 = vmatprep.subr.bf16.mxu1 %v4530_v55 }
 0x17b   : > { %1540 = vmatpush1.bf16.msra.mxu0 %v4415_v38  ;;  %1581 = vmatpush1.bf16.msra.mxu1 %v4536_v56 }
 0x17c   : > { %1875 = vmatprep.subr.bf16.mxu1 %v4425_v40 }
 0x231   : > { %v1250_v15 = vpop.f32.mrb[16].mxu0  ;;  %v1291_v16 = vpop.f32.mrb[24].mxu1 }
 0x232   : > { %v1298_v19 = vadd.f32 %v1250_v15, %v4600_v57  ;;  %v1300_v21 = vadd.f32 %v1291_v16, %v4574_v3  ;;  %v1252_v24 = vpop.f32.mrb[17].mxu0  ;;  %v1293_v26 = vpop.f32.mrb[25].mxu1 }
 0x233   : > { %v1299_v28 = vadd.f32 %v1252_v24, %v4605_v5  ;;  %v1301_v29 = vadd.f32 %v1293_v26, %v4577_v6  ;;  %v1254_v31 = vpop.f32.mrb[18].mxu0  ;;  %v1295_v32 = vpop.f32.mrb[26].mxu1 }
 0x234   : > { %v1302_v33 = vmul.f32 0.5, %v1298_v19  ;;  %v1255_v35 = vpop.f32.mrb[19].mxu0  ;;  %v1296_v36 = vpop.f32.mrb[27].mxu1 }
 0x235   : > { %v1306_v37 = vmul.f32 0.5, %v1299_v28  ;;  %v1311_v38 = vmul.f32 0.5, %v1301_v29 }
 0x236   : > { %4004 = vtanh.f32 %v1302_v33 }
 0x237   : > { %4006 = vtanh.f32 %v1306_v37 }
 0x238   : > { %4008 = vtanh.f32 %v1300_v21  ;;  %v5303_v21 = vld [vmem:[#allocation13_spill] sm:$0xff] }
 0x239   : > { %4010 = vtanh.f32 %v1311_v38 }
 0x240   : > { %v4005_v39 = vpop.eup %4004 }
 0x241   : > { %v4007_v40 = vpop.eup %4006  ;;  %v1304_v3 = vmul.f32 0.5, %v4005_v39 }
 0x242   : > { %v1308_v57 = vmul.f32 0.5, %v4007_v40  ;;  %v4009_v6 = vpop.eup %4008  ;;  %v1632_v40 = vstv %s1631_s22 }
 0x243   : > { %v1305_v5 = vadd.f32 0.5, %v1304_v3  ;;  %v4011_v0 = vpop.eup %4010  ;;  %vm1633_vm3 = vcmp.eq.s32.totalorder %v1632_v40, 1 }
 0x244   : > { %v1309_v58 = vadd.f32 0.5, %v1308_v57  ;;  %v1313_v1 = vmul.f32 0.5, %v4011_v0 }
 0x245   : > { %v1316_v61 = vmul.f32 %v4009_v6, %v1305_v5 }
 0x246   : > { %v1315_v62 = vmul.f32 %v1309_v58, %v4654_v2  ;;  %v1314_v4 = vadd.f32 0.5, %v1313_v1 }
 0x248   : > { %v1317_v63 = vadd.f32 %v1316_v61, %v1315_v62 }
 0x24a   : > { %4012 = vtanh.f32 %v1317_v63  ;;  %v4702_v59 = vsel %vm1324_vm2, %v1317_v63, %v4654_v2  ;;  %v4819_v2 = vld [vmem:[%s5270_s2 + $0xe4] ss:$16 sps:$4 sm:$0xff]  }
 0x254   : > { %v4013_v30 = vpop.eup %4012 }
 0x255   : > { %v1319_v9 = vmul.f32 %v4013_v30, %v1314_v4  ;;  %v4865_v4 = vld [vmem:[%s5270_s2 + $0x8] ss:$16 sps:$4 sm:$0xff]   ;;  %v4872_v30 = vld [vmem:[%s5270_s2 + $0x2c] ss:$16 sps:$4 sm:$0xff]  }
 0x257   : > { %v4705_v7 = vsel %vm1324_vm2, %v1319_v9, %v4657_v42  ;;  %v4877_v9 = vld [vmem:[%s5270_s2 + $0x28] ss:$16 sps:$4 sm:$0xff]  }
 0x258   : > { %1327 = vst [vmem:[#allocation5 + $0x8] sm:$0xff] %v4705_v7  ;;  %v1332_v22 = vpack.c.bf16 %v4705_v7, %v4705_v7 }
 0x25a   : > { %1558 = vmatmul.mubr.bf16.vlgmr.msra.gmra.mrb[20].mxu0 %v1332_v22  ;;  %1599 = vmatmul.mubr.bf16.vlgmr.msra.gmra.mrb[28].mxu1 %v1332_v22  ;;  %v4889_v22 = vld [vmem:[%s5270_s2 + $0x48] ss:$16 sps:$4 sm:$0xff]  }
 0x25b   : > { %1876 = vmatpush1.bf16.msra.mxu1 %v4434_v41  ;;  %1866 = vmatprep.mubr.bf16.mxu0 %v5302_v27  ;;  %v4730_v41 = vld [vmem:[%s5270_s2 + $0x4] ss:$16 sps:$4 sm:$0xff]  }
 0x25c   : > { %1877 = vmatprep.subr.bf16.mxu1 %v4442_v43  ;;  %1907 = vmatprep.mubr.bf16.mxu1 %v5302_v27  ;;  %v4735_v43 = vld [vmem:[%s5270_s2] ss:$16 sps:$4 sm:$0xff]  }
 0x25d   : > { %1834 = vmatprep.subr.bf16.mxu0 %v4730_v41 }
 0x25e   : > { %1835 = vmatpush1.bf16.msra.mxu0 %v4735_v43 }
 0x25f   : > { %1878 = vmatpush1.bf16.msra.mxu1 %v4451_v44  ;;  %v4742_v44 = vld [vmem:[%s5270_s2 + $0x24] ss:$16 sps:$4 sm:$0xff]  }
 0x260   : > { %1879 = vmatprep.subr.bf16.mxu1 %v4462_v45  ;;  %v4747_v45 = vld [vmem:[%s5270_s2 + $0x20] ss:$16 sps:$4 sm:$0xff]   ;;  %1836 = vmatprep.subr.bf16.mxu0 %v4742_v44 }
 0x262   : > { %1837 = vmatpush1.bf16.msra.mxu0 %v4747_v45 }
 0x263   : > { %1880 = vmatpush1.bf16.msra.mxu1 %v4470_v46  ;;  %v4754_v46 = vld [vmem:[%s5270_s2 + $0x44] ss:$16 sps:$4 sm:$0xff]  }
 0x264   : > { %1881 = vmatprep.subr.bf16.mxu1 %v4476_v47  ;;  %v4759_v47 = vld [vmem:[%s5270_s2 + $0x40] ss:$16 sps:$4 sm:$0xff]   ;;  %1838 = vmatprep.subr.bf16.mxu0 %v4754_v46 }
 0x266   : > { %1839 = vmatpush1.bf16.msra.mxu0 %v4759_v47 }
 0x267   : > { %1882 = vmatpush1.bf16.msra.mxu1 %v4486_v48  ;;  %v4766_v48 = vld [vmem:[%s5270_s2 + $0x64] ss:$16 sps:$4 sm:$0xff]  }
 0x268   : > { %1883 = vmatprep.subr.bf16.mxu1 %v4492_v49  ;;  %v4771_v49 = vld [vmem:[%s5270_s2 + $0x60] ss:$16 sps:$4 sm:$0xff]   ;;  %1840 = vmatprep.subr.bf16.mxu0 %v4766_v48 }
 0x26a   : > { %1841 = vmatpush1.bf16.msra.mxu0 %v4771_v49 }
 0x26b   : > { %1884 = vmatpush1.bf16.msra.mxu1 %v4500_v50  ;;  %v4778_v50 = vld [vmem:[%s5270_s2 + $0x84] ss:$16 sps:$4 sm:$0xff]  }
 0x26c   : > { %1885 = vmatprep.subr.bf16.mxu1 %v4506_v51  ;;  %v4783_v51 = vld [vmem:[%s5270_s2 + $0x80] ss:$16 sps:$4 sm:$0xff]   ;;  %1842 = vmatprep.subr.bf16.mxu0 %v4778_v50 }
 0x26e   : > { %1843 = vmatpush1.bf16.msra.mxu0 %v4783_v51 }
 0x26f   : > { %1886 = vmatpush1.bf16.msra.mxu1 %v4512_v52  ;;  %v4790_v52 = vld [vmem:[%s5270_s2 + $0xa4] ss:$16 sps:$4 sm:$0xff]  }
 0x270   : > { %1887 = vmatprep.subr.bf16.mxu1 %v4518_v53  ;;  %v4795_v53 = vld [vmem:[%s5270_s2 + $0xa0] ss:$16 sps:$4 sm:$0xff]   ;;  %1844 = vmatprep.subr.bf16.mxu0 %v4790_v52 }
 0x272   : > { %1845 = vmatpush1.bf16.msra.mxu0 %v4795_v53 }
 0x273   : > { %1888 = vmatpush1.bf16.msra.mxu1 %v4524_v54  ;;  %v4802_v54 = vld [vmem:[%s5270_s2 + $0xc4] ss:$16 sps:$4 sm:$0xff]  }
 0x274   : > { %1889 = vmatprep.subr.bf16.mxu1 %v4530_v55  ;;  %v4807_v55 = vld [vmem:[%s5270_s2 + $0xc0] ss:$16 sps:$4 sm:$0xff]   ;;  %1846 = vmatprep.subr.bf16.mxu0 %v4802_v54 }
 0x276   : > { %1847 = vmatpush1.bf16.msra.mxu0 %v4807_v55 }
 0x277   : > { %1890 = vmatpush1.bf16.msra.mxu1 %v4536_v56  ;;  %v4814_v56 = vld [vmem:[%s5270_s2 + $0xe0] ss:$16 sps:$4 sm:$0xff]   ;;  %1848 = vmatprep.subr.bf16.mxu0 %v4819_v2 }
 0x27a   : > { %1849 = vmatpush1.bf16.msra.mxu0 %v4814_v56 }
 0x27b   : > { %2143 = vmatprep.subr.bf16.mxu0 %v4730_v41 }
 0x32d   : > { %v1559_v34 = vpop.f32.mrb[20].mxu0  ;;  %v1600_v20 = vpop.f32.mrb[28].mxu1 }
 0x32e   : > { %v1607_v42 = vadd.f32 %v1559_v34, %v4613_v13  ;;  %v1609_v12 = vadd.f32 %v1600_v20, %v4580_v8  ;;  %v1561_v15 = vpop.f32.mrb[21].mxu0  ;;  %v1602_v16 = vpop.f32.mrb[29].mxu1  ;;  %v4896_v34 = vld [vmem:[%s5270_s2 + $0x6c] ss:$16 sps:$4 sm:$0xff]   ;;  %v4901_v20 = vld [vmem:[%s5270_s2 + $0x68] ss:$16 sps:$4 sm:$0xff]  }
 0x32f   : > { %v1608_v19 = vadd.f32 %v1561_v15, %v4615_v18  ;;  %v1610_v24 = vadd.f32 %v1602_v16, %v5303_v21  ;;  %v1563_v26 = vpop.f32.mrb[22].mxu0  ;;  %v1604_v28 = vpop.f32.mrb[30].mxu1  ;;  %v4920_v15 = vld [vmem:[%s5270_s2 + $0xac] ss:$16 sps:$4 sm:$0xff]   ;;  %v4925_v16 = vld [vmem:[%s5270_s2 + $0xa8] ss:$16 sps:$4 sm:$0xff]  }
 0x330   : > { %v1611_v29 = vmul.f32 0.5, %v1607_v42  ;;  %v1564_v31 = vpop.f32.mrb[23].mxu0  ;;  %v1605_v32 = vpop.f32.mrb[31].mxu1  ;;  %v4908_v42 = vld [vmem:[%s5270_s2 + $0x8c] ss:$16 sps:$4 sm:$0xff]  }
 0x331   : > { %v1615_v33 = vmul.f32 0.5, %v1608_v19  ;;  %v1620_v13 = vmul.f32 0.5, %v1610_v24  ;;  %v4932_v19 = vld [vmem:[%s5270_s2 + $0xcc] ss:$16 sps:$4 sm:$0xff]   ;;  %v4937_v21 = vld [vmem:[%s5270_s2 + $0xc8] ss:$16 sps:$4 sm:$0xff]  }
 0x332   : > { %4014 = vtanh.f32 %v1611_v29  ;;  %v4944_v24 = vld [vmem:[%s5270_s2 + $0xe8] ss:$16 sps:$4 sm:$0xff]   ;;  %v4949_v26 = vld [vmem:[%s5270_s2 + $0xec] ss:$16 sps:$4 sm:$0xff]  }
 0x333   : > { %4016 = vtanh.f32 %v1615_v33  ;;  %v5304_v31 = vld [vmem:[#allocation21_spill] sm:$0xff]  ;;  %v5305_v33 = vld [vmem:[#allocation14_spill] sm:$0xff] }
 0x334   : > { %4018 = vtanh.f32 %v1609_v12  ;;  %v4913_v12 = vld [vmem:[%s5270_s2 + $0x88] ss:$16 sps:$4 sm:$0xff]  }
 0x335   : > { %4020 = vtanh.f32 %v1620_v13 }
 0x33c   : > { %v4015_v35 = vpop.eup %4014 }
 0x33d   : > { %v4017_v8 = vpop.eup %4016  ;;  %v1613_v36 = vmul.f32 0.5, %v4015_v35 }
 0x33e   : > { %v1617_v37 = vmul.f32 0.5, %v4017_v8  ;;  %v4019_v38 = vpop.eup %4018 }
 0x33f   : > { %v1614_v18 = vadd.f32 0.5, %v1613_v36  ;;  %v4021_v58 = vpop.eup %4020  ;;  %v5306_v36 = vld [vmem:[#allocation23_spill] sm:$0xff] }
 0x340   : > { %v1618_v39 = vadd.f32 0.5, %v1617_v37  ;;  %v1622_v11 = vmul.f32 0.5, %v4021_v58 }
 0x341   : > { %v1625_v3 = vmul.f32 %v4019_v38, %v1614_v18  ;;  %v5307_v18 = vld [vmem:[#allocation15_spill] sm:$0xff] }
 0x342   : > { %v1624_v57 = vmul.f32 %v1618_v39, %v4702_v59  ;;  %v1623_v61 = vadd.f32 0.5, %v1622_v11 }
 0x344   : > { %v1626_v5 = vadd.f32 %v1625_v3, %v1624_v57 }
 0x346   : > { %4022 = vtanh.f32 %v1626_v5  ;;  %v4831_v6 = vsel %vm1633_vm3, %v1626_v5, %v4702_v59  ;;  %v4860_v59 = vld [vmem:[%s5270_s2 + $0xc] ss:$16 sps:$4 sm:$0xff]  }
 0x347   : > { %2184 = vmatprep.subr.bf16.mxu1 %v4860_v59 }
 0x350   : > { %v4023_v62 = vpop.eup %4022 }
 0x351   : > { %v1628_v63 = vmul.f32 %v4023_v62, %v1623_v61 }
 0x353   : > { %v4834_v0 = vsel %vm1633_vm3, %v1628_v63, %v4705_v7  ;;  %v4884_v7 = vld [vmem:[%s5270_s2 + $0x4c] ss:$16 sps:$4 sm:$0xff]  }
 0x354   : > { %1636 = vst [vmem:[#allocation5 + $0x10] sm:$0xff] %v4834_v0  ;;  %v1641_v1 = vpack.c.bf16 %v4834_v0, %v4834_v0 }
 0x356   : > { %1867 = vmatmul.mubr.bf16.vlgmr.msra.gmra.mrb[24].mxu0 %v1641_v1  ;;  %1908 = vmatmul.mubr.bf16.vlgmr.msra.gmra.mrb[32].mxu1 %v1641_v1 }
 0x357   : > { %2144 = vmatpush1.bf16.msra.mxu0 %v4735_v43  ;;  %2175 = vmatprep.mubr.bf16.mxu0 %v5302_v27 }
 0x358   : > { %2145 = vmatprep.subr.bf16.mxu0 %v4742_v44  ;;  %2216 = vmatprep.mubr.bf16.mxu1 %v5302_v27 }
 0x359   : > { %2185 = vmatpush1.bf16.msra.mxu1 %v4865_v4 }
 0x35a   : > { %2186 = vmatprep.subr.bf16.mxu1 %v4872_v30 }
 0x35b   : > { %2146 = vmatpush1.bf16.msra.mxu0 %v4747_v45 }
 0x35c   : > { %2147 = vmatprep.subr.bf16.mxu0 %v4754_v46 }
 0x35d   : > { %2187 = vmatpush1.bf16.msra.mxu1 %v4877_v9 }
 0x35e   : > { %2188 = vmatprep.subr.bf16.mxu1 %v4884_v7 }
 0x35f   : > { %2148 = vmatpush1.bf16.msra.mxu0 %v4759_v47 }
 0x360   : > { %2149 = vmatprep.subr.bf16.mxu0 %v4766_v48 }
 0x361   : > { %2189 = vmatpush1.bf16.msra.mxu1 %v4889_v22 }
 0x362   : > { %2190 = vmatprep.subr.bf16.mxu1 %v4896_v34 }
 0x363   : > { %2150 = vmatpush1.bf16.msra.mxu0 %v4771_v49 }
 0x364   : > { %2151 = vmatprep.subr.bf16.mxu0 %v4778_v50 }
 0x365   : > { %2191 = vmatpush1.bf16.msra.mxu1 %v4901_v20 }
 0x366   : > { %2192 = vmatprep.subr.bf16.mxu1 %v4908_v42 }
 0x367   : > { %2152 = vmatpush1.bf16.msra.mxu0 %v4783_v51 }
 0x368   : > { %2153 = vmatprep.subr.bf16.mxu0 %v4790_v52 }
 0x369   : > { %2193 = vmatpush1.bf16.msra.mxu1 %v4913_v12 }
 0x36a   : > { %2194 = vmatprep.subr.bf16.mxu1 %v4920_v15 }
 0x36b   : > { %2154 = vmatpush1.bf16.msra.mxu0 %v4795_v53 }
 0x36c   : > { %2155 = vmatprep.subr.bf16.mxu0 %v4802_v54 }
 0x36d   : > { %2195 = vmatpush1.bf16.msra.mxu1 %v4925_v16 }
 0x36e   : > { %2196 = vmatprep.subr.bf16.mxu1 %v4932_v19 }
 0x36f   : > { %2156 = vmatpush1.bf16.msra.mxu0 %v4807_v55 }
 0x370   : > { %2157 = vmatprep.subr.bf16.mxu0 %v4819_v2 }
 0x371   : > { %2197 = vmatpush1.bf16.msra.mxu1 %v4937_v21 }
 0x372   : > { %2198 = vmatprep.subr.bf16.mxu1 %v4949_v26 }
 0x373   : > { %2158 = vmatpush1.bf16.msra.mxu0 %v4814_v56 }
 0x374   : > { %2452 = vmatprep.subr.bf16.mxu0 %v4730_v41 }
 0x375   : > { %2199 = vmatpush1.bf16.msra.mxu1 %v4944_v24 }
 0x376   : > { %2493 = vmatprep.subr.bf16.mxu1 %v4860_v59 }
 0x429   : > { %v1868_v28 = vpop.f32.mrb[24].mxu0  ;;  %v1909_v29 = vpop.f32.mrb[32].mxu1 }
 0x42a   : > { %v1916_v32 = vadd.f32 %v1868_v28, %v5304_v31  ;;  %v1918_v13 = vadd.f32 %v1909_v29, %v5305_v33  ;;  %v1870_v35 = vpop.f32.mrb[25].mxu0  ;;  %v1911_v8 = vpop.f32.mrb[33].mxu1  ;;  %v1941_v33 = vstv %s1940_s25 }
 0x42b   : > { %v1917_v37 = vadd.f32 %v1870_v35, %v5306_v36  ;;  %v1919_v38 = vadd.f32 %v1911_v8, %v5307_v18  ;;  %v1872_v39 = vpop.f32.mrb[26].mxu0  ;;  %v1913_v40 = vpop.f32.mrb[34].mxu1  ;;  %vm1942_vm4 = vcmp.eq.s32.totalorder %v1941_v33, 1 }
 0x42c   : > { %v1920_v3 = vmul.f32 0.5, %v1916_v32  ;;  %v1873_v57 = vpop.f32.mrb[27].mxu0  ;;  %v1914_v5 = vpop.f32.mrb[35].mxu1 }
 0x42d   : > { %v1924_v58 = vmul.f32 0.5, %v1917_v37  ;;  %v1929_v11 = vmul.f32 0.5, %v1919_v38  ;;  %v5308_v57 = vld [vmem:[#allocation26_spill] sm:$0xff] }
 0x42e   : > { %4024 = vtanh.f32 %v1920_v3 }
 0x42f   : > { %4026 = vtanh.f32 %v1924_v58  ;;  %v5309_v58 = vld [vmem:[#allocation16_spill] sm:$0xff] }
 0x430   : > { %4028 = vtanh.f32 %v1918_v13 }
 0x431   : > { %4030 = vtanh.f32 %v1929_v11 }
 0x438   : > { %v4025_v61 = vpop.eup %4024 }
 0x439   : > { %v4027_v62 = vpop.eup %4026  ;;  %v1922_v63 = vmul.f32 0.5, %v4025_v61 }
 0x43a   : > { %v1926_v1 = vmul.f32 0.5, %v4027_v62  ;;  %v4029_v29 = vpop.eup %4028 }
 0x43b   : > { %v1923_v28 = vadd.f32 0.5, %v1922_v63  ;;  %v4031_v36 = vpop.eup %4030  ;;  %v5310_v63 = vld [vmem:[#allocation27_spill] sm:$0xff] }
 0x43c   : > { %v1927_v31 = vadd.f32 0.5, %v1926_v1  ;;  %v1931_v37 = vmul.f32 0.5, %v4031_v36 }
 0x43d   : > { %v1934_v32 = vmul.f32 %v4029_v29, %v1923_v28  ;;  %v5311_v28 = vld [vmem:[#allocation17_spill] sm:$0xff] }
 0x43e   : > { %v1933_v35 = vmul.f32 %v1927_v31, %v4831_v6  ;;  %v1932_v18 = vadd.f32 0.5, %v1931_v37 }
 0x440   : > { %v1935_v8 = vadd.f32 %v1934_v32, %v1933_v35 }
 0x442   : > { %4032 = vtanh.f32 %v1935_v8  ;;  %v4961_v13 = vsel %vm1942_vm4, %v1935_v8, %v4831_v6 }
 0x44c   : > { %v4033_v38 = vpop.eup %4032 }
 0x44d   : > { %v1937_v39 = vmul.f32 %v4033_v38, %v1932_v18 }
 0x44f   : > { %v4964_v40 = vsel %vm1942_vm4, %v1937_v39, %v4834_v0 }
 0x450   : > { %1945 = vst [vmem:[#allocation5 + $0x18] sm:$0xff] %v4964_v40  ;;  %v1950_v3 = vpack.c.bf16 %v4964_v40, %v4964_v40 }
 0x452   : > { %2176 = vmatmul.mubr.bf16.vlgmr.msra.gmra.mrb[28].mxu0 %v1950_v3  ;;  %2217 = vmatmul.mubr.bf16.vlgmr.msra.gmra.mrb[36].mxu1 %v1950_v3 }
 0x453   : > { %2453 = vmatpush1.bf16.msra.mxu0 %v4735_v43  ;;  %2494 = vmatpush1.bf16.msra.mxu1 %v4865_v4 }
 0x454   : > { %2454 = vmatprep.subr.bf16.mxu0 %v4742_v44  ;;  %2495 = vmatprep.subr.bf16.mxu1 %v4872_v30 }
 0x455   : > { %2484 = vmatprep.mubr.bf16.mxu0 %v5302_v27  ;;  %2525 = vmatprep.mubr.bf16.mxu1 %v5302_v27 }
 0x457   : > { %2455 = vmatpush1.bf16.msra.mxu0 %v4747_v45  ;;  %2496 = vmatpush1.bf16.msra.mxu1 %v4877_v9 }
 0x458   : > { %2456 = vmatprep.subr.bf16.mxu0 %v4754_v46  ;;  %2497 = vmatprep.subr.bf16.mxu1 %v4884_v7 }
 0x45b   : > { %2457 = vmatpush1.bf16.msra.mxu0 %v4759_v47  ;;  %2498 = vmatpush1.bf16.msra.mxu1 %v4889_v22 }
 0x45c   : > { %2458 = vmatprep.subr.bf16.mxu0 %v4766_v48  ;;  %2499 = vmatprep.subr.bf16.mxu1 %v4896_v34 }
 0x45f   : > { %2459 = vmatpush1.bf16.msra.mxu0 %v4771_v49  ;;  %2500 = vmatpush1.bf16.msra.mxu1 %v4901_v20 }
 0x460   : > { %2460 = vmatprep.subr.bf16.mxu0 %v4778_v50  ;;  %2501 = vmatprep.subr.bf16.mxu1 %v4908_v42 }
 0x463   : > { %2461 = vmatpush1.bf16.msra.mxu0 %v4783_v51  ;;  %2502 = vmatpush1.bf16.msra.mxu1 %v4913_v12 }
 0x464   : > { %2462 = vmatprep.subr.bf16.mxu0 %v4790_v52  ;;  %2503 = vmatprep.subr.bf16.mxu1 %v4920_v15 }
 0x467   : > { %2463 = vmatpush1.bf16.msra.mxu0 %v4795_v53  ;;  %2504 = vmatpush1.bf16.msra.mxu1 %v4925_v16 }
 0x468   : > { %2464 = vmatprep.subr.bf16.mxu0 %v4802_v54  ;;  %2505 = vmatprep.subr.bf16.mxu1 %v4932_v19 }
 0x46b   : > { %2465 = vmatpush1.bf16.msra.mxu0 %v4807_v55  ;;  %2506 = vmatpush1.bf16.msra.mxu1 %v4937_v21 }
 0x46c   : > { %2466 = vmatprep.subr.bf16.mxu0 %v4819_v2  ;;  %2507 = vmatprep.subr.bf16.mxu1 %v4949_v26 }
 0x46f   : > { %2467 = vmatpush1.bf16.msra.mxu0 %v4814_v56  ;;  %2508 = vmatpush1.bf16.msra.mxu1 %v4944_v24 }
 0x470   : > { %2761 = vmatprep.subr.bf16.mxu0 %v4730_v41  ;;  %2802 = vmatprep.subr.bf16.mxu1 %v4860_v59 }
 0x525   : > { %v2177_v6 = vpop.f32.mrb[28].mxu0  ;;  %v2218_v0 = vpop.f32.mrb[36].mxu1 }
 0x526   : > { %v2225_v5 = vadd.f32 %v2177_v6, %v5308_v57  ;;  %v2227_v11 = vadd.f32 %v2218_v0, %v5309_v58  ;;  %v2179_v61 = vpop.f32.mrb[29].mxu0  ;;  %v2220_v62 = vpop.f32.mrb[37].mxu1  ;;  %v2250_v57 = vstv %s2249_s27 }
 0x527   : > { %v2226_v1 = vadd.f32 %v2179_v61, %v5310_v63  ;;  %v2228_v29 = vadd.f32 %v2220_v62, %v5311_v28  ;;  %v2181_v31 = vpop.f32.mrb[30].mxu0  ;;  %v2222_v33 = vpop.f32.mrb[38].mxu1  ;;  %vm2251_vm5 = vcmp.eq.s32.totalorder %v2250_v57, 1 }
 0x528   : > { %v2229_v32 = vmul.f32 0.5, %v2225_v5  ;;  %v2182_v35 = vpop.f32.mrb[31].mxu0  ;;  %v2223_v41 = vpop.f32.mrb[39].mxu1 }
 0x529   : > { %v2233_v8 = vmul.f32 0.5, %v2226_v1  ;;  %v2238_v36 = vmul.f32 0.5, %v2228_v29 }
 0x52a   : > { %4034 = vtanh.f32 %v2229_v32 }
 0x52b   : > { %4036 = vtanh.f32 %v2233_v8 }
 0x52c   : > { %4038 = vtanh.f32 %v2227_v11 }
 0x52d   : > { %4040 = vtanh.f32 %v2238_v36  ;;  %v2559_v36 = vstv %s2558_s29 }
 0x52e   : > { %vm2560_vm6 = vcmp.eq.s32.totalorder %v2559_v36, 1 }
 0x534   : > { %v4035_v37 = vpop.eup %4034 }
 0x535   : > { %v4037_v18 = vpop.eup %4036  ;;  %v2231_v38 = vmul.f32 0.5, %v4035_v37 }
 0x536   : > { %v2235_v39 = vmul.f32 0.5, %v4037_v18  ;;  %v4039_v6 = vpop.eup %4038 }
 0x537   : > { %v2232_v3 = vadd.f32 0.5, %v2231_v38  ;;  %v4041_v62 = vpop.eup %4040 }
 0x538   : > { %v2236_v0 = vadd.f32 0.5, %v2235_v39  ;;  %v2240_v63 = vmul.f32 0.5, %v4041_v62 }
 0x539   : > { %v2243_v5 = vmul.f32 %v4039_v6, %v2232_v3 }
 0x53a   : > { %v2242_v58 = vmul.f32 %v2236_v0, %v4961_v13  ;;  %v2241_v1 = vadd.f32 0.5, %v2240_v63 }
 0x53c   : > { %v2244_v61 = vadd.f32 %v2243_v5, %v2242_v58 }
 0x53e   : > { %4042 = vtanh.f32 %v2244_v61  ;;  %v5010_v11 = vsel %vm2251_vm5, %v2244_v61, %v4961_v13 }
 0x548   : > { %v4043_v28 = vpop.eup %4042 }
 0x549   : > { %v2246_v29 = vmul.f32 %v4043_v28, %v2241_v1  ;;  %v5314_v1 = vld [vmem:[#allocation20_spill] sm:$0xff] }
 0x54b   : > { %v5013_v31 = vsel %vm2251_vm5, %v2246_v29, %v4964_v40 }
 0x54c   : > { %2254 = vst [vmem:[#allocation5 + $0x20] sm:$0xff] %v5013_v31  ;;  %v2259_v33 = vpack.c.bf16 %v5013_v31, %v5013_v31 }
 0x54e   : > { %2485 = vmatmul.mubr.bf16.vlgmr.msra.gmra.mrb[32].mxu0 %v2259_v33  ;;  %2526 = vmatmul.mubr.bf16.vlgmr.msra.gmra.mrb[40].mxu1 %v2259_v33 }
 0x54f   : > { %2762 = vmatpush1.bf16.msra.mxu0 %v4735_v43  ;;  %2803 = vmatpush1.bf16.msra.mxu1 %v4865_v4 }
 0x550   : > { %2763 = vmatprep.subr.bf16.mxu0 %v4742_v44  ;;  %2804 = vmatprep.subr.bf16.mxu1 %v4872_v30 }
 0x551   : > { %2793 = vmatprep.mubr.bf16.mxu0 %v5302_v27  ;;  %2834 = vmatprep.mubr.bf16.mxu1 %v5302_v27 }
 0x553   : > { %2764 = vmatpush1.bf16.msra.mxu0 %v4747_v45  ;;  %2805 = vmatpush1.bf16.msra.mxu1 %v4877_v9 }
 0x554   : > { %2765 = vmatprep.subr.bf16.mxu0 %v4754_v46  ;;  %2806 = vmatprep.subr.bf16.mxu1 %v4884_v7  ;;  %v5312_v46 = vld [vmem:[#allocation18_spill] sm:$0xff] }
 0x557   : > { %2766 = vmatpush1.bf16.msra.mxu0 %v4759_v47  ;;  %2807 = vmatpush1.bf16.msra.mxu1 %v4889_v22 }
 0x558   : > { %2767 = vmatprep.subr.bf16.mxu0 %v4766_v48  ;;  %2808 = vmatprep.subr.bf16.mxu1 %v4896_v34 }
 0x55b   : > { %2768 = vmatpush1.bf16.msra.mxu0 %v4771_v49  ;;  %2809 = vmatpush1.bf16.msra.mxu1 %v4901_v20 }
 0x55c   : > { %2769 = vmatprep.subr.bf16.mxu0 %v4778_v50  ;;  %2810 = vmatprep.subr.bf16.mxu1 %v4908_v42 }
 0x55f   : > { %2770 = vmatpush1.bf16.msra.mxu0 %v4783_v51  ;;  %2811 = vmatpush1.bf16.msra.mxu1 %v4913_v12  ;;  %v5313_v51 = vld [vmem:[#allocation19_spill] sm:$0xff] }
 0x560   : > { %2771 = vmatprep.subr.bf16.mxu0 %v4790_v52  ;;  %2812 = vmatprep.subr.bf16.mxu1 %v4920_v15 }
 0x563   : > { %2772 = vmatpush1.bf16.msra.mxu0 %v4795_v53  ;;  %2813 = vmatpush1.bf16.msra.mxu1 %v4925_v16 }
 0x564   : > { %2773 = vmatprep.subr.bf16.mxu0 %v4802_v54  ;;  %2814 = vmatprep.subr.bf16.mxu1 %v4932_v19 }
 0x567   : > { %2774 = vmatpush1.bf16.msra.mxu0 %v4807_v55  ;;  %2815 = vmatpush1.bf16.msra.mxu1 %v4937_v21 }
 0x568   : > { %2775 = vmatprep.subr.bf16.mxu0 %v4819_v2  ;;  %2816 = vmatprep.subr.bf16.mxu1 %v4949_v26 }
 0x56b   : > { %2776 = vmatpush1.bf16.msra.mxu0 %v4814_v56  ;;  %2817 = vmatpush1.bf16.msra.mxu1 %v4944_v24 }
 0x56c   : > { %3111 = vmatprep.subr.bf16.mxu1 %v4860_v59 }
 0x621   : > { %v2486_v43 = vpop.f32.mrb[32].mxu0  ;;  %v2527_v44 = vpop.f32.mrb[40].mxu1 }
 0x622   : > { %v2534_v45 = vadd.f32 %v2486_v43, %v4637_v60  ;;  %v2536_v47 = vadd.f32 %v2527_v44, %v5312_v46  ;;  %v2488_v48 = vpop.f32.mrb[33].mxu0  ;;  %v2529_v49 = vpop.f32.mrb[41].mxu1  ;;  %v5315_v43 = vld [vmem:[#allocation22_spill] sm:$0xff] }
 0x623   : > { %v2535_v50 = vadd.f32 %v2488_v48, %v4639_v10  ;;  %v2537_v52 = vadd.f32 %v2529_v49, %v5313_v51  ;;  %v2490_v53 = vpop.f32.mrb[34].mxu0  ;;  %v2531_v54 = vpop.f32.mrb[42].mxu1 }
 0x624   : > { %v2538_v55 = vmul.f32 0.5, %v2534_v45  ;;  %v2491_v56 = vpop.f32.mrb[35].mxu0  ;;  %v2532_v2 = vpop.f32.mrb[43].mxu1 }
 0x625   : > { %v2542_v13 = vmul.f32 0.5, %v2535_v50  ;;  %v2547_v60 = vmul.f32 0.5, %v2537_v52  ;;  %v2868_v2 = vstv %s2867_s21 }
 0x626   : > { %4044 = vtanh.f32 %v2538_v55  ;;  %vm2869_vm7 = vcmp.eq.s32.totalorder %v2868_v2, 1 }
 0x627   : > { %4046 = vtanh.f32 %v2542_v13 }
 0x628   : > { %4048 = vtanh.f32 %v2536_v47 }
 0x629   : > { %4050 = vtanh.f32 %v2547_v60 }
 0x630   : > { %v4045_v59 = vpop.eup %4044 }
 0x631   : > { %v4047_v40 = vpop.eup %4046  ;;  %v2540_v32 = vmul.f32 0.5, %v4045_v59 }
 0x632   : > { %v2544_v35 = vmul.f32 0.5, %v4047_v40  ;;  %v4049_v41 = vpop.eup %4048 }
 0x633   : > { %v2541_v10 = vadd.f32 0.5, %v2540_v32  ;;  %v4051_v3 = vpop.eup %4050 }
 0x634   : > { %v2545_v8 = vadd.f32 0.5, %v2544_v35  ;;  %v2549_v6 = vmul.f32 0.5, %v4051_v3 }
 0x635   : > { %v2552_v37 = vmul.f32 %v4049_v41, %v2541_v10 }
 0x636   : > { %v2551_v18 = vmul.f32 %v2545_v8, %v5010_v11  ;;  %v2550_v0 = vadd.f32 0.5, %v2549_v6  ;;  %v5316_v6 = vld [vmem:[#allocation24_spill] sm:$0xff] }
 0x638   : > { %v2553_v38 = vadd.f32 %v2552_v37, %v2551_v18 }
 0x63a   : > { %4052 = vtanh.f32 %v2553_v38  ;;  %v5058_v39 = vsel %vm2560_vm6, %v2553_v38, %v5010_v11 }
 0x644   : > { %v4053_v57 = vpop.eup %4052 }
 0x645   : > { %v2555_v5 = vmul.f32 %v4053_v57, %v2550_v0 }
 0x647   : > { %v5061_v58 = vsel %vm2560_vm6, %v2555_v5, %v5013_v31 }
 0x648   : > { %2563 = vst [vmem:[#allocation5 + $0x28] sm:$0xff] %v5061_v58  ;;  %v2568_v61 = vpack.c.bf16 %v5061_v58, %v5061_v58 }
 0x64a   : > { %2794 = vmatmul.mubr.bf16.vlgmr.msra.gmra.mrb[36].mxu0 %v2568_v61  ;;  %2835 = vmatmul.mubr.bf16.vlgmr.msra.gmra.mrb[44].mxu1 %v2568_v61  ;;  %v5317_v61 = vld [vmem:[#allocation25_spill] sm:$0xff] }
 0x64b   : > { %3112 = vmatpush1.bf16.msra.mxu1 %v4865_v4  ;;  %3102 = vmatprep.mubr.bf16.mxu0 %v5302_v27  ;;  %v3970_v4 = vld [vmem:[%s5270_s2] ss:$16 sps:$4 sm:$0xff]  }
 0x64c   : > { %3113 = vmatprep.subr.bf16.mxu1 %v4872_v30  ;;  %3143 = vmatprep.mubr.bf16.mxu1 %v5302_v27  ;;  %v3972_v27 = vld [vmem:[%s5270_s2 + $0x4] ss:$16 sps:$4 sm:$0xff]  }
 0x64d   : > { %3070 = vmatprep.subr.bf16.mxu0 %v3972_v27  ;;  %v3975_v30 = vld [vmem:[%s5270_s2 + $0x24] ss:$16 sps:$4 sm:$0xff]  }
 0x64e   : > { %3071 = vmatpush1.bf16.msra.mxu0 %v3970_v4 }
 0x64f   : > { %3114 = vmatpush1.bf16.msra.mxu1 %v4877_v9  ;;  %v3973_v9 = vld [vmem:[%s5270_s2 + $0x20] ss:$16 sps:$4 sm:$0xff]   ;;  %3072 = vmatprep.subr.bf16.mxu0 %v3975_v30 }
 0x650   : > { %3115 = vmatprep.subr.bf16.mxu1 %v4884_v7  ;;  %v3978_v7 = vld [vmem:[%s5270_s2 + $0x44] ss:$16 sps:$4 sm:$0xff]  }
 0x652   : > { %3073 = vmatpush1.bf16.msra.mxu0 %v3973_v9 }
 0x653   : > { %3116 = vmatpush1.bf16.msra.mxu1 %v4889_v22  ;;  %v3976_v22 = vld [vmem:[%s5270_s2 + $0x40] ss:$16 sps:$4 sm:$0xff]   ;;  %3074 = vmatprep.subr.bf16.mxu0 %v3978_v7 }
 0x654   : > { %3117 = vmatprep.subr.bf16.mxu1 %v4896_v34  ;;  %v3981_v34 = vld [vmem:[%s5270_s2 + $0x64] ss:$16 sps:$4 sm:$0xff]  }
 0x656   : > { %3075 = vmatpush1.bf16.msra.mxu0 %v3976_v22 }
 0x657   : > { %3118 = vmatpush1.bf16.msra.mxu1 %v4901_v20  ;;  %v3979_v20 = vld [vmem:[%s5270_s2 + $0x60] ss:$16 sps:$4 sm:$0xff]   ;;  %3076 = vmatprep.subr.bf16.mxu0 %v3981_v34 }
 0x658   : > { %3119 = vmatprep.subr.bf16.mxu1 %v4908_v42  ;;  %v3984_v42 = vld [vmem:[%s5270_s2 + $0x84] ss:$16 sps:$4 sm:$0xff]  }
 0x65a   : > { %3077 = vmatpush1.bf16.msra.mxu0 %v3979_v20 }
 0x65b   : > { %3120 = vmatpush1.bf16.msra.mxu1 %v4913_v12  ;;  %v3982_v12 = vld [vmem:[%s5270_s2 + $0x80] ss:$16 sps:$4 sm:$0xff]   ;;  %3078 = vmatprep.subr.bf16.mxu0 %v3984_v42 }
 0x65c   : > { %3121 = vmatprep.subr.bf16.mxu1 %v4920_v15  ;;  %v3987_v15 = vld [vmem:[%s5270_s2 + $0xa4] ss:$16 sps:$4 sm:$0xff]  }
 0x65e   : > { %3079 = vmatpush1.bf16.msra.mxu0 %v3982_v12 }
 0x65f   : > { %3122 = vmatpush1.bf16.msra.mxu1 %v4925_v16  ;;  %v3985_v16 = vld [vmem:[%s5270_s2 + $0xa0] ss:$16 sps:$4 sm:$0xff]   ;;  %3080 = vmatprep.subr.bf16.mxu0 %v3987_v15 }
 0x660   : > { %3123 = vmatprep.subr.bf16.mxu1 %v4932_v19  ;;  %v3990_v19 = vld [vmem:[%s5270_s2 + $0xc4] ss:$16 sps:$4 sm:$0xff]  }
 0x662   : > { %3081 = vmatpush1.bf16.msra.mxu0 %v3985_v16 }
 0x663   : > { %3124 = vmatpush1.bf16.msra.mxu1 %v4937_v21  ;;  %v3988_v21 = vld [vmem:[%s5270_s2 + $0xc0] ss:$16 sps:$4 sm:$0xff]   ;;  %3082 = vmatprep.subr.bf16.mxu0 %v3990_v19  ;;  %v3177_v19 = vstv %s3176_s12 }
 0x664   : > { %3125 = vmatprep.subr.bf16.mxu1 %v4949_v26  ;;  %v3993_v26 = vld [vmem:[%s5270_s2 + $0xe4] ss:$16 sps:$4 sm:$0xff]   ;;  %vm3178_vm8 = vcmp.eq.s32.totalorder %v3177_v19, 1 }
 0x666   : > { %3083 = vmatpush1.bf16.msra.mxu0 %v3988_v21 }
 0x667   : > { %3126 = vmatpush1.bf16.msra.mxu1 %v4944_v24  ;;  %v3991_v24 = vld [vmem:[%s5270_s2 + $0xe0] ss:$16 sps:$4 sm:$0xff]   ;;  %3084 = vmatprep.subr.bf16.mxu0 %v3993_v26 }
 0x66a   : > { %3085 = vmatpush1.bf16.msra.mxu0 %v3991_v24 }
 0x71d   : > { %v2795_v11 = vpop.f32.mrb[36].mxu0  ;;  %v2836_v62 = vpop.f32.mrb[44].mxu1 }
 0x71e   : > { %v2843_v63 = vadd.f32 %v2795_v11, %v4641_v23  ;;  %v2845_v28 = vadd.f32 %v2836_v62, %v5314_v1  ;;  %v2797_v29 = vpop.f32.mrb[37].mxu0  ;;  %v2838_v31 = vpop.f32.mrb[45].mxu1 }
 0x71f   : > { %v2844_v33 = vadd.f32 %v2797_v29, %v4643_v25  ;;  %v2846_v44 = vadd.f32 %v2838_v31, %v5315_v43  ;;  %v2799_v45 = vpop.f32.mrb[38].mxu0  ;;  %v2840_v46 = vpop.f32.mrb[46].mxu1 }
 0x720   : > { %v2847_v47 = vmul.f32 0.5, %v2843_v63  ;;  %v2800_v48 = vpop.f32.mrb[39].mxu0  ;;  %v2841_v49 = vpop.f32.mrb[47].mxu1 }
 0x721   : > { %v2851_v50 = vmul.f32 0.5, %v2844_v33  ;;  %v2856_v23 = vmul.f32 0.5, %v2846_v44 }
 0x722   : > { %4054 = vtanh.f32 %v2847_v47 }
 0x723   : > { %4056 = vtanh.f32 %v2851_v50 }
 0x724   : > { %4058 = vtanh.f32 %v2845_v28 }
 0x725   : > { %4060 = vtanh.f32 %v2856_v23 }
 0x72c   : > { %v4055_v51 = vpop.eup %4054 }
 0x72d   : > { %v4057_v52 = vpop.eup %4056  ;;  %v2849_v53 = vmul.f32 0.5, %v4055_v51 }
 0x72e   : > { %v2853_v54 = vmul.f32 0.5, %v4057_v52  ;;  %v4059_v55 = vpop.eup %4058 }
 0x72f   : > { %v2850_v25 = vadd.f32 0.5, %v2849_v53  ;;  %v4061_v32 = vpop.eup %4060 }
 0x730   : > { %v2854_v56 = vadd.f32 0.5, %v2853_v54  ;;  %v2858_v35 = vmul.f32 0.5, %v4061_v32 }
 0x731   : > { %v2861_v13 = vmul.f32 %v4059_v55, %v2850_v25 }
 0x732   : > { %v2860_v60 = vmul.f32 %v2854_v56, %v5058_v39  ;;  %v2859_v10 = vadd.f32 0.5, %v2858_v35 }
 0x734   : > { %v2862_v59 = vadd.f32 %v2861_v13, %v2860_v60 }
 0x736   : > { %4062 = vtanh.f32 %v2862_v59  ;;  %v2871_v40 = vsel %vm2869_vm7, %v2862_v59, %v5058_v39 }
 0x740   : > { %v4063_v41 = vpop.eup %4062 }
 0x741   : > { %v2864_v8 = vmul.f32 %v4063_v41, %v2859_v10 }
 0x743   : > { %v2870_v36 = vsel %vm2869_vm7, %v2864_v8, %v5061_v58 }
 0x744   : > { %2872 = vst [vmem:[#allocation5 + $0x30] sm:$0xff] %v2870_v36  ;;  %v2877_v37 = vpack.c.bf16 %v2870_v36, %v2870_v36 }
 0x746   : > { %3103 = vmatmul.mubr.bf16.vlgmr.msra.gmra.mrb[40].mxu0 %v2877_v37  ;;  %3144 = vmatmul.mubr.bf16.vlgmr.msra.gmra.mrb[48].mxu1 %v2877_v37 }
 0x819   : > { %v3104_v18 = vpop.f32.mrb[40].mxu0  ;;  %v3145_v38 = vpop.f32.mrb[48].mxu1 }
 0x81a   : > { %v3152_v3 = vadd.f32 %v3104_v18, %v4645_v14  ;;  %v3154_v0 = vadd.f32 %v3145_v38, %v5316_v6  ;;  %v3106_v57 = vpop.f32.mrb[41].mxu0  ;;  %v3147_v39 = vpop.f32.mrb[49].mxu1 }
 0x81b   : > { %v3153_v5 = vadd.f32 %v3106_v57, %v4647_v17  ;;  %v3155_v27 = vadd.f32 %v3147_v39, %v5317_v61  ;;  %v3108_v4 = vpop.f32.mrb[42].mxu0  ;;  %v3149_v30 = vpop.f32.mrb[50].mxu1 }
 0x81c   : > { %v3156_v58 = vmul.f32 0.5, %v3152_v3  ;;  %v3109_v9 = vpop.f32.mrb[43].mxu0  ;;  %v3150_v7 = vpop.f32.mrb[51].mxu1 }
 0x81d   : > { %v3160_v22 = vmul.f32 0.5, %v3153_v5  ;;  %v3165_v14 = vmul.f32 0.5, %v3155_v27 }
 0x81e   : > { %4064 = vtanh.f32 %v3156_v58 }
 0x81f   : > { %4066 = vtanh.f32 %v3160_v22 }
 0x820   : > { %4068 = vtanh.f32 %v3154_v0 }
 0x821   : > { %4070 = vtanh.f32 %v3165_v14 }
 0x828   : > { %v4065_v34 = vpop.eup %4064 }
 0x829   : > { %v4067_v20 = vpop.eup %4066  ;;  %v3158_v42 = vmul.f32 0.5, %v4065_v34 }
 0x82a   : > { %v3162_v12 = vmul.f32 0.5, %v4067_v20  ;;  %v4069_v15 = vpop.eup %4068 }
 0x82b   : > { %v3159_v17 = vadd.f32 0.5, %v3158_v42  ;;  %v4071_v62 = vpop.eup %4070 }
 0x82c   : > { %v3163_v16 = vadd.f32 0.5, %v3162_v12  ;;  %v3167_v63 = vmul.f32 0.5, %v4071_v62 }
 0x82d   : > { %v3170_v21 = vmul.f32 %v4069_v15, %v3159_v17 }
 0x82e   : > { %v3169_v24 = vmul.f32 %v3163_v16, %v2871_v40  ;;  %v3168_v1 = vadd.f32 0.5, %v3167_v63 }
 0x830   : > { %v3171_v26 = vadd.f32 %v3170_v21, %v3169_v24 }
 0x832   : > { %4072 = vtanh.f32 %v3171_v26  ;;  %v3180_v11 = vsel %vm3178_vm8, %v3171_v26, %v2871_v40 }
 0x833   : > { %3183 = vst [vmem:[#allocation4] sm:$0xff] %v3180_v11  ;;  %3189 = vst [vmem:[#allocation8] sm:$0xff] (!%p3799_p13), %v3180_v11 }
 0x83a   : > { %3187 = sbr.rel (%p3799_p13) target bundleno = 2114 (0x842), region = 60 }
 0x83c   : > { %v4073_v28 = vpop.eup %4072 }
 0x83d   : > { %v3173_v29 = vmul.f32 %v4073_v28, %v3168_v1 }
 0x83f   : > { %v3179_v31 = vsel %vm3178_vm8, %v3173_v29, %v2870_v36 }
 0x840   : > { %3181 = vst [vmem:[#allocation5 + $0x38] sm:$0xff] %v3179_v31  ;;  %3182 = vst [vmem:[#allocation3] sm:$0xff] %v3179_v31 }
 0x841   : > { %3188 = vst [vmem:[#allocation6] sm:$0xff] %v3179_v31 }
 0x842 PF: > { %v4074_v33 = vld [vmem:[%s5274_s6 + $0x4] ss:$8 sps:$4 sm:$0xff]   ;;  %v5318_v43 = vmov 0   ;;  %v4076_v44 = vld [vmem:[%s5274_s6] ss:$8 sps:$4 sm:$0xff]   ;;  %v3190_v2 = vld [vmem:[#allocation5] sm:$0xff] }
 0x843   : > { %3342 = vmatprep.mubr.bf16.mxu0 %v5318_v43  ;;  %3310 = vmatprep.subr.bf16.mxu0 %v4074_v33  ;;  %v4077_v45 = vld [vmem:[%s5274_s6 + $0x14] ss:$8 sps:$4 sm:$0xff]   ;;  %v4079_v46 = vld [vmem:[%s5274_s6 + $0x10] ss:$8 sps:$4 sm:$0xff]   ;;  %v4080_v47 = vld [vmem:[%s5274_s6 + $0x24] ss:$8 sps:$4 sm:$0xff]  }
 0x844   : > { %3311 = vmatpush1.bf16.msra.mxu0 %v4076_v44  ;;  %v4082_v48 = vld [vmem:[%s5274_s6 + $0x20] ss:$8 sps:$4 sm:$0xff]   ;;  %v4083_v49 = vld [vmem:[%s5274_s6 + $0x34] ss:$8 sps:$4 sm:$0xff]   ;;  %v4085_v50 = vld [vmem:[%s5274_s6 + $0x30] ss:$8 sps:$4 sm:$0xff]  }
 0x845   : > { %3312 = vmatprep.subr.bf16.mxu0 %v4077_v45  ;;  %v4086_v23 = vld [vmem:[%s5274_s6 + $0x44] ss:$8 sps:$4 sm:$0xff]   ;;  %v4088_v51 = vld [vmem:[%s5274_s6 + $0x40] ss:$8 sps:$4 sm:$0xff]   ;;  %v4089_v52 = vld [vmem:[%s5274_s6 + $0x54] ss:$8 sps:$4 sm:$0xff]  }
 0x846   : > { %v4091_v53 = vld [vmem:[%s5274_s6 + $0x50] ss:$8 sps:$4 sm:$0xff]   ;;  %v4092_v54 = vld [vmem:[%s5274_s6 + $0x64] ss:$8 sps:$4 sm:$0xff]   ;;  %v4094_v25 = vld [vmem:[%s5274_s6 + $0x60] ss:$8 sps:$4 sm:$0xff]  }
 0x847   : > { %v4095_v55 = vld [vmem:[%s5274_s6 + $0x74] ss:$8 sps:$4 sm:$0xff]   ;;  %v4097_v56 = vld [vmem:[%s5274_s6 + $0x70] ss:$8 sps:$4 sm:$0xff]   ;;  %v3192_v59 = vld [vmem:[#allocation5 + $0x10] sm:$0xff]  ;;  %p3831_p0 = scmp.eq.s32.totalorder %s4230_s14, 1 }
 0x848   : > { %3313 = vmatpush1.bf16.msra.mxu0 %v4079_v46  ;;  %v3191_v13 = vld [vmem:[#allocation5 + $0x8] sm:$0xff]  ;;  %v3193_v40 = vld [vmem:[#allocation5 + $0x18] sm:$0xff]  ;;  %v3194_v35 = vld [vmem:[#allocation5 + $0x20] sm:$0xff]  ;;  %s4167_s11 = smov [#allocation6]   ;;  %s4168_s15 = smov [#allocation8]  }
 0x849   : > { %3314 = vmatprep.subr.bf16.mxu0 %v4080_v47  ;;  %v3198_v60 = vpack.c.bf16 %v3191_v13, %v3190_v2  ;;  %v3199_v32 = vpack.c.bf16 %v3193_v40, %v3192_v59  ;;  %v3195_v10 = vld [vmem:[#allocation5 + $0x28] sm:$0xff]  ;;  %v3196_v8 = vld [vmem:[#allocation5 + $0x30] sm:$0xff]  ;;  %v3197_v36 = vld [vmem:[#allocation5 + $0x38] sm:$0xff]  ;;  %s3412_s12 = sshll.u32 %s4167_s11, 4  ;;  %s3423_s16 = sshll.u32 %s4168_s15, 4  ;;  %s3413_s12 = int_to_ptr.vmem [resolvable:$true] %s3412_s12  ;;  %s3424_s16 = int_to_ptr.vmem [resolvable:$true] %s3423_s16 }
 0x84a   : > { %v3200_v41 = vpack.c.bf16 %v3195_v10, %v3194_v35  ;;  %v3201_v37 = vpack.c.bf16 %v3197_v36, %v3196_v8  ;;  %s4098_s17 = scalar_lea.vmem %s3413_s12, 128  ;;  %p4105_p4 = scmp.lt.s32.totalorder %s3413_s12, %s3413_s12 }
 0x84b   : > { %p4099_p1 = scmp.ne.s32.totalorder %s3413_s12, %s4098_s17  ;;  %p4106_p5 = scmp.lt.s32.totalorder %s4098_s17, %s4098_s17 }
 0x84c   : > { %3315 = vmatpush1.bf16.msra.mxu0 %v4082_v48 }
 0x84d   : > { %3316 = vmatprep.subr.bf16.mxu0 %v4083_v49  ;;  %p4100_p2 = pnand %p4099_p1, %p3831_p0  ;;  %p4107_p6 = por %p4106_p5, %p4105_p4 }
 0x84f   : > { %p4101_p3 = pneg %p4100_p2 }
 0x850   : > { %3317 = vmatpush1.bf16.msra.mxu0 %v4085_v50 }
 0x851   : > { %3318 = vmatprep.subr.bf16.mxu0 %v4086_v23  ;;  %p4108_p7 = pnand %p4107_p6, %p4101_p3 }
 0x854   : > { %3319 = vmatpush1.bf16.msra.mxu0 %v4088_v51 }
 0x855   : > { %3320 = vmatprep.subr.bf16.mxu0 %v4089_v52 }
 0x858   : > { %3321 = vmatpush1.bf16.msra.mxu0 %v4091_v53 }
 0x859   : > { %3322 = vmatprep.subr.bf16.mxu0 %v4092_v54 }
 0x85c   : > { %3323 = vmatpush1.bf16.msra.mxu0 %v4094_v25 }
 0x85d   : > { %3324 = vmatprep.subr.bf16.mxu0 %v4095_v55 }
 0x860   : > { %3325 = vmatpush1.bf16.msra.mxu0 %v4097_v56 }
 0x863   : > { %3343 = vmatmul.mubr.bf16.vlgmr.msra.gmra.mrb[44].mxu0 %v3198_v60 }
 0x864   : > { %3352 = vmatprep.mubr.bf16.mxu0 %v5318_v43 }
 0x86b   : > { %3353 = vmatmul.mubr.bf16.gmra.mrb[48].mxu0 %v3199_v32 }
 0x86c   : > { %3362 = vmatprep.mubr.bf16.mxu0 %v5318_v43 }
 0x873   : > { %3363 = vmatmul.mubr.bf16.gmra.mrb[52].mxu0 %v3200_v41 }
 0x874   : > { %3372 = vmatprep.mubr.bf16.mxu0 %v5318_v43 }
 0x87b   : > { %3373 = vmatmul.mubr.bf16.gmra.mrb[56].mxu0 %v3201_v37 }
 0x87c   : > { %4111 = shalt.err (!%p4108_p7)
}
 0x87d   : > { %s4112_s20 = scalar_lea.hbm %s5276_s8, 128 }
 0x87e   : > { %p4113_p8 = scmp.ne.s32.totalorder %s5276_s8, %s4112_s20  ;;  %p4118_p11 = scmp.lt.u32.totalorder %s4112_s20, %s5276_s8 }
 0x880   : > { %p4114_p9 = pnand %p4113_p8, %p3831_p0 }
 0x882   : > { %p4115_p10 = pneg %p4114_p9 }
 0x884   : > { %p4120_p12 = pnand %p4118_p11, %p4115_p10 }
 0x886   : > { %4123 = shalt.err (!%p4120_p12)
}
 0x887   : > { %3824 = dma.vmem_to_hbm [thread:$0]  (%p3831_p0), %s3413_s12, 128, %s5276_s8, [#allocation7]  }
 0x888   : > { %s4124_s29 = scalar_lea.vmem %s3424_s16, 128  ;;  %p4131_p3 = scmp.lt.s32.totalorder %s3424_s16, %s3424_s16 }
 0x889   : > { %p4125_p13 = scmp.ne.s32.totalorder %s3424_s16, %s4124_s29  ;;  %p4132_p4 = scmp.lt.s32.totalorder %s4124_s29, %s4124_s29 }
 0x88b   : > { %p4126_p1 = pnand %p4125_p13, %p3831_p0  ;;  %p4133_p5 = por %p4132_p4, %p4131_p3 }
 0x88d   : > { %p4127_p2 = pneg %p4126_p1 }
 0x88f   : > { %p4134_p6 = pnand %p4133_p5, %p4127_p2 }
 0x891   : > { %4137 = shalt.err (!%p4134_p6)
}
 0x892   : > { %s4138_s11 = scalar_lea.hbm %s5277_s9, 128 }
 0x893   : > { %p4139_p7 = scmp.ne.s32.totalorder %s5277_s9, %s4138_s11  ;;  %p4144_p10 = scmp.lt.u32.totalorder %s4138_s11, %s5277_s9 }
 0x895   : > { %p4140_p8 = pnand %p4139_p7, %p3831_p0 }
 0x897   : > { %p4141_p9 = pneg %p4140_p8 }
 0x899   : > { %p4146_p11 = pnand %p4144_p10, %p4141_p9 }
 0x89b   : > { %4149 = shalt.err (!%p4146_p11)
}
 0x89c   : > { %3826 = dma.vmem_to_hbm [thread:$0]  (%p3831_p0), %s3424_s16, 128, %s5277_s9, [#allocation9]   ;;  %v3218_v18 = vld [vmem:[%s5275_s7] sm:$0x3] }
 0x89d   : > { %v5319_v38 = vld [vmem:[#allocation12_spill] sm:$0xff] }
 0x89e   : > { %v5320_v3 = vsub.s32 0, %v5319_v38  ;;  %v5321_v0 = vsub.s32 1, %v5319_v38 }
 0x8a0   : > { %v3223_v6 = vrot.slane %v3218_v18, %v5320_v3  ;;  %v3227_v57 = vrot.slane %v3218_v18, %v5321_v0 }
 0x936   : > { %v3344_v39 = vpop.f32.mrb[44].mxu0 }
 0x937   : > { %v3345_v5 = vadd.f32 %v3344_v39, %v3223_v6  ;;  %v3346_v61 = vpop.f32.mrb[45].mxu0 }
 0x938   : > { %v3347_v27 = vadd.f32 %v3346_v61, %v3227_v57  ;;  %v3348_v4 = vpop.f32.mrb[46].mxu0 }
 0x939   : > { %3383 = vst [vmem:[%s4247_s24] sm:$0xff] %v3345_v5  ;;  %v3349_v30 = vadd.f32 %v3348_v4, %v3223_v6  ;;  %v3350_v58 = vpop.f32.mrb[47].mxu0 }
 0x93a   : > { %3384 = vst [vmem:[%s4247_s24 + $0x8] sm:$0xff] %v3347_v27  ;;  %v3351_v9 = vadd.f32 %v3350_v58, %v3227_v57 }
 0x93b   : > { %3385 = vst [vmem:[%s4247_s24 + $0x10] sm:$0xff] %v3349_v30 }
 0x93c   : > { %3386 = vst [vmem:[%s4247_s24 + $0x18] sm:$0xff] %v3351_v9 }
 0x93e   : > { %v3354_v7 = vpop.f32.mrb[48].mxu0 }
 0x93f   : > { %v3355_v22 = vadd.f32 %v3354_v7, %v3223_v6  ;;  %v3356_v14 = vpop.f32.mrb[49].mxu0 }
 0x940   : > { %v3357_v34 = vadd.f32 %v3356_v14, %v3227_v57  ;;  %v3358_v20 = vpop.f32.mrb[50].mxu0 }
 0x941   : > { %3387 = vst [vmem:[%s4247_s24 + $0x20] sm:$0xff] %v3355_v22  ;;  %v3359_v42 = vadd.f32 %v3358_v20, %v3223_v6  ;;  %v3360_v12 = vpop.f32.mrb[51].mxu0 }
 0x942   : > { %3388 = vst [vmem:[%s4247_s24 + $0x28] sm:$0xff] %v3357_v34  ;;  %v3361_v17 = vadd.f32 %v3360_v12, %v3227_v57 }
 0x943   : > { %3389 = vst [vmem:[%s4247_s24 + $0x30] sm:$0xff] %v3359_v42 }
 0x944   : > { %3390 = vst [vmem:[%s4247_s24 + $0x38] sm:$0xff] %v3361_v17 }
 0x946   : > { %v3364_v15 = vpop.f32.mrb[52].mxu0 }
 0x947   : > { %v3365_v16 = vadd.f32 %v3364_v15, %v3223_v6  ;;  %v3366_v19 = vpop.f32.mrb[53].mxu0 }
 0x948   : > { %v3367_v21 = vadd.f32 %v3366_v19, %v3227_v57  ;;  %v3368_v24 = vpop.f32.mrb[54].mxu0 }
 0x949   : > { %3391 = vst [vmem:[%s4247_s24 + $0x40] sm:$0xff] %v3365_v16  ;;  %v3369_v26 = vadd.f32 %v3368_v24, %v3223_v6  ;;  %v3370_v11 = vpop.f32.mrb[55].mxu0 }
 0x94a   : > { %3392 = vst [vmem:[%s4247_s24 + $0x48] sm:$0xff] %v3367_v21  ;;  %v3371_v62 = vadd.f32 %v3370_v11, %v3227_v57 }
 0x94b   : > { %3393 = vst [vmem:[%s4247_s24 + $0x50] sm:$0xff] %v3369_v26 }
 0x94c   : > { %3394 = vst [vmem:[%s4247_s24 + $0x58] sm:$0xff] %v3371_v62 }
 0x94e   : > { %v3374_v63 = vpop.f32.mrb[56].mxu0 }
 0x94f   : > { %v3375_v1 = vadd.f32 %v3374_v63, %v3223_v6  ;;  %v3376_v28 = vpop.f32.mrb[57].mxu0 }
 0x950   : > { %v3377_v29 = vadd.f32 %v3376_v28, %v3227_v57  ;;  %v3378_v31 = vpop.f32.mrb[58].mxu0 }
 0x951   : > { %3395 = vst [vmem:[%s4247_s24 + $0x60] sm:$0xff] %v3375_v1  ;;  %v3379_v33 = vadd.f32 %v3378_v31, %v3223_v6  ;;  %v3380_v43 = vpop.f32.mrb[59].mxu0 }
 0x952   : > { %3396 = vst [vmem:[%s4247_s24 + $0x68] sm:$0xff] %v3377_v29  ;;  %v3381_v44 = vadd.f32 %v3380_v43, %v3227_v57 }
 0x953   : > { %3397 = vst [vmem:[%s4247_s24 + $0x70] sm:$0xff] %v3379_v33 }
 0x954   : > { %3398 = vst [vmem:[%s4247_s24 + $0x78] sm:$0xff] %v3381_v44 }
 0x955   : > { %4155 = dma.done.wait (%p3831_p0), [#allocation7], 128  }
 0x956   : > { %4157 = vsyncadd (%p3831_p0), [#allocation7], 4294967168 }
 0x957   : > { %4159 = dma.done.wait (%p3831_p0), [#allocation9], 128  }
 0x958   : > { %4161 = vsyncadd (%p3831_p0), [#allocation9], 4294967168 }
 0x959 PF: > { %s23_s13 = sadd.s32 1, %s4164_s13  }
 0x95a   : > { %p20_p12 = scmp.ge.s32.totalorder %s23_s13, 4  }
 0x95c   :  { %22 = sbr.rel (!%p20_p12) target bundleno = 2 (0x2), region = 107 }
 0x963   :  { %3453 = vsyncpa [#allocation7], 1 }
 0x964   :  { %3455 = vsyncpa [#allocation7 + $0x1], 1 }
 0x965   :  { %3456 = vsyncpa [#allocation9], 1 }

</bundles_post_ra>
